<compile_context>
chip_gen: v6e
topology: v6e:2x2x1
jax: 0.10.0
libtpu: 0.0.40
codegen_flags: <defaults>
</compile_context>

<pallas_src>
import jax
import jax.numpy as jnp
import numpy as np
from jax.experimental import pallas as pl
from jax.experimental.pallas import tpu as pltpu

_CPAD = 128  # per-tap channel padding -> all lane slices / K dims are 128-aligned


# ---------------------------------------------------------------------------
# Fused 4-layer conv kernel (one image per grid step)
# ---------------------------------------------------------------------------
def _unet_kernel(xcol_ref, w1_ref, b1_ref, w2_ref, b2_ref, w3_ref, b3_ref,
                 w4_ref, b4_ref, o_ref, pad1, pad2, pad3, col2, col3, col4):
    # xcol_ref: (HW, 128)        host-built conv1 im2col (K=36 zero-padded to 128)
    # wN_ref  : (K_N, CoutN)     fused-K weights;  bN_ref: (1, CoutN)
    # o_ref   : (HW, 3)
    # padX    : (H+2, W+2, 128)  zero-padded activation scratch
    # colX    : (HW, 9*128)      in-kernel im2col scratch
    hw = o_ref.shape[0]
    hp, wp, cpad = pad1.shape
    h, w = hp - 2, wp - 2

    def conv(lhs, w_ref, b_ref, relu):
        acc = jnp.dot(lhs, w_ref[...], preferred_element_type=jnp.float32)
        acc = acc + b_ref[...]
        return jnp.maximum(acc, 0.0) if relu else acc

    def stash(pad_ref, act):
        # Zero-pad `act` (HW, C<=128) spatially into (H+2, W+2, 128); channels
        # [C:128) stay zero and are matched by zero rows in the next weights.
        c = act.shape[-1]
        pad_ref[...] = jnp.zeros_like(pad_ref)
        pad_ref[pl.ds(1, h), pl.ds(1, w), pl.ds(0, c)] = act.reshape(h, w, c)

    def im2col(pad_ref, col_ref):
        # col[:, k*128:(k+1)*128] = shifted view for tap k; stores lane-aligned.
        for k in range(9):
            dh, dw = divmod(k, 3)
            v = pad_ref[pl.ds(dh, h), pl.ds(dw, w), :]        # (h, w, 128)
            col_ref[:, pl.ds(k * cpad, cpad)] = v.reshape(hw, cpad)

    a1 = conv(xcol_ref[...], w1_ref, b1_ref, relu=True)       # (HW, 64)
    stash(pad1, a1)
    im2col(pad1, col2)
    a2 = conv(col2[...], w2_ref, b2_ref, relu=True)           # (HW, 128)
    stash(pad2, a2)
    im2col(pad2, col3)
    a3 = conv(col3[...], w3_ref, b3_ref, relu=True)           # (HW, 64)
    stash(pad3, a3)
    im2col(pad3, col4)
    # TODO(synk): final result is stored NHWC-flat (HW, 3) and transposed to NCHW
    # by XLA outside the kernel; a lane-dense in-kernel (3, HW) store would need a
    # small 2-D transpose lowering and is skipped for robustness.
    o_ref[...] = conv(col4[...], w4_ref, b4_ref, relu=False).astype(o_ref.dtype)


# ---------------------------------------------------------------------------
# Host-side weight packing (fused-K layout, per-tap zero padding to _CPAD)
# ---------------------------------------------------------------------------
def _pack_w_tap_padded(w):
    # (Cout, Cin, 3, 3) -> (9*_CPAD, Cout); rows ordered (dh, dw, cin), each tap's
    # Cin block zero-padded to _CPAD to match the kernel's padded im2col.
    cout, cin = w.shape[0], w.shape[1]
    wk = jnp.transpose(w, (2, 3, 1, 0)).reshape(9, cin, cout)
    wk = jnp.pad(wk, ((0, 0), (0, _CPAD - cin), (0, 0)))
    return wk.reshape(9 * _CPAD, cout)


def _pack_w1(w):
    # conv1: dense (dh, dw, cin) rows (9*4 = 36), tail zero-padded to 128 to match
    # the host-built, lane-padded conv1 im2col.
    cout, cin = w.shape[0], w.shape[1]
    wk = jnp.transpose(w, (2, 3, 1, 0)).reshape(9 * cin, cout)
    return jnp.pad(wk, ((0, _CPAD - 9 * cin), (0, 0)))


# ---------------------------------------------------------------------------
# SimpleUNet forward (single fused Pallas call)
# ---------------------------------------------------------------------------
def simple_unet_forward(params, x_nchw, t):
    N, C, H, W = x_nchw.shape
    HW = H * W

    # forward() semantics: concat a constant-timestep plane onto the channels.
    t_plane = jnp.broadcast_to(
        t.reshape(N, 1, 1, 1).astype(jnp.float32), (N, 1, H, W))
    x4 = jnp.concatenate([x_nchw.astype(jnp.float32), t_plane], axis=1)  # (N,4,H,W)

    # Host-side im2col for conv1 only (tiny: N*HW*128 f32); layers 2-4 build
    # their im2col inside the kernel from VMEM-resident activations.
    x_nhwc = jnp.transpose(x4, (0, 2, 3, 1))                     # (N, H, W, 4)
    xp = jnp.pad(x_nhwc, ((0, 0), (1, 1), (1, 1), (0, 0)))
    x_col = jnp.concatenate(
        [xp[:, dh:dh + H, dw:dw + W, :] for dh in range(3) for dw in range(3)],
        axis=-1,
    ).reshape(N, HW, 9 * (C + 1))
    x_col = jnp.pad(x_col, ((0, 0), (0, 0), (0, _CPAD - 9 * (C + 1))))

    w1 = _pack_w1(params["w1"])                 # (128, 64)
    w2 = _pack_w_tap_padded(params["w2"])       # (1152, 128)
    w3 = _pack_w_tap_padded(params["w3"])       # (1152, 64)
    w4 = _pack_w_tap_padded(params["w4"])       # (1152, 3)
    b1 = params["b1"].reshape(1, -1)
    b2 = params["b2"].reshape(1, -1)
    b3 = params["b3"].reshape(1, -1)
    b4 = params["b4"].reshape(1, -1)
    c1, c2, c3, c4 = w1.shape[1], w2.shape[1], w3.shape[1], w4.shape[1]

    flops = 2 * N * HW * (w1.shape[0] * c1 + w2.shape[0] * c2
                          + w3.shape[0] * c3 + w4.shape[0] * c4)
    bytes_accessed = 4 * (x_col.size + w1.size + w2.size + w3.size + w4.size
                          + b1.size + b2.size + b3.size + b4.size + N * HW * c4)

    out = pl.pallas_call(
        _unet_kernel,
        out_shape=jax.ShapeDtypeStruct((N, HW, c4), jnp.float32),
        grid_spec=pltpu.PrefetchScalarGridSpec(
            num_scalar_prefetch=0,
            grid=(N,),
            in_specs=[
                pl.BlockSpec((None, HW, _CPAD), lambda n: (n, 0, 0)),
                pl.BlockSpec(w1.shape, lambda n: (0, 0)),
                pl.BlockSpec(b1.shape, lambda n: (0, 0)),
                pl.BlockSpec(w2.shape, lambda n: (0, 0)),
                pl.BlockSpec(b2.shape, lambda n: (0, 0)),
                pl.BlockSpec(w3.shape, lambda n: (0, 0)),
                pl.BlockSpec(b3.shape, lambda n: (0, 0)),
                pl.BlockSpec(w4.shape, lambda n: (0, 0)),
                pl.BlockSpec(b4.shape, lambda n: (0, 0)),
            ],
            out_specs=pl.BlockSpec((None, HW, c4), lambda n: (n, 0, 0)),
            scratch_shapes=[
                pltpu.VMEM((H + 2, W + 2, _CPAD), jnp.float32),   # pad1
                pltpu.VMEM((H + 2, W + 2, _CPAD), jnp.float32),   # pad2
                pltpu.VMEM((H + 2, W + 2, _CPAD), jnp.float32),   # pad3
                pltpu.VMEM((HW, 9 * _CPAD), jnp.float32),         # col2
                pltpu.VMEM((HW, 9 * _CPAD), jnp.float32),         # col3
                pltpu.VMEM((HW, 9 * _CPAD), jnp.float32),         # col4
            ],
        ),
        compiler_params=pltpu.CompilerParams(
            dimension_semantics=("parallel",),      # v7x: both TCs split the batch
            vmem_limit_bytes=32 * 1024 * 1024,
        ),
        cost_estimate=pl.CostEstimate(
            flops=flops, transcendentals=0, bytes_accessed=bytes_accessed),
    )(x_col, w1, b1, w2, b2, w3, b3, w4, b4)

    out = out.reshape(N, H, W, c4)
    return jnp.transpose(out, (0, 3, 1, 2))         # NHWC -> NCHW


# ---------------------------------------------------------------------------
# Deterministic parameter init (PyTorch Conv2d default: U(-1/sqrt(fan_in), ...))
# ---------------------------------------------------------------------------
def init_params(key):
    def conv_init(k, cin, cout):
        kw, kb = jax.random.split(k)
        bound = 1.0 / float(np.sqrt(cin * 3 * 3))
        w = jax.random.uniform(kw, (cout, cin, 3, 3), jnp.float32, -bound, bound)
        b = jax.random.uniform(kb, (cout,), jnp.float32, -bound, bound)
        return w, b

    k1, k2, k3, k4 = jax.random.split(key, 4)
    w1, b1 = conv_init(k1, 4, 64)    # 3 image channels + 1 timestep channel
    w2, b2 = conv_init(k2, 64, 128)
    w3, b3 = conv_init(k3, 128, 64)
    w4, b4 = conv_init(k4, 64, 3)
    return dict(w1=w1, b1=b1, w2=w2, b2=b2, w3=w3, b3=b3, w4=w4, b4=b4)


# ---------------------------------------------------------------------------
# Pure-JAX reference (for correctness check)
# ---------------------------------------------------------------------------
def _ref_forward(params, x_nchw, t):
    N, C, H, W = x_nchw.shape
    t_emb = t.reshape(N, 1, 1, 1).astype(jnp.float32)
    x = jnp.concatenate(
        [x_nchw.astype(jnp.float32), jnp.broadcast_to(t_emb, (N, 1, H, W))], axis=1
    )

    def conv(h, w, b):
        y = jax.lax.conv_general_dilated(
            h, w, (1, 1), "SAME", dimension_numbers=("NCHW", "OIHW", "NCHW")
        )
        return y + b.reshape(1, -1, 1, 1)

    h = jax.nn.relu(conv(x, params["w1"], params["b1"]))
    h = jax.nn.relu(conv(h, params["w2"], params["b2"]))
    h = jax.nn.relu(conv(h, params["w3"], params["b3"]))
    return conv(h, params["w4"], params["b4"])


if __name__ == "__main__":
    key = jax.random.PRNGKey(0)
    kp, kx, kt = jax.random.split(key, 3)

    params = init_params(kp)
    x = jax.random.normal(kx, (2, 3, 16, 16), jnp.float32)       # NCHW image
    t = jax.random.randint(kt, (2,), 0, 10).astype(jnp.int32)    # timesteps

    out = jax.jit(simple_unet_forward)(params, x, t)
    out = jax.block_until_ready(out)
    assert out.shape == (2, 3, 16, 16) and out.dtype == jnp.float32

    ref = jax.block_until_ready(_ref_forward(params, x, t))
    np.testing.assert_allclose(np.asarray(out), np.asarray(ref), rtol=2e-4, atol=2e-4)

    print("KERNEL_OK")
</pallas_src>

<mosaic_0001>
module attributes {stable_mosaic.version = 11 : i64} {
  func.func @_unet_kernel(%arg0: i32, %arg1: memref<1x256x128xf32, #tpu.memory_space<vmem>>, %arg2: memref<128x64xf32, #tpu.memory_space<vmem>>, %arg3: memref<1x64xf32, #tpu.memory_space<vmem>>, %arg4: memref<1152x128xf32, #tpu.memory_space<vmem>>, %arg5: memref<1x128xf32, #tpu.memory_space<vmem>>, %arg6: memref<1152x64xf32, #tpu.memory_space<vmem>>, %arg7: memref<1x64xf32, #tpu.memory_space<vmem>>, %arg8: memref<1152x3xf32, #tpu.memory_space<vmem>>, %arg9: memref<1x3xf32, #tpu.memory_space<vmem>>, %arg10: memref<1x256x3xf32, #tpu.memory_space<vmem>>, %arg11: memref<18x18x128xf32, #tpu.memory_space<vmem>>, %arg12: memref<18x18x128xf32, #tpu.memory_space<vmem>>, %arg13: memref<18x18x128xf32, #tpu.memory_space<vmem>>, %arg14: memref<256x1152xf32, #tpu.memory_space<vmem>>, %arg15: memref<256x1152xf32, #tpu.memory_space<vmem>>, %arg16: memref<256x1152xf32, #tpu.memory_space<vmem>>) attributes {dimension_semantics = [#tpu.dimension_semantics<parallel>], iteration_bounds = array<i64: 2>, scalar_prefetch = 0 : i64, scratch_operands = 6 : i64, tpu.core_type = #tpu.core_type<tc>, window_params = [{transform_indices = @transform_0, window_bounds = array<i64: 1, 256, 128>}, {pipeline_mode = #tpu.pipeline_mode<synchronous>, transform_indices = @transform_1, window_bounds = array<i64: 128, 64>}, {pipeline_mode = #tpu.pipeline_mode<synchronous>, transform_indices = @transform_2, window_bounds = array<i64: 1, 64>}, {pipeline_mode = #tpu.pipeline_mode<synchronous>, transform_indices = @transform_3, window_bounds = array<i64: 1152, 128>}, {pipeline_mode = #tpu.pipeline_mode<synchronous>, transform_indices = @transform_4, window_bounds = array<i64: 1, 128>}, {pipeline_mode = #tpu.pipeline_mode<synchronous>, transform_indices = @transform_5, window_bounds = array<i64: 1152, 64>}, {pipeline_mode = #tpu.pipeline_mode<synchronous>, transform_indices = @transform_6, window_bounds = array<i64: 1, 64>}, {pipeline_mode = #tpu.pipeline_mode<synchronous>, transform_indices = @transform_7, window_bounds = array<i64: 1152, 3>}, {pipeline_mode = #tpu.pipeline_mode<synchronous>, transform_indices = @transform_8, window_bounds = array<i64: 1, 3>}, {transform_indices = @transform_9, window_bounds = array<i64: 1, 256, 3>}]} {
    %c0 = arith.constant 0 : index
    %c0_0 = arith.constant 0 : index
    %c0_1 = arith.constant 0 : index
    %0 = vector.load %arg1[%c0, %c0_0, %c0_1] : memref<1x256x128xf32, #tpu.memory_space<vmem>>, vector<1x256x128xf32>
    %1 = vector.shape_cast %0 : vector<1x256x128xf32> to vector<256x128xf32>
    %c0_2 = arith.constant 0 : index
    %c0_3 = arith.constant 0 : index
    %2 = vector.load %arg2[%c0_2, %c0_3] : memref<128x64xf32, #tpu.memory_space<vmem>>, vector<128x64xf32>
    %cst = arith.constant dense<0.000000e+00> : vector<256x64xf32>
    %3 = tpu.matmul %1, %2, %cst {dimension_numbers = #tpu.dot_dimension_numbers<[1], [0], [0], [1], [0, 0, 1, 1], [], []>} : vector<256x128xf32>, vector<128x64xf32>, vector<256x64xf32> -> vector<256x64xf32>
    %c0_4 = arith.constant 0 : index
    %c0_5 = arith.constant 0 : index
    %4 = vector.load %arg3[%c0_4, %c0_5] : memref<1x64xf32, #tpu.memory_space<vmem>>, vector<1x64xf32>
    %5 = vector.broadcast %4 : vector<1x64xf32> to vector<256x64xf32>
    %6 = arith.addf %3, %5 : vector<256x64xf32>
    %cst_6 = arith.constant 0.000000e+00 : f32
    %7 = vector.broadcast %cst_6 : f32 to vector<256x64xf32>
    %8 = arith.maximumf %6, %7 : vector<256x64xf32>
    %cst_7 = arith.constant 0.000000e+00 : f32
    %9 = vector.broadcast %cst_7 : f32 to vector<18x18x128xf32>
    %c0_8 = arith.constant 0 : index
    %c0_9 = arith.constant 0 : index
    %c0_10 = arith.constant 0 : index
    %10 = vector.load %arg11[%c0_8, %c0_9, %c0_10] : memref<18x18x128xf32, #tpu.memory_space<vmem>>, vector<18x18x128xf32>
    tpu.vector_store %arg11[%c0_8, %c0_9, %c0_10], %9 {strides = array<i32>} : memref<18x18x128xf32, #tpu.memory_space<vmem>>, vector<18x18x128xf32>,
    %11 = vector.shape_cast %8 : vector<256x64xf32> to vector<16x16x64xf32>
    %c1 = arith.constant 1 : index
    %c1_11 = arith.constant 1 : index
    %c0_12 = arith.constant 0 : index
    %12 = vector.load %arg11[%c1, %c1_11, %c0_12] : memref<18x18x128xf32, #tpu.memory_space<vmem>>, vector<16x16x64xf32>
    tpu.vector_store %arg11[%c1, %c1_11, %c0_12], %11 {strides = array<i32>} : memref<18x18x128xf32, #tpu.memory_space<vmem>>, vector<16x16x64xf32>,
    %c0_13 = arith.constant 0 : index
    %c0_14 = arith.constant 0 : index
    %c0_15 = arith.constant 0 : index
    %13 = vector.load %arg11[%c0_13, %c0_14, %c0_15] : memref<18x18x128xf32, #tpu.memory_space<vmem>>, vector<16x16x128xf32>
    %14 = vector.shape_cast %13 : vector<16x16x128xf32> to vector<256x128xf32>
    %c0_16 = arith.constant 0 : index
    %c0_17 = arith.constant 0 : index
    %15 = vector.load %arg14[%c0_16, %c0_17] : memref<256x1152xf32, #tpu.memory_space<vmem>>, vector<256x128xf32>
    tpu.vector_store %arg14[%c0_16, %c0_17], %14 {strides = array<i32>} : memref<256x1152xf32, #tpu.memory_space<vmem>>, vector<256x128xf32>,
    %c0_18 = arith.constant 0 : index
    %c1_19 = arith.constant 1 : index
    %c0_20 = arith.constant 0 : index
    %16 = vector.load %arg11[%c0_18, %c1_19, %c0_20] : memref<18x18x128xf32, #tpu.memory_space<vmem>>, vector<16x16x128xf32>
    %17 = vector.shape_cast %16 : vector<16x16x128xf32> to vector<256x128xf32>
    %c0_21 = arith.constant 0 : index
    %c128 = arith.constant 128 : index
    %18 = vector.load %arg14[%c0_21, %c128] : memref<256x1152xf32, #tpu.memory_space<vmem>>, vector<256x128xf32>
    tpu.vector_store %arg14[%c0_21, %c128], %17 {strides = array<i32>} : memref<256x1152xf32, #tpu.memory_space<vmem>>, vector<256x128xf32>,
    %c0_22 = arith.constant 0 : index
    %c2 = arith.constant 2 : index
    %c0_23 = arith.constant 0 : index
    %19 = vector.load %arg11[%c0_22, %c2, %c0_23] : memref<18x18x128xf32, #tpu.memory_space<vmem>>, vector<16x16x128xf32>
    %20 = vector.shape_cast %19 : vector<16x16x128xf32> to vector<256x128xf32>
    %c0_24 = arith.constant 0 : index
    %c256 = arith.constant 256 : index
    %21 = vector.load %arg14[%c0_24, %c256] : memref<256x1152xf32, #tpu.memory_space<vmem>>, vector<256x128xf32>
    tpu.vector_store %arg14[%c0_24, %c256], %20 {strides = array<i32>} : memref<256x1152xf32, #tpu.memory_space<vmem>>, vector<256x128xf32>,
    %c1_25 = arith.constant 1 : index
    %c0_26 = arith.constant 0 : index
    %c0_27 = arith.constant 0 : index
    %22 = vector.load %arg11[%c1_25, %c0_26, %c0_27] : memref<18x18x128xf32, #tpu.memory_space<vmem>>, vector<16x16x128xf32>
    %23 = vector.shape_cast %22 : vector<16x16x128xf32> to vector<256x128xf32>
    %c0_28 = arith.constant 0 : index
    %c384 = arith.constant 384 : index
    %24 = vector.load %arg14[%c0_28, %c384] : memref<256x1152xf32, #tpu.memory_space<vmem>>, vector<256x128xf32>
    tpu.vector_store %arg14[%c0_28, %c384], %23 {strides = array<i32>} : memref<256x1152xf32, #tpu.memory_space<vmem>>, vector<256x128xf32>,
    %c1_29 = arith.constant 1 : index
    %c1_30 = arith.constant 1 : index
    %c0_31 = arith.constant 0 : index
    %25 = vector.load %arg11[%c1_29, %c1_30, %c0_31] : memref<18x18x128xf32, #tpu.memory_space<vmem>>, vector<16x16x128xf32>
    %26 = vector.shape_cast %25 : vector<16x16x128xf32> to vector<256x128xf32>
    %c0_32 = arith.constant 0 : index
    %c512 = arith.constant 512 : index
    %27 = vector.load %arg14[%c0_32, %c512] : memref<256x1152xf32, #tpu.memory_space<vmem>>, vector<256x128xf32>
    tpu.vector_store %arg14[%c0_32, %c512], %26 {strides = array<i32>} : memref<256x1152xf32, #tpu.memory_space<vmem>>, vector<256x128xf32>,
    %c1_33 = arith.constant 1 : index
    %c2_34 = arith.constant 2 : index
    %c0_35 = arith.constant 0 : index
    %28 = vector.load %arg11[%c1_33, %c2_34, %c0_35] : memref<18x18x128xf32, #tpu.memory_space<vmem>>, vector<16x16x128xf32>
    %29 = vector.shape_cast %28 : vector<16x16x128xf32> to vector<256x128xf32>
    %c0_36 = arith.constant 0 : index
    %c640 = arith.constant 640 : index
    %30 = vector.load %arg14[%c0_36, %c640] : memref<256x1152xf32, #tpu.memory_space<vmem>>, vector<256x128xf32>
    tpu.vector_store %arg14[%c0_36, %c640], %29 {strides = array<i32>} : memref<256x1152xf32, #tpu.memory_space<vmem>>, vector<256x128xf32>,
    %c2_37 = arith.constant 2 : index
    %c0_38 = arith.constant 0 : index
    %c0_39 = arith.constant 0 : index
    %31 = vector.load %arg11[%c2_37, %c0_38, %c0_39] : memref<18x18x128xf32, #tpu.memory_space<vmem>>, vector<16x16x128xf32>
    %32 = vector.shape_cast %31 : vector<16x16x128xf32> to vector<256x128xf32>
    %c0_40 = arith.constant 0 : index
    %c768 = arith.constant 768 : index
    %33 = vector.load %arg14[%c0_40, %c768] : memref<256x1152xf32, #tpu.memory_space<vmem>>, vector<256x128xf32>
    tpu.vector_store %arg14[%c0_40, %c768], %32 {strides = array<i32>} : memref<256x1152xf32, #tpu.memory_space<vmem>>, vector<256x128xf32>,
    %c2_41 = arith.constant 2 : index
    %c1_42 = arith.constant 1 : index
    %c0_43 = arith.constant 0 : index
    %34 = vector.load %arg11[%c2_41, %c1_42, %c0_43] : memref<18x18x128xf32, #tpu.memory_space<vmem>>, vector<16x16x128xf32>
    %35 = vector.shape_cast %34 : vector<16x16x128xf32> to vector<256x128xf32>
    %c0_44 = arith.constant 0 : index
    %c896 = arith.constant 896 : index
    %36 = vector.load %arg14[%c0_44, %c896] : memref<256x1152xf32, #tpu.memory_space<vmem>>, vector<256x128xf32>
    tpu.vector_store %arg14[%c0_44, %c896], %35 {strides = array<i32>} : memref<256x1152xf32, #tpu.memory_space<vmem>>, vector<256x128xf32>,
    %c2_45 = arith.constant 2 : index
    %c2_46 = arith.constant 2 : index
    %c0_47 = arith.constant 0 : index
    %37 = vector.load %arg11[%c2_45, %c2_46, %c0_47] : memref<18x18x128xf32, #tpu.memory_space<vmem>>, vector<16x16x128xf32>
    %38 = vector.shape_cast %37 : vector<16x16x128xf32> to vector<256x128xf32>
    %c0_48 = arith.constant 0 : index
    %c1024 = arith.constant 1024 : index
    %39 = vector.load %arg14[%c0_48, %c1024] : memref<256x1152xf32, #tpu.memory_space<vmem>>, vector<256x128xf32>
    tpu.vector_store %arg14[%c0_48, %c1024], %38 {strides = array<i32>} : memref<256x1152xf32, #tpu.memory_space<vmem>>, vector<256x128xf32>,
    %c0_49 = arith.constant 0 : index
    %c0_50 = arith.constant 0 : index
    %40 = vector.load %arg14[%c0_49, %c0_50] : memref<256x1152xf32, #tpu.memory_space<vmem>>, vector<256x1152xf32>
    %c0_51 = arith.constant 0 : index
    %c0_52 = arith.constant 0 : index
    %41 = vector.load %arg4[%c0_51, %c0_52] : memref<1152x128xf32, #tpu.memory_space<vmem>>, vector<1152x128xf32>
    %cst_53 = arith.constant dense<0.000000e+00> : vector<256x128xf32>
    %42 = tpu.matmul %40, %41, %cst_53 {dimension_numbers = #tpu.dot_dimension_numbers<[1], [0], [0], [1], [0, 0, 1, 1], [], []>} : vector<256x1152xf32>, vector<1152x128xf32>, vector<256x128xf32> -> vector<256x128xf32>
    %c0_54 = arith.constant 0 : index
    %c0_55 = arith.constant 0 : index
    %43 = vector.load %arg5[%c0_54, %c0_55] : memref<1x128xf32, #tpu.memory_space<vmem>>, vector<1x128xf32>
    %44 = vector.broadcast %43 : vector<1x128xf32> to vector<256x128xf32>
    %45 = arith.addf %42, %44 : vector<256x128xf32>
    %cst_56 = arith.constant 0.000000e+00 : f32
    %46 = vector.broadcast %cst_56 : f32 to vector<256x128xf32>
    %47 = arith.maximumf %45, %46 : vector<256x128xf32>
    %cst_57 = arith.constant 0.000000e+00 : f32
    %48 = vector.broadcast %cst_57 : f32 to vector<18x18x128xf32>
    %c0_58 = arith.constant 0 : index
    %c0_59 = arith.constant 0 : index
    %c0_60 = arith.constant 0 : index
    %49 = vector.load %arg12[%c0_58, %c0_59, %c0_60] : memref<18x18x128xf32, #tpu.memory_space<vmem>>, vector<18x18x128xf32>
    tpu.vector_store %arg12[%c0_58, %c0_59, %c0_60], %48 {strides = array<i32>} : memref<18x18x128xf32, #tpu.memory_space<vmem>>, vector<18x18x128xf32>,
    %50 = vector.shape_cast %47 : vector<256x128xf32> to vector<16x16x128xf32>
    %c1_61 = arith.constant 1 : index
    %c1_62 = arith.constant 1 : index
    %c0_63 = arith.constant 0 : index
    %51 = vector.load %arg12[%c1_61, %c1_62, %c0_63] : memref<18x18x128xf32, #tpu.memory_space<vmem>>, vector<16x16x128xf32>
    tpu.vector_store %arg12[%c1_61, %c1_62, %c0_63], %50 {strides = array<i32>} : memref<18x18x128xf32, #tpu.memory_space<vmem>>, vector<16x16x128xf32>,
    %c0_64 = arith.constant 0 : index
    %c0_65 = arith.constant 0 : index
    %c0_66 = arith.constant 0 : index
    %52 = vector.load %arg12[%c0_64, %c0_65, %c0_66] : memref<18x18x128xf32, #tpu.memory_space<vmem>>, vector<16x16x128xf32>
    %53 = vector.shape_cast %52 : vector<16x16x128xf32> to vector<256x128xf32>
    %c0_67 = arith.constant 0 : index
    %c0_68 = arith.constant 0 : index
    %54 = vector.load %arg15[%c0_67, %c0_68] : memref<256x1152xf32, #tpu.memory_space<vmem>>, vector<256x128xf32>
    tpu.vector_store %arg15[%c0_67, %c0_68], %53 {strides = array<i32>} : memref<256x1152xf32, #tpu.memory_space<vmem>>, vector<256x128xf32>,
    %c0_69 = arith.constant 0 : index
    %c1_70 = arith.constant 1 : index
    %c0_71 = arith.constant 0 : index
    %55 = vector.load %arg12[%c0_69, %c1_70, %c0_71] : memref<18x18x128xf32, #tpu.memory_space<vmem>>, vector<16x16x128xf32>
    %56 = vector.shape_cast %55 : vector<16x16x128xf32> to vector<256x128xf32>
    %c0_72 = arith.constant 0 : index
    %c128_73 = arith.constant 128 : index
    %57 = vector.load %arg15[%c0_72, %c128_73] : memref<256x1152xf32, #tpu.memory_space<vmem>>, vector<256x128xf32>
    tpu.vector_store %arg15[%c0_72, %c128_73], %56 {strides = array<i32>} : memref<256x1152xf32, #tpu.memory_space<vmem>>, vector<256x128xf32>,
    %c0_74 = arith.constant 0 : index
    %c2_75 = arith.constant 2 : index
    %c0_76 = arith.constant 0 : index
    %58 = vector.load %arg12[%c0_74, %c2_75, %c0_76] : memref<18x18x128xf32, #tpu.memory_space<vmem>>, vector<16x16x128xf32>
    %59 = vector.shape_cast %58 : vector<16x16x128xf32> to vector<256x128xf32>
    %c0_77 = arith.constant 0 : index
    %c256_78 = arith.constant 256 : index
    %60 = vector.load %arg15[%c0_77, %c256_78] : memref<256x1152xf32, #tpu.memory_space<vmem>>, vector<256x128xf32>
    tpu.vector_store %arg15[%c0_77, %c256_78], %59 {strides = array<i32>} : memref<256x1152xf32, #tpu.memory_space<vmem>>, vector<256x128xf32>,
    %c1_79 = arith.constant 1 : index
    %c0_80 = arith.constant 0 : index
    %c0_81 = arith.constant 0 : index
    %61 = vector.load %arg12[%c1_79, %c0_80, %c0_81] : memref<18x18x128xf32, #tpu.memory_space<vmem>>, vector<16x16x128xf32>
    %62 = vector.shape_cast %61 : vector<16x16x128xf32> to vector<256x128xf32>
    %c0_82 = arith.constant 0 : index
    %c384_83 = arith.constant 384 : index
    %63 = vector.load %arg15[%c0_82, %c384_83] : memref<256x1152xf32, #tpu.memory_space<vmem>>, vector<256x128xf32>
    tpu.vector_store %arg15[%c0_82, %c384_83], %62 {strides = array<i32>} : memref<256x1152xf32, #tpu.memory_space<vmem>>, vector<256x128xf32>,
    %c1_84 = arith.constant 1 : index
    %c1_85 = arith.constant 1 : index
    %c0_86 = arith.constant 0 : index
    %64 = vector.load %arg12[%c1_84, %c1_85, %c0_86] : memref<18x18x128xf32, #tpu.memory_space<vmem>>, vector<16x16x128xf32>
    %65 = vector.shape_cast %64 : vector<16x16x128xf32> to vector<256x128xf32>
    %c0_87 = arith.constant 0 : index
    %c512_88 = arith.constant 512 : index
    %66 = vector.load %arg15[%c0_87, %c512_88] : memref<256x1152xf32, #tpu.memory_space<vmem>>, vector<256x128xf32>
    tpu.vector_store %arg15[%c0_87, %c512_88], %65 {strides = array<i32>} : memref<256x1152xf32, #tpu.memory_space<vmem>>, vector<256x128xf32>,
    %c1_89 = arith.constant 1 : index
    %c2_90 = arith.constant 2 : index
    %c0_91 = arith.constant 0 : index
    %67 = vector.load %arg12[%c1_89, %c2_90, %c0_91] : memref<18x18x128xf32, #tpu.memory_space<vmem>>, vector<16x16x128xf32>
    %68 = vector.shape_cast %67 : vector<16x16x128xf32> to vector<256x128xf32>
    %c0_92 = arith.constant 0 : index
    %c640_93 = arith.constant 640 : index
    %69 = vector.load %arg15[%c0_92, %c640_93] : memref<256x1152xf32, #tpu.memory_space<vmem>>, vector<256x128xf32>
    tpu.vector_store %arg15[%c0_92, %c640_93], %68 {strides = array<i32>} : memref<256x1152xf32, #tpu.memory_space<vmem>>, vector<256x128xf32>,
    %c2_94 = arith.constant 2 : index
    %c0_95 = arith.constant 0 : index
    %c0_96 = arith.constant 0 : index
    %70 = vector.load %arg12[%c2_94, %c0_95, %c0_96] : memref<18x18x128xf32, #tpu.memory_space<vmem>>, vector<16x16x128xf32>
    %71 = vector.shape_cast %70 : vector<16x16x128xf32> to vector<256x128xf32>
    %c0_97 = arith.constant 0 : index
    %c768_98 = arith.constant 768 : index
    %72 = vector.load %arg15[%c0_97, %c768_98] : memref<256x1152xf32, #tpu.memory_space<vmem>>, vector<256x128xf32>
    tpu.vector_store %arg15[%c0_97, %c768_98], %71 {strides = array<i32>} : memref<256x1152xf32, #tpu.memory_space<vmem>>, vector<256x128xf32>,
    %c2_99 = arith.constant 2 : index
    %c1_100 = arith.constant 1 : index
    %c0_101 = arith.constant 0 : index
    %73 = vector.load %arg12[%c2_99, %c1_100, %c0_101] : memref<18x18x128xf32, #tpu.memory_space<vmem>>, vector<16x16x128xf32>
    %74 = vector.shape_cast %73 : vector<16x16x128xf32> to vector<256x128xf32>
    %c0_102 = arith.constant 0 : index
    %c896_103 = arith.constant 896 : index
    %75 = vector.load %arg15[%c0_102, %c896_103] : memref<256x1152xf32, #tpu.memory_space<vmem>>, vector<256x128xf32>
    tpu.vector_store %arg15[%c0_102, %c896_103], %74 {strides = array<i32>} : memref<256x1152xf32, #tpu.memory_space<vmem>>, vector<256x128xf32>,
    %c2_104 = arith.constant 2 : index
    %c2_105 = arith.constant 2 : index
    %c0_106 = arith.constant 0 : index
    %76 = vector.load %arg12[%c2_104, %c2_105, %c0_106] : memref<18x18x128xf32, #tpu.memory_space<vmem>>, vector<16x16x128xf32>
    %77 = vector.shape_cast %76 : vector<16x16x128xf32> to vector<256x128xf32>
    %c0_107 = arith.constant 0 : index
    %c1024_108 = arith.constant 1024 : index
    %78 = vector.load %arg15[%c0_107, %c1024_108] : memref<256x1152xf32, #tpu.memory_space<vmem>>, vector<256x128xf32>
    tpu.vector_store %arg15[%c0_107, %c1024_108], %77 {strides = array<i32>} : memref<256x1152xf32, #tpu.memory_space<vmem>>, vector<256x128xf32>,
    %c0_109 = arith.constant 0 : index
    %c0_110 = arith.constant 0 : index
    %79 = vector.load %arg15[%c0_109, %c0_110] : memref<256x1152xf32, #tpu.memory_space<vmem>>, vector<256x1152xf32>
    %c0_111 = arith.constant 0 : index
    %c0_112 = arith.constant 0 : index
    %80 = vector.load %arg6[%c0_111, %c0_112] : memref<1152x64xf32, #tpu.memory_space<vmem>>, vector<1152x64xf32>
    %cst_113 = arith.constant dense<0.000000e+00> : vector<256x64xf32>
    %81 = tpu.matmul %79, %80, %cst_113 {dimension_numbers = #tpu.dot_dimension_numbers<[1], [0], [0], [1], [0, 0, 1, 1], [], []>} : vector<256x1152xf32>, vector<1152x64xf32>, vector<256x64xf32> -> vector<256x64xf32>
    %c0_114 = arith.constant 0 : index
    %c0_115 = arith.constant 0 : index
    %82 = vector.load %arg7[%c0_114, %c0_115] : memref<1x64xf32, #tpu.memory_space<vmem>>, vector<1x64xf32>
    %83 = vector.broadcast %82 : vector<1x64xf32> to vector<256x64xf32>
    %84 = arith.addf %81, %83 : vector<256x64xf32>
    %cst_116 = arith.constant 0.000000e+00 : f32
    %85 = vector.broadcast %cst_116 : f32 to vector<256x64xf32>
    %86 = arith.maximumf %84, %85 : vector<256x64xf32>
    %cst_117 = arith.constant 0.000000e+00 : f32
    %87 = vector.broadcast %cst_117 : f32 to vector<18x18x128xf32>
    %c0_118 = arith.constant 0 : index
    %c0_119 = arith.constant 0 : index
    %c0_120 = arith.constant 0 : index
    %88 = vector.load %arg13[%c0_118, %c0_119, %c0_120] : memref<18x18x128xf32, #tpu.memory_space<vmem>>, vector<18x18x128xf32>
    tpu.vector_store %arg13[%c0_118, %c0_119, %c0_120], %87 {strides = array<i32>} : memref<18x18x128xf32, #tpu.memory_space<vmem>>, vector<18x18x128xf32>,
    %89 = vector.shape_cast %86 : vector<256x64xf32> to vector<16x16x64xf32>
    %c1_121 = arith.constant 1 : index
    %c1_122 = arith.constant 1 : index
    %c0_123 = arith.constant 0 : index
    %90 = vector.load %arg13[%c1_121, %c1_122, %c0_123] : memref<18x18x128xf32, #tpu.memory_space<vmem>>, vector<16x16x64xf32>
    tpu.vector_store %arg13[%c1_121, %c1_122, %c0_123], %89 {strides = array<i32>} : memref<18x18x128xf32, #tpu.memory_space<vmem>>, vector<16x16x64xf32>,
    %c0_124 = arith.constant 0 : index
    %c0_125 = arith.constant 0 : index
    %c0_126 = arith.constant 0 : index
    %91 = vector.load %arg13[%c0_124, %c0_125, %c0_126] : memref<18x18x128xf32, #tpu.memory_space<vmem>>, vector<16x16x128xf32>
    %92 = vector.shape_cast %91 : vector<16x16x128xf32> to vector<256x128xf32>
    %c0_127 = arith.constant 0 : index
    %c0_128 = arith.constant 0 : index
    %93 = vector.load %arg16[%c0_127, %c0_128] : memref<256x1152xf32, #tpu.memory_space<vmem>>, vector<256x128xf32>
    tpu.vector_store %arg16[%c0_127, %c0_128], %92 {strides = array<i32>} : memref<256x1152xf32, #tpu.memory_space<vmem>>, vector<256x128xf32>,
    %c0_129 = arith.constant 0 : index
    %c1_130 = arith.constant 1 : index
    %c0_131 = arith.constant 0 : index
    %94 = vector.load %arg13[%c0_129, %c1_130, %c0_131] : memref<18x18x128xf32, #tpu.memory_space<vmem>>, vector<16x16x128xf32>
    %95 = vector.shape_cast %94 : vector<16x16x128xf32> to vector<256x128xf32>
    %c0_132 = arith.constant 0 : index
    %c128_133 = arith.constant 128 : index
    %96 = vector.load %arg16[%c0_132, %c128_133] : memref<256x1152xf32, #tpu.memory_space<vmem>>, vector<256x128xf32>
    tpu.vector_store %arg16[%c0_132, %c128_133], %95 {strides = array<i32>} : memref<256x1152xf32, #tpu.memory_space<vmem>>, vector<256x128xf32>,
    %c0_134 = arith.constant 0 : index
    %c2_135 = arith.constant 2 : index
    %c0_136 = arith.constant 0 : index
    %97 = vector.load %arg13[%c0_134, %c2_135, %c0_136] : memref<18x18x128xf32, #tpu.memory_space<vmem>>, vector<16x16x128xf32>
    %98 = vector.shape_cast %97 : vector<16x16x128xf32> to vector<256x128xf32>
    %c0_137 = arith.constant 0 : index
    %c256_138 = arith.constant 256 : index
    %99 = vector.load %arg16[%c0_137, %c256_138] : memref<256x1152xf32, #tpu.memory_space<vmem>>, vector<256x128xf32>
    tpu.vector_store %arg16[%c0_137, %c256_138], %98 {strides = array<i32>} : memref<256x1152xf32, #tpu.memory_space<vmem>>, vector<256x128xf32>,
    %c1_139 = arith.constant 1 : index
    %c0_140 = arith.constant 0 : index
    %c0_141 = arith.constant 0 : index
    %100 = vector.load %arg13[%c1_139, %c0_140, %c0_141] : memref<18x18x128xf32, #tpu.memory_space<vmem>>, vector<16x16x128xf32>
    %101 = vector.shape_cast %100 : vector<16x16x128xf32> to vector<256x128xf32>
    %c0_142 = arith.constant 0 : index
    %c384_143 = arith.constant 384 : index
    %102 = vector.load %arg16[%c0_142, %c384_143] : memref<256x1152xf32, #tpu.memory_space<vmem>>, vector<256x128xf32>
    tpu.vector_store %arg16[%c0_142, %c384_143], %101 {strides = array<i32>} : memref<256x1152xf32, #tpu.memory_space<vmem>>, vector<256x128xf32>,
    %c1_144 = arith.constant 1 : index
    %c1_145 = arith.constant 1 : index
    %c0_146 = arith.constant 0 : index
    %103 = vector.load %arg13[%c1_144, %c1_145, %c0_146] : memref<18x18x128xf32, #tpu.memory_space<vmem>>, vector<16x16x128xf32>
    %104 = vector.shape_cast %103 : vector<16x16x128xf32> to vector<256x128xf32>
    %c0_147 = arith.constant 0 : index
    %c512_148 = arith.constant 512 : index
    %105 = vector.load %arg16[%c0_147, %c512_148] : memref<256x1152xf32, #tpu.memory_space<vmem>>, vector<256x128xf32>
    tpu.vector_store %arg16[%c0_147, %c512_148], %104 {strides = array<i32>} : memref<256x1152xf32, #tpu.memory_space<vmem>>, vector<256x128xf32>,
    %c1_149 = arith.constant 1 : index
    %c2_150 = arith.constant 2 : index
    %c0_151 = arith.constant 0 : index
    %106 = vector.load %arg13[%c1_149, %c2_150, %c0_151] : memref<18x18x128xf32, #tpu.memory_space<vmem>>, vector<16x16x128xf32>
    %107 = vector.shape_cast %106 : vector<16x16x128xf32> to vector<256x128xf32>
    %c0_152 = arith.constant 0 : index
    %c640_153 = arith.constant 640 : index
    %108 = vector.load %arg16[%c0_152, %c640_153] : memref<256x1152xf32, #tpu.memory_space<vmem>>, vector<256x128xf32>
    tpu.vector_store %arg16[%c0_152, %c640_153], %107 {strides = array<i32>} : memref<256x1152xf32, #tpu.memory_space<vmem>>, vector<256x128xf32>,
    %c2_154 = arith.constant 2 : index
    %c0_155 = arith.constant 0 : index
    %c0_156 = arith.constant 0 : index
    %109 = vector.load %arg13[%c2_154, %c0_155, %c0_156] : memref<18x18x128xf32, #tpu.memory_space<vmem>>, vector<16x16x128xf32>
    %110 = vector.shape_cast %109 : vector<16x16x128xf32> to vector<256x128xf32>
    %c0_157 = arith.constant 0 : index
    %c768_158 = arith.constant 768 : index
    %111 = vector.load %arg16[%c0_157, %c768_158] : memref<256x1152xf32, #tpu.memory_space<vmem>>, vector<256x128xf32>
    tpu.vector_store %arg16[%c0_157, %c768_158], %110 {strides = array<i32>} : memref<256x1152xf32, #tpu.memory_space<vmem>>, vector<256x128xf32>,
    %c2_159 = arith.constant 2 : index
    %c1_160 = arith.constant 1 : index
    %c0_161 = arith.constant 0 : index
    %112 = vector.load %arg13[%c2_159, %c1_160, %c0_161] : memref<18x18x128xf32, #tpu.memory_space<vmem>>, vector<16x16x128xf32>
    %113 = vector.shape_cast %112 : vector<16x16x128xf32> to vector<256x128xf32>
    %c0_162 = arith.constant 0 : index
    %c896_163 = arith.constant 896 : index
    %114 = vector.load %arg16[%c0_162, %c896_163] : memref<256x1152xf32, #tpu.memory_space<vmem>>, vector<256x128xf32>
    tpu.vector_store %arg16[%c0_162, %c896_163], %113 {strides = array<i32>} : memref<256x1152xf32, #tpu.memory_space<vmem>>, vector<256x128xf32>,
    %c2_164 = arith.constant 2 : index
    %c2_165 = arith.constant 2 : index
    %c0_166 = arith.constant 0 : index
    %115 = vector.load %arg13[%c2_164, %c2_165, %c0_166] : memref<18x18x128xf32, #tpu.memory_space<vmem>>, vector<16x16x128xf32>
    %116 = vector.shape_cast %115 : vector<16x16x128xf32> to vector<256x128xf32>
    %c0_167 = arith.constant 0 : index
    %c1024_168 = arith.constant 1024 : index
    %117 = vector.load %arg16[%c0_167, %c1024_168] : memref<256x1152xf32, #tpu.memory_space<vmem>>, vector<256x128xf32>
    tpu.vector_store %arg16[%c0_167, %c1024_168], %116 {strides = array<i32>} : memref<256x1152xf32, #tpu.memory_space<vmem>>, vector<256x128xf32>,
    %c0_169 = arith.constant 0 : index
    %c0_170 = arith.constant 0 : index
    %118 = vector.load %arg16[%c0_169, %c0_170] : memref<256x1152xf32, #tpu.memory_space<vmem>>, vector<256x1152xf32>
    %c0_171 = arith.constant 0 : index
    %c0_172 = arith.constant 0 : index
    %119 = vector.load %arg8[%c0_171, %c0_172] : memref<1152x3xf32, #tpu.memory_space<vmem>>, vector<1152x3xf32>
    %cst_173 = arith.constant dense<0.000000e+00> : vector<256x3xf32>
    %120 = tpu.matmul %118, %119, %cst_173 {dimension_numbers = #tpu.dot_dimension_numbers<[1], [0], [0], [1], [0, 0, 1, 1], [], []>} : vector<256x1152xf32>, vector<1152x3xf32>, vector<256x3xf32> -> vector<256x3xf32>
    %c0_174 = arith.constant 0 : index
    %c0_175 = arith.constant 0 : index
    %121 = vector.load %arg9[%c0_174, %c0_175] : memref<1x3xf32, #tpu.memory_space<vmem>>, vector<1x3xf32>
    %122 = vector.broadcast %121 : vector<1x3xf32> to vector<256x3xf32>
    %123 = arith.addf %120, %122 : vector<256x3xf32>
    %c0_176 = arith.constant 0 : index
    %c0_177 = arith.constant 0 : index
    %c0_178 = arith.constant 0 : index
    %124 = vector.load %arg10[%c0_176, %c0_177, %c0_178] : memref<1x256x3xf32, #tpu.memory_space<vmem>>, vector<1x256x3xf32>
    %125 = vector.shape_cast %124 : vector<1x256x3xf32> to vector<256x3xf32>
    %126 = vector.shape_cast %123 : vector<256x3xf32> to vector<1x256x3xf32>
    tpu.vector_store %arg10[%c0_176, %c0_177, %c0_178], %126 {strides = array<i32>} : memref<1x256x3xf32, #tpu.memory_space<vmem>>, vector<1x256x3xf32>,
    return
  }
  func.func @transform_0(%arg0: i32) -> (i32, i32, i32) {
    %c0_i32 = arith.constant 0 : i32
    %c0_i32_0 = arith.constant 0 : i32
    %c0_i32_1 = arith.constant 0 : i32
    return %arg0, %c0_i32, %c0_i32_0 : i32, i32, i32
  }
  func.func @transform_1(%arg0: i32) -> (i32, i32) {
    %c0_i32 = arith.constant 0 : i32
    %c0_i32_0 = arith.constant 0 : i32
    %c0_i32_1 = arith.constant 0 : i32
    return %c0_i32, %c0_i32_0 : i32, i32
  }
  func.func @transform_2(%arg0: i32) -> (i32, i32) {
    %c0_i32 = arith.constant 0 : i32
    %c0_i32_0 = arith.constant 0 : i32
    %c0_i32_1 = arith.constant 0 : i32
    return %c0_i32, %c0_i32_0 : i32, i32
  }
  func.func @transform_3(%arg0: i32) -> (i32, i32) {
    %c0_i32 = arith.constant 0 : i32
    %c0_i32_0 = arith.constant 0 : i32
    %c0_i32_1 = arith.constant 0 : i32
    return %c0_i32, %c0_i32_0 : i32, i32
  }
  func.func @transform_4(%arg0: i32) -> (i32, i32) {
    %c0_i32 = arith.constant 0 : i32
    %c0_i32_0 = arith.constant 0 : i32
    %c0_i32_1 = arith.constant 0 : i32
    return %c0_i32, %c0_i32_0 : i32, i32
  }
  func.func @transform_5(%arg0: i32) -> (i32, i32) {
    %c0_i32 = arith.constant 0 : i32
    %c0_i32_0 = arith.constant 0 : i32
    %c0_i32_1 = arith.constant 0 : i32
    return %c0_i32, %c0_i32_0 : i32, i32
  }
  func.func @transform_6(%arg0: i32) -> (i32, i32) {
    %c0_i32 = arith.constant 0 : i32
    %c0_i32_0 = arith.constant 0 : i32
    %c0_i32_1 = arith.constant 0 : i32
    return %c0_i32, %c0_i32_0 : i32, i32
  }
  func.func @transform_7(%arg0: i32) -> (i32, i32) {
    %c0_i32 = arith.constant 0 : i32
    %c0_i32_0 = arith.constant 0 : i32
    %c0_i32_1 = arith.constant 0 : i32
    return %c0_i32, %c0_i32_0 : i32, i32
  }
  func.func @transform_8(%arg0: i32) -> (i32, i32) {
    %c0_i32 = arith.constant 0 : i32
    %c0_i32_0 = arith.constant 0 : i32
    %c0_i32_1 = arith.constant 0 : i32
    return %c0_i32, %c0_i32_0 : i32, i32
  }
  func.func @transform_9(%arg0: i32) -> (i32, i32, i32) {
    %c0_i32 = arith.constant 0 : i32
    %c0_i32_0 = arith.constant 0 : i32
    %c0_i32_1 = arith.constant 0 : i32
    return %arg0, %c0_i32, %c0_i32_0 : i32, i32, i32
  }
}

</mosaic_0001>

<bundles_post_ra>
// kernel: simple_unet_forward.1
= control target key start
LH: loop header
LB: loop body
LE: loop exit
PB: predicated region body
PF: predicated region fallthrough
CT: control target
= control target key end

     0   :  { %s8118_s30 = smov 0   ;;  %s12311_s0 = inlined_call_operand.vmem [shape: f32[2,256,128], index: 0, kind: input, shape index: {}]   ;;  %s12312_s1 = inlined_call_operand.vmem [shape: f32[128,64], index: 1, kind: input, shape index: {}]   ;;  %s12313_s2 = inlined_call_operand.vmem [shape: f32[1,64], index: 2, kind: input, shape index: {}]   ;;  %s12314_s3 = inlined_call_operand.vmem [shape: f32[1152,128], index: 3, kind: input, shape index: {}]   ;;  %s12315_s4 = inlined_call_operand.vmem [shape: f32[1,128], index: 4, kind: input, shape index: {}]   ;;  %s12316_s5 = inlined_call_operand.vmem [shape: f32[1152,64], index: 5, kind: input, shape index: {}]   ;;  %s12317_s6 = inlined_call_operand.vmem [shape: f32[1,64], index: 6, kind: input, shape index: {}]   ;;  %s12318_s7 = inlined_call_operand.vmem [shape: f32[1152,3], index: 7, kind: input, shape index: {}]   ;;  %s12319_s8 = inlined_call_operand.vmem [shape: f32[1,3], index: 8, kind: input, shape index: {}]   ;;  %s12320_s9 = inlined_call_operand.vmem [shape: f32[2,256,3], index: 9, kind: output, shape index: {}]  }
   0x1 LB: > { %s7482_s10 = sadd.s32 4294967295, %s8065_s30   ;;  %p7486_p0 = scmp.ge.s32.totalorder %s8065_s30, 1  ;;  %s8065_s30 = sphi %s8118_s30, %s19_s30  }
   0x2   : > { %p287_p1 = scmp.lt.s32.totalorder %s8065_s30, 3 }
   0x4   : > { %p288_p2 = pnand %p7486_p0, %p287_p1 }
   0x6   : > { %291 = sbr.rel (%p288_p2) target bundleno = 1653 (0x675), region = 56 }
   0xb   : > { %v8129_v0 = vld [vmem:[%s12312_s1 + $0x78] sm:$0xff]  ;;  %v8134_v1 = vld [vmem:[%s12312_s1 + $0x70] sm:$0xff]  ;;  %p8138_p3 = scmp.lt.s32.totalorder %s7482_s10, 1  ;;  %v8067_v2 = vmov 0.0   ;;  %v378_v3 = vld [vmem:[%s12312_s1 + $0x68] sm:$0xff]  ;;  %vm700_vm0 = vcmask 523264  }
   0xc   : > { %7691 = vmatprep.subr.mxu0 %v8129_v0  ;;  %1749 = vmatprep.subr.mxu1 %v8067_v2  ;;  %645 = vst [vmem:[#allocation2] sm:$0xff] %v8067_v2  ;;  %646 = vst [vmem:[#allocation2 + $0x8] sm:$0xff] %v8067_v2  ;;  %v377_v4 = vld [vmem:[%s12312_s1 + $0x60] sm:$0xff]  ;;  %v1613_v5 = vld [vmem:[%s12314_s3 + $0x78] sm:$0xff]  ;;  %vm7394_vm1 = vcmask 23552  }
   0xd   : > { %647 = vst [vmem:[#allocation2 + $0x10] sm:$0x3] %v8067_v2  ;;  %648 = vst [vmem:[#allocation2 + $0x18] sm:$0xff] %v8067_v2  ;;  %7692 = vmatpush3.msra.mxu0 %v8129_v0  ;;  %s12522_s10 = smov (!%p8138_p3, %s7482_s10), 1  ;;  %v376_v6 = vld [vmem:[%s12312_s1 + $0x58] sm:$0xff]  ;;  %1750 = vmatpush1.msra.mxu1 %v1613_v5  ;;  %v1612_v8 = vld [vmem:[%s12314_s3 + $0x70] sm:$0xff] }
   0xe   : > { %649 = vst [vmem:[#allocation2 + $0x20] sm:$0xff] %v8067_v2  ;;  %650 = vst [vmem:[#allocation2 + $0x28] sm:$0x3] %v8067_v2  ;;  %7693 = vmatprep.subr.mxu0 %v8134_v1  ;;  %s7497_s20 = sshll.u32 %s12522_s10, 8  ;;  %v375_v9 = vld [vmem:[%s12312_s1 + $0x50] sm:$0xff]  ;;  %1751 = vmatprep.subr.mxu1 %v8067_v2  ;;  %v374_v10 = vld [vmem:[%s12312_s1 + $0x48] sm:$0xff] }
   0xf   : > { %651 = vst [vmem:[#allocation2 + $0x30] sm:$0xff] %v8067_v2  ;;  %652 = vst [vmem:[#allocation2 + $0x38] sm:$0xff] %v8067_v2  ;;  %7694 = vmatpush3.msra.mxu0 %v8134_v1  ;;  %s8327_s23 = scalar_lea.vmem %s12311_s0, %s7497_s20  ;;  %1752 = vmatpush1.msra.mxu1 %v1612_v8  ;;  %v373_v11 = vld [vmem:[%s12312_s1 + $0x40] sm:$0xff]  ;;  %v372_v12 = vld [vmem:[%s12312_s1 + $0x38] sm:$0xff]  ;;  %s12185_s29 = scalar_lea.vmem %s12320_s9, %s7497_s20 }
  0x10   : > { %653 = vst [vmem:[#allocation2 + $0x40] sm:$0x3] %v8067_v2  ;;  %654 = vst [vmem:[#allocation2 + $0x48] sm:$0xff] %v8067_v2  ;;  %7695 = vmatprep.subr.mxu0 %v378_v3  ;;  %v333_v7 = vld [vmem:[%s8327_s23] sm:$0xff]  ;;  %1753 = vmatprep.subr.mxu1 %v8067_v2  ;;  %v371_v13 = vld [vmem:[%s12312_s1 + $0x30] sm:$0xff] }
  0x11   : > { %655 = vst [vmem:[#allocation2 + $0x50] sm:$0xff] %v8067_v2  ;;  %656 = vst [vmem:[#allocation2 + $0x58] sm:$0x3] %v8067_v2  ;;  %7696 = vmatpush3.msra.mxu0 %v378_v3  ;;  %7723 = vmatprep.mubr.f32.mxu0 %v333_v7  ;;  %v1611_v14 = vld [vmem:[%s12314_s3 + $0x68] sm:$0xff]  ;;  %v1610_v15 = vld [vmem:[%s12314_s3 + $0x60] sm:$0xff] }
  0x12   : > { %657 = vst [vmem:[#allocation2 + $0x60] sm:$0xff] %v8067_v2  ;;  %658 = vst [vmem:[#allocation2 + $0x68] sm:$0xff] %v8067_v2  ;;  %7697 = vmatprep.subr.mxu0 %v377_v4  ;;  %1754 = vmatpush1.msra.mxu1 %v1611_v14  ;;  %v370_v16 = vld [vmem:[%s12312_s1 + $0x28] sm:$0xff]  ;;  %v1609_v17 = vld [vmem:[%s12314_s3 + $0x58] sm:$0xff] }
  0x13   : > { %659 = vst [vmem:[#allocation2 + $0x70] sm:$0x3] %v8067_v2  ;;  %660 = vst [vmem:[#allocation2 + $0x78] sm:$0xff] %v8067_v2  ;;  %7698 = vmatpush3.msra.mxu0 %v377_v4  ;;  %1755 = vmatprep.subr.mxu1 %v8067_v2  ;;  %v369_v18 = vld [vmem:[%s12312_s1 + $0x20] sm:$0xff]  ;;  %v1608_v19 = vld [vmem:[%s12314_s3 + $0x50] sm:$0xff] }
  0x14   : > { %661 = vst [vmem:[#allocation2 + $0x80] sm:$0xff] %v8067_v2  ;;  %662 = vst [vmem:[#allocation2 + $0x88] sm:$0x3] %v8067_v2  ;;  %7699 = vmatprep.subr.mxu0 %v376_v6  ;;  %1756 = vmatpush1.msra.mxu1 %v1610_v15  ;;  %v368_v20 = vld [vmem:[%s12312_s1 + $0x18] sm:$0xff]  ;;  %v1607_v21 = vld [vmem:[%s12314_s3 + $0x48] sm:$0xff] }
  0x15   : > { %663 = vst [vmem:[#allocation2 + $0x90] sm:$0xff] %v8067_v2  ;;  %664 = vst [vmem:[#allocation2 + $0x98] sm:$0xff] %v8067_v2  ;;  %7700 = vmatpush3.msra.mxu0 %v376_v6  ;;  %1757 = vmatprep.subr.mxu1 %v8067_v2  ;;  %v367_v22 = vld [vmem:[%s12312_s1 + $0x10] sm:$0xff]  ;;  %v1606_v23 = vld [vmem:[%s12314_s3 + $0x40] sm:$0xff] }
  0x16   : > { %665 = vst [vmem:[#allocation2 + $0xa0] sm:$0x3] %v8067_v2  ;;  %666 = vst [vmem:[#allocation2 + $0xa8] sm:$0xff] %v8067_v2  ;;  %7701 = vmatprep.subr.mxu0 %v375_v9  ;;  %1758 = vmatpush1.msra.mxu1 %v1609_v17  ;;  %v366_v24 = vld [vmem:[%s12312_s1 + $0x8] sm:$0xff]  ;;  %v1605_v25 = vld [vmem:[%s12314_s3 + $0x38] sm:$0xff] }
  0x17   : > { %667 = vst [vmem:[#allocation2 + $0xb0] sm:$0xff] %v8067_v2  ;;  %668 = vst [vmem:[#allocation2 + $0xb8] sm:$0x3] %v8067_v2  ;;  %7702 = vmatpush3.msra.mxu0 %v375_v9  ;;  %1759 = vmatprep.subr.mxu1 %v8067_v2  ;;  %v365_v26 = vld [vmem:[%s12312_s1] sm:$0xff]  ;;  %v1604_v27 = vld [vmem:[%s12314_s3 + $0x30] sm:$0xff] }
  0x18   : > { %669 = vst [vmem:[#allocation2 + $0xc0] sm:$0xff] %v8067_v2  ;;  %670 = vst [vmem:[#allocation2 + $0xc8] sm:$0xff] %v8067_v2  ;;  %7703 = vmatprep.subr.mxu0 %v374_v10  ;;  %1760 = vmatpush1.msra.mxu1 %v1608_v19  ;;  %v334_v28 = vld [vmem:[%s8327_s23 + $0x8] sm:$0xff]  ;;  %v335_v29 = vld [vmem:[%s8327_s23 + $0x10] sm:$0xff] }
  0x19   : > { %671 = vst [vmem:[#allocation2 + $0xd0] sm:$0x3] %v8067_v2  ;;  %672 = vst [vmem:[#allocation2 + $0xd8] sm:$0xff] %v8067_v2  ;;  %7704 = vmatpush3.msra.mxu0 %v374_v10  ;;  %1761 = vmatprep.subr.mxu1 %v8067_v2  ;;  %v1645_v30 = vld [vmem:[%s12314_s3 + $0x178] sm:$0xff]  ;;  %v1603_v31 = vld [vmem:[%s12314_s3 + $0x28] sm:$0xff] }
  0x1a   : > { %673 = vst [vmem:[#allocation2 + $0xe0] sm:$0xff] %v8067_v2  ;;  %674 = vst [vmem:[#allocation2 + $0xe8] sm:$0x3] %v8067_v2  ;;  %7705 = vmatprep.subr.mxu0 %v373_v11  ;;  %1762 = vmatpush1.msra.mxu1 %v1607_v21  ;;  %v1644_v32 = vld [vmem:[%s12314_s3 + $0x170] sm:$0xff]  ;;  %v336_v33 = vld [vmem:[%s8327_s23 + $0x18] sm:$0xff] }
  0x1b   : > { %675 = vst [vmem:[#allocation2 + $0xf0] sm:$0xff] %v8067_v2  ;;  %676 = vst [vmem:[#allocation2 + $0xf8] sm:$0xff] %v8067_v2  ;;  %7706 = vmatpush3.msra.mxu0 %v373_v11  ;;  %1763 = vmatprep.subr.mxu1 %v8067_v2  ;;  %v337_v34 = vld [vmem:[%s8327_s23 + $0x20] sm:$0xff]  ;;  %v1643_v35 = vld [vmem:[%s12314_s3 + $0x168] sm:$0xff] }
  0x1c   : > { %677 = vst [vmem:[#allocation2 + $0x100] sm:$0x3] %v8067_v2  ;;  %678 = vst [vmem:[#allocation2 + $0x108] sm:$0xff] %v8067_v2  ;;  %7707 = vmatprep.subr.mxu0 %v372_v12  ;;  %1764 = vmatpush1.msra.mxu1 %v1606_v23  ;;  %v1602_v36 = vld [vmem:[%s12314_s3 + $0x20] sm:$0xff]  ;;  %v338_v38 = vld [vmem:[%s8327_s23 + $0x28] sm:$0xff] }
  0x1d   : > { %679 = vst [vmem:[#allocation2 + $0x110] sm:$0xff] %v8067_v2  ;;  %680 = vst [vmem:[#allocation2 + $0x118] sm:$0x3] %v8067_v2  ;;  %7708 = vmatpush3.msra.mxu0 %v372_v12  ;;  %1765 = vmatprep.subr.mxu1 %v8067_v2  ;;  %v1642_v37 = vld [vmem:[%s12314_s3 + $0x160] sm:$0xff]  ;;  %v339_v39 = vld [vmem:[%s8327_s23 + $0x30] sm:$0xff] }
  0x1e   : > { %681 = vst [vmem:[#allocation2 + $0x120] sm:$0xff] %v8067_v2  ;;  %682 = vst [vmem:[#allocation2 + $0x128] sm:$0xff] %v8067_v2  ;;  %7709 = vmatprep.subr.mxu0 %v371_v13  ;;  %1766 = vmatpush1.msra.mxu1 %v1605_v25  ;;  %v1641_v40 = vld [vmem:[%s12314_s3 + $0x158] sm:$0xff]  ;;  %v1640_v42 = vld [vmem:[%s12314_s3 + $0x150] sm:$0xff] }
  0x1f   : > { %683 = vst [vmem:[#allocation2 + $0x130] sm:$0x3] %v8067_v2  ;;  %684 = vst [vmem:[#allocation2 + $0x138] sm:$0xff] %v8067_v2  ;;  %7710 = vmatpush3.msra.mxu0 %v371_v13  ;;  %1767 = vmatprep.subr.mxu1 %v8067_v2  ;;  %v1601_v41 = vld [vmem:[%s12314_s3 + $0x18] sm:$0xff]  ;;  %v341_v44 = vld [vmem:[%s8327_s23 + $0x40] sm:$0xff] }
  0x20   : > { %685 = vst [vmem:[#allocation2 + $0x140] sm:$0xff] %v8067_v2  ;;  %686 = vst [vmem:[#allocation2 + $0x148] sm:$0x3] %v8067_v2  ;;  %7711 = vmatprep.subr.mxu0 %v370_v16  ;;  %1768 = vmatpush1.msra.mxu1 %v1604_v27  ;;  %v340_v43 = vld [vmem:[%s8327_s23 + $0x38] sm:$0xff]  ;;  %v1639_v45 = vld [vmem:[%s12314_s3 + $0x148] sm:$0xff] }
  0x21   : > { %687 = vst [vmem:[#allocation2 + $0x150] sm:$0xff] %v8067_v2  ;;  %688 = vst [vmem:[#allocation2 + $0x158] sm:$0xff] %v8067_v2  ;;  %7712 = vmatpush3.msra.mxu0 %v370_v16  ;;  %1769 = vmatprep.subr.mxu1 %v8067_v2  ;;  %v1600_v46 = vld [vmem:[%s12314_s3 + $0x10] sm:$0xff]  ;;  %v1638_v47 = vld [vmem:[%s12314_s3 + $0x140] sm:$0xff] }
  0x22   : > { %689 = vst [vmem:[#allocation2 + $0x160] sm:$0x3] %v8067_v2  ;;  %690 = vst [vmem:[#allocation2 + $0x168] sm:$0xff] %v8067_v2  ;;  %7713 = vmatprep.subr.mxu0 %v369_v18  ;;  %1770 = vmatpush1.msra.mxu1 %v1603_v31  ;;  %v342_v48 = vld [vmem:[%s8327_s23 + $0x48] sm:$0xff]  ;;  %v343_v49 = vld [vmem:[%s8327_s23 + $0x50] sm:$0xff] }
  0x23   : > { %691 = vst [vmem:[#allocation2 + $0x170] sm:$0xff] %v8067_v2  ;;  %692 = vst [vmem:[#allocation2 + $0x178] sm:$0x3] %v8067_v2  ;;  %7714 = vmatpush3.msra.mxu0 %v369_v18  ;;  %1771 = vmatprep.subr.mxu1 %v8067_v2  ;;  %v1637_v50 = vld [vmem:[%s12314_s3 + $0x138] sm:$0xff]  ;;  %v1599_v51 = vld [vmem:[%s12314_s3 + $0x8] sm:$0xff] }
  0x24   : > { %693 = vst [vmem:[#allocation2 + $0x180] sm:$0xff] %v8067_v2  ;;  %694 = vst [vmem:[#allocation2 + $0x188] sm:$0xff] %v8067_v2  ;;  %7715 = vmatprep.subr.mxu0 %v368_v20  ;;  %1772 = vmatpush1.msra.mxu1 %v1602_v36  ;;  %v1636_v52 = vld [vmem:[%s12314_s3 + $0x130] sm:$0xff]  ;;  %v344_v53 = vld [vmem:[%s8327_s23 + $0x58] sm:$0xff] }
  0x25   : > { %695 = vst [vmem:[#allocation2 + $0x190] sm:$0x3] %v8067_v2  ;;  %696 = vst [vmem:[#allocation2 + $0x198] sm:$0xff] %v8067_v2  ;;  %7716 = vmatpush3.msra.mxu0 %v368_v20  ;;  %1773 = vmatprep.subr.mxu1 %v8067_v2  ;;  %v345_v54 = vld [vmem:[%s8327_s23 + $0x60] sm:$0xff]  ;;  %v1635_v56 = vld [vmem:[%s12314_s3 + $0x128] sm:$0xff] }
  0x26   : > { %697 = vst [vmem:[#allocation2 + $0x1a0] sm:$0xff] %v8067_v2  ;;  %698 = vst [vmem:[#allocation2 + $0x1a8] sm:$0x3] %v8067_v2  ;;  %7717 = vmatprep.subr.mxu0 %v367_v22  ;;  %1774 = vmatpush1.msra.mxu1 %v1601_v41  ;;  %v1598_v55 = vld [vmem:[%s12314_s3] sm:$0xff]  ;;  %v1629_v57 = vld [vmem:[%s12314_s3 + $0xf8] sm:$0xff] }
  0x27   : > { %2906 = vst [vmem:[#allocation3] sm:$0xff] %v8067_v2  ;;  %2907 = vst [vmem:[#allocation3 + $0x8] sm:$0xff] %v8067_v2  ;;  %7718 = vmatpush3.msra.mxu0 %v367_v22  ;;  %1775 = vmatprep.subr.mxu1 %v8067_v2  ;;  %v346_v58 = vld [vmem:[%s8327_s23 + $0x68] sm:$0xff]  ;;  %v347_v59 = vld [vmem:[%s8327_s23 + $0x70] sm:$0xff] }
  0x28   : > { %2908 = vst [vmem:[#allocation3 + $0x10] sm:$0x3] %v8067_v2  ;;  %2909 = vst [vmem:[#allocation3 + $0x18] sm:$0xff] %v8067_v2  ;;  %7719 = vmatprep.subr.mxu0 %v366_v24  ;;  %1776 = vmatpush1.msra.mxu1 %v1600_v46  ;;  %v1634_v60 = vld [vmem:[%s12314_s3 + $0x120] sm:$0xff]  ;;  %v1628_v61 = vld [vmem:[%s12314_s3 + $0xf0] sm:$0xff] }
  0x29   : > { %2910 = vst [vmem:[#allocation3 + $0x20] sm:$0xff] %v8067_v2  ;;  %2911 = vst [vmem:[#allocation3 + $0x28] sm:$0x3] %v8067_v2  ;;  %7720 = vmatpush3.msra.mxu0 %v366_v24  ;;  %1777 = vmatprep.subr.mxu1 %v8067_v2  ;;  %v1633_v62 = vld [vmem:[%s12314_s3 + $0x118] sm:$0xff]  ;;  %v349_v0 = vld [vmem:[%s8327_s23 + $0x80] sm:$0xff] }
  0x2a   : > { %2912 = vst [vmem:[#allocation3 + $0x30] sm:$0xff] %v8067_v2  ;;  %2913 = vst [vmem:[#allocation3 + $0x38] sm:$0xff] %v8067_v2  ;;  %7721 = vmatprep.subr.mxu0 %v365_v26  ;;  %1778 = vmatpush1.msra.mxu1 %v1599_v51  ;;  %v348_v63 = vld [vmem:[%s8327_s23 + $0x78] sm:$0xff]  ;;  %v1627_v1 = vld [vmem:[%s12314_s3 + $0xe8] sm:$0xff] }
  0x2b   : > { %2914 = vst [vmem:[#allocation3 + $0x40] sm:$0x3] %v8067_v2  ;;  %2915 = vst [vmem:[#allocation3 + $0x48] sm:$0xff] %v8067_v2  ;;  %7722 = vmatpush3.msra.mxu0 %v365_v26  ;;  %1779 = vmatprep.subr.mxu1 %v8067_v2  ;;  %v1632_v3 = vld [vmem:[%s12314_s3 + $0x110] sm:$0xff]  ;;  %v1626_v4 = vld [vmem:[%s12314_s3 + $0xe0] sm:$0xff] }
  0x2c   : > { %2916 = vst [vmem:[#allocation3 + $0x50] sm:$0xff] %v8067_v2  ;;  %2917 = vst [vmem:[#allocation3 + $0x58] sm:$0x3] %v8067_v2  ;;  %7724 = vmatmul.mubr.f32.vlgmr.msra.gmra.mxu0 %v334_v28  ;;  %1974 = vmatprep.subr.mxu0 %v8067_v2  ;;  %v350_v5 = vld [vmem:[%s8327_s23 + $0x88] sm:$0xff]  ;;  %v351_v6 = vld [vmem:[%s8327_s23 + $0x90] sm:$0xff] }
  0x2d   : > { %2918 = vst [vmem:[#allocation3 + $0x60] sm:$0xff] %v8067_v2  ;;  %2919 = vst [vmem:[#allocation3 + $0x68] sm:$0xff] %v8067_v2  ;;  %7726 = vmatprep.mubr.f32.mxu0 %v335_v29  ;;  %1975 = vmatpush1.msra.mxu0 %v1645_v30  ;;  %v1631_v7 = vld [vmem:[%s12314_s3 + $0x108] sm:$0xff]  ;;  %v1625_v8 = vld [vmem:[%s12314_s3 + $0xd8] sm:$0xff] }
  0x2e   : > { %2920 = vst [vmem:[#allocation3 + $0x70] sm:$0x3] %v8067_v2  ;;  %2921 = vst [vmem:[#allocation3 + $0x78] sm:$0xff] %v8067_v2  ;;  %1976 = vmatprep.subr.mxu0 %v8067_v2  ;;  %1780 = vmatpush1.msra.mxu1 %v1598_v55  ;;  %v1630_v9 = vld [vmem:[%s12314_s3 + $0x100] sm:$0xff]  ;;  %v352_v10 = vld [vmem:[%s8327_s23 + $0x98] sm:$0xff] }
  0x2f   : > { %2922 = vst [vmem:[#allocation3 + $0x80] sm:$0xff] %v8067_v2  ;;  %2923 = vst [vmem:[#allocation3 + $0x88] sm:$0x3] %v8067_v2  ;;  %1977 = vmatpush1.msra.mxu0 %v1644_v32  ;;  %1781 = vmatprep.subr.mxu1 %v8067_v2  ;;  %v353_v11 = vld [vmem:[%s8327_s23 + $0xa0] sm:$0xff]  ;;  %v1624_v12 = vld [vmem:[%s12314_s3 + $0xd0] sm:$0xff] }
  0x30   : > { %2924 = vst [vmem:[#allocation3 + $0x90] sm:$0xff] %v8067_v2  ;;  %2925 = vst [vmem:[#allocation3 + $0x98] sm:$0xff] %v8067_v2  ;;  %7727 = vmatmul.mubr.f32.gmra.mxu0 %v336_v33  ;;  %1978 = vmatprep.subr.mxu0 %v8067_v2  ;;  %v1661_v13 = vld [vmem:[%s12314_s3 + $0x1f8] sm:$0xff]  ;;  %v1623_v14 = vld [vmem:[%s12314_s3 + $0xc8] sm:$0xff] }
  0x31   : > { %2926 = vst [vmem:[#allocation3 + $0xa0] sm:$0x3] %v8067_v2  ;;  %2927 = vst [vmem:[#allocation3 + $0xa8] sm:$0xff] %v8067_v2  ;;  %7729 = vmatprep.mubr.f32.mxu0 %v337_v34  ;;  %1979 = vmatpush1.msra.mxu0 %v1643_v35  ;;  %v354_v15 = vld [vmem:[%s8327_s23 + $0xa8] sm:$0xff]  ;;  %v355_v16 = vld [vmem:[%s8327_s23 + $0xb0] sm:$0xff] }
  0x32   : > { %2928 = vst [vmem:[#allocation3 + $0xb0] sm:$0xff] %v8067_v2  ;;  %2929 = vst [vmem:[#allocation3 + $0xb8] sm:$0x3] %v8067_v2  ;;  %1980 = vmatprep.subr.mxu0 %v8067_v2  ;;  %1782 = vmatpush2.msra.mxu1 %v1629_v57  ;;  %v1660_v17 = vld [vmem:[%s12314_s3 + $0x1f0] sm:$0xff]  ;;  %v1622_v18 = vld [vmem:[%s12314_s3 + $0xc0] sm:$0xff] }
  0x33   : > { %2930 = vst [vmem:[#allocation3 + $0xc0] sm:$0xff] %v8067_v2  ;;  %2931 = vst [vmem:[#allocation3 + $0xc8] sm:$0xff] %v8067_v2  ;;  %1981 = vmatpush1.msra.mxu0 %v1642_v37  ;;  %1783 = vmatprep.subr.mxu1 %v8067_v2  ;;  %v1659_v19 = vld [vmem:[%s12314_s3 + $0x1e8] sm:$0xff]  ;;  %v356_v20 = vld [vmem:[%s8327_s23 + $0xb8] sm:$0xff] }
  0x34   : > { %2932 = vst [vmem:[#allocation3 + $0xd0] sm:$0x3] %v8067_v2  ;;  %2933 = vst [vmem:[#allocation3 + $0xd8] sm:$0xff] %v8067_v2  ;;  %7730 = vmatmul.mubr.f32.gmra.mxu0 %v338_v38  ;;  %1982 = vmatprep.subr.mxu0 %v8067_v2  ;;  %v357_v21 = vld [vmem:[%s8327_s23 + $0xc0] sm:$0xff]  ;;  %v1621_v22 = vld [vmem:[%s12314_s3 + $0xb8] sm:$0xff] }
  0x35   : > { %2934 = vst [vmem:[#allocation3 + $0xe0] sm:$0xff] %v8067_v2  ;;  %2935 = vst [vmem:[#allocation3 + $0xe8] sm:$0x3] %v8067_v2  ;;  %7732 = vmatprep.mubr.f32.mxu0 %v339_v39  ;;  %1983 = vmatpush1.msra.mxu0 %v1641_v40  ;;  %v1658_v23 = vld [vmem:[%s12314_s3 + $0x1e0] sm:$0xff]  ;;  %v1620_v24 = vld [vmem:[%s12314_s3 + $0xb0] sm:$0xff] }
  0x36   : > { %2936 = vst [vmem:[#allocation3 + $0xf0] sm:$0xff] %v8067_v2  ;;  %2937 = vst [vmem:[#allocation3 + $0xf8] sm:$0xff] %v8067_v2  ;;  %1984 = vmatprep.subr.mxu0 %v8067_v2  ;;  %1784 = vmatpush2.msra.mxu1 %v1628_v61  ;;  %v358_v25 = vld [vmem:[%s8327_s23 + $0xc8] sm:$0xff]  ;;  %v359_v26 = vld [vmem:[%s8327_s23 + $0xd0] sm:$0xff] }
  0x37   : > { %2938 = vst [vmem:[#allocation3 + $0x100] sm:$0x3] %v8067_v2  ;;  %2939 = vst [vmem:[#allocation3 + $0x108] sm:$0xff] %v8067_v2  ;;  %1985 = vmatpush1.msra.mxu0 %v1640_v42  ;;  %1785 = vmatprep.subr.mxu1 %v8067_v2  ;;  %v1657_v27 = vld [vmem:[%s12314_s3 + $0x1d8] sm:$0xff]  ;;  %v1619_v28 = vld [vmem:[%s12314_s3 + $0xa8] sm:$0xff] }
  0x38   : > { %2940 = vst [vmem:[#allocation3 + $0x110] sm:$0xff] %v8067_v2  ;;  %2941 = vst [vmem:[#allocation3 + $0x118] sm:$0x3] %v8067_v2  ;;  %7733 = vmatmul.mubr.f32.gmra.mxu0 %v340_v43  ;;  %1986 = vmatprep.subr.mxu0 %v8067_v2  ;;  %v1656_v29 = vld [vmem:[%s12314_s3 + $0x1d0] sm:$0xff]  ;;  %v360_v30 = vld [vmem:[%s8327_s23 + $0xd8] sm:$0xff] }
  0x39   : > { %2942 = vst [vmem:[#allocation3 + $0x120] sm:$0xff] %v8067_v2  ;;  %2943 = vst [vmem:[#allocation3 + $0x128] sm:$0xff] %v8067_v2  ;;  %7735 = vmatprep.mubr.f32.mxu0 %v341_v44  ;;  %1987 = vmatpush1.msra.mxu0 %v1639_v45  ;;  %v361_v31 = vld [vmem:[%s8327_s23 + $0xe0] sm:$0xff]  ;;  %v1655_v33 = vld [vmem:[%s12314_s3 + $0x1c8] sm:$0xff] }
  0x3a   : > { %2944 = vst [vmem:[#allocation3 + $0x130] sm:$0x3] %v8067_v2  ;;  %2945 = vst [vmem:[#allocation3 + $0x138] sm:$0xff] %v8067_v2  ;;  %1988 = vmatprep.subr.mxu0 %v8067_v2  ;;  %1786 = vmatpush2.msra.mxu1 %v1627_v1  ;;  %v1618_v32 = vld [vmem:[%s12314_s3 + $0xa0] sm:$0xff]  ;;  %v1617_v34 = vld [vmem:[%s12314_s3 + $0x98] sm:$0xff] }
  0x3b   : > { %2946 = vst [vmem:[#allocation3 + $0x140] sm:$0xff] %v8067_v2  ;;  %2947 = vst [vmem:[#allocation3 + $0x148] sm:$0x3] %v8067_v2  ;;  %1989 = vmatpush1.msra.mxu0 %v1638_v47  ;;  %1787 = vmatprep.subr.mxu1 %v8067_v2  ;;  %v362_v35 = vld [vmem:[%s8327_s23 + $0xe8] sm:$0xff]  ;;  %v363_v36 = vld [vmem:[%s8327_s23 + $0xf0] sm:$0xff] }
  0x3c   : > { %2948 = vst [vmem:[#allocation3 + $0x150] sm:$0xff] %v8067_v2  ;;  %2949 = vst [vmem:[#allocation3 + $0x158] sm:$0xff] %v8067_v2  ;;  %7736 = vmatmul.mubr.f32.gmra.mxu0 %v342_v48  ;;  %1990 = vmatprep.subr.mxu0 %v8067_v2  ;;  %v1654_v37 = vld [vmem:[%s12314_s3 + $0x1c0] sm:$0xff]  ;;  %v364_v38 = vld [vmem:[%s8327_s23 + $0xf8] sm:$0xff] }
  0x3d   : > { %2950 = vst [vmem:[#allocation3 + $0x160] sm:$0x3] %v8067_v2  ;;  %2951 = vst [vmem:[#allocation3 + $0x168] sm:$0xff] %v8067_v2  ;;  %7738 = vmatprep.mubr.f32.mxu0 %v343_v49  ;;  %1991 = vmatpush1.msra.mxu0 %v1637_v50  ;;  %v1616_v39 = vld [vmem:[%s12314_s3 + $0x90] sm:$0xff]  ;;  %v1653_v40 = vld [vmem:[%s12314_s3 + $0x1b8] sm:$0xff] }
  0x3e   : > { %2952 = vst [vmem:[#allocation3 + $0x170] sm:$0xff] %v8067_v2  ;;  %2953 = vst [vmem:[#allocation3 + $0x178] sm:$0x3] %v8067_v2  ;;  %1992 = vmatprep.subr.mxu0 %v8067_v2  ;;  %1788 = vmatpush2.msra.mxu1 %v1626_v4  ;;  %v1615_v41 = vld [vmem:[%s12314_s3 + $0x88] sm:$0xff]  ;;  %v1652_v42 = vld [vmem:[%s12314_s3 + $0x1b0] sm:$0xff] }
  0x3f   : > { %2954 = vst [vmem:[#allocation3 + $0x180] sm:$0xff] %v8067_v2  ;;  %2955 = vst [vmem:[#allocation3 + $0x188] sm:$0xff] %v8067_v2  ;;  %1993 = vmatpush1.msra.mxu0 %v1636_v52  ;;  %1789 = vmatprep.subr.mxu1 %v8067_v2  ;;  %v1614_v43 = vld [vmem:[%s12314_s3 + $0x80] sm:$0xff]  ;;  %v1651_v45 = vld [vmem:[%s12314_s3 + $0x1a8] sm:$0xff] }
  0x40   : > { %2956 = vst [vmem:[#allocation3 + $0x190] sm:$0x3] %v8067_v2  ;;  %2957 = vst [vmem:[#allocation3 + $0x198] sm:$0xff] %v8067_v2  ;;  %7739 = vmatmul.mubr.f32.gmra.mxu0 %v344_v53  ;;  %1994 = vmatprep.subr.mxu0 %v8067_v2  ;;  %v797_v44 = vld [vmem:[#allocation2 + $0x1] sm:$0xff]  ;;  %v798_v47 = vld [vmem:[#allocation2 + $0x9] sm:$0xff] }
  0x41   : > { %2958 = vst [vmem:[#allocation3 + $0x1a0] sm:$0xff] %v8067_v2  ;;  %2959 = vst [vmem:[#allocation3 + $0x1a8] sm:$0x3] %v8067_v2  ;;  %7741 = vmatprep.mubr.f32.mxu0 %v345_v54  ;;  %1995 = vmatpush1.msra.mxu0 %v1635_v56  ;;  %v1650_v46 = vld [vmem:[%s12314_s3 + $0x1a0] sm:$0xff]  ;;  %v1649_v48 = vld [vmem:[%s12314_s3 + $0x198] sm:$0xff] }
  0x42   : > { %5166 = vst [vmem:[#allocation4] sm:$0xff] %v8067_v2  ;;  %5167 = vst [vmem:[#allocation4 + $0x8] sm:$0xff] %v8067_v2  ;;  %1996 = vmatprep.subr.mxu0 %v8067_v2  ;;  %1790 = vmatpush2.msra.mxu1 %v1625_v8  ;;  %v1648_v49 = vld [vmem:[%s12314_s3 + $0x190] sm:$0xff]  ;;  %v1677_v50 = vld [vmem:[%s12314_s3 + $0x278] sm:$0xff] }
  0x43   : > { %5168 = vst [vmem:[#allocation4 + $0x10] sm:$0x3] %v8067_v2  ;;  %5169 = vst [vmem:[#allocation4 + $0x18] sm:$0xff] %v8067_v2  ;;  %1997 = vmatpush1.msra.mxu0 %v1634_v60  ;;  %1791 = vmatprep.subr.mxu1 %v8067_v2  ;;  %v1676_v51 = vld [vmem:[%s12314_s3 + $0x270] sm:$0xff]  ;;  %v1647_v52 = vld [vmem:[%s12314_s3 + $0x188] sm:$0xff] }
  0x44   : > { %5170 = vst [vmem:[#allocation4 + $0x20] sm:$0xff] %v8067_v2  ;;  %5171 = vst [vmem:[#allocation4 + $0x28] sm:$0x3] %v8067_v2  ;;  %7742 = vmatmul.mubr.f32.gmra.mxu0 %v346_v58  ;;  %1998 = vmatprep.subr.mxu0 %v8067_v2  ;;  %v1646_v53 = vld [vmem:[%s12314_s3 + $0x180] sm:$0xff]  ;;  %v1675_v54 = vld [vmem:[%s12314_s3 + $0x268] sm:$0xff] }
  0x45   : > { %5172 = vst [vmem:[#allocation4 + $0x30] sm:$0xff] %v8067_v2  ;;  %5173 = vst [vmem:[#allocation4 + $0x38] sm:$0xff] %v8067_v2  ;;  %7744 = vmatprep.mubr.f32.mxu0 %v347_v59  ;;  %1999 = vmatpush1.msra.mxu0 %v1633_v62  ;;  %v1674_v55 = vld [vmem:[%s12314_s3 + $0x260] sm:$0xff]  ;;  %v1673_v56 = vld [vmem:[%s12314_s3 + $0x258] sm:$0xff] }
  0x46   : > { %5174 = vst [vmem:[#allocation4 + $0x40] sm:$0x3] %v8067_v2  ;;  %5175 = vst [vmem:[#allocation4 + $0x48] sm:$0xff] %v8067_v2  ;;  %2000 = vmatprep.subr.mxu0 %v8067_v2  ;;  %1792 = vmatpush2.msra.mxu1 %v1624_v12  ;;  %v1672_v57 = vld [vmem:[%s12314_s3 + $0x250] sm:$0xff]  ;;  %v1671_v58 = vld [vmem:[%s12314_s3 + $0x248] sm:$0xff] }
  0x47   : > { %5176 = vst [vmem:[#allocation4 + $0x50] sm:$0xff] %v8067_v2  ;;  %5177 = vst [vmem:[#allocation4 + $0x58] sm:$0x3] %v8067_v2  ;;  %2001 = vmatpush1.msra.mxu0 %v1632_v3  ;;  %1793 = vmatprep.subr.mxu1 %v8067_v2  ;;  %v1670_v59 = vld [vmem:[%s12314_s3 + $0x240] sm:$0xff]  ;;  %v1669_v60 = vld [vmem:[%s12314_s3 + $0x238] sm:$0xff] }
  0x48   : > { %5178 = vst [vmem:[#allocation4 + $0x60] sm:$0xff] %v8067_v2  ;;  %5179 = vst [vmem:[#allocation4 + $0x68] sm:$0xff] %v8067_v2  ;;  %7745 = vmatmul.mubr.f32.gmra.mxu0 %v348_v63  ;;  %2002 = vmatprep.subr.mxu0 %v8067_v2  ;;  %v1668_v61 = vld [vmem:[%s12314_s3 + $0x230] sm:$0xff]  ;;  %v1667_v62 = vld [vmem:[%s12314_s3 + $0x228] sm:$0xff] }
  0x49   : > { %5180 = vst [vmem:[#allocation4 + $0x70] sm:$0x3] %v8067_v2  ;;  %5181 = vst [vmem:[#allocation4 + $0x78] sm:$0xff] %v8067_v2  ;;  %7747 = vmatprep.mubr.f32.mxu0 %v349_v0  ;;  %2003 = vmatpush1.msra.mxu0 %v1631_v7  ;;  %v1666_v63 = vld [vmem:[%s12314_s3 + $0x220] sm:$0xff]  ;;  %v1665_v0 = vld [vmem:[%s12314_s3 + $0x218] sm:$0xff] }
  0x4a   : > { %5182 = vst [vmem:[#allocation4 + $0x80] sm:$0xff] %v8067_v2  ;;  %5183 = vst [vmem:[#allocation4 + $0x88] sm:$0x3] %v8067_v2  ;;  %2004 = vmatprep.subr.mxu0 %v8067_v2  ;;  %1794 = vmatpush2.msra.mxu1 %v1623_v14  ;;  %v1664_v1 = vld [vmem:[%s12314_s3 + $0x210] sm:$0xff]  ;;  %v8711_v3 = vld [vmem:[#allocation2] sm:$0xff] }
  0x4b   : > { %5184 = vst [vmem:[#allocation4 + $0x90] sm:$0xff] %v8067_v2  ;;  %5185 = vst [vmem:[#allocation4 + $0x98] sm:$0xff] %v8067_v2  ;;  %2005 = vmatpush1.msra.mxu0 %v1630_v9  ;;  %1795 = vmatprep.subr.mxu1 %v8067_v2  ;;  %v1663_v4 = vld [vmem:[%s12314_s3 + $0x208] sm:$0xff]  ;;  %v1690_v8 = vld [vmem:[%s12314_s3 + $0x2e0] sm:$0xff] }
  0x4c   : > { %5186 = vst [vmem:[#allocation4 + $0xa0] sm:$0x3] %v8067_v2  ;;  %5187 = vst [vmem:[#allocation4 + $0xa8] sm:$0xff] %v8067_v2  ;;  %7748 = vmatmul.mubr.f32.gmra.mxu0 %v350_v5  ;;  %2006 = vmatprep.subr.mxu0 %v8067_v2  ;;  %v1693_v5 = vld [vmem:[%s12314_s3 + $0x2f8] sm:$0xff]  ;;  %v1691_v7 = vld [vmem:[%s12314_s3 + $0x2e8] sm:$0xff] }
  0x4d   : > { %5188 = vst [vmem:[#allocation4 + $0xb0] sm:$0xff] %v8067_v2  ;;  %5189 = vst [vmem:[#allocation4 + $0xb8] sm:$0x3] %v8067_v2  ;;  %7750 = vmatprep.mubr.f32.mxu0 %v351_v6  ;;  %2007 = vmatpush2.msra.mxu0 %v1661_v13  ;;  %v1692_v6 = vld [vmem:[%s12314_s3 + $0x2f0] sm:$0xff]  ;;  %v1689_v9 = vld [vmem:[%s12314_s3 + $0x2d8] sm:$0xff] }
  0x4e   : > { %5190 = vst [vmem:[#allocation4 + $0xc0] sm:$0xff] %v8067_v2  ;;  %5191 = vst [vmem:[#allocation4 + $0xc8] sm:$0xff] %v8067_v2  ;;  %2008 = vmatprep.subr.mxu0 %v8067_v2  ;;  %1796 = vmatpush2.msra.mxu1 %v1622_v18  ;;  %v1686_v12 = vld [vmem:[%s12314_s3 + $0x2c0] sm:$0xff]  ;;  %v1685_v13 = vld [vmem:[%s12314_s3 + $0x2b8] sm:$0xff] }
  0x4f   : > { %5192 = vst [vmem:[#allocation4 + $0xd0] sm:$0x3] %v8067_v2  ;;  %5193 = vst [vmem:[#allocation4 + $0xd8] sm:$0xff] %v8067_v2  ;;  %2009 = vmatpush2.msra.mxu0 %v1660_v17  ;;  %1797 = vmatprep.subr.mxu1 %v8067_v2  ;;  %v1684_v14 = vld [vmem:[%s12314_s3 + $0x2b0] sm:$0xff]  ;;  %v1681_v17 = vld [vmem:[%s12314_s3 + $0x298] sm:$0xff] }
  0x50   : > { %5194 = vst [vmem:[#allocation4 + $0xe0] sm:$0xff] %v8067_v2  ;;  %5195 = vst [vmem:[#allocation4 + $0xe8] sm:$0x3] %v8067_v2  ;;  %7751 = vmatmul.mubr.f32.gmra.mxu0 %v352_v10  ;;  %2010 = vmatprep.subr.mxu0 %v8067_v2  ;;  %v1688_v10 = vld [vmem:[%s12314_s3 + $0x2d0] sm:$0xff] }
  0x51   : > { %5196 = vst [vmem:[#allocation4 + $0xf0] sm:$0xff] %v8067_v2  ;;  %5197 = vst [vmem:[#allocation4 + $0xf8] sm:$0xff] %v8067_v2  ;;  %7753 = vmatprep.mubr.f32.mxu0 %v353_v11  ;;  %2011 = vmatpush2.msra.mxu0 %v1659_v19  ;;  %v1687_v11 = vld [vmem:[%s12314_s3 + $0x2c8] sm:$0xff]  ;;  %v1680_v18 = vld [vmem:[%s12314_s3 + $0x290] sm:$0xff] }
  0x52   : > { %5198 = vst [vmem:[#allocation4 + $0x100] sm:$0x3] %v8067_v2  ;;  %5199 = vst [vmem:[#allocation4 + $0x108] sm:$0xff] %v8067_v2  ;;  %2012 = vmatprep.subr.mxu0 %v8067_v2  ;;  %1798 = vmatpush2.msra.mxu1 %v1621_v22  ;;  %v8780_v19 = vld [vmem:[%s12313_s2] ss:$0 sm:$0xff] }
  0x53   : > { %5200 = vst [vmem:[#allocation4 + $0x110] sm:$0xff] %v8067_v2  ;;  %5201 = vst [vmem:[#allocation4 + $0x118] sm:$0x3] %v8067_v2  ;;  %2013 = vmatpush2.msra.mxu0 %v1658_v23  ;;  %1799 = vmatprep.subr.mxu1 %v8067_v2 }
  0x54   : > { %5202 = vst [vmem:[#allocation4 + $0x120] sm:$0xff] %v8067_v2  ;;  %5203 = vst [vmem:[#allocation4 + $0x128] sm:$0xff] %v8067_v2  ;;  %7754 = vmatmul.mubr.f32.gmra.mxu0 %v354_v15  ;;  %2014 = vmatprep.subr.mxu0 %v8067_v2  ;;  %v1683_v15 = vld [vmem:[%s12314_s3 + $0x2a8] sm:$0xff] }
  0x55   : > { %5204 = vst [vmem:[#allocation4 + $0x130] sm:$0x3] %v8067_v2  ;;  %5205 = vst [vmem:[#allocation4 + $0x138] sm:$0xff] %v8067_v2  ;;  %7756 = vmatprep.mubr.f32.mxu0 %v355_v16  ;;  %1800 = vmatpush2.msra.mxu1 %v1620_v24  ;;  %v1682_v16 = vld [vmem:[%s12314_s3 + $0x2a0] sm:$0xff] }
  0x56   : > { %5206 = vst [vmem:[#allocation4 + $0x140] sm:$0xff] %v8067_v2  ;;  %5207 = vst [vmem:[#allocation4 + $0x148] sm:$0x3] %v8067_v2  ;;  %1801 = vmatprep.subr.mxu1 %v8067_v2  ;;  %2015 = vmatpush2.msra.mxu0 %v1657_v27  ;;  %v1678_v27 = vld [vmem:[%s12314_s3 + $0x280] sm:$0xff] }
  0x57   : > { %5208 = vst [vmem:[#allocation4 + $0x150] sm:$0xff] %v8067_v2  ;;  %5209 = vst [vmem:[#allocation4 + $0x158] sm:$0xff] %v8067_v2  ;;  %2016 = vmatprep.subr.mxu0 %v8067_v2  ;;  %1802 = vmatpush2.msra.mxu1 %v1619_v28 }
  0x58   : > { %5210 = vst [vmem:[#allocation4 + $0x160] sm:$0x3] %v8067_v2  ;;  %5211 = vst [vmem:[#allocation4 + $0x168] sm:$0xff] %v8067_v2  ;;  %7757 = vmatmul.mubr.f32.gmra.mxu0 %v356_v20  ;;  %1803 = vmatprep.subr.mxu1 %v8067_v2 }
  0x59   : > { %5212 = vst [vmem:[#allocation4 + $0x170] sm:$0xff] %v8067_v2  ;;  %5213 = vst [vmem:[#allocation4 + $0x178] sm:$0x3] %v8067_v2  ;;  %7759 = vmatprep.mubr.f32.mxu0 %v357_v21  ;;  %2017 = vmatpush2.msra.mxu0 %v1656_v29  ;;  %v1679_v21 = vld [vmem:[%s12314_s3 + $0x288] sm:$0xff] }
  0x5a   : > { %5214 = vst [vmem:[#allocation4 + $0x180] sm:$0xff] %v8067_v2  ;;  %5215 = vst [vmem:[#allocation4 + $0x188] sm:$0xff] %v8067_v2  ;;  %2018 = vmatprep.subr.mxu0 %v8067_v2  ;;  %1804 = vmatpush2.msra.mxu1 %v1618_v32 }
  0x5b   : > { %5216 = vst [vmem:[#allocation4 + $0x190] sm:$0x3] %v8067_v2  ;;  %5217 = vst [vmem:[#allocation4 + $0x198] sm:$0xff] %v8067_v2  ;;  %2019 = vmatpush2.msra.mxu0 %v1655_v33  ;;  %1805 = vmatprep.subr.mxu1 %v8067_v2 }
  0x5c   : > { %5218 = vst [vmem:[#allocation4 + $0x1a0] sm:$0xff] %v8067_v2  ;;  %5219 = vst [vmem:[#allocation4 + $0x1a8] sm:$0x3] %v8067_v2  ;;  %7760 = vmatmul.mubr.f32.gmra.mxu0 %v358_v25  ;;  %2020 = vmatprep.subr.mxu0 %v8067_v2 }
  0x5d   : > { %7762 = vmatprep.mubr.f32.mxu0 %v359_v26  ;;  %1806 = vmatpush2.msra.mxu1 %v1617_v34 }
  0x5e   : > { %1807 = vmatprep.subr.mxu1 %v8067_v2  ;;  %2021 = vmatpush2.msra.mxu0 %v1654_v37 }
  0x5f   : > { %2022 = vmatprep.subr.mxu0 %v8067_v2  ;;  %1808 = vmatpush2.msra.mxu1 %v1616_v39 }
  0x60   : > { %7763 = vmatmul.mubr.f32.gmra.mxu0 %v360_v30  ;;  %1809 = vmatprep.subr.mxu1 %v8067_v2  ;;  %v8797_v30 = vld [vmem:[%s12314_s3 + $0x478] sm:$0xff] }
  0x61   : > { %7765 = vmatprep.mubr.f32.mxu0 %v361_v31  ;;  %2023 = vmatpush2.msra.mxu0 %v1653_v40 }
  0x62   : > { %2024 = vmatprep.subr.mxu0 %v8067_v2  ;;  %1810 = vmatpush2.msra.mxu1 %v1615_v41 }
  0x63   : > { %2025 = vmatpush2.msra.mxu0 %v1652_v42  ;;  %1811 = vmatprep.subr.mxu1 %v8067_v2  ;;  %v861_v42 = vld [vmem:[#allocation2 + $0x2] sm:$0xff] }
  0x64   : > { %7766 = vmatmul.mubr.f32.gmra.mxu0 %v362_v35  ;;  %2026 = vmatprep.subr.mxu0 %v8067_v2 }
  0x65   : > { %7768 = vmatprep.mubr.f32.mxu0 %v363_v36  ;;  %1812 = vmatpush2.msra.mxu1 %v1614_v43 }
  0x66   : > { %1813 = vmatprep.mubr.f32.mxu1 %v797_v44  ;;  %2027 = vmatpush2.msra.mxu0 %v1651_v45 }
  0x67   : > { %1814 = vmatmul.mubr.f32.vlgmr.msra.gmra.mxu1 %v8067_v2  ;;  %2028 = vmatprep.subr.mxu0 %v8067_v2 }
  0x68   : > { %7769 = vmatmul.mubr.f32.gmra.mxu0 %v364_v38  ;;  %2199 = vmatprep.subr.mxu1 %v8067_v2 }
  0x69   : > { %2029 = vmatpush2.msra.mxu0 %v1650_v46  ;;  %1818 = vmatprep.mubr.f32.mxu1 %v798_v47 }
  0x6a   : > { %2030 = vmatprep.subr.mxu0 %v8067_v2  ;;  %2200 = vmatpush1.msra.mxu1 %v1677_v50 }
  0x6b   : > { %2031 = vmatpush2.msra.mxu0 %v1649_v48  ;;  %1819 = vmatmul.mubr.f32.gmra.mxu1 %v8067_v2 }
  0x6c   : > { %2032 = vmatprep.subr.mxu0 %v8067_v2  ;;  %2201 = vmatprep.subr.mxu1 %v8067_v2 }
  0x6d   : > { %2033 = vmatpush2.msra.mxu0 %v1648_v49  ;;  %2202 = vmatpush1.msra.mxu1 %v1676_v51  ;;  %v1709_v49 = vld [vmem:[%s12314_s3 + $0x378] sm:$0xff] }
  0x6e   : > { %2034 = vmatprep.subr.mxu0 %v8067_v2  ;;  %2203 = vmatprep.subr.mxu1 %v8067_v2 }
  0x6f   : > { %2035 = vmatpush2.msra.mxu0 %v1647_v52  ;;  %2204 = vmatpush1.msra.mxu1 %v1675_v54 }
  0x70   : > { %2036 = vmatprep.subr.mxu0 %v8067_v2  ;;  %2205 = vmatprep.subr.mxu1 %v8067_v2 }
  0x71   : > { %2037 = vmatpush2.msra.mxu0 %v1646_v53  ;;  %2206 = vmatpush1.msra.mxu1 %v1674_v55  ;;  %v862_v53 = vld [vmem:[#allocation2 + $0xa] sm:$0xff] }
  0x72   : > { %2424 = vmatprep.subr.mxu0 %v8067_v2  ;;  %2207 = vmatprep.subr.mxu1 %v8067_v2 }
  0x73   : > { %2208 = vmatpush1.msra.mxu1 %v1673_v56 }
  0x74   : > { %2209 = vmatprep.subr.mxu1 %v8067_v2 }
  0x75   : > { %2210 = vmatpush1.msra.mxu1 %v1672_v57 }
  0x76   : > { %2211 = vmatprep.subr.mxu1 %v8067_v2 }
  0x77   : > { %2212 = vmatpush1.msra.mxu1 %v1671_v58 }
  0x78   : > { %2213 = vmatprep.subr.mxu1 %v8067_v2 }
  0x79   : > { %2214 = vmatpush1.msra.mxu1 %v1670_v59 }
  0x7a   : > { %2215 = vmatprep.subr.mxu1 %v8067_v2 }
  0x7b   : > { %2216 = vmatpush1.msra.mxu1 %v1669_v60 }
  0x7c   : > { %2217 = vmatprep.subr.mxu1 %v8067_v2 }
  0x7d   : > { %2218 = vmatpush1.msra.mxu1 %v1668_v61  ;;  %v1708_v61 = vld [vmem:[%s12314_s3 + $0x370] sm:$0xff] }
  0x7e   : > { %2219 = vmatprep.subr.mxu1 %v8067_v2 }
  0x7f   : > { %2220 = vmatpush1.msra.mxu1 %v1667_v62 }
  0x80   : > { %2221 = vmatprep.subr.mxu1 %v8067_v2 }
  0x81   : > { %2222 = vmatpush1.msra.mxu1 %v1666_v63 }
  0x82   : > { %2223 = vmatprep.subr.mxu1 %v8067_v2 }
  0x83   : > { %2224 = vmatpush1.msra.mxu1 %v1665_v0 }
  0x84   : > { %2225 = vmatprep.subr.mxu1 %v8067_v2  ;;  %v1662_v2 = vld [vmem:[%s12314_s3 + $0x200] sm:$0xff] }
  0x85   : > { %2226 = vmatpush1.msra.mxu1 %v1664_v1 }
  0x86   : > { %2227 = vmatprep.subr.mxu1 %v8711_v3 }
  0x87   : > { %2228 = vmatpush1.msra.mxu1 %v1663_v4 }
  0x88   : > { %2229 = vmatprep.subr.mxu1 %v8711_v3 }
  0x89   : > { %2230 = vmatpush1.msra.mxu1 %v1662_v2 }
  0x8a   : > { %2231 = vmatprep.subr.mxu1 %v8711_v3 }
  0x8b   : > { %2232 = vmatpush2.msra.mxu1 %v1693_v5 }
  0x8c   : > { %2233 = vmatprep.subr.mxu1 %v8711_v3 }
  0x8d   : > { %2234 = vmatpush2.msra.mxu1 %v1692_v6  ;;  %v1707_v6 = vld [vmem:[%s12314_s3 + $0x368] sm:$0xff] }
  0x8e   : > { %2235 = vmatprep.subr.mxu1 %v8711_v3 }
  0x8f   : > { %2236 = vmatpush2.msra.mxu1 %v1691_v7 }
  0x90   : > { %2237 = vmatprep.subr.mxu1 %v8711_v3 }
  0x91   : > { %2238 = vmatpush2.msra.mxu1 %v1690_v8 }
  0x92   : > { %2239 = vmatprep.subr.mxu1 %v8711_v3 }
  0x93   : > { %2240 = vmatpush2.msra.mxu1 %v1689_v9 }
  0x94   : > { %2241 = vmatprep.subr.mxu1 %v8711_v3 }
  0x95   : > { %2242 = vmatpush2.msra.mxu1 %v1688_v10 }
  0x96   : > { %2243 = vmatprep.subr.mxu1 %v8711_v3 }
  0x97   : > { %2244 = vmatpush2.msra.mxu1 %v1687_v11 }
  0x98   : > { %2245 = vmatprep.subr.mxu1 %v8711_v3 }
  0x99   : > { %2246 = vmatpush2.msra.mxu1 %v1686_v12 }
  0x9a   : > { %2247 = vmatprep.subr.mxu1 %v8711_v3 }
  0x9b   : > { %2248 = vmatpush2.msra.mxu1 %v1685_v13 }
  0x9c   : > { %2249 = vmatprep.subr.mxu1 %v8711_v3 }
  0x9d   : > { %2250 = vmatpush2.msra.mxu1 %v1684_v14 }
  0x9e   : > { %2251 = vmatprep.subr.mxu1 %v8711_v3 }
  0x9f   : > { %2252 = vmatpush2.msra.mxu1 %v1683_v15 }
  0xa0   : > { %2253 = vmatprep.subr.mxu1 %v8711_v3 }
  0xa1   : > { %2254 = vmatpush2.msra.mxu1 %v1682_v16 }
  0xa2   : > { %2255 = vmatprep.subr.mxu1 %v8711_v3 }
  0xa3   : > { %2256 = vmatpush2.msra.mxu1 %v1681_v17 }
  0xa4   : > { %2257 = vmatprep.subr.mxu1 %v8711_v3 }
  0xa5   : > { %2258 = vmatpush2.msra.mxu1 %v1680_v18  ;;  %v1706_v18 = vld [vmem:[%s12314_s3 + $0x360] sm:$0xff] }
  0xa6   : > { %2259 = vmatprep.subr.mxu1 %v8711_v3 }
  0xa7   : > { %2260 = vmatpush2.msra.mxu1 %v1679_v21 }
  0xa8   : > { %2261 = vmatprep.subr.mxu1 %v8711_v3 }
  0xa9   : > { %2262 = vmatpush2.msra.mxu1 %v1678_v27  ;;  %v1705_v27 = vld [vmem:[%s12314_s3 + $0x358] sm:$0xff] }
  0xaa   : > { %7771 = vmatprep.subr.mxu1 %v8797_v30 }
  0xec   : > { %v7725_v20 = vpop.f32.mrf.mxu0 }
  0xed   : > { %v460_v22 = vadd.f32 %v7725_v20, %v8780_v19 }
  0xee   : > { %v454_v23 = vpop.f32.mrf.mxu0 }
  0xef   : > { %v614_v24 = vmax.f32 %v460_v22, 0.0  ;;  %v455_v25 = vadd.f32 %v8780_v19, %v454_v23 }
  0xf0   : > { %v7728_v26 = vpop.f32.mrf.mxu0 }
  0xf1   : > { %702 = vst.msk [vmem:[#allocation2 + $0x21] sm:$0xff] %vm700_vm0, %v614_v24  ;;  %v613_v28 = vmax.f32 %v455_v25, 0.0  ;;  %v470_v29 = vadd.f32 %v7728_v26, %v8780_v19 }
  0xf2   : > { %v464_v31 = vpop.f32.mrf.mxu0 }
  0xf3   : > { %701 = vst.msk [vmem:[#allocation2 + $0x19] sm:$0xff] %vm700_vm0, %v613_v28  ;;  %v616_v32 = vmax.f32 %v470_v29, 0.0  ;;  %v465_v33 = vadd.f32 %v8780_v19, %v464_v31 }
  0xf4   : > { %v7731_v34 = vpop.f32.mrf.mxu0 }
  0xf5   : > { %704 = vst.msk [vmem:[#allocation2 + $0x39] sm:$0xff] %vm700_vm0, %v616_v32  ;;  %v615_v35 = vmax.f32 %v465_v33, 0.0  ;;  %v480_v36 = vadd.f32 %v7731_v34, %v8780_v19 }
  0xf6   : > { %v474_v37 = vpop.f32.mrf.mxu0 }
  0xf7   : > { %703 = vst.msk [vmem:[#allocation2 + $0x31] sm:$0xff] %vm700_vm0, %v615_v35  ;;  %v618_v38 = vmax.f32 %v480_v36, 0.0  ;;  %v475_v39 = vadd.f32 %v8780_v19, %v474_v37 }
  0xf8   : > { %v7734_v40 = vpop.f32.mrf.mxu0  ;;  %v800_v50 = vld [vmem:[#allocation2 + $0x21] sm:$0xff] }
  0xf9   : > { %706 = vst.msk [vmem:[#allocation2 + $0x51] sm:$0xff] %vm700_vm0, %v618_v38  ;;  %v617_v41 = vmax.f32 %v475_v39, 0.0  ;;  %v490_v43 = vadd.f32 %v7734_v40, %v8780_v19  ;;  %v8834_v15 = vld [vmem:[#allocation2 + $0x22] sm:$0xff]  ;;  %v1704_v40 = vld [vmem:[%s12314_s3 + $0x350] sm:$0xff] }
  0xfa   : > { %v799_v44 = vld [vmem:[#allocation2 + $0x19] sm:$0xff]  ;;  %v484_v46 = vpop.f32.mrf.mxu0 }
  0xfb   : > { %v925_v45 = vld [vmem:[#allocation2 + $0x18] sm:$0xff]  ;;  %1823 = vmatprep.mubr.f32.mxu1 %v799_v44  ;;  %705 = vst.msk [vmem:[#allocation2 + $0x49] sm:$0xff] %vm700_vm0, %v617_v41  ;;  %v620_v47 = vmax.f32 %v490_v43, 0.0  ;;  %v485_v48 = vadd.f32 %v8780_v19, %v484_v46  ;;  %v926_v51 = vld [vmem:[#allocation2 + $0x20] sm:$0xff] }
  0xfc   : > { %2038 = vmatprep.mubr.f32.mxu0 %v925_v45  ;;  %1824 = vmatmul.mubr.f32.gmra.mxu1 %v925_v45  ;;  %v7737_v52 = vpop.f32.mrf.mxu0  ;;  %v8823_v4 = vld [vmem:[#allocation2 + $0x1a] sm:$0xff] }
  0xfd   : > { %2039 = vmatmul.mubr.f32.vlgmr.msra.gmra.mxu0 %v861_v42  ;;  %1828 = vmatprep.mubr.f32.mxu1 %v800_v50  ;;  %708 = vst.msk [vmem:[#allocation2 + $0x69] sm:$0xff] %vm700_vm0, %v620_v47  ;;  %v619_v54 = vmax.f32 %v485_v48, 0.0  ;;  %v500_v55 = vadd.f32 %v7737_v52, %v8780_v19  ;;  %v802_v7 = vld [vmem:[#allocation2 + $0x39] sm:$0xff]  ;;  %v1703_v48 = vld [vmem:[%s12314_s3 + $0x348] sm:$0xff] }
  0xfe   : > { %2043 = vmatprep.mubr.f32.mxu0 %v926_v51  ;;  %v801_v56 = vld [vmem:[#allocation2 + $0x31] sm:$0xff]  ;;  %v494_v58 = vpop.f32.mrf.mxu0  ;;  %2425 = vmatpush1.msra.mxu0 %v1709_v49  ;;  %v8866_v37 = vld [vmem:[#allocation2 + $0x3a] sm:$0xff] }
  0xff   : > { %v927_v57 = vld [vmem:[#allocation2 + $0x30] sm:$0xff]  ;;  %707 = vst.msk [vmem:[#allocation2 + $0x61] sm:$0xff] %vm700_vm0, %v619_v54  ;;  %v622_v59 = vmax.f32 %v500_v55, 0.0  ;;  %v495_v60 = vadd.f32 %v8780_v19, %v494_v58  ;;  %2426 = vmatprep.subr.mxu0 %v8711_v3  ;;  %v928_v8 = vld [vmem:[#allocation2 + $0x38] sm:$0xff] }
 0x100   : > { %1829 = vmatmul.mubr.f32.gmra.mxu1 %v926_v51  ;;  %v7740_v62 = vpop.f32.mrf.mxu0  ;;  %2427 = vmatpush1.msra.mxu0 %v1708_v61  ;;  %v8845_v24 = vld [vmem:[#allocation2 + $0x32] sm:$0xff] }
 0x101   : > { %2044 = vmatmul.mubr.f32.gmra.mxu0 %v862_v53  ;;  %1833 = vmatprep.mubr.f32.mxu1 %v801_v56  ;;  %710 = vst.msk [vmem:[#allocation2 + $0x81] sm:$0xff] %vm700_vm0, %v622_v59  ;;  %v621_v63 = vmax.f32 %v495_v60, 0.0  ;;  %v510_v0 = vadd.f32 %v7740_v62, %v8780_v19  ;;  %v8854_v28 = vld [vmem:[#allocation2 + $0x51] sm:$0xff]  ;;  %v1702_v60 = vld [vmem:[%s12314_s3 + $0x340] sm:$0xff] }
 0x102   : > { %2048 = vmatprep.mubr.f32.mxu0 %v927_v57  ;;  %v504_v1 = vpop.f32.mrf.mxu0  ;;  %2428 = vmatprep.subr.mxu0 %v8711_v3  ;;  %v803_v12 = vld [vmem:[#allocation2 + $0x49] sm:$0xff] }
 0x103   : > { %709 = vst.msk [vmem:[#allocation2 + $0x79] sm:$0xff] %vm700_vm0, %v621_v63  ;;  %v624_v2 = vmax.f32 %v510_v0, 0.0  ;;  %v505_v5 = vadd.f32 %v8780_v19, %v504_v1  ;;  %v929_v13 = vld [vmem:[#allocation2 + $0x48] sm:$0xff]  ;;  %2429 = vmatpush1.msra.mxu0 %v1707_v6  ;;  %v8856_v29 = vld [vmem:[#allocation2 + $0x50] sm:$0xff]  ;;  %v1701_v6 = vld [vmem:[%s12314_s3 + $0x338] sm:$0xff] }
 0x104   : > { %1834 = vmatmul.mubr.f32.gmra.mxu1 %v927_v57  ;;  %v7743_v9 = vpop.f32.mrf.mxu0  ;;  %2430 = vmatprep.subr.mxu0 %v8711_v3  ;;  %v8880_v45 = vld [vmem:[#allocation2 + $0x4a] sm:$0xff]  ;;  %v8902_v57 = vld [vmem:[#allocation2 + $0x52] sm:$0xff] }
 0x105   : > { %2049 = vmatmul.mubr.f32.gmra.mxu0 %v8823_v4  ;;  %1838 = vmatprep.mubr.f32.mxu1 %v802_v7  ;;  %712 = vst.msk [vmem:[#allocation2 + $0x99] sm:$0xff] %vm700_vm0, %v624_v2  ;;  %v623_v10 = vmax.f32 %v505_v5, 0.0  ;;  %v520_v11 = vadd.f32 %v7743_v9, %v8780_v19  ;;  %v8890_v49 = vld [vmem:[#allocation2 + $0x69] sm:$0xff] }
 0x106   : > { %2053 = vmatprep.mubr.f32.mxu0 %v928_v8  ;;  %v514_v14 = vpop.f32.mrf.mxu0  ;;  %2431 = vmatpush1.msra.mxu0 %v1706_v18  ;;  %v8862_v34 = vld [vmem:[#allocation2 + $0x61] sm:$0xff] }
 0x107   : > { %711 = vst.msk [vmem:[#allocation2 + $0x91] sm:$0xff] %vm700_vm0, %v623_v10  ;;  %v626_v16 = vmax.f32 %v520_v11, 0.0  ;;  %v515_v17 = vadd.f32 %v8780_v19, %v514_v14  ;;  %2432 = vmatprep.subr.mxu0 %v8711_v3  ;;  %v8864_v35 = vld [vmem:[#allocation2 + $0x60] sm:$0xff]  ;;  %v8892_v50 = vld [vmem:[#allocation2 + $0x68] sm:$0xff] }
 0x108   : > { %1839 = vmatmul.mubr.f32.gmra.mxu1 %v928_v8  ;;  %v7746_v20 = vpop.f32.mrf.mxu0  ;;  %2433 = vmatpush1.msra.mxu0 %v1705_v27  ;;  %v8916_v1 = vld [vmem:[#allocation2 + $0x62] sm:$0xff] }
 0x109   : > { %2054 = vmatmul.mubr.f32.gmra.mxu0 %v8834_v15  ;;  %1843 = vmatprep.mubr.f32.mxu1 %v803_v12  ;;  %714 = vst.msk [vmem:[#allocation2 + $0xb1] sm:$0xff] %vm700_vm0, %v626_v16  ;;  %v625_v21 = vmax.f32 %v515_v17, 0.0  ;;  %v530_v22 = vadd.f32 %v7746_v20, %v8780_v19  ;;  %v8926_v7 = vld [vmem:[#allocation2 + $0x81] sm:$0xff]  ;;  %v8938_v16 = vld [vmem:[#allocation2 + $0x6a] sm:$0xff] }
 0x10a   : > { %2058 = vmatprep.mubr.f32.mxu0 %v929_v13  ;;  %v524_v23 = vpop.f32.mrf.mxu0  ;;  %2434 = vmatprep.subr.mxu0 %v8711_v3  ;;  %v8898_v54 = vld [vmem:[#allocation2 + $0x79] sm:$0xff]  ;;  %v1700_v20 = vld [vmem:[%s12314_s3 + $0x330] sm:$0xff]  ;;  %v1699_v27 = vld [vmem:[%s12314_s3 + $0x328] sm:$0xff] }
 0x10b   : > { %713 = vst.msk [vmem:[#allocation2 + $0xa9] sm:$0xff] %vm700_vm0, %v625_v21  ;;  %v628_v25 = vmax.f32 %v530_v22, 0.0  ;;  %v525_v26 = vadd.f32 %v8780_v19, %v524_v23  ;;  %2435 = vmatpush1.msra.mxu0 %v1704_v40  ;;  %v8900_v55 = vld [vmem:[#allocation2 + $0x78] sm:$0xff]  ;;  %v8928_v8 = vld [vmem:[#allocation2 + $0x80] sm:$0xff] }
 0x10c   : > { %1844 = vmatmul.mubr.f32.gmra.mxu1 %v929_v13  ;;  %v7749_v31 = vpop.f32.mrf.mxu0  ;;  %2436 = vmatprep.subr.mxu0 %v8711_v3 }
 0x10d   : > { %2059 = vmatmul.mubr.f32.gmra.mxu0 %v8845_v24  ;;  %1848 = vmatprep.mubr.f32.mxu1 %v8854_v28  ;;  %716 = vst.msk [vmem:[#allocation2 + $0xc9] sm:$0xff] %vm700_vm0, %v628_v25  ;;  %v627_v32 = vmax.f32 %v525_v26, 0.0  ;;  %v540_v33 = vadd.f32 %v7749_v31, %v8780_v19  ;;  %v8952_v26 = vld [vmem:[#allocation2 + $0x7a] sm:$0xff] }
 0x10e   : > { %2063 = vmatprep.mubr.f32.mxu0 %v8856_v29  ;;  %v534_v36 = vpop.f32.mrf.mxu0  ;;  %2437 = vmatpush1.msra.mxu0 %v1703_v48  ;;  %v8934_v12 = vld [vmem:[#allocation2 + $0x91] sm:$0xff] }
 0x10f   : > { %715 = vst.msk [vmem:[#allocation2 + $0xc1] sm:$0xff] %vm700_vm0, %v627_v32  ;;  %v630_v38 = vmax.f32 %v540_v33, 0.0  ;;  %v535_v39 = vadd.f32 %v8780_v19, %v534_v36  ;;  %2438 = vmatprep.subr.mxu0 %v8711_v3  ;;  %v8936_v13 = vld [vmem:[#allocation2 + $0x90] sm:$0xff]  ;;  %v8962_v33 = vld [vmem:[#allocation2 + $0x99] sm:$0xff] }
 0x110   : > { %1849 = vmatmul.mubr.f32.gmra.mxu1 %v8856_v29  ;;  %v7752_v41 = vpop.f32.mrf.mxu0  ;;  %2439 = vmatpush1.msra.mxu0 %v1702_v60  ;;  %v8964_v36 = vld [vmem:[#allocation2 + $0x98] sm:$0xff] }
 0x111   : > { %2064 = vmatmul.mubr.f32.gmra.mxu0 %v8866_v37  ;;  %1853 = vmatprep.mubr.f32.mxu1 %v8862_v34  ;;  %718 = vst.msk [vmem:[#allocation2 + $0xe1] sm:$0xff] %vm700_vm0, %v630_v38  ;;  %v629_v42 = vmax.f32 %v535_v39, 0.0  ;;  %v550_v43 = vadd.f32 %v7752_v41, %v8780_v19 }
 0x112   : > { %2068 = vmatprep.mubr.f32.mxu0 %v8864_v35  ;;  %v544_v44 = vpop.f32.mrf.mxu0  ;;  %2440 = vmatprep.subr.mxu0 %v8711_v3  ;;  %v8970_v41 = vld [vmem:[#allocation2 + $0xa9] sm:$0xff] }
 0x113   : > { %717 = vst.msk [vmem:[#allocation2 + $0xd9] sm:$0xff] %vm700_vm0, %v629_v42  ;;  %v632_v46 = vmax.f32 %v550_v43, 0.0  ;;  %v545_v47 = vadd.f32 %v8780_v19, %v544_v44  ;;  %2441 = vmatpush1.msra.mxu0 %v1701_v6  ;;  %v8972_v42 = vld [vmem:[#allocation2 + $0xa8] sm:$0xff]  ;;  %v1696_v6 = vld [vmem:[%s12314_s3 + $0x310] sm:$0xff] }
 0x114   : > { %1854 = vmatmul.mubr.f32.gmra.mxu1 %v8864_v35  ;;  %v7755_v51 = vpop.f32.mrf.mxu0  ;;  %2442 = vmatprep.subr.mxu0 %v8711_v3  ;;  %v8974_v44 = vld [vmem:[#allocation2 + $0x82] sm:$0xff] }
 0x115   : > { %2069 = vmatmul.mubr.f32.gmra.mxu0 %v8880_v45  ;;  %1858 = vmatprep.mubr.f32.mxu1 %v8890_v49  ;;  %720 = vst.msk [vmem:[#allocation2 + $0xf9] sm:$0xff] %vm700_vm0, %v632_v46  ;;  %v631_v52 = vmax.f32 %v545_v47, 0.0  ;;  %v560_v53 = vadd.f32 %v7755_v51, %v8780_v19  ;;  %v1698_v46 = vld [vmem:[%s12314_s3 + $0x320] sm:$0xff] }
 0x116   : > { %2073 = vmatprep.mubr.f32.mxu0 %v8892_v50  ;;  %v554_v56 = vpop.f32.mrf.mxu0  ;;  %2443 = vmatpush1.msra.mxu0 %v1700_v20 }
 0x117   : > { %719 = vst.msk [vmem:[#allocation2 + $0xf1] sm:$0xff] %vm700_vm0, %v631_v52  ;;  %v634_v58 = vmax.f32 %v560_v53, 0.0  ;;  %v555_v59 = vadd.f32 %v8780_v19, %v554_v56  ;;  %2444 = vmatprep.subr.mxu0 %v8711_v3 }
 0x118   : > { %1859 = vmatmul.mubr.f32.gmra.mxu1 %v8892_v50  ;;  %v7758_v61 = vpop.f32.mrf.mxu0  ;;  %2445 = vmatpush1.msra.mxu0 %v1699_v27 }
 0x119   : > { %2074 = vmatmul.mubr.f32.gmra.mxu0 %v8902_v57  ;;  %1863 = vmatprep.mubr.f32.mxu1 %v8898_v54  ;;  %722 = vst.msk [vmem:[#allocation2 + $0x111] sm:$0xff] %vm700_vm0, %v634_v58  ;;  %v633_v62 = vmax.f32 %v555_v59, 0.0  ;;  %v570_v63 = vadd.f32 %v7758_v61, %v8780_v19  ;;  %v8988_v58 = vld [vmem:[#allocation2 + $0x92] sm:$0xff] }
 0x11a   : > { %2078 = vmatprep.mubr.f32.mxu0 %v8900_v55  ;;  %v564_v0 = vpop.f32.mrf.mxu0  ;;  %2446 = vmatprep.subr.mxu0 %v8711_v3  ;;  %v1697_v59 = vld [vmem:[%s12314_s3 + $0x318] sm:$0xff] }
 0x11b   : > { %721 = vst.msk [vmem:[#allocation2 + $0x109] sm:$0xff] %vm700_vm0, %v633_v62  ;;  %v636_v2 = vmax.f32 %v570_v63, 0.0  ;;  %v565_v5 = vadd.f32 %v8780_v19, %v564_v0  ;;  %2447 = vmatpush1.msra.mxu0 %v1698_v46  ;;  %v8998_v62 = vld [vmem:[#allocation2 + $0xb1] sm:$0xff]  ;;  %v9036_v20 = vld [vmem:[#allocation2 + $0xd9] sm:$0xff] }
 0x11c   : > { %1864 = vmatmul.mubr.f32.gmra.mxu1 %v8900_v55  ;;  %v7761_v9 = vpop.f32.mrf.mxu0  ;;  %2448 = vmatprep.subr.mxu0 %v8711_v3  ;;  %v9000_v63 = vld [vmem:[#allocation2 + $0xb0] sm:$0xff] }
 0x11d   : > { %2079 = vmatmul.mubr.f32.gmra.mxu0 %v8916_v1  ;;  %1868 = vmatprep.mubr.f32.mxu1 %v8926_v7  ;;  %724 = vst.msk [vmem:[#allocation2 + $0x129] sm:$0xff] %vm700_vm0, %v636_v2  ;;  %v635_v10 = vmax.f32 %v565_v5, 0.0  ;;  %v580_v11 = vadd.f32 %v7761_v9, %v8780_v19  ;;  %v9005_v2 = vld [vmem:[#allocation2 + $0xc1] sm:$0xff]  ;;  %v9070_v46 = vld [vmem:[#allocation2 + $0xca] sm:$0xff] }
 0x11e   : > { %2083 = vmatprep.mubr.f32.mxu0 %v8928_v8  ;;  %v574_v14 = vpop.f32.mrf.mxu0  ;;  %v9007_v5 = vld [vmem:[#allocation2 + $0xc0] sm:$0xff]  ;;  %2449 = vmatpush1.msra.mxu0 %v1697_v59 }
 0x11f   : > { %723 = vst.msk [vmem:[#allocation2 + $0x121] sm:$0xff] %vm700_vm0, %v635_v10  ;;  %v638_v17 = vmax.f32 %v580_v11, 0.0  ;;  %v575_v18 = vadd.f32 %v8780_v19, %v574_v14  ;;  %2450 = vmatprep.subr.mxu0 %v8711_v3  ;;  %v9022_v10 = vld [vmem:[#allocation2 + $0xaa] sm:$0xff] }
 0x120   : > { %1869 = vmatmul.mubr.f32.gmra.mxu1 %v8928_v8  ;;  %v7764_v21 = vpop.f32.mrf.mxu0  ;;  %2451 = vmatpush1.msra.mxu0 %v1696_v6  ;;  %v1695_v11 = vld [vmem:[%s12314_s3 + $0x308] sm:$0xff]  ;;  %v1721_v6 = vld [vmem:[%s12314_s3 + $0x3d8] sm:$0xff] }
 0x121   : > { %2084 = vmatmul.mubr.f32.gmra.mxu0 %v8938_v16  ;;  %1873 = vmatprep.mubr.f32.mxu1 %v8934_v12  ;;  %726 = vst.msk [vmem:[#allocation2 + $0x141] sm:$0xff] %vm700_vm0, %v638_v17  ;;  %v637_v22 = vmax.f32 %v575_v18, 0.0  ;;  %v590_v23 = vadd.f32 %v7764_v21, %v8780_v19  ;;  %v9030_v14 = vld [vmem:[#allocation2 + $0xc9] sm:$0xff]  ;;  %v9038_v21 = vld [vmem:[#allocation2 + $0xd8] sm:$0xff] }
 0x122   : > { %2088 = vmatprep.mubr.f32.mxu0 %v8936_v13  ;;  %v584_v25 = vpop.f32.mrf.mxu0  ;;  %2452 = vmatprep.subr.mxu0 %v8711_v3  ;;  %v9032_v17 = vld [vmem:[#allocation2 + $0xc8] sm:$0xff] }
 0x123   : > { %725 = vst.msk [vmem:[#allocation2 + $0x139] sm:$0xff] %vm700_vm0, %v637_v22  ;;  %v640_v31 = vmax.f32 %v590_v23, 0.0  ;;  %v585_v32 = vadd.f32 %v8780_v19, %v584_v25  ;;  %2453 = vmatpush1.msra.mxu0 %v1695_v11  ;;  %v9042_v23 = vld [vmem:[#allocation2 + $0xb2] sm:$0xff]  ;;  %v1694_v25 = vld [vmem:[%s12314_s3 + $0x300] sm:$0xff]  ;;  %v9096_v59 = vld [vmem:[#allocation2 + $0x108] sm:$0xff] }
 0x124   : > { %1874 = vmatmul.mubr.f32.gmra.mxu1 %v8936_v13  ;;  %v7767_v38 = vpop.f32.mrf.mxu0  ;;  %2454 = vmatprep.subr.mxu0 %v8711_v3  ;;  %12401 = vst [vmem:[#allocation8_spill] sm:$0xff] %v9096_v59  ;;  %v9116_v11 = vld [vmem:[#allocation2 + $0x111] sm:$0xff] }
 0x125   : > { %2089 = vmatmul.mubr.f32.gmra.mxu0 %v8952_v26  ;;  %1878 = vmatprep.mubr.f32.mxu1 %v8962_v33  ;;  %728 = vst.msk [vmem:[#allocation2 + $0x159] sm:$0xff] %vm700_vm0, %v640_v31  ;;  %v639_v39 = vmax.f32 %v585_v32, 0.0  ;;  %v600_v40 = vadd.f32 %v7767_v38, %v8780_v19  ;;  %v9052_v31 = vld [vmem:[#allocation2 + $0xc2] sm:$0xff]  ;;  %v1725_v32 = vld [vmem:[%s12314_s3 + $0x3f8] sm:$0xff]  ;;  %12402 = vst [vmem:[#allocation9_spill] sm:$0xff] %v9116_v11 }
 0x126   : > { %2093 = vmatprep.mubr.f32.mxu0 %v8964_v36  ;;  %v594_v43 = vpop.f32.mrf.mxu0  ;;  %2455 = vmatpush1.msra.mxu0 %v1694_v25  ;;  %v9060_v38 = vld [vmem:[#allocation2 + $0xe1] sm:$0xff] }
 0x127   : > { %727 = vst.msk [vmem:[#allocation2 + $0x151] sm:$0xff] %vm700_vm0, %v639_v39  ;;  %v642_v47 = vmax.f32 %v600_v40, 0.0  ;;  %v595_v48 = vadd.f32 %v8780_v19, %v594_v43  ;;  %v9020_v9 = vpop.f32.mrf.mxu1  ;;  %2456 = vmatprep.subr.mxu0 %v8711_v3  ;;  %v9062_v39 = vld [vmem:[#allocation2 + $0xe0] sm:$0xff]  ;;  %v9066_v40 = vld [vmem:[#allocation2 + $0xf1] sm:$0xff] }
 0x128   : > { %1879 = vmatmul.mubr.f32.gmra.mxu1 %v8964_v36  ;;  %v7770_v51 = vpop.f32.mrf.mxu0  ;;  %v9068_v43 = vld [vmem:[#allocation2 + $0xf0] sm:$0xff]  ;;  %2457 = vmatpush2.msra.mxu0 %v1725_v32  ;;  %v9122_v25 = vld [vmem:[#allocation2 + $0x121] sm:$0xff] }
 0x129   : > { %2094 = vmatmul.mubr.f32.gmra.mxu0 %v8974_v44  ;;  %1883 = vmatprep.mubr.f32.mxu1 %v8970_v41  ;;  %730 = vst.msk [vmem:[#allocation2 + $0x171] sm:$0xff] %vm700_vm0, %v642_v47  ;;  %v641_v52 = vmax.f32 %v595_v48, 0.0  ;;  %v610_v53 = vadd.f32 %v7770_v51, %v8780_v19  ;;  %v1817_v18 = vpop.f32.mrf.mxu1  ;;  %v1724_v47 = vld [vmem:[%s12314_s3 + $0x3f0] sm:$0xff]  ;;  %v9080_v48 = vld [vmem:[#allocation2 + $0xda] sm:$0xff]  ;;  %v1723_v51 = vld [vmem:[%s12314_s3 + $0x3e8] sm:$0xff] }
 0x12a   : > { %2098 = vmatprep.mubr.f32.mxu0 %v8972_v42  ;;  %v604_v56 = vpop.f32.mrf.mxu0  ;;  %2458 = vmatprep.subr.mxu0 %v8711_v3  ;;  %v9118_v18 = vld [vmem:[#allocation2 + $0x110] sm:$0xff]  ;;  %12404 = vst [vmem:[#allocation11_spill] sm:$0xff] %v9122_v25  ;;  %v9126_v32 = vld [vmem:[#allocation2 + $0xfa] sm:$0xff] }
 0x12b   : > { %729 = vst.msk [vmem:[#allocation2 + $0x169] sm:$0xff] %vm700_vm0, %v641_v52  ;;  %v644_v60 = vmax.f32 %v610_v53, 0.0  ;;  %v605_v61 = vadd.f32 %v8780_v19, %v604_v56  ;;  %v9009_v19 = vld [vmem:[#allocation2 + $0x9a] sm:$0xff]  ;;  %v9040_v22 = vpop.f32.mrf.mxu1  ;;  %2459 = vmatpush2.msra.mxu0 %v1724_v47  ;;  %v9094_v56 = vld [vmem:[#allocation2 + $0x109] sm:$0xff]  ;;  %12403 = vst [vmem:[#allocation10_spill] sm:$0xff] %v9118_v18 }
 0x12c   : > { %1884 = vmatmul.mubr.f32.gmra.mxu1 %v8972_v42  ;;  %2460 = vmatprep.subr.mxu0 %v8711_v3  ;;  %v9088_v52 = vld [vmem:[#allocation2 + $0xf9] sm:$0xff]  ;;  %v1720_v47 = vld [vmem:[%s12314_s3 + $0x3d0] sm:$0xff] }
 0x12d   : > { %2099 = vmatmul.mubr.f32.gmra.mxu0 %v8988_v58  ;;  %1888 = vmatprep.mubr.f32.mxu1 %v8998_v62  ;;  %732 = vst.msk [vmem:[#allocation2 + $0x189] sm:$0xff] %vm700_vm0, %v644_v60  ;;  %v643_v0 = vmax.f32 %v605_v61, 0.0  ;;  %v1822_v27 = vpop.f32.mrf.mxu1  ;;  %v9090_v53 = vld [vmem:[#allocation2 + $0xf8] sm:$0xff]  ;;  %v9098_v60 = vld [vmem:[#allocation2 + $0xe2] sm:$0xff] }
 0x12e   : > { %2103 = vmatprep.mubr.f32.mxu0 %v9000_v63  ;;  %2461 = vmatpush2.msra.mxu0 %v1723_v51  ;;  %v1722_v61 = vld [vmem:[%s12314_s3 + $0x3e0] sm:$0xff]  ;;  %v9136_v51 = vld [vmem:[#allocation2 + $0x10a] sm:$0xff] }
 0x12f   : > { %731 = vst.msk [vmem:[#allocation2 + $0x181] sm:$0xff] %vm700_vm0, %v643_v0  ;;  %2462 = vmatprep.subr.mxu0 %v8711_v3  ;;  %v9108_v0 = vld [vmem:[#allocation2 + $0xf2] sm:$0xff]  ;;  %v9124_v27 = vld [vmem:[#allocation2 + $0x120] sm:$0xff] }
 0x130   : > { %1889 = vmatmul.mubr.f32.gmra.mxu1 %v9000_v63  ;;  %2463 = vmatpush2.msra.mxu0 %v1722_v61  ;;  %12405 = vst [vmem:[#allocation12_spill] sm:$0xff] %v9124_v27  ;;  %v1719_v61 = vld [vmem:[%s12314_s3 + $0x3c8] sm:$0xff] }
 0x131   : > { %2104 = vmatmul.mubr.f32.gmra.mxu0 %v9009_v19  ;;  %1893 = vmatprep.mubr.f32.mxu1 %v9005_v2 }
 0x132   : > { %2108 = vmatprep.mubr.f32.mxu0 %v9007_v5  ;;  %2464 = vmatprep.subr.mxu0 %v8711_v3 }
 0x133   : > { %2465 = vmatpush2.msra.mxu0 %v1721_v6  ;;  %v9144_v6 = vld [vmem:[#allocation2 + $0x129] sm:$0xff] }
 0x134   : > { %1894 = vmatmul.mubr.f32.gmra.mxu1 %v9007_v5  ;;  %2466 = vmatprep.subr.mxu0 %v8711_v3  ;;  %12406 = vst [vmem:[#allocation13_spill] sm:$0xff] %v9144_v6 }
 0x135   : > { %2109 = vmatmul.mubr.f32.gmra.mxu0 %v9022_v10  ;;  %1898 = vmatprep.mubr.f32.mxu1 %v9030_v14 }
 0x136   : > { %2113 = vmatprep.mubr.f32.mxu0 %v9032_v17  ;;  %2467 = vmatpush2.msra.mxu0 %v1720_v47  ;;  %v9150_v47 = vld [vmem:[#allocation2 + $0x139] sm:$0xff] }
 0x137   : > { %2468 = vmatprep.subr.mxu0 %v8711_v3  ;;  %12408 = vst [vmem:[#allocation15_spill] sm:$0xff] %v9150_v47 }
 0x138   : > { %1899 = vmatmul.mubr.f32.gmra.mxu1 %v9032_v17  ;;  %2469 = vmatpush2.msra.mxu0 %v1719_v61  ;;  %v1717_v61 = vld [vmem:[%s12314_s3 + $0x3b8] sm:$0xff] }
 0x139   : > { %2114 = vmatmul.mubr.f32.gmra.mxu0 %v9042_v23  ;;  %1903 = vmatprep.mubr.f32.mxu1 %v9036_v20 }
 0x13a   : > { %2118 = vmatprep.mubr.f32.mxu0 %v9038_v21  ;;  %2470 = vmatprep.subr.mxu0 %v8711_v3 }
 0x13c   : > { %1904 = vmatmul.mubr.f32.gmra.mxu1 %v9038_v21 }
 0x13d   : > { %2119 = vmatmul.mubr.f32.gmra.mxu0 %v9052_v31  ;;  %1908 = vmatprep.mubr.f32.mxu1 %v9060_v38 }
 0x13e   : > { %2123 = vmatprep.mubr.f32.mxu0 %v9062_v39 }
 0x140   : > { %1909 = vmatmul.mubr.f32.gmra.mxu1 %v9062_v39 }
 0x141   : > { %2124 = vmatmul.mubr.f32.gmra.mxu0 %v9070_v46  ;;  %1913 = vmatprep.mubr.f32.mxu1 %v9066_v40 }
 0x142   : > { %2128 = vmatprep.mubr.f32.mxu0 %v9068_v43 }
 0x144   : > { %1914 = vmatmul.mubr.f32.gmra.mxu1 %v9068_v43 }
 0x145   : > { %2129 = vmatmul.mubr.f32.gmra.mxu0 %v9080_v48  ;;  %1918 = vmatprep.mubr.f32.mxu1 %v9088_v52 }
 0x146   : > { %2133 = vmatprep.mubr.f32.mxu0 %v9090_v53 }
 0x148   : > { %1919 = vmatmul.mubr.f32.gmra.mxu1 %v9090_v53 }
 0x149   : > { %2134 = vmatmul.mubr.f32.gmra.mxu0 %v9098_v60  ;;  %1923 = vmatprep.mubr.f32.mxu1 %v9094_v56 }
 0x14a   : > { %2138 = vmatprep.mubr.f32.mxu0 %v9096_v59 }
 0x14c   : > { %1924 = vmatmul.mubr.f32.gmra.mxu1 %v9096_v59  ;;  %v9182_v59 = vld [vmem:[#allocation2 + $0x12a] sm:$0xff] }
 0x14d   : > { %2139 = vmatmul.mubr.f32.gmra.mxu0 %v9108_v0  ;;  %1928 = vmatprep.mubr.f32.mxu1 %v9116_v11  ;;  %v9154_v11 = vld [vmem:[#allocation2 + $0x112] sm:$0xff]  ;;  %12416 = vst [vmem:[#allocation23_spill] sm:$0xff] %v9182_v59 }
 0x14e   : > { %2143 = vmatprep.mubr.f32.mxu0 %v9118_v18  ;;  %12410 = vst [vmem:[#allocation17_spill] sm:$0xff] %v9154_v11 }
 0x150   : > { %1929 = vmatmul.mubr.f32.gmra.mxu1 %v9118_v18  ;;  %v9146_v18 = vld [vmem:[#allocation2 + $0x128] sm:$0xff] }
 0x151   : > { %2144 = vmatmul.mubr.f32.gmra.mxu0 %v9126_v32  ;;  %1933 = vmatprep.mubr.f32.mxu1 %v9122_v25  ;;  %12407 = vst [vmem:[#allocation14_spill] sm:$0xff] %v9146_v18  ;;  %v9152_v25 = vld [vmem:[#allocation2 + $0x138] sm:$0xff] }
 0x152   : > { %2148 = vmatprep.mubr.f32.mxu0 %v9124_v27  ;;  %12409 = vst [vmem:[#allocation16_spill] sm:$0xff] %v9152_v25 }
 0x154   : > { %1934 = vmatmul.mubr.f32.gmra.mxu1 %v9124_v27  ;;  %v1718_v27 = vld [vmem:[%s12314_s3 + $0x3c0] sm:$0xff] }
 0x155   : > { %2149 = vmatmul.mubr.f32.gmra.mxu0 %v9136_v51  ;;  %1938 = vmatprep.mubr.f32.mxu1 %v9144_v6  ;;  %v9164_v6 = vld [vmem:[#allocation2 + $0x122] sm:$0xff] }
 0x156   : > { %2153 = vmatprep.mubr.f32.mxu0 %v9146_v18  ;;  %2471 = vmatpush2.msra.mxu0 %v1718_v27  ;;  %12411 = vst [vmem:[#allocation18_spill] sm:$0xff] %v9164_v6  ;;  %v9178_v27 = vld [vmem:[#allocation2 + $0x151] sm:$0xff] }
 0x157   : > { %2472 = vmatprep.subr.mxu0 %v8711_v3  ;;  %12414 = vst [vmem:[#allocation21_spill] sm:$0xff] %v9178_v27 }
 0x158   : > { %1939 = vmatmul.mubr.f32.gmra.mxu1 %v9146_v18  ;;  %v9172_v18 = vld [vmem:[#allocation2 + $0x141] sm:$0xff]  ;;  %2473 = vmatpush2.msra.mxu0 %v1717_v61 }
 0x159   : > { %2154 = vmatmul.mubr.f32.gmra.mxu0 %v9154_v11  ;;  %1943 = vmatprep.mubr.f32.mxu1 %v9150_v47  ;;  %12412 = vst [vmem:[#allocation19_spill] sm:$0xff] %v9172_v18  ;;  %v9174_v11 = vld [vmem:[#allocation2 + $0x140] sm:$0xff]  ;;  %v9180_v47 = vld [vmem:[#allocation2 + $0x150] sm:$0xff]  ;;  %v1715_v61 = vld [vmem:[%s12314_s3 + $0x3a8] sm:$0xff] }
 0x15a   : > { %2158 = vmatprep.mubr.f32.mxu0 %v9152_v25  ;;  %12413 = vst [vmem:[#allocation20_spill] sm:$0xff] %v9174_v11  ;;  %12415 = vst [vmem:[#allocation22_spill] sm:$0xff] %v9180_v47  ;;  %2474 = vmatprep.subr.mxu0 %v8711_v3 }
 0x15c   : > { %1944 = vmatmul.mubr.f32.gmra.mxu1 %v9152_v25  ;;  %v1716_v25 = vld [vmem:[%s12314_s3 + $0x3b0] sm:$0xff] }
 0x15d   : > { %2159 = vmatmul.mubr.f32.gmra.mxu0 %v9164_v6  ;;  %1948 = vmatprep.mubr.f32.mxu1 %v9172_v18  ;;  %v9192_v18 = vld [vmem:[#allocation2 + $0x13a] sm:$0xff]  ;;  %v9210_v6 = vld [vmem:[#allocation2 + $0x142] sm:$0xff] }
 0x15e   : > { %2163 = vmatprep.mubr.f32.mxu0 %v9174_v11  ;;  %2475 = vmatpush2.msra.mxu0 %v1716_v25  ;;  %12417 = vst [vmem:[#allocation24_spill] sm:$0xff] %v9192_v18  ;;  %v9206_v25 = vld [vmem:[#allocation2 + $0x169] sm:$0xff]  ;;  %12422 = vst [vmem:[#allocation29_spill] sm:$0xff] %v9210_v6 }
 0x15f   : > { %2476 = vmatprep.subr.mxu0 %v8711_v3  ;;  %12420 = vst [vmem:[#allocation27_spill] sm:$0xff] %v9206_v25 }
 0x160   : > { %1949 = vmatmul.mubr.f32.gmra.mxu1 %v9174_v11  ;;  %v9200_v11 = vld [vmem:[#allocation2 + $0x159] sm:$0xff]  ;;  %2477 = vmatpush2.msra.mxu0 %v1715_v61 }
 0x161   : > { %2164 = vmatmul.mubr.f32.gmra.mxu0 %v9182_v59  ;;  %1953 = vmatprep.mubr.f32.mxu1 %v9178_v27  ;;  %12418 = vst [vmem:[#allocation25_spill] sm:$0xff] %v9200_v11  ;;  %v9202_v59 = vld [vmem:[#allocation2 + $0x158] sm:$0xff]  ;;  %v9208_v27 = vld [vmem:[#allocation2 + $0x168] sm:$0xff] }
 0x162   : > { %2168 = vmatprep.mubr.f32.mxu0 %v9180_v47  ;;  %12419 = vst [vmem:[#allocation26_spill] sm:$0xff] %v9202_v59  ;;  %12421 = vst [vmem:[#allocation28_spill] sm:$0xff] %v9208_v27  ;;  %2478 = vmatprep.subr.mxu0 %v8711_v3  ;;  %v1713_v61 = vld [vmem:[%s12314_s3 + $0x398] sm:$0xff] }
 0x164   : > { %1954 = vmatmul.mubr.f32.gmra.mxu1 %v9180_v47  ;;  %v1714_v47 = vld [vmem:[%s12314_s3 + $0x3a0] sm:$0xff] }
 0x165   : > { %2169 = vmatmul.mubr.f32.gmra.mxu0 %v9192_v18  ;;  %1958 = vmatprep.mubr.f32.mxu1 %v9200_v11  ;;  %v9220_v11 = vld [vmem:[#allocation2 + $0x152] sm:$0xff]  ;;  %v9251_v18 = vld [vmem:[#allocation2 + $0x188] sm:$0xff] }
 0x166   : > { %2173 = vmatprep.mubr.f32.mxu0 %v9202_v59  ;;  %2479 = vmatpush2.msra.mxu0 %v1714_v47  ;;  %12423 = vst [vmem:[#allocation30_spill] sm:$0xff] %v9220_v11  ;;  %v9234_v47 = vld [vmem:[#allocation2 + $0x180] sm:$0xff] }
 0x167   : > { %2480 = vmatprep.subr.mxu0 %v8711_v3  ;;  %12426 = vst [vmem:[#allocation33_spill] sm:$0xff] %v9234_v47 }
 0x168   : > { %1959 = vmatmul.mubr.f32.gmra.mxu1 %v9202_v59  ;;  %v9228_v59 = vld [vmem:[#allocation2 + $0x171] sm:$0xff]  ;;  %2481 = vmatpush2.msra.mxu0 %v1713_v61  ;;  %v1711_v61 = vld [vmem:[%s12314_s3 + $0x388] sm:$0xff] }
 0x169   : > { %2174 = vmatmul.mubr.f32.gmra.mxu0 %v9210_v6  ;;  %1963 = vmatprep.mubr.f32.mxu1 %v9206_v25  ;;  %12424 = vst [vmem:[#allocation31_spill] sm:$0xff] %v9228_v59  ;;  %v9230_v6 = vld [vmem:[#allocation2 + $0x170] sm:$0xff]  ;;  %v9236_v25 = vld [vmem:[#allocation2 + $0x15a] sm:$0xff] }
 0x16a   : > { %2178 = vmatprep.mubr.f32.mxu0 %v9208_v27  ;;  %12425 = vst [vmem:[#allocation32_spill] sm:$0xff] %v9230_v6  ;;  %2482 = vmatprep.subr.mxu0 %v8711_v3 }
 0x16c   : > { %1964 = vmatmul.mubr.f32.gmra.mxu1 %v9208_v27  ;;  %v1712_v27 = vld [vmem:[%s12314_s3 + $0x390] sm:$0xff] }
 0x16d   : > { %2179 = vmatmul.mubr.f32.gmra.mxu0 %v9220_v11  ;;  %1968 = vmatprep.mubr.f32.mxu1 %v9228_v59  ;;  %v9249_v59 = vld [vmem:[#allocation2 + $0x16a] sm:$0xff]  ;;  %v989_v11 = vld [vmem:[#allocation2 + $0x19] sm:$0xff] }
 0x16e   : > { %2183 = vmatprep.mubr.f32.mxu0 %v9230_v6  ;;  %2483 = vmatpush2.msra.mxu0 %v1712_v27  ;;  %v9261_v27 = vld [vmem:[#allocation2 + $0x172] sm:$0xff] }
 0x16f   : > { %2484 = vmatprep.subr.mxu0 %v8711_v3 }
 0x170   : > { %1969 = vmatmul.mubr.f32.gmra.mxu1 %v9230_v6  ;;  %2485 = vmatpush2.msra.mxu0 %v1711_v61  ;;  %v1182_v6 = vld [vmem:[#allocation2 + $0x31] sm:$0xff]  ;;  %v1183_v61 = vld [vmem:[#allocation2 + $0x39] sm:$0xff] }
 0x171   : > { %2184 = vmatmul.mubr.f32.gmra.mxu0 %v9236_v25  ;;  %2263 = vmatprep.mubr.f32.mxu1 %v8823_v4  ;;  %v1740_v4 = vld [vmem:[%s12314_s3 + $0x470] sm:$0xff] }
 0x172   : > { %2188 = vmatprep.mubr.f32.mxu0 %v9234_v47  ;;  %v990_v47 = vld [vmem:[#allocation2 + $0x21] sm:$0xff]  ;;  %2486 = vmatprep.subr.mxu0 %v8711_v3 }
 0x173   : > { %v9272_v3 = vld [vmem:[#allocation2] sm:$0xff] }
 0x174   : > { %2264 = vmatmul.mubr.f32.vlgmr.msra.gmra.mxu1 %v989_v11  ;;  %v1710_v11 = vld [vmem:[%s12314_s3 + $0x380] sm:$0xff] }
 0x175   : > { %2189 = vmatmul.mubr.f32.gmra.mxu0 %v9249_v59  ;;  %7772 = vmatpush3.msra.mxu1 %v8797_v30  ;;  %v1739_v30 = vld [vmem:[%s12314_s3 + $0x468] sm:$0xff] }
 0x176   : > { %2268 = vmatprep.mubr.f32.mxu1 %v8834_v15  ;;  %2193 = vmatprep.mubr.f32.mxu0 %v9251_v18  ;;  %v1118_v15 = vld [vmem:[#allocation2 + $0x30] sm:$0xff] }
 0x177   : > { %7773 = vmatprep.subr.mxu1 %v1740_v4  ;;  %2487 = vmatpush2.msra.mxu0 %v1710_v11  ;;  %v1737_v11 = vld [vmem:[%s12314_s3 + $0x458] sm:$0xff] }
 0x178   : > { %2269 = vmatmul.mubr.f32.gmra.mxu1 %v990_v47  ;;  %4009 = vmatprep.subr.mxu0 %v9272_v3  ;;  %v1738_v47 = vld [vmem:[%s12314_s3 + $0x460] sm:$0xff] }
 0x179   : > { %2194 = vmatmul.mubr.f32.gmra.mxu0 %v9261_v27  ;;  %2273 = vmatprep.mubr.f32.mxu1 %v8845_v24  ;;  %v1119_v24 = vld [vmem:[#allocation2 + $0x38] sm:$0xff] }
 0x17a   : > { %2488 = vmatprep.mubr.f32.mxu0 %v1182_v6  ;;  %7774 = vmatpush3.msra.mxu1 %v1740_v4  ;;  %v1184_v4 = vld [vmem:[#allocation2 + $0x49] sm:$0xff] }
 0x17b   : > { %7775 = vmatprep.subr.mxu1 %v1739_v30 }
 0x17c   : > { %2274 = vmatmul.mubr.f32.gmra.mxu1 %v1182_v6  ;;  %v1120_v6 = vld [vmem:[#allocation2 + $0x48] sm:$0xff] }
 0x17d   : > { %2489 = vmatmul.mubr.f32.vlgmr.msra.gmra.mxu0 %v1118_v15  ;;  %2278 = vmatprep.mubr.f32.mxu1 %v8866_v37  ;;  %v1736_v37 = vld [vmem:[%s12314_s3 + $0x450] sm:$0xff]  ;;  %v12435_v15 = vld [vmem:[#allocation13_spill] sm:$0xff] }
 0x17e   : > { %2493 = vmatprep.mubr.f32.mxu0 %v1183_v61  ;;  %7776 = vmatpush3.msra.mxu1 %v1739_v30  ;;  %v12434_v30 = vld [vmem:[#allocation23_spill] sm:$0xff] }
 0x17f   : > { %7777 = vmatprep.subr.mxu1 %v1738_v47 }
 0x180   : > { %2279 = vmatmul.mubr.f32.gmra.mxu1 %v1183_v61  ;;  %v3869_v61 = vld [vmem:[%s12316_s5 + $0x58] sm:$0xff] }
 0x181   : > { %2494 = vmatmul.mubr.f32.gmra.mxu0 %v1119_v24  ;;  %2283 = vmatprep.mubr.f32.mxu1 %v8880_v45  ;;  %v1735_v45 = vld [vmem:[%s12314_s3 + $0x448] sm:$0xff] }
 0x182   : > { %2498 = vmatprep.mubr.f32.mxu0 %v1184_v4  ;;  %7778 = vmatpush3.msra.mxu1 %v1738_v47 }
 0x183   : > { %7779 = vmatprep.subr.mxu1 %v1737_v11 }
 0x184   : > { %2284 = vmatmul.mubr.f32.gmra.mxu1 %v1184_v4 }
 0x185   : > { %2499 = vmatmul.mubr.f32.gmra.mxu0 %v1120_v6  ;;  %2288 = vmatprep.mubr.f32.mxu1 %v8902_v57  ;;  %v1726_v57 = vld [vmem:[%s12314_s3 + $0x400] sm:$0xff] }
 0x186   : > { %2503 = vmatprep.mubr.f32.mxu0 %v8854_v28  ;;  %7780 = vmatpush3.msra.mxu1 %v1737_v11 }
 0x187   : > { %7781 = vmatprep.subr.mxu1 %v1736_v37 }
 0x188   : > { %2289 = vmatmul.mubr.f32.gmra.mxu1 %v8854_v28  ;;  %v1734_v28 = vld [vmem:[%s12314_s3 + $0x440] sm:$0xff] }
 0x189   : > { %2504 = vmatmul.mubr.f32.gmra.mxu0 %v8856_v29  ;;  %2293 = vmatprep.mubr.f32.mxu1 %v8916_v1  ;;  %v1733_v29 = vld [vmem:[%s12314_s3 + $0x438] sm:$0xff]  ;;  %v9370_v1 = vld [vmem:[%s12315_s4] ss:$0 sm:$0xff] }
 0x18a   : > { %2508 = vmatprep.mubr.f32.mxu0 %v8862_v34  ;;  %7782 = vmatpush3.msra.mxu1 %v1736_v37  ;;  %v12436_v37 = vld [vmem:[#allocation14_spill] sm:$0xff] }
 0x18b   : > { %7783 = vmatprep.subr.mxu1 %v1735_v45 }
 0x18c   : > { %2294 = vmatmul.mubr.f32.gmra.mxu1 %v8862_v34  ;;  %v1732_v34 = vld [vmem:[%s12314_s3 + $0x430] sm:$0xff] }
 0x18d   : > { %2509 = vmatmul.mubr.f32.gmra.mxu0 %v8864_v35  ;;  %2298 = vmatprep.mubr.f32.mxu1 %v8938_v16  ;;  %v1731_v35 = vld [vmem:[%s12314_s3 + $0x428] sm:$0xff]  ;;  %v3873_v16 = vld [vmem:[%s12316_s5 + $0x78] sm:$0xff] }
 0x18e   : > { %2513 = vmatprep.mubr.f32.mxu0 %v8890_v49  ;;  %7784 = vmatpush3.msra.mxu1 %v1735_v45 }
 0x18f   : > { %7785 = vmatprep.subr.mxu1 %v1734_v28  ;;  %4010 = vmatpush1.msra.mxu0 %v3873_v16  ;;  %v3867_v16 = vld [vmem:[%s12316_s5 + $0x48] sm:$0xff] }
 0x190   : > { %2299 = vmatmul.mubr.f32.gmra.mxu1 %v8890_v49  ;;  %v1730_v49 = vld [vmem:[%s12314_s3 + $0x420] sm:$0xff]  ;;  %4011 = vmatprep.subr.mxu0 %v9272_v3 }
 0x191   : > { %2514 = vmatmul.mubr.f32.gmra.mxu0 %v8892_v50  ;;  %2303 = vmatprep.mubr.f32.mxu1 %v8952_v26  ;;  %v1729_v50 = vld [vmem:[%s12314_s3 + $0x418] sm:$0xff] }
 0x192   : > { %2518 = vmatprep.mubr.f32.mxu0 %v8898_v54  ;;  %7786 = vmatpush3.msra.mxu1 %v1734_v28  ;;  %v12437_v28 = vld [vmem:[#allocation24_spill] sm:$0xff] }
 0x193   : > { %7787 = vmatprep.subr.mxu1 %v1733_v29 }
 0x194   : > { %2304 = vmatmul.mubr.f32.gmra.mxu1 %v8898_v54  ;;  %v1728_v54 = vld [vmem:[%s12314_s3 + $0x410] sm:$0xff] }
 0x195   : > { %2519 = vmatmul.mubr.f32.gmra.mxu0 %v8900_v55  ;;  %2308 = vmatprep.mubr.f32.mxu1 %v8974_v44  ;;  %v1727_v55 = vld [vmem:[%s12314_s3 + $0x408] sm:$0xff] }
 0x196   : > { %2523 = vmatprep.mubr.f32.mxu0 %v8926_v7  ;;  %7788 = vmatpush3.msra.mxu1 %v1733_v29  ;;  %v12438_v29 = vld [vmem:[#allocation15_spill] sm:$0xff] }
 0x197   : > { %7789 = vmatprep.subr.mxu1 %v1732_v34 }
 0x198   : > { %2309 = vmatmul.mubr.f32.gmra.mxu1 %v8926_v7  ;;  %v1816_v7 = vadd.f32 %v9370_v1, %v9020_v9  ;;  %v12427_v9 = vld [vmem:[#allocation8_spill] sm:$0xff] }
 0x199   : > { %2524 = vmatmul.mubr.f32.gmra.mxu0 %v8928_v8  ;;  %2313 = vmatprep.mubr.f32.mxu1 %v8988_v58  ;;  %v3872_v58 = vld [vmem:[%s12316_s5 + $0x70] sm:$0xff] }
 0x19a   : > { %2528 = vmatprep.mubr.f32.mxu0 %v8934_v12  ;;  %7790 = vmatpush3.msra.mxu1 %v1732_v34  ;;  %v3868_v34 = vld [vmem:[%s12316_s5 + $0x50] sm:$0xff] }
 0x19b   : > { %7791 = vmatprep.subr.mxu1 %v1731_v35  ;;  %4012 = vmatpush1.msra.mxu0 %v3872_v58  ;;  %v12442_v58 = vld [vmem:[#allocation20_spill] sm:$0xff] }
 0x19c   : > { %2314 = vmatmul.mubr.f32.gmra.mxu1 %v8934_v12  ;;  %4013 = vmatprep.subr.mxu0 %v9272_v3 }
 0x19d   : > { %2529 = vmatmul.mubr.f32.gmra.mxu0 %v8936_v13  ;;  %2318 = vmatprep.mubr.f32.mxu1 %v9009_v19 }
 0x19e   : > { %2533 = vmatprep.mubr.f32.mxu0 %v8962_v33  ;;  %7792 = vmatpush3.msra.mxu1 %v1731_v35 }
 0x19f   : > { %7793 = vmatprep.subr.mxu1 %v1730_v49 }
 0x1a0   : > { %2319 = vmatmul.mubr.f32.gmra.mxu1 %v8962_v33 }
 0x1a1   : > { %2534 = vmatmul.mubr.f32.gmra.mxu0 %v8964_v36  ;;  %2323 = vmatprep.mubr.f32.mxu1 %v9022_v10  ;;  %v1821_v36 = vadd.f32 %v9370_v1, %v9040_v22 }
 0x1a2   : > { %2538 = vmatprep.mubr.f32.mxu0 %v8970_v41  ;;  %7794 = vmatpush3.msra.mxu1 %v1730_v49 }
 0x1a3   : > { %7795 = vmatprep.subr.mxu1 %v1729_v50 }
 0x1a4   : > { %2324 = vmatmul.mubr.f32.gmra.mxu1 %v8970_v41 }
 0x1a5   : > { %2539 = vmatmul.mubr.f32.gmra.mxu0 %v8972_v42  ;;  %2328 = vmatprep.mubr.f32.mxu1 %v9042_v23 }
 0x1a6   : > { %2543 = vmatprep.mubr.f32.mxu0 %v8998_v62  ;;  %7796 = vmatpush3.msra.mxu1 %v1729_v50 }
 0x1a7   : > { %7797 = vmatprep.subr.mxu1 %v1728_v54 }
 0x1a8   : > { %2329 = vmatmul.mubr.f32.gmra.mxu1 %v8998_v62 }
 0x1a9   : > { %2544 = vmatmul.mubr.f32.gmra.mxu0 %v9000_v63  ;;  %2333 = vmatprep.mubr.f32.mxu1 %v9052_v31 }
 0x1aa   : > { %2548 = vmatprep.mubr.f32.mxu0 %v9005_v2  ;;  %7798 = vmatpush3.msra.mxu1 %v1728_v54 }
 0x1ab   : > { %7799 = vmatprep.subr.mxu1 %v1727_v55 }
 0x1ac   : > { %2334 = vmatmul.mubr.f32.gmra.mxu1 %v9005_v2 }
 0x1ad   : > { %2549 = vmatmul.mubr.f32.gmra.mxu0 %v9007_v5  ;;  %2338 = vmatprep.mubr.f32.mxu1 %v9070_v46  ;;  %v12432_v46 = vld [vmem:[#allocation11_spill] sm:$0xff] }
 0x1ae   : > { %2553 = vmatprep.mubr.f32.mxu0 %v9030_v14  ;;  %7800 = vmatpush3.msra.mxu1 %v1727_v55 }
 0x1af   : > { %7801 = vmatprep.subr.mxu1 %v1726_v57 }
 0x1b0   : > { %2339 = vmatmul.mubr.f32.gmra.mxu1 %v9030_v14  ;;  %v12428_v14 = vld [vmem:[#allocation17_spill] sm:$0xff] }
 0x1b1   : > { %2554 = vmatmul.mubr.f32.gmra.mxu0 %v9032_v17  ;;  %2343 = vmatprep.mubr.f32.mxu1 %v9080_v48  ;;  %v12429_v17 = vld [vmem:[#allocation9_spill] sm:$0xff]  ;;  %v3870_v48 = vld [vmem:[%s12316_s5 + $0x60] sm:$0xff] }
 0x1b2   : > { %2558 = vmatprep.mubr.f32.mxu0 %v9036_v20  ;;  %7802 = vmatpush3.msra.mxu1 %v1726_v57  ;;  %v12439_v57 = vld [vmem:[#allocation16_spill] sm:$0xff] }
 0x1b3   : > { %4234 = vmatprep.subr.mxu1 %v9272_v3 }
 0x1b4   : > { %2344 = vmatmul.mubr.f32.gmra.mxu1 %v9036_v20  ;;  %v3871_v20 = vld [vmem:[%s12316_s5 + $0x68] sm:$0xff] }
 0x1b5   : > { %2559 = vmatmul.mubr.f32.gmra.mxu0 %v9038_v21  ;;  %2348 = vmatprep.mubr.f32.mxu1 %v9098_v60 }
 0x1b6   : > { %2563 = vmatprep.mubr.f32.mxu0 %v9060_v38  ;;  %4014 = vmatpush1.msra.mxu0 %v3871_v20 }
 0x1b7   : > { %4015 = vmatprep.subr.mxu0 %v9272_v3 }
 0x1b8   : > { %2349 = vmatmul.mubr.f32.gmra.mxu1 %v9060_v38  ;;  %4016 = vmatpush1.msra.mxu0 %v3870_v48 }
 0x1b9   : > { %2564 = vmatmul.mubr.f32.gmra.mxu0 %v9062_v39  ;;  %2353 = vmatprep.mubr.f32.mxu1 %v9108_v0  ;;  %v12430_v39 = vld [vmem:[#allocation10_spill] sm:$0xff] }
 0x1ba   : > { %2568 = vmatprep.mubr.f32.mxu0 %v9066_v40  ;;  %4017 = vmatprep.subr.mxu0 %v9272_v3 }
 0x1bb   : > { %4018 = vmatpush1.msra.mxu0 %v3869_v61  ;;  %v12449_v61 = vld [vmem:[#allocation28_spill] sm:$0xff] }
 0x1bc   : > { %v1825_v8 = vpop.f32.mrf.mxu1  ;;  %2354 = vmatmul.mubr.f32.gmra.mxu1 %v9066_v40  ;;  %4019 = vmatprep.subr.mxu0 %v9272_v3 }
 0x1bd   : > { %v2040_v12 = vpop.f32.mrf.mxu0  ;;  %2569 = vmatmul.mubr.f32.gmra.mxu0 %v9068_v43  ;;  %2358 = vmatprep.mubr.f32.mxu1 %v9126_v32  ;;  %v1826_v2 = vadd.f32 %v9370_v1, %v1825_v8  ;;  %v12431_v43 = vld [vmem:[#allocation18_spill] sm:$0xff]  ;;  %v12433_v32 = vld [vmem:[#allocation12_spill] sm:$0xff]  ;;  %v12440_v8 = vld [vmem:[#allocation29_spill] sm:$0xff] }
 0x1be   : > { %v9380_v13 = vadd.f32 %v2040_v12, %v1816_v7  ;;  %2573 = vmatprep.mubr.f32.mxu0 %v9088_v52  ;;  %v1827_v26 = vpop.f32.mrf.mxu1  ;;  %4020 = vmatpush1.msra.mxu0 %v3868_v34  ;;  %v12441_v12 = vld [vmem:[#allocation19_spill] sm:$0xff] }
 0x1bf   : > { %v2042_v33 = vpop.f32.mrf.mxu0  ;;  %4021 = vmatprep.subr.mxu0 %v9272_v3 }
 0x1c0   : > { %v1830_v41 = vpop.f32.mrf.mxu1  ;;  %2359 = vmatmul.mubr.f32.gmra.mxu1 %v9088_v52  ;;  %4022 = vmatpush1.msra.mxu0 %v3867_v16  ;;  %v9513_v16 = vld [vmem:[#allocation2 + $0x18a] sm:$0xff] }
 0x1c1   : > { %v2045_v42 = vpop.f32.mrf.mxu0  ;;  %2574 = vmatmul.mubr.f32.gmra.mxu0 %v9090_v53  ;;  %2363 = vmatprep.mubr.f32.mxu1 %v9136_v51  ;;  %v1831_v23 = vadd.f32 %v9370_v1, %v1830_v41 }
 0x1c2   : > { %v9392_v44 = vadd.f32 %v2045_v42, %v1821_v36  ;;  %2578 = vmatprep.mubr.f32.mxu0 %v9094_v56  ;;  %v1832_v62 = vpop.f32.mrf.mxu1  ;;  %4023 = vmatprep.subr.mxu0 %v9272_v3 }
 0x1c3   : > { %v2047_v63 = vpop.f32.mrf.mxu0 }
 0x1c4   : > { %v1835_v5 = vpop.f32.mrf.mxu1  ;;  %2364 = vmatmul.mubr.f32.gmra.mxu1 %v9094_v56  ;;  %v12443_v63 = vld [vmem:[#allocation30_spill] sm:$0xff] }
 0x1c5   : > { %v2050_v19 = vpop.f32.mrf.mxu0  ;;  %2579 = vmatmul.mubr.f32.gmra.mxu0 %v12427_v9  ;;  %2368 = vmatprep.mubr.f32.mxu1 %v12428_v14  ;;  %v1836_v56 = vadd.f32 %v9370_v1, %v1835_v5  ;;  %v3866_v5 = vld [vmem:[%s12316_s5 + $0x40] sm:$0xff] }
 0x1c6   : > { %v9403_v10 = vadd.f32 %v2050_v19, %v1826_v2  ;;  %2583 = vmatprep.mubr.f32.mxu0 %v12429_v17  ;;  %v1837_v21 = vpop.f32.mrf.mxu1  ;;  %v12444_v2 = vld [vmem:[#allocation21_spill] sm:$0xff]  ;;  %4024 = vmatpush1.msra.mxu0 %v3866_v5 }
 0x1c7   : > { %v2052_v22 = vpop.f32.mrf.mxu0  ;;  %4025 = vmatprep.subr.mxu0 %v9272_v3  ;;  %v12445_v21 = vld [vmem:[#allocation22_spill] sm:$0xff] }
 0x1c8   : > { %v1840_v31 = vpop.f32.mrf.mxu1  ;;  %2369 = vmatmul.mubr.f32.gmra.mxu1 %v12429_v17 }
 0x1c9   : > { %v2055_v38 = vpop.f32.mrf.mxu0  ;;  %2584 = vmatmul.mubr.f32.gmra.mxu0 %v12430_v39  ;;  %2373 = vmatprep.mubr.f32.mxu1 %v12431_v43  ;;  %v1841_v4 = vadd.f32 %v9370_v1, %v1840_v31  ;;  %v3865_v31 = vld [vmem:[%s12316_s5 + $0x38] sm:$0xff] }
 0x1ca   : > { %v9414_v40 = vadd.f32 %v2055_v38, %v1831_v23  ;;  %2588 = vmatprep.mubr.f32.mxu0 %v12432_v46  ;;  %v1842_v52 = vpop.f32.mrf.mxu1  ;;  %v12446_v23 = vld [vmem:[#allocation25_spill] sm:$0xff]  ;;  %4026 = vmatpush1.msra.mxu0 %v3865_v31 }
 0x1cb   : > { %v2057_v53 = vpop.f32.mrf.mxu0  ;;  %4027 = vmatprep.subr.mxu0 %v9272_v3  ;;  %v12447_v52 = vld [vmem:[#allocation26_spill] sm:$0xff] }
 0x1cc   : > { %v1845_v60 = vpop.f32.mrf.mxu1  ;;  %2374 = vmatmul.mubr.f32.gmra.mxu1 %v12432_v46  ;;  %v12448_v53 = vld [vmem:[#allocation27_spill] sm:$0xff]  ;;  %v1247_v31 = vld [vmem:[#allocation2 + $0x3a] sm:$0xff] }
 0x1cd   : > { %v2060_v0 = vpop.f32.mrf.mxu0  ;;  %2589 = vmatmul.mubr.f32.gmra.mxu0 %v12433_v32  ;;  %2378 = vmatprep.mubr.f32.mxu1 %v12434_v30  ;;  %v1846_v50 = vadd.f32 %v9370_v1, %v1845_v60 }
 0x1ce   : > { %v9425_v51 = vadd.f32 %v2060_v0, %v1836_v56  ;;  %2593 = vmatprep.mubr.f32.mxu0 %v12435_v15  ;;  %v1847_v47 = vpop.f32.mrf.mxu1  ;;  %v3864_v56 = vld [vmem:[%s12316_s5 + $0x30] sm:$0xff] }
 0x1cf   : > { %v2062_v24 = vpop.f32.mrf.mxu0  ;;  %4028 = vmatpush1.msra.mxu0 %v3864_v56  ;;  %v12450_v47 = vld [vmem:[#allocation31_spill] sm:$0xff]  ;;  %v1249_v56 = vld [vmem:[#allocation2 + $0x52] sm:$0xff] }
 0x1d0   : > { %v1850_v11 = vpop.f32.mrf.mxu1  ;;  %2379 = vmatmul.mubr.f32.gmra.mxu1 %v12435_v15  ;;  %4029 = vmatprep.subr.mxu0 %v9272_v3  ;;  %v3863_v24 = vld [vmem:[%s12316_s5 + $0x28] sm:$0xff] }
 0x1d1   : > { %v2065_v6 = vpop.f32.mrf.mxu0  ;;  %2594 = vmatmul.mubr.f32.gmra.mxu0 %v12436_v37  ;;  %2383 = vmatprep.mubr.f32.mxu1 %v12437_v28  ;;  %v1851_v36 = vadd.f32 %v9370_v1, %v1850_v11  ;;  %v1210_v37 = vld [vmem:[#allocation2 + $0x181] sm:$0xff] }
 0x1d2   : > { %v9436_v45 = vadd.f32 %v2065_v6, %v1841_v4  ;;  %2598 = vmatprep.mubr.f32.mxu0 %v12438_v29  ;;  %v1852_v35 = vpop.f32.mrf.mxu1  ;;  %v9498_v6 = vld [vmem:[#allocation2 + $0x182] sm:$0xff]  ;;  %4030 = vmatpush1.msra.mxu0 %v3863_v24 }
 0x1d3   : > { %v2067_v49 = vpop.f32.mrf.mxu0  ;;  %4031 = vmatprep.subr.mxu0 %v9272_v3 }
 0x1d4   : > { %v1855_v54 = vpop.f32.mrf.mxu1  ;;  %2384 = vmatmul.mubr.f32.gmra.mxu1 %v12438_v29  ;;  %v3862_v49 = vld [vmem:[%s12316_s5 + $0x20] sm:$0xff] }
 0x1d5   : > { %v2070_v55 = vpop.f32.mrf.mxu0  ;;  %2599 = vmatmul.mubr.f32.gmra.mxu0 %v12439_v57  ;;  %2388 = vmatprep.mubr.f32.mxu1 %v12440_v8  ;;  %v1856_v14 = vadd.f32 %v9370_v1, %v1855_v54 }
 0x1d6   : > { %v9447_v7 = vadd.f32 %v2070_v55, %v1846_v50  ;;  %2603 = vmatprep.mubr.f32.mxu0 %v12441_v12  ;;  %v1857_v26 = vpop.f32.mrf.mxu1  ;;  %4032 = vmatpush1.msra.mxu0 %v3862_v49 }
 0x1d7   : > { %v2072_v33 = vpop.f32.mrf.mxu0  ;;  %4033 = vmatprep.subr.mxu0 %v9272_v3  ;;  %v1211_v26 = vld [vmem:[#allocation2 + $0x189] sm:$0xff] }
 0x1d8   : > { %v1860_v41 = vpop.f32.mrf.mxu1  ;;  %2389 = vmatmul.mubr.f32.gmra.mxu1 %v12441_v12  ;;  %v12452_v12 = vld [vmem:[#allocation33_spill] sm:$0xff] }
 0x1d9   : > { %v2075_v42 = vpop.f32.mrf.mxu0  ;;  %2604 = vmatmul.mubr.f32.gmra.mxu0 %v12442_v58  ;;  %2393 = vmatprep.mubr.f32.mxu1 %v12443_v63  ;;  %v1861_v43 = vadd.f32 %v9370_v1, %v1860_v41  ;;  %v1212_v58 = vld [vmem:[#allocation2 + $0x199] sm:$0xff] }
 0x1da   : > { %v9458_v62 = vadd.f32 %v2075_v42, %v1851_v36  ;;  %2608 = vmatprep.mubr.f32.mxu0 %v12444_v2  ;;  %v1862_v19 = vpop.f32.mrf.mxu1  ;;  %v3861_v36 = vld [vmem:[%s12316_s5 + $0x18] sm:$0xff] }
 0x1db   : > { %v2077_v9 = vpop.f32.mrf.mxu0  ;;  %4034 = vmatpush1.msra.mxu0 %v3861_v36  ;;  %v1246_v19 = vld [vmem:[#allocation2 + $0x32] sm:$0xff] }
 0x1dc   : > { %v1865_v17 = vpop.f32.mrf.mxu1  ;;  %2394 = vmatmul.mubr.f32.gmra.mxu1 %v12444_v2  ;;  %4035 = vmatprep.subr.mxu0 %v9272_v3 }
 0x1dd   : > { %v2080_v20 = vpop.f32.mrf.mxu0  ;;  %2609 = vmatmul.mubr.f32.gmra.mxu0 %v12445_v21  ;;  %2398 = vmatprep.mubr.f32.mxu1 %v9236_v25  ;;  %v1866_v32 = vadd.f32 %v9370_v1, %v1865_v17  ;;  %v1213_v21 = vld [vmem:[#allocation2 + $0x1a1] sm:$0xff] }
 0x1de   : > { %v9469_v22 = vadd.f32 %v2080_v20, %v1856_v14  ;;  %2613 = vmatprep.mubr.f32.mxu0 %v12446_v23  ;;  %v1867_v38 = vpop.f32.mrf.mxu1  ;;  %v3860_v14 = vld [vmem:[%s12316_s5 + $0x10] sm:$0xff] }
 0x1df   : > { %v2082_v39 = vpop.f32.mrf.mxu0  ;;  %4036 = vmatpush1.msra.mxu0 %v3860_v14  ;;  %v3887_v14 = vld [vmem:[%s12316_s5 + $0xe8] sm:$0xff] }
 0x1e0   : > { %v1870_v46 = vpop.f32.mrf.mxu1  ;;  %2399 = vmatmul.mubr.f32.gmra.mxu1 %v12446_v23  ;;  %4037 = vmatprep.subr.mxu0 %v9272_v3  ;;  %v1248_v39 = vld [vmem:[#allocation2 + $0x4a] sm:$0xff] }
 0x1e1   : > { %v2085_v48 = vpop.f32.mrf.mxu0  ;;  %2614 = vmatmul.mubr.f32.gmra.mxu0 %v12447_v52  ;;  %2403 = vmatprep.mubr.f32.mxu1 %v9249_v59  ;;  %v1871_v28 = vadd.f32 %v9370_v1, %v1870_v46  ;;  %v3859_v46 = vld [vmem:[%s12316_s5 + $0x8] sm:$0xff] }
 0x1e2   : > { %v9480_v25 = vadd.f32 %v2085_v48, %v1861_v43  ;;  %2618 = vmatprep.mubr.f32.mxu0 %v12448_v53  ;;  %v1872_v60 = vpop.f32.mrf.mxu1  ;;  %4038 = vmatpush1.msra.mxu0 %v3859_v46  ;;  %v1258_v46 = vld [vmem:[#allocation2 + $0xc2] sm:$0xff] }
 0x1e3   : > { %v2087_v0 = vpop.f32.mrf.mxu0  ;;  %4039 = vmatprep.subr.mxu0 %v9272_v3 }
 0x1e4   : > { %v1875_v30 = vpop.f32.mrf.mxu1  ;;  %2404 = vmatmul.mubr.f32.gmra.mxu1 %v12448_v53 }
 0x1e5   : > { %v2090_v15 = vpop.f32.mrf.mxu0  ;;  %2619 = vmatmul.mubr.f32.gmra.mxu0 %v12449_v61  ;;  %2408 = vmatprep.mubr.f32.mxu1 %v9261_v27  ;;  %v12451_v27 = vld [vmem:[#allocation32_spill] sm:$0xff]  ;;  %v1876_v55 = vadd.f32 %v9370_v1, %v1875_v30 }
 0x1e6   : > { %v9491_v59 = vadd.f32 %v2090_v15, %v1866_v32  ;;  %2623 = vmatprep.mubr.f32.mxu0 %v12450_v47  ;;  %v1877_v4 = vpop.f32.mrf.mxu1  ;;  %v1250_v32 = vld [vmem:[#allocation2 + $0x62] sm:$0xff] }
 0x1e7   : > { %v2092_v11 = vpop.f32.mrf.mxu0  ;;  %v3858_v15 = vld [vmem:[%s12316_s5] sm:$0xff]  ;;  %v1251_v4 = vld [vmem:[#allocation2 + $0x6a] sm:$0xff] }
 0x1e8   : > { %v1880_v29 = vpop.f32.mrf.mxu1  ;;  %2409 = vmatmul.mubr.f32.gmra.mxu1 %v12450_v47  ;;  %4040 = vmatpush1.msra.mxu0 %v3858_v15  ;;  %v1259_v15 = vld [vmem:[#allocation2 + $0xca] sm:$0xff] }
 0x1e9   : > { %v2095_v34 = vpop.f32.mrf.mxu0  ;;  %2624 = vmatmul.mubr.f32.gmra.mxu0 %v12451_v27  ;;  %2413 = vmatprep.mubr.f32.mxu1 %v9498_v6  ;;  %v1881_v63 = vadd.f32 %v9370_v1, %v1880_v29 }
 0x1ea   : > { %v9504_v35 = vadd.f32 %v2095_v34, %v1871_v28  ;;  %2628 = vmatprep.mubr.f32.mxu0 %v1210_v37  ;;  %v1882_v50 = vpop.f32.mrf.mxu1  ;;  %4041 = vmatprep.subr.mxu0 %v9272_v3  ;;  %v1252_v28 = vld [vmem:[#allocation2 + $0x7a] sm:$0xff] }
 0x1eb   : > { %v2097_v54 = vpop.f32.mrf.mxu0  ;;  %v3889_v34 = vld [vmem:[%s12316_s5 + $0xf8] sm:$0xff] }
 0x1ec   : > { %v1885_v57 = vpop.f32.mrf.mxu1  ;;  %2414 = vmatmul.mubr.f32.gmra.mxu1 %v1210_v37  ;;  %4042 = vmatpush2.msra.mxu0 %v3889_v34  ;;  %v1253_v54 = vld [vmem:[#allocation2 + $0x82] sm:$0xff] }
 0x1ed   : > { %v2100_v8 = vpop.f32.mrf.mxu0  ;;  %2629 = vmatmul.mubr.f32.gmra.mxu0 %v12452_v12  ;;  %2418 = vmatprep.mubr.f32.mxu1 %v9513_v16  ;;  %v1886_v23 = vadd.f32 %v9370_v1, %v1885_v57 }
 0x1ee   : > { %v9515_v33 = vadd.f32 %v2100_v8, %v1876_v55  ;;  %2633 = vmatprep.mubr.f32.mxu0 %v1211_v26  ;;  %v1887_v41 = vpop.f32.mrf.mxu1  ;;  %4043 = vmatprep.subr.mxu0 %v9272_v3  ;;  %v1254_v8 = vld [vmem:[#allocation2 + $0x92] sm:$0xff] }
 0x1ef   : > { %v2102_v42 = vpop.f32.mrf.mxu0 }
 0x1f0   : > { %v1890_v2 = vpop.f32.mrf.mxu1  ;;  %2419 = vmatmul.mubr.f32.gmra.mxu1 %v1211_v26  ;;  %v3888_v26 = vld [vmem:[%s12316_s5 + $0xf0] sm:$0xff] }
 0x1f1   : > { %v2105_v5 = vpop.f32.mrf.mxu0  ;;  %2634 = vmatmul.mubr.f32.gmra.mxu0 %v9251_v18  ;;  %7803 = vmatprep.mubr.f32.mxu1 %v1246_v19  ;;  %v1891_v53 = vadd.f32 %v9370_v1, %v1890_v2 }
 0x1f2   : > { %v9524_v9 = vadd.f32 %v2105_v5, %v1881_v63  ;;  %2638 = vmatprep.mubr.f32.mxu0 %v1212_v58  ;;  %v1892_v17 = vpop.f32.mrf.mxu1  ;;  %4044 = vmatpush2.msra.mxu0 %v3888_v26  ;;  %v1255_v58 = vld [vmem:[#allocation2 + $0x9a] sm:$0xff]  ;;  %v1256_v5 = vld [vmem:[#allocation2 + $0xaa] sm:$0xff] }
 0x1f3   : > { %v2107_v20 = vpop.f32.mrf.mxu0  ;;  %4045 = vmatprep.subr.mxu0 %v9272_v3  ;;  %v3905_v17 = vld [vmem:[%s12316_s5 + $0x178] sm:$0xff]  ;;  %v3884_v26 = vld [vmem:[%s12316_s5 + $0xd0] sm:$0xff] }
 0x1f4   : > { %v1895_v38 = vpop.f32.mrf.mxu1  ;;  %7804 = vmatmul.mubr.f32.vlgmr.msra.gmra.mxu1 %v1247_v31  ;;  %4046 = vmatpush2.msra.mxu0 %v3887_v14 }
 0x1f5   : > { %v2110_v18 = vpop.f32.mrf.mxu0  ;;  %2639 = vmatmul.mubr.f32.gmra.mxu0 %v9272_v3  ;;  %7806 = vmatprep.mubr.f32.mxu1 %v1248_v39  ;;  %v1896_v24 = vadd.f32 %v9370_v1, %v1895_v38  ;;  %v1257_v38 = vld [vmem:[#allocation2 + $0xb2] sm:$0xff] }
 0x1f6   : > { %v9532_v43 = vadd.f32 %v2110_v18, %v1886_v23  ;;  %2643 = vmatprep.mubr.f32.mxu0 %v1213_v21  ;;  %v1897_v48 = vpop.f32.mrf.mxu1  ;;  %4235 = vmatpush1.msra.mxu1 %v3905_v17  ;;  %v3904_v23 = vld [vmem:[%s12316_s5 + $0x170] sm:$0xff] }
 0x1f7   : > { %v2112_v52 = vpop.f32.mrf.mxu0  ;;  %4236 = vmatprep.subr.mxu1 %v9272_v3  ;;  %4047 = vmatprep.subr.mxu0 %v9272_v3  ;;  %v1264_v17 = vld [vmem:[#allocation2 + $0x10a] sm:$0xff] }
 0x1f8   : > { %v1900_v60 = vpop.f32.mrf.mxu1  ;;  %7807 = vmatmul.mubr.f32.gmra.mxu1 %v1249_v56  ;;  %v3886_v52 = vld [vmem:[%s12316_s5 + $0xe0] sm:$0xff] }
 0x1f9   : > { %v2115_v0 = vpop.f32.mrf.mxu0  ;;  %2644 = vmatmul.mubr.f32.gmra.mxu0 %v9272_v3  ;;  %7809 = vmatprep.mubr.f32.mxu1 %v1250_v32  ;;  %v1901_v50 = vadd.f32 %v9370_v1, %v1900_v60 }
 0x1fa   : > { %v9540_v30 = vadd.f32 %v2115_v0, %v1891_v53  ;;  %v1902_v61 = vpop.f32.mrf.mxu1  ;;  %4237 = vmatpush1.msra.mxu1 %v3904_v23  ;;  %v3903_v53 = vld [vmem:[%s12316_s5 + $0x168] sm:$0xff]  ;;  %4048 = vmatpush2.msra.mxu0 %v3886_v52  ;;  %v3902_v0 = vld [vmem:[%s12316_s5 + $0x160] sm:$0xff]  ;;  %v3897_v23 = vld [vmem:[%s12316_s5 + $0x138] sm:$0xff] }
 0x1fb   : > { %v2117_v47 = vpop.f32.mrf.mxu0  ;;  %4238 = vmatprep.subr.mxu1 %v9272_v3  ;;  %4049 = vmatprep.subr.mxu0 %v9272_v3 }
 0x1fc   : > { %v1905_v11 = vpop.f32.mrf.mxu1  ;;  %7810 = vmatmul.mubr.f32.gmra.mxu1 %v1251_v4 }
 0x1fd   : > { %v2120_v37 = vpop.f32.mrf.mxu0  ;;  %7812 = vmatprep.mubr.f32.mxu1 %v1252_v28  ;;  %v1906_v42 = vadd.f32 %v9370_v1, %v1905_v11  ;;  %4239 = vmatpush1.msra.mxu1 %v3903_v53  ;;  %v3885_v11 = vld [vmem:[%s12316_s5 + $0xd8] sm:$0xff] }
 0x1fe   : > { %v9547_v29 = vadd.f32 %v2120_v37, %v1896_v24  ;;  %v1907_v27 = vpop.f32.mrf.mxu1  ;;  %v1260_v24 = vld [vmem:[#allocation2 + $0xda] sm:$0xff]  ;;  %4240 = vmatprep.subr.mxu1 %v9272_v3  ;;  %4050 = vmatpush2.msra.mxu0 %v3885_v11  ;;  %v1267_v11 = vld [vmem:[#allocation2 + $0x12a] sm:$0xff] }
 0x1ff   : > { %v2122_v49 = vpop.f32.mrf.mxu0  ;;  %4241 = vmatpush1.msra.mxu1 %v3902_v0  ;;  %v3901_v37 = vld [vmem:[%s12316_s5 + $0x158] sm:$0xff]  ;;  %v3900_v27 = vld [vmem:[%s12316_s5 + $0x150] sm:$0xff]  ;;  %4051 = vmatprep.subr.mxu0 %v9272_v3  ;;  %v3882_v0 = vld [vmem:[%s12316_s5 + $0xc0] sm:$0xff] }
 0x200   : > { %v1910_v55 = vpop.f32.mrf.mxu1  ;;  %7813 = vmatmul.mubr.f32.gmra.mxu1 %v1253_v54  ;;  %4242 = vmatprep.subr.mxu1 %v9272_v3 }
 0x201   : > { %v2125_v57 = vpop.f32.mrf.mxu0  ;;  %7815 = vmatprep.mubr.f32.mxu1 %v1254_v8  ;;  %v1911_v31 = vadd.f32 %v9370_v1, %v1910_v55  ;;  %4243 = vmatpush1.msra.mxu1 %v3901_v37 }
 0x202   : > { %v9554_v12 = vadd.f32 %v2125_v57, %v1901_v50  ;;  %v1912_v36 = vpop.f32.mrf.mxu1  ;;  %v1261_v50 = vld [vmem:[#allocation2 + $0xe2] sm:$0xff]  ;;  %v1262_v57 = vld [vmem:[#allocation2 + $0xf2] sm:$0xff]  ;;  %4244 = vmatprep.subr.mxu1 %v9272_v3  ;;  %4052 = vmatpush2.msra.mxu0 %v3884_v26 }
 0x203   : > { %v2127_v41 = vpop.f32.mrf.mxu0  ;;  %4245 = vmatpush1.msra.mxu1 %v3900_v27  ;;  %v3899_v36 = vld [vmem:[%s12316_s5 + $0x148] sm:$0xff]  ;;  %4053 = vmatprep.subr.mxu0 %v9272_v3 }
 0x204   : > { %v1915_v63 = vpop.f32.mrf.mxu1  ;;  %7816 = vmatmul.mubr.f32.gmra.mxu1 %v1255_v58  ;;  %4246 = vmatprep.subr.mxu1 %v9272_v3  ;;  %v3898_v58 = vld [vmem:[%s12316_s5 + $0x140] sm:$0xff] }
 0x205   : > { %v2130_v2 = vpop.f32.mrf.mxu0  ;;  %7818 = vmatprep.mubr.f32.mxu1 %v1256_v5  ;;  %v1916_v32 = vadd.f32 %v9370_v1, %v1915_v63  ;;  %4247 = vmatpush1.msra.mxu1 %v3899_v36  ;;  %v1269_v36 = vld [vmem:[#allocation2 + $0x142] sm:$0xff] }
 0x206   : > { %v9561_v19 = vadd.f32 %v2130_v2, %v1906_v42  ;;  %v1917_v20 = vpop.f32.mrf.mxu1  ;;  %v1263_v2 = vld [vmem:[#allocation2 + $0xfa] sm:$0xff]  ;;  %4248 = vmatprep.subr.mxu1 %v9272_v3 }
 0x207   : > { %v2132_v21 = vpop.f32.mrf.mxu0  ;;  %4249 = vmatpush1.msra.mxu1 %v3898_v58  ;;  %v1270_v58 = vld [vmem:[#allocation2 + $0x152] sm:$0xff] }
 0x208   : > { %v1920_v18 = vpop.f32.mrf.mxu1  ;;  %7819 = vmatmul.mubr.f32.gmra.mxu1 %v1257_v38  ;;  %v3883_v21 = vld [vmem:[%s12316_s5 + $0xc8] sm:$0xff]  ;;  %4250 = vmatprep.subr.mxu1 %v9272_v3 }
 0x209   : > { %v2135_v39 = vpop.f32.mrf.mxu0  ;;  %7821 = vmatprep.mubr.f32.mxu1 %v1258_v46  ;;  %v1921_v49 = vadd.f32 %v9370_v1, %v1920_v18  ;;  %4054 = vmatpush2.msra.mxu0 %v3883_v21  ;;  %v3896_v18 = vld [vmem:[%s12316_s5 + $0x130] sm:$0xff]  ;;  %v3890_v21 = vld [vmem:[%s12316_s5 + $0x100] sm:$0xff] }
 0x20a   : > { %v9575_v48 = vadd.f32 %v2135_v39, %v1911_v31  ;;  %v1922_v56 = vpop.f32.mrf.mxu1  ;;  %v1265_v46 = vld [vmem:[#allocation2 + $0x112] sm:$0xff]  ;;  %4251 = vmatpush1.msra.mxu1 %v3897_v23  ;;  %4055 = vmatprep.subr.mxu0 %v9272_v3 }
 0x20b   : > { %v2137_v60 = vpop.f32.mrf.mxu0  ;;  %v1266_v56 = vld [vmem:[#allocation2 + $0x122] sm:$0xff]  ;;  %4252 = vmatprep.subr.mxu1 %v9272_v3  ;;  %4056 = vmatpush2.msra.mxu0 %v3882_v0 }
 0x20c   : > { %v1925_v61 = vpop.f32.mrf.mxu1  ;;  %7822 = vmatmul.mubr.f32.gmra.mxu1 %v1259_v15  ;;  %4057 = vmatprep.subr.mxu0 %v9272_v3 }
 0x20d   : > { %v2140_v47 = vpop.f32.mrf.mxu0  ;;  %7824 = vmatprep.mubr.f32.mxu1 %v1260_v24  ;;  %v1926_v63 = vadd.f32 %v9370_v1, %v1925_v61  ;;  %4253 = vmatpush1.msra.mxu1 %v3896_v18 }
 0x20e   : > { %v9590_v4 = vadd.f32 %v2140_v47, %v1916_v32  ;;  %v1927_v28 = vpop.f32.mrf.mxu1  ;;  %v3895_v32 = vld [vmem:[%s12316_s5 + $0x128] sm:$0xff]  ;;  %4254 = vmatprep.subr.mxu1 %v9272_v3  ;;  %v3894_v47 = vld [vmem:[%s12316_s5 + $0x120] sm:$0xff] }
 0x20f   : > { %v2142_v34 = vpop.f32.mrf.mxu0  ;;  %4255 = vmatpush1.msra.mxu1 %v3895_v32  ;;  %v9688_v32 = vld [vmem:[#allocation2] sm:$0xff] }
 0x210   : > { %v1930_v54 = vpop.f32.mrf.mxu1  ;;  %7825 = vmatmul.mubr.f32.gmra.mxu1 %v1261_v50  ;;  %v1268_v34 = vld [vmem:[#allocation2 + $0x13a] sm:$0xff]  ;;  %4256 = vmatprep.subr.mxu1 %v9272_v3 }
 0x211   : > { %v2145_v55 = vpop.f32.mrf.mxu0  ;;  %7827 = vmatprep.mubr.f32.mxu1 %v1262_v57  ;;  %v1931_v39 = vadd.f32 %v9370_v1, %v1930_v54  ;;  %4257 = vmatpush1.msra.mxu1 %v3894_v47  ;;  %v3893_v50 = vld [vmem:[%s12316_s5 + $0x118] sm:$0xff]  ;;  %v3892_v57 = vld [vmem:[%s12316_s5 + $0x110] sm:$0xff] }
 0x212   : > { %v9605_v8 = vadd.f32 %v2145_v55, %v1921_v49  ;;  %v1932_v41 = vpop.f32.mrf.mxu1  ;;  %v3881_v49 = vld [vmem:[%s12316_s5 + $0xb8] sm:$0xff]  ;;  %4258 = vmatprep.subr.mxu1 %v9272_v3 }
 0x213   : > { %v2147_v42 = vpop.f32.mrf.mxu0  ;;  %4058 = vmatpush2.msra.mxu0 %v3881_v49  ;;  %4259 = vmatpush1.msra.mxu1 %v3893_v50  ;;  %v1276_v50 = vld [vmem:[#allocation2 + $0x19a] sm:$0xff] }
 0x214   : > { %v1935_v5 = vpop.f32.mrf.mxu1  ;;  %7828 = vmatmul.mubr.f32.gmra.mxu1 %v1263_v2  ;;  %4059 = vmatprep.subr.mxu0 %v9272_v3  ;;  %v3880_v2 = vld [vmem:[%s12316_s5 + $0xb0] sm:$0xff] }
 0x215   : > { %v2150_v14 = vpop.f32.mrf.mxu0  ;;  %7830 = vmatprep.mubr.f32.mxu1 %v1264_v17  ;;  %v1936_v24 = vadd.f32 %v9370_v1, %v1935_v5  ;;  %4260 = vmatprep.subr.mxu1 %v9272_v3  ;;  %v3891_v5 = vld [vmem:[%s12316_s5 + $0x108] sm:$0xff] }
 0x216   : > { %v9620_v20 = vadd.f32 %v2150_v14, %v1926_v63  ;;  %v1937_v31 = vpop.f32.mrf.mxu1  ;;  %4261 = vmatpush1.msra.mxu1 %v3892_v57  ;;  %4060 = vmatpush2.msra.mxu0 %v3880_v2 }
 0x217   : > { %v2152_v38 = vpop.f32.mrf.mxu0  ;;  %4262 = vmatprep.subr.mxu1 %v9272_v3  ;;  %v1271_v31 = vld [vmem:[#allocation2 + $0x15a] sm:$0xff]  ;;  %4061 = vmatprep.subr.mxu0 %v9272_v3 }
 0x218   : > { %v1940_v52 = vpop.f32.mrf.mxu1  ;;  %7831 = vmatmul.mubr.f32.gmra.mxu1 %v1265_v46 }
 0x219   : > { %v2155_v53 = vpop.f32.mrf.mxu0  ;;  %7833 = vmatprep.mubr.f32.mxu1 %v1266_v56  ;;  %v1941_v26 = vadd.f32 %v9370_v1, %v1940_v52  ;;  %4263 = vmatpush1.msra.mxu1 %v3891_v5  ;;  %v3879_v52 = vld [vmem:[%s12316_s5 + $0xa8] sm:$0xff] }
 0x21a   : > { %v9635_v60 = vadd.f32 %v2155_v53, %v1931_v39  ;;  %v1942_v15 = vpop.f32.mrf.mxu1  ;;  %v1272_v39 = vld [vmem:[#allocation2 + $0x16a] sm:$0xff]  ;;  %4264 = vmatprep.subr.mxu1 %v9272_v3  ;;  %v3921_v53 = vld [vmem:[%s12316_s5 + $0x1f8] sm:$0xff]  ;;  %4062 = vmatpush2.msra.mxu0 %v3879_v52 }
 0x21b   : > { %v2157_v61 = vpop.f32.mrf.mxu0  ;;  %4265 = vmatpush1.msra.mxu1 %v3890_v21  ;;  %v3920_v3 = vld [vmem:[%s12316_s5 + $0x1f0] sm:$0xff]  ;;  %4063 = vmatprep.subr.mxu0 %v9688_v32 }
 0x21c   : > { %v1945_v37 = vpop.f32.mrf.mxu1  ;;  %7834 = vmatmul.mubr.f32.gmra.mxu1 %v1267_v11  ;;  %4266 = vmatprep.subr.mxu1 %v9688_v32  ;;  %v1273_v61 = vld [vmem:[#allocation2 + $0x172] sm:$0xff] }
 0x21d   : > { %v2160_v28 = vpop.f32.mrf.mxu0  ;;  %7836 = vmatprep.mubr.f32.mxu1 %v1268_v34  ;;  %v1946_v23 = vadd.f32 %v9370_v1, %v1945_v37  ;;  %4267 = vmatpush2.msra.mxu1 %v3921_v53  ;;  %v3878_v37 = vld [vmem:[%s12316_s5 + $0xa0] sm:$0xff]  ;;  %v3875_v53 = vld [vmem:[%s12316_s5 + $0x88] sm:$0xff] }
 0x21e   : > { %v9650_v27 = vadd.f32 %v2160_v28, %v1936_v24  ;;  %v1947_v54 = vpop.f32.mrf.mxu1  ;;  %4268 = vmatprep.subr.mxu1 %v9688_v32  ;;  %v3919_v28 = vld [vmem:[%s12316_s5 + $0x1e8] sm:$0xff]  ;;  %4064 = vmatpush2.msra.mxu0 %v3878_v37 }
 0x21f   : > { %v2162_v55 = vpop.f32.mrf.mxu0  ;;  %4269 = vmatpush2.msra.mxu1 %v3920_v3  ;;  %v3918_v54 = vld [vmem:[%s12316_s5 + $0x1e0] sm:$0xff]  ;;  %4065 = vmatprep.subr.mxu0 %v9688_v32 }
 0x220   : > { %v1950_v41 = vpop.f32.mrf.mxu1  ;;  %7837 = vmatmul.mubr.f32.gmra.mxu1 %v1269_v36  ;;  %4270 = vmatprep.subr.mxu1 %v9688_v32  ;;  %v1277_v36 = vld [vmem:[#allocation2 + $0x1a2] sm:$0xff] }
 0x221   : > { %v2165_v42 = vpop.f32.mrf.mxu0  ;;  %7839 = vmatprep.mubr.f32.mxu1 %v1270_v58  ;;  %v1951_v15 = vadd.f32 %v9370_v1, %v1950_v41  ;;  %4271 = vmatpush2.msra.mxu1 %v3919_v28  ;;  %v3877_v41 = vld [vmem:[%s12316_s5 + $0x98] sm:$0xff] }
 0x222   : > { %v9665_v63 = vadd.f32 %v2165_v42, %v1941_v26  ;;  %v1952_v14 = vpop.f32.mrf.mxu1  ;;  %4272 = vmatprep.subr.mxu1 %v9688_v32  ;;  %v3917_v42 = vld [vmem:[%s12316_s5 + $0x1d8] sm:$0xff]  ;;  %4066 = vmatpush2.msra.mxu0 %v3877_v41  ;;  %v3910_v41 = vld [vmem:[%s12316_s5 + $0x1a0] sm:$0xff] }
 0x223   : > { %v2167_v17 = vpop.f32.mrf.mxu0  ;;  %4273 = vmatpush2.msra.mxu1 %v3918_v54  ;;  %4067 = vmatprep.subr.mxu0 %v9688_v32 }
 0x224   : > { %v1955_v38 = vpop.f32.mrf.mxu1  ;;  %7840 = vmatmul.mubr.f32.gmra.mxu1 %v1271_v31  ;;  %4274 = vmatprep.subr.mxu1 %v9688_v32  ;;  %v3915_v31 = vld [vmem:[%s12316_s5 + $0x1c8] sm:$0xff] }
 0x225   : > { %v2170_v18 = vpop.f32.mrf.mxu0  ;;  %7842 = vmatprep.mubr.f32.mxu1 %v1272_v39  ;;  %4275 = vmatpush2.msra.mxu1 %v3917_v42  ;;  %v3914_v39 = vld [vmem:[%s12316_s5 + $0x1c0] sm:$0xff] }
 0x226   : > { %v9680_v46 = vadd.f32 %v2170_v18, %v1946_v23  ;;  %v1957_v56 = vpop.f32.mrf.mxu1  ;;  %4276 = vmatprep.subr.mxu1 %v9688_v32  ;;  %v3876_v23 = vld [vmem:[%s12316_s5 + $0x90] sm:$0xff] }
 0x227   : > { %v2172_v0 = vpop.f32.mrf.mxu0  ;;  %4068 = vmatpush2.msra.mxu0 %v3876_v23 }
 0x228   : > { %v1960_v47 = vpop.f32.mrf.mxu1  ;;  %7843 = vmatmul.mubr.f32.gmra.mxu1 %v1273_v61  ;;  %4069 = vmatprep.subr.mxu0 %v9688_v32  ;;  %v3913_v61 = vld [vmem:[%s12316_s5 + $0x1b8] sm:$0xff] }
 0x229   : > { %v2175_v24 = vpop.f32.mrf.mxu0  ;;  %7845 = vmatprep.mubr.f32.mxu1 %v9498_v6  ;;  %v1956_v6 = vadd.f32 %v9370_v1, %v1955_v38  ;;  %v1961_v5 = vadd.f32 %v9370_v1, %v1960_v47  ;;  %4070 = vmatpush2.msra.mxu0 %v3875_v53  ;;  %v3874_v47 = vld [vmem:[%s12316_s5 + $0x80] sm:$0xff] }
 0x22a   : > { %v9697_v11 = vadd.f32 %v2175_v24, %v1951_v15  ;;  %v1962_v34 = vpop.f32.mrf.mxu1  ;;  %4071 = vmatprep.subr.mxu0 %v9688_v32  ;;  %v3057_v24 = vld [vmem:[#allocation3 + $0x1] sm:$0xff] }
 0x22b   : > { %v2177_v49 = vpop.f32.mrf.mxu0  ;;  %4072 = vmatpush2.msra.mxu0 %v3874_v47  ;;  %4073 = vmatprep.mubr.f32.mxu0 %v3057_v24  ;;  %v3936_v47 = vld [vmem:[%s12316_s5 + $0x270] sm:$0xff] }
 0x22c   : > { %v1965_v55 = vpop.f32.mrf.mxu1  ;;  %7846 = vmatmul.mubr.f32.gmra.mxu1 %v9513_v16  ;;  %v3916_v16 = vld [vmem:[%s12316_s5 + $0x1d0] sm:$0xff]  ;;  %4074 = vmatmul.mubr.f32.vlgmr.msra.gmra.mxu0 %v9688_v32 }
 0x22d   : > { %v2180_v57 = vpop.f32.mrf.mxu0  ;;  %7848 = vmatprep.mubr.f32.mxu1 %v1276_v50  ;;  %4277 = vmatpush2.msra.mxu1 %v3916_v16  ;;  %v1966_v52 = vadd.f32 %v9370_v1, %v1965_v55  ;;  %v3058_v55 = vld [vmem:[#allocation3 + $0x9] sm:$0xff] }
 0x22e   : > { %v9714_v26 = vadd.f32 %v2180_v57, %v1956_v6  ;;  %v1967_v58 = vpop.f32.mrf.mxu1  ;;  %4278 = vmatprep.subr.mxu1 %v9688_v32  ;;  %4459 = vmatprep.subr.mxu0 %v9688_v32  ;;  %v3909_v16 = vld [vmem:[%s12316_s5 + $0x198] sm:$0xff] }
 0x22f   : > { %v2182_v2 = vpop.f32.mrf.mxu0  ;;  %4279 = vmatpush2.msra.mxu1 %v3915_v31  ;;  %4078 = vmatprep.mubr.f32.mxu0 %v3058_v55 }
 0x230   : > { %v1970_v14 = vpop.f32.mrf.mxu1  ;;  %7849 = vmatmul.mubr.f32.gmra.mxu1 %v1277_v36  ;;  %4280 = vmatprep.subr.mxu1 %v9688_v32 }
 0x231   : > { %v2185_v17 = vpop.f32.mrf.mxu0  ;;  %4281 = vmatpush2.msra.mxu1 %v3914_v39  ;;  %v1971_v34 = vadd.f32 %v9370_v1, %v1970_v14  ;;  %v3911_v1 = vld [vmem:[%s12316_s5 + $0x1a8] sm:$0xff]  ;;  %4079 = vmatmul.mubr.f32.gmra.mxu0 %v9688_v32 }
 0x232   : > { %v9729_v21 = vadd.f32 %v2185_v17, %v1961_v5  ;;  %v1972_v38 = vpop.f32.mrf.mxu1  ;;  %4282 = vmatprep.subr.mxu1 %v9688_v32  ;;  %v3908_v17 = vld [vmem:[%s12316_s5 + $0x190] sm:$0xff]  ;;  %v3907_v39 = vld [vmem:[%s12316_s5 + $0x188] sm:$0xff] }
 0x233   : > { %v2187_v18 = vpop.f32.mrf.mxu0  ;;  %4283 = vmatpush2.msra.mxu1 %v3913_v61 }
 0x234   : > { %v2265_v0 = vpop.f32.mrf.mxu1  ;;  %4284 = vmatprep.subr.mxu1 %v9688_v32  ;;  %v3937_v18 = vld [vmem:[%s12316_s5 + $0x278] sm:$0xff] }
 0x235   : > { %v2190_v56 = vpop.f32.mrf.mxu0  ;;  %v2266_v15 = vadd.f32 %v2265_v0, %v9380_v13  ;;  %v3912_v13 = vld [vmem:[%s12316_s5 + $0x1b0] sm:$0xff]  ;;  %4460 = vmatpush1.msra.mxu0 %v3937_v18 }
 0x236   : > { %v9747_v3 = vadd.f32 %v2190_v56, %v1966_v52  ;;  %v2267_v28 = vpop.f32.mrf.mxu1  ;;  %4285 = vmatpush2.msra.mxu1 %v3912_v13  ;;  %4461 = vmatprep.subr.mxu0 %v9688_v32 }
 0x237   : > { %v2192_v37 = vpop.f32.mrf.mxu0  ;;  %4286 = vmatprep.subr.mxu1 %v9688_v32  ;;  %4462 = vmatpush1.msra.mxu0 %v3936_v47 }
 0x238   : > { %v2270_v50 = vpop.f32.mrf.mxu1  ;;  %4287 = vmatpush2.msra.mxu1 %v3911_v1  ;;  %4463 = vmatprep.subr.mxu0 %v9688_v32 }
 0x239   : > { %v2195_v49 = vpop.f32.mrf.mxu0  ;;  %v2271_v6 = vadd.f32 %v2270_v50, %v9392_v44  ;;  %4288 = vmatprep.subr.mxu1 %v9688_v32 }
 0x23a   : > { %v9764_v54 = vadd.f32 %v2195_v49, %v1971_v34  ;;  %v2272_v36 = vpop.f32.mrf.mxu1  ;;  %4289 = vmatpush2.msra.mxu1 %v3910_v41 }
 0x23b   : > { %v2197_v57 = vpop.f32.mrf.mxu0  ;;  %4290 = vmatprep.subr.mxu1 %v9688_v32 }
 0x23c   : > { %v2275_v42 = vpop.f32.mrf.mxu1  ;;  %4291 = vmatpush2.msra.mxu1 %v3909_v16 }
 0x23d   : > { %v2490_v44 = vpop.f32.mrf.mxu0  ;;  %v2276_v58 = vadd.f32 %v2275_v42, %v9403_v10  ;;  %4292 = vmatprep.subr.mxu1 %v9688_v32 }
 0x23e   : > { %v9778_v2 = vadd.f32 %v2490_v44, %v2266_v15  ;;  %v2277_v5 = vpop.f32.mrf.mxu1  ;;  %4293 = vmatpush2.msra.mxu1 %v3908_v17 }
 0x23f   : > { %v2492_v14 = vpop.f32.mrf.mxu0  ;;  %4294 = vmatprep.subr.mxu1 %v9688_v32 }
 0x240   : > { %v2280_v23 = vpop.f32.mrf.mxu1  ;;  %4295 = vmatpush2.msra.mxu1 %v3907_v39 }
 0x241   : > { %v2495_v31 = vpop.f32.mrf.mxu0  ;;  %v2281_v10 = vadd.f32 %v2280_v23, %v9414_v40  ;;  %v3906_v40 = vld [vmem:[%s12316_s5 + $0x180] sm:$0xff]  ;;  %4296 = vmatprep.subr.mxu1 %v9688_v32 }
 0x242   : > { %v9789_v38 = vadd.f32 %v2495_v31, %v2271_v6  ;;  %v2282_v52 = vpop.f32.mrf.mxu1  ;;  %4297 = vmatpush2.msra.mxu1 %v3906_v40 }
 0x243   : > { %v2497_v53 = vpop.f32.mrf.mxu0  ;;  %4684 = vmatprep.subr.mxu1 %v9688_v32 }
 0x244   : > { %v2285_v56 = vpop.f32.mrf.mxu1 }
 0x245   : > { %v2500_v0 = vpop.f32.mrf.mxu0  ;;  %v2286_v15 = vadd.f32 %v2285_v56, %v9425_v51  ;;  %v3935_v51 = vld [vmem:[%s12316_s5 + $0x268] sm:$0xff] }
 0x246   : > { %v9804_v61 = vadd.f32 %v2500_v0, %v2276_v58  ;;  %v2287_v24 = vpop.f32.mrf.mxu1  ;;  %4464 = vmatpush1.msra.mxu0 %v3935_v51 }
 0x247   : > { %v2502_v37 = vpop.f32.mrf.mxu0  ;;  %4465 = vmatprep.subr.mxu0 %v9688_v32 }
 0x248   : > { %v2290_v28 = vpop.f32.mrf.mxu1 }
 0x249   : > { %v2505_v34 = vpop.f32.mrf.mxu0  ;;  %v2291_v13 = vadd.f32 %v2290_v28, %v9436_v45  ;;  %v3934_v45 = vld [vmem:[%s12316_s5 + $0x260] sm:$0xff] }
 0x24a   : > { %v9812_v49 = vadd.f32 %v2505_v34, %v2281_v10  ;;  %v2292_v50 = vpop.f32.mrf.mxu1  ;;  %4466 = vmatpush1.msra.mxu0 %v3934_v45 }
 0x24b   : > { %v2507_v6 = vpop.f32.mrf.mxu0  ;;  %4467 = vmatprep.subr.mxu0 %v9688_v32 }
 0x24c   : > { %v2295_v1 = vpop.f32.mrf.mxu1 }
 0x24d   : > { %v2510_v55 = vpop.f32.mrf.mxu0  ;;  %v2296_v57 = vadd.f32 %v2295_v1, %v9447_v7  ;;  %v3933_v7 = vld [vmem:[%s12316_s5 + $0x258] sm:$0xff] }
 0x24e   : > { %v9819_v36 = vadd.f32 %v2510_v55, %v2286_v15  ;;  %v2297_v41 = vpop.f32.mrf.mxu1  ;;  %4468 = vmatpush1.msra.mxu0 %v3933_v7 }
 0x24f   : > { %v2512_v42 = vpop.f32.mrf.mxu0  ;;  %4469 = vmatprep.subr.mxu0 %v9688_v32 }
 0x250   : > { %v2300_v44 = vpop.f32.mrf.mxu1 }
 0x251   : > { %v2515_v58 = vpop.f32.mrf.mxu0  ;;  %v2301_v16 = vadd.f32 %v2300_v44, %v9458_v62  ;;  %v3932_v62 = vld [vmem:[%s12316_s5 + $0x250] sm:$0xff] }
 0x252   : > { %v9826_v5 = vadd.f32 %v2515_v58, %v2291_v13  ;;  %v2302_v14 = vpop.f32.mrf.mxu1  ;;  %4470 = vmatpush1.msra.mxu0 %v3932_v62 }
 0x253   : > { %v2517_v17 = vpop.f32.mrf.mxu0  ;;  %4471 = vmatprep.subr.mxu0 %v9688_v32 }
 0x254   : > { %v2305_v23 = vpop.f32.mrf.mxu1 }
 0x255   : > { %v2520_v31 = vpop.f32.mrf.mxu0  ;;  %v2306_v10 = vadd.f32 %v2305_v23, %v9469_v22  ;;  %v3931_v22 = vld [vmem:[%s12316_s5 + $0x248] sm:$0xff] }
 0x256   : > { %v9833_v18 = vadd.f32 %v2520_v31, %v2296_v57  ;;  %v2307_v39 = vpop.f32.mrf.mxu1  ;;  %4472 = vmatpush1.msra.mxu0 %v3931_v22 }
 0x257   : > { %v2522_v52 = vpop.f32.mrf.mxu0  ;;  %4473 = vmatprep.subr.mxu0 %v9688_v32 }
 0x258   : > { %v2310_v53 = vpop.f32.mrf.mxu1 }
 0x259   : > { %v2525_v40 = vpop.f32.mrf.mxu0  ;;  %v2311_v56 = vadd.f32 %v2310_v53, %v9480_v25  ;;  %v3930_v25 = vld [vmem:[%s12316_s5 + $0x240] sm:$0xff] }
 0x25a   : > { %v9840_v0 = vadd.f32 %v2525_v40, %v2301_v16  ;;  %v2312_v15 = vpop.f32.mrf.mxu1  ;;  %4474 = vmatpush1.msra.mxu0 %v3930_v25 }
 0x25b   : > { %v2527_v47 = vpop.f32.mrf.mxu0  ;;  %4475 = vmatprep.subr.mxu0 %v9688_v32 }
 0x25c   : > { %v2315_v24 = vpop.f32.mrf.mxu1 }
 0x25d   : > { %v2530_v37 = vpop.f32.mrf.mxu0  ;;  %v2316_v28 = vadd.f32 %v2315_v24, %v9491_v59  ;;  %v3929_v59 = vld [vmem:[%s12316_s5 + $0x238] sm:$0xff] }
 0x25e   : > { %v9847_v34 = vadd.f32 %v2530_v37, %v2306_v10  ;;  %v2317_v13 = vpop.f32.mrf.mxu1  ;;  %4476 = vmatpush1.msra.mxu0 %v3929_v59 }
 0x25f   : > { %v2532_v51 = vpop.f32.mrf.mxu0  ;;  %4477 = vmatprep.subr.mxu0 %v9688_v32 }
 0x260   : > { %v2320_v50 = vpop.f32.mrf.mxu1 }
 0x261   : > { %v2535_v6 = vpop.f32.mrf.mxu0  ;;  %v2321_v1 = vadd.f32 %v2320_v50, %v9504_v35  ;;  %v3928_v35 = vld [vmem:[%s12316_s5 + $0x230] sm:$0xff] }
 0x262   : > { %v9854_v55 = vadd.f32 %v2535_v6, %v2311_v56  ;;  %v2322_v57 = vpop.f32.mrf.mxu1  ;;  %4478 = vmatpush1.msra.mxu0 %v3928_v35 }
 0x263   : > { %v2537_v45 = vpop.f32.mrf.mxu0  ;;  %4479 = vmatprep.subr.mxu0 %v9688_v32  ;;  %v3923_v57 = vld [vmem:[%s12316_s5 + $0x208] sm:$0xff] }
 0x264   : > { %v2325_v41 = vpop.f32.mrf.mxu1 }
 0x265   : > { %v2540_v42 = vpop.f32.mrf.mxu0  ;;  %v2326_v44 = vadd.f32 %v2325_v41, %v9515_v33  ;;  %v3927_v33 = vld [vmem:[%s12316_s5 + $0x228] sm:$0xff] }
 0x266   : > { %v9861_v58 = vadd.f32 %v2540_v42, %v2316_v28  ;;  %v2327_v16 = vpop.f32.mrf.mxu1  ;;  %4480 = vmatpush1.msra.mxu0 %v3927_v33 }
 0x267   : > { %v2542_v7 = vpop.f32.mrf.mxu0  ;;  %4481 = vmatprep.subr.mxu0 %v9688_v32 }
 0x268   : > { %v2330_v14 = vpop.f32.mrf.mxu1 }
 0x269   : > { %v2545_v17 = vpop.f32.mrf.mxu0  ;;  %v2331_v23 = vadd.f32 %v2330_v14, %v9524_v9  ;;  %v3926_v9 = vld [vmem:[%s12316_s5 + $0x220] sm:$0xff] }
 0x26a   : > { %v9868_v31 = vadd.f32 %v2545_v17, %v2321_v1  ;;  %v2332_v10 = vpop.f32.mrf.mxu1  ;;  %4482 = vmatpush1.msra.mxu0 %v3926_v9  ;;  %v3953_v17 = vld [vmem:[%s12316_s5 + $0x2f8] sm:$0xff] }
 0x26b   : > { %v2547_v62 = vpop.f32.mrf.mxu0  ;;  %4483 = vmatprep.subr.mxu0 %v9688_v32 }
 0x26c   : > { %v2335_v39 = vpop.f32.mrf.mxu1 }
 0x26d   : > { %v2550_v52 = vpop.f32.mrf.mxu0  ;;  %v2336_v53 = vadd.f32 %v2335_v39, %v9532_v43  ;;  %v3925_v43 = vld [vmem:[%s12316_s5 + $0x218] sm:$0xff] }
 0x26e   : > { %v9875_v40 = vadd.f32 %v2550_v52, %v2326_v44  ;;  %v2337_v56 = vpop.f32.mrf.mxu1  ;;  %4484 = vmatpush1.msra.mxu0 %v3925_v43  ;;  %v3952_v52 = vld [vmem:[%s12316_s5 + $0x2f0] sm:$0xff] }
 0x26f   : > { %v2552_v22 = vpop.f32.mrf.mxu0  ;;  %4485 = vmatprep.subr.mxu0 %v9688_v32 }
 0x270   : > { %v2340_v15 = vpop.f32.mrf.mxu1 }
 0x271   : > { %v2555_v47 = vpop.f32.mrf.mxu0  ;;  %v2341_v24 = vadd.f32 %v2340_v15, %v9540_v30  ;;  %v3924_v30 = vld [vmem:[%s12316_s5 + $0x210] sm:$0xff] }
 0x272   : > { %v9882_v37 = vadd.f32 %v2555_v47, %v2331_v23  ;;  %v2342_v28 = vpop.f32.mrf.mxu1  ;;  %4486 = vmatpush1.msra.mxu0 %v3924_v30  ;;  %v3951_v47 = vld [vmem:[%s12316_s5 + $0x2e8] sm:$0xff] }
 0x273   : > { %v2557_v25 = vpop.f32.mrf.mxu0  ;;  %4487 = vmatprep.subr.mxu0 %v9688_v32 }
 0x274   : > { %v2345_v13 = vpop.f32.mrf.mxu1  ;;  %4488 = vmatpush1.msra.mxu0 %v3923_v57 }
 0x275   : > { %v2560_v51 = vpop.f32.mrf.mxu0  ;;  %v2346_v50 = vadd.f32 %v2345_v13, %v9547_v29  ;;  %v3922_v29 = vld [vmem:[%s12316_s5 + $0x200] sm:$0xff]  ;;  %4489 = vmatprep.subr.mxu0 %v9688_v32 }
 0x276   : > { %v9889_v6 = vadd.f32 %v2560_v51, %v2336_v53  ;;  %v2347_v1 = vpop.f32.mrf.mxu1  ;;  %4490 = vmatpush1.msra.mxu0 %v3922_v29  ;;  %v3950_v51 = vld [vmem:[%s12316_s5 + $0x2e0] sm:$0xff] }
 0x277   : > { %v2562_v59 = vpop.f32.mrf.mxu0  ;;  %4491 = vmatprep.subr.mxu0 %v9688_v32 }
 0x278   : > { %v2350_v45 = vpop.f32.mrf.mxu1  ;;  %4492 = vmatpush2.msra.mxu0 %v3953_v17 }
 0x279   : > { %v2565_v41 = vpop.f32.mrf.mxu0  ;;  %v2351_v42 = vadd.f32 %v2350_v45, %v9554_v12  ;;  %4493 = vmatprep.subr.mxu0 %v9688_v32  ;;  %v3949_v45 = vld [vmem:[%s12316_s5 + $0x2d8] sm:$0xff] }
 0x27a   : > { %v9902_v44 = vadd.f32 %v2565_v41, %v2341_v24  ;;  %v2352_v35 = vpop.f32.mrf.mxu1  ;;  %4494 = vmatpush2.msra.mxu0 %v3952_v52 }
 0x27b   : > { %v2567_v16 = vpop.f32.mrf.mxu0  ;;  %4495 = vmatprep.subr.mxu0 %v9688_v32 }
 0x27c   : > { %v2355_v7 = vpop.f32.mrf.mxu1  ;;  %4496 = vmatpush2.msra.mxu0 %v3951_v47 }
 0x27d   : > { %v2570_v14 = vpop.f32.mrf.mxu0  ;;  %v2356_v23 = vadd.f32 %v2355_v7, %v9561_v19  ;;  %4497 = vmatprep.subr.mxu0 %v9688_v32  ;;  %v3948_v7 = vld [vmem:[%s12316_s5 + $0x2d0] sm:$0xff] }
 0x27e   : > { %v9910_v33 = vadd.f32 %v2570_v14, %v2346_v50  ;;  %v2357_v12 = vpop.f32.mrf.mxu1  ;;  %4498 = vmatpush2.msra.mxu0 %v3950_v51 }
 0x27f   : > { %v2572_v10 = vpop.f32.mrf.mxu0  ;;  %4499 = vmatprep.subr.mxu0 %v9688_v32 }
 0x280   : > { %v2360_v62 = vpop.f32.mrf.mxu1  ;;  %4500 = vmatpush2.msra.mxu0 %v3949_v45 }
 0x281   : > { %v2575_v39 = vpop.f32.mrf.mxu0  ;;  %v2361_v53 = vadd.f32 %v2360_v62, %v9575_v48  ;;  %4501 = vmatprep.subr.mxu0 %v9688_v32  ;;  %v3947_v62 = vld [vmem:[%s12316_s5 + $0x2c8] sm:$0xff] }
 0x282   : > { %v9917_v9 = vadd.f32 %v2575_v39, %v2351_v42  ;;  %v2362_v56 = vpop.f32.mrf.mxu1  ;;  %4502 = vmatpush2.msra.mxu0 %v3948_v7 }
 0x283   : > { %v2577_v19 = vpop.f32.mrf.mxu0  ;;  %4503 = vmatprep.subr.mxu0 %v9688_v32 }
 0x284   : > { %v2365_v22 = vpop.f32.mrf.mxu1  ;;  %4504 = vmatpush2.msra.mxu0 %v3947_v62 }
 0x285   : > { %v2580_v15 = vpop.f32.mrf.mxu0  ;;  %v2366_v24 = vadd.f32 %v2365_v22, %v9590_v4  ;;  %4505 = vmatprep.subr.mxu0 %v9688_v32  ;;  %v3946_v22 = vld [vmem:[%s12316_s5 + $0x2c0] sm:$0xff] }
 0x286   : > { %v9924_v43 = vadd.f32 %v2580_v15, %v2356_v23  ;;  %v2367_v28 = vpop.f32.mrf.mxu1  ;;  %4506 = vmatpush2.msra.mxu0 %v3946_v22 }
 0x287   : > { %v2582_v48 = vpop.f32.mrf.mxu0  ;;  %4507 = vmatprep.subr.mxu0 %v9688_v32 }
 0x288   : > { %v2370_v25 = vpop.f32.mrf.mxu1 }
 0x289   : > { %v2585_v13 = vpop.f32.mrf.mxu0  ;;  %v2371_v50 = vadd.f32 %v2370_v25, %v9605_v8  ;;  %v3945_v25 = vld [vmem:[%s12316_s5 + $0x2b8] sm:$0xff] }
 0x28a   : > { %v9931_v30 = vadd.f32 %v2585_v13, %v2361_v53  ;;  %v2372_v1 = vpop.f32.mrf.mxu1  ;;  %4508 = vmatpush2.msra.mxu0 %v3945_v25 }
 0x28b   : > { %v2587_v4 = vpop.f32.mrf.mxu0  ;;  %4509 = vmatprep.subr.mxu0 %v9688_v32 }
 0x28c   : > { %v2375_v59 = vpop.f32.mrf.mxu1 }
 0x28d   : > { %v2590_v57 = vpop.f32.mrf.mxu0  ;;  %v2376_v41 = vadd.f32 %v2375_v59, %v9620_v20  ;;  %v3944_v59 = vld [vmem:[%s12316_s5 + $0x2b0] sm:$0xff] }
 0x28e   : > { %v9938_v29 = vadd.f32 %v2590_v57, %v2366_v24  ;;  %v2377_v42 = vpop.f32.mrf.mxu1  ;;  %4510 = vmatpush2.msra.mxu0 %v3944_v59 }
 0x28f   : > { %v2592_v8 = vpop.f32.mrf.mxu0  ;;  %4511 = vmatprep.subr.mxu0 %v9688_v32 }
 0x290   : > { %v2380_v35 = vpop.f32.mrf.mxu1 }
 0x291   : > { %v2595_v16 = vpop.f32.mrf.mxu0  ;;  %v2381_v14 = vadd.f32 %v2380_v35, %v9635_v60  ;;  %v3943_v35 = vld [vmem:[%s12316_s5 + $0x2a8] sm:$0xff] }
 0x292   : > { %v9945_v17 = vadd.f32 %v2595_v16, %v2371_v50  ;;  %v2382_v23 = vpop.f32.mrf.mxu1  ;;  %4512 = vmatpush2.msra.mxu0 %v3943_v35 }
 0x293   : > { %v2597_v20 = vpop.f32.mrf.mxu0  ;;  %4513 = vmatprep.subr.mxu0 %v9688_v32 }
 0x294   : > { %v2385_v12 = vpop.f32.mrf.mxu1 }
 0x295   : > { %v2600_v10 = vpop.f32.mrf.mxu0  ;;  %v2386_v39 = vadd.f32 %v2385_v12, %v9650_v27  ;;  %v3942_v12 = vld [vmem:[%s12316_s5 + $0x2a0] sm:$0xff] }
 0x296   : > { %v9952_v52 = vadd.f32 %v2600_v10, %v2376_v41  ;;  %v2387_v53 = vpop.f32.mrf.mxu1  ;;  %4514 = vmatpush2.msra.mxu0 %v3942_v12 }
 0x297   : > { %v2602_v60 = vpop.f32.mrf.mxu0  ;;  %4515 = vmatprep.subr.mxu0 %v9688_v32 }
 0x298   : > { %v2390_v56 = vpop.f32.mrf.mxu1  ;;  %v3941_v60 = vld [vmem:[%s12316_s5 + $0x298] sm:$0xff] }
 0x299   : > { %v2605_v19 = vpop.f32.mrf.mxu0  ;;  %v2391_v15 = vadd.f32 %v2390_v56, %v9665_v63  ;;  %4516 = vmatpush2.msra.mxu0 %v3941_v60 }
 0x29a   : > { %v9959_v47 = vadd.f32 %v2605_v19, %v2381_v14  ;;  %v2392_v24 = vpop.f32.mrf.mxu1  ;;  %4517 = vmatprep.subr.mxu0 %v9688_v32 }
 0x29b   : > { %v2607_v27 = vpop.f32.mrf.mxu0 }
 0x29c   : > { %v2395_v28 = vpop.f32.mrf.mxu1  ;;  %v3940_v27 = vld [vmem:[%s12316_s5 + $0x290] sm:$0xff] }
 0x29d   : > { %v2610_v48 = vpop.f32.mrf.mxu0  ;;  %v2396_v13 = vadd.f32 %v2395_v28, %v9680_v46  ;;  %4518 = vmatpush2.msra.mxu0 %v3940_v27  ;;  %v3969_v27 = vld [vmem:[%s12316_s5 + $0x378] sm:$0xff] }
 0x29e   : > { %v9966_v51 = vadd.f32 %v2610_v48, %v2386_v39  ;;  %v2397_v50 = vpop.f32.mrf.mxu1  ;;  %4519 = vmatprep.subr.mxu0 %v9688_v32 }
 0x29f   : > { %v2612_v63 = vpop.f32.mrf.mxu0 }
 0x2a0   : > { %v2400_v1 = vpop.f32.mrf.mxu1 }
 0x2a1   : > { %v2615_v4 = vpop.f32.mrf.mxu0  ;;  %v9973_v57 = vadd.f32 %v2400_v1, %v9697_v11 }
 0x2a2   : > { %v9975_v45 = vadd.f32 %v2615_v4, %v2391_v15  ;;  %v2402_v46 = vpop.f32.mrf.mxu1 }
 0x2a3   : > { %v2617_v41 = vpop.f32.mrf.mxu0 }
 0x2a4   : > { %v2405_v42 = vpop.f32.mrf.mxu1 }
 0x2a5   : > { %v2620_v8 = vpop.f32.mrf.mxu0  ;;  %v2406_v16 = vadd.f32 %v2405_v42, %v9714_v26  ;;  %v3938_v42 = vld [vmem:[%s12316_s5 + $0x280] sm:$0xff] }
 0x2a6   : > { %v9982_v7 = vadd.f32 %v2620_v8, %v2396_v13  ;;  %v2407_v11 = vpop.f32.mrf.mxu1  ;;  %v3939_v13 = vld [vmem:[%s12316_s5 + $0x288] sm:$0xff] }
 0x2a7   : > { %v2622_v14 = vpop.f32.mrf.mxu0  ;;  %4520 = vmatpush2.msra.mxu0 %v3939_v13 }
 0x2a8   : > { %v2410_v23 = vpop.f32.mrf.mxu1  ;;  %4521 = vmatprep.subr.mxu0 %v9688_v32 }
 0x2a9   : > { %v9985_v20 = vpop.f32.mrf.mxu0  ;;  %v9991_v10 = vadd.f32 %v2410_v23, %v9729_v21  ;;  %4522 = vmatpush2.msra.mxu0 %v3938_v42 }
 0x2aa   : > { %v2412_v62 = vpop.f32.mrf.mxu1 }
 0x2ab   : > { %v2627_v26 = vpop.f32.mrf.mxu0 }
 0x2ac   : > { %v2415_v39 = vpop.f32.mrf.mxu1 }
 0x2ad   : > { %v2630_v53 = vpop.f32.mrf.mxu0  ;;  %v9998_v56 = vadd.f32 %v2415_v39, %v9747_v3 }
 0x2ae   : > { %v10000_v19 = vadd.f32 %v2630_v53, %v2406_v16  ;;  %v2417_v22 = vpop.f32.mrf.mxu1 }
 0x2af   : > { %v2632_v21 = vpop.f32.mrf.mxu0  ;;  %v3121_v22 = vld [vmem:[#allocation3 + $0x2] sm:$0xff] }
 0x2b0   : > { %v10003_v15 = vpop.f32.mrf.mxu1 }
 0x2b1   : > { %v10005_v24 = vpop.f32.mrf.mxu0 }
 0x2b2   : > { %v2422_v28 = vpop.f32.mrf.mxu1 }
 0x2b3   : > { %v2637_v48 = vpop.f32.mrf.mxu0 }
 0x2b4   : > { %v7805_v25 = vpop.f32.mrf.mxu1 }
 0x2b5   : > { %v10011_v3 = vpop.f32.mrf.mxu0  ;;  %v2721_v50 = vadd.f32 %v7805_v25, %v9789_v38  ;;  %v10030_v38 = vld [vmem:[%s12316_s5 + $0x478] sm:$0xff]  ;;  %v3968_v25 = vld [vmem:[%s12316_s5 + $0x370] sm:$0xff] }
 0x2b6   : > { %v2715_v1 = vpop.f32.mrf.mxu1  ;;  %7851 = vmatprep.subr.mxu0 %v10030_v38 }
 0x2b7   : > { %v2642_v63 = vpop.f32.mrf.mxu0  ;;  %v2875_v4 = vmax.f32 %v2721_v50, 0.0  ;;  %v2716_v59 = vadd.f32 %v2715_v1, %v9778_v2 }
 0x2b8   : > { %v7808_v41 = vpop.f32.mrf.mxu1 }
 0x2b9   : > { %v10019_v46 = vpop.f32.mrf.mxu0  ;;  %2962 = vst [vmem:[#allocation3 + $0x21] sm:$0xff] %v2875_v4  ;;  %v2874_v8 = vmax.f32 %v2716_v59, 0.0  ;;  %v10025_v35 = vadd.f32 %v7808_v41, %v9812_v49 }
 0x2ba   : > { %v2725_v16 = vpop.f32.mrf.mxu1 }
 0x2bb   : > { %v2647_v2 = vpop.f32.mrf.mxu0  ;;  %2961 = vst [vmem:[#allocation3 + $0x19] sm:$0xff] %v2874_v8  ;;  %v2877_v11 = vmax.f32 %v10025_v35, 0.0  ;;  %v2726_v14 = vadd.f32 %v2725_v16, %v9804_v61  ;;  %4083 = vmatprep.mubr.f32.mxu0 %v2874_v8  ;;  %v3966_v35 = vld [vmem:[%s12316_s5 + $0x360] sm:$0xff] }
 0x2bc   : > { %v7811_v23 = vpop.f32.mrf.mxu1 }
 0x2bd   : > { %2964 = vst [vmem:[#allocation3 + $0x39] sm:$0xff] %v2877_v11  ;;  %v2876_v49 = vmax.f32 %v2726_v14, 0.0  ;;  %v10036_v12 = vadd.f32 %v7811_v23, %v9826_v5 }
 0x2be   : > { %v2735_v62 = vpop.f32.mrf.mxu1 }
 0x2bf   : > { %2963 = vst [vmem:[#allocation3 + $0x31] sm:$0xff] %v2876_v49  ;;  %v2879_v26 = vmax.f32 %v10036_v12, 0.0  ;;  %v10040_v39 = vadd.f32 %v2735_v62, %v9819_v36 }
 0x2c0   : > { %v7814_v53 = vpop.f32.mrf.mxu1 }
 0x2c1   : > { %2966 = vst [vmem:[#allocation3 + $0x51] sm:$0xff] %v2879_v26  ;;  %v2878_v61 = vmax.f32 %v10040_v39, 0.0  ;;  %v10046_v60 = vadd.f32 %v7814_v53, %v9840_v0  ;;  %v3963_v39 = vld [vmem:[%s12316_s5 + $0x348] sm:$0xff] }
 0x2c2   : > { %v2745_v21 = vpop.f32.mrf.mxu1  ;;  %v3185_v5 = vld [vmem:[#allocation3 + $0x18] sm:$0xff]  ;;  %v3186_v0 = vld [vmem:[#allocation3 + $0x20] sm:$0xff] }
 0x2c3   : > { %2965 = vst [vmem:[#allocation3 + $0x49] sm:$0xff] %v2878_v61  ;;  %v2881_v36 = vmax.f32 %v10046_v60, 0.0  ;;  %v10055_v28 = vadd.f32 %v2745_v21, %v9833_v18  ;;  %4298 = vmatprep.mubr.f32.mxu1 %v3185_v5  ;;  %4084 = vmatmul.mubr.f32.gmra.mxu0 %v3185_v5  ;;  %v3122_v18 = vld [vmem:[#allocation3 + $0xa] sm:$0xff]  ;;  %v10116_v21 = vld [vmem:[#allocation3 + $0x22] sm:$0xff] }
 0x2c4   : > { %v7817_v48 = vpop.f32.mrf.mxu1  ;;  %4299 = vmatmul.mubr.f32.vlgmr.msra.gmra.mxu1 %v3121_v22  ;;  %4088 = vmatprep.mubr.f32.mxu0 %v2875_v4 }
 0x2c5   : > { %2968 = vst [vmem:[#allocation3 + $0x69] sm:$0xff] %v2881_v36  ;;  %v2880_v13 = vmax.f32 %v10055_v28, 0.0  ;;  %v10064_v50 = vadd.f32 %v7817_v48, %v9854_v55  ;;  %4303 = vmatprep.mubr.f32.mxu1 %v3186_v0  ;;  %4685 = vmatpush1.msra.mxu1 %v3969_v27  ;;  %v3967_v55 = vld [vmem:[%s12316_s5 + $0x368] sm:$0xff]  ;;  %v3960_v28 = vld [vmem:[%s12316_s5 + $0x330] sm:$0xff] }
 0x2c6   : > { %v2755_v63 = vpop.f32.mrf.mxu1  ;;  %4686 = vmatprep.subr.mxu1 %v9688_v32  ;;  %v3187_v41 = vld [vmem:[#allocation3 + $0x30] sm:$0xff]  ;;  %v10096_v23 = vld [vmem:[#allocation3 + $0x38] sm:$0xff] }
 0x2c7   : > { %2967 = vst [vmem:[#allocation3 + $0x61] sm:$0xff] %v2880_v13  ;;  %v2883_v1 = vmax.f32 %v10064_v50, 0.0  ;;  %v10071_v4 = vadd.f32 %v2755_v63, %v9847_v34  ;;  %4089 = vmatmul.mubr.f32.gmra.mxu0 %v3186_v0  ;;  %4687 = vmatpush1.msra.mxu1 %v3968_v25  ;;  %v2626_v50 = vadd.f32 %v9985_v20, %v9973_v57 }
 0x2c8   : > { %v7820_v59 = vpop.f32.mrf.mxu1  ;;  %4304 = vmatmul.mubr.f32.gmra.mxu1 %v3122_v18  ;;  %4093 = vmatprep.mubr.f32.mxu0 %v2876_v49  ;;  %v3965_v49 = vld [vmem:[%s12316_s5 + $0x358] sm:$0xff] }
 0x2c9   : > { %2970 = vst [vmem:[#allocation3 + $0x81] sm:$0xff] %v2883_v1  ;;  %v2882_v42 = vmax.f32 %v10071_v4, 0.0  ;;  %v10080_v8 = vadd.f32 %v7820_v59, %v9868_v31  ;;  %4308 = vmatprep.mubr.f32.mxu1 %v3187_v41  ;;  %4688 = vmatprep.subr.mxu1 %v9688_v32  ;;  %v10092_v31 = vld [vmem:[#allocation3 + $0x1a] sm:$0xff]  ;;  %v3957_v4 = vld [vmem:[%s12316_s5 + $0x318] sm:$0xff] }
 0x2ca   : > { %v2765_v34 = vpop.f32.mrf.mxu1  ;;  %4689 = vmatpush1.msra.mxu1 %v3967_v55  ;;  %v10124_v27 = vld [vmem:[#allocation3 + $0x48] sm:$0xff]  ;;  %v10150_v63 = vld [vmem:[#allocation3 + $0x50] sm:$0xff] }
 0x2cb   : > { %2969 = vst [vmem:[#allocation3 + $0x79] sm:$0xff] %v2882_v42  ;;  %v2885_v16 = vmax.f32 %v10080_v8, 0.0  ;;  %v10090_v2 = vadd.f32 %v2765_v34, %v9861_v58  ;;  %4094 = vmatmul.mubr.f32.gmra.mxu0 %v3187_v41  ;;  %4690 = vmatprep.subr.mxu1 %v9688_v32  ;;  %v3962_v55 = vld [vmem:[%s12316_s5 + $0x340] sm:$0xff]  ;;  %v10170_v34 = vld [vmem:[#allocation3 + $0x3a] sm:$0xff] }
 0x2cc   : > { %v7823_v14 = vpop.f32.mrf.mxu1  ;;  %4309 = vmatmul.mubr.f32.gmra.mxu1 %v10092_v31  ;;  %4098 = vmatprep.mubr.f32.mxu0 %v2877_v11 }
 0x2cd   : > { %2972 = vst [vmem:[#allocation3 + $0x99] sm:$0xff] %v2885_v16  ;;  %v2884_v58 = vmax.f32 %v10090_v2, 0.0  ;;  %v10105_v62 = vadd.f32 %v7823_v14, %v9882_v37  ;;  %4313 = vmatprep.mubr.f32.mxu1 %v10096_v23  ;;  %4691 = vmatpush1.msra.mxu1 %v3966_v35  ;;  %v3964_v37 = vld [vmem:[%s12316_s5 + $0x350] sm:$0xff]  ;;  %v3954_v2 = vld [vmem:[%s12316_s5 + $0x300] sm:$0xff] }
 0x2ce   : > { %v2775_v53 = vpop.f32.mrf.mxu1  ;;  %4692 = vmatprep.subr.mxu1 %v9688_v32 }
 0x2cf   : > { %2971 = vst [vmem:[#allocation3 + $0x91] sm:$0xff] %v2884_v58  ;;  %v2887_v11 = vmax.f32 %v10105_v62, 0.0  ;;  %v10113_v22 = vadd.f32 %v2775_v53, %v9875_v40  ;;  %4099 = vmatmul.mubr.f32.gmra.mxu0 %v10096_v23  ;;  %4693 = vmatpush1.msra.mxu1 %v3965_v49  ;;  %v10187_v49 = vld [vmem:[#allocation2] sm:$0xff]  ;;  %v3981_v62 = vld [vmem:[%s12316_s5 + $0x3d8] sm:$0xff] }
 0x2d0   : > { %v7826_v5 = vpop.f32.mrf.mxu1  ;;  %4314 = vmatmul.mubr.f32.gmra.mxu1 %v10116_v21  ;;  %4103 = vmatprep.mubr.f32.mxu0 %v2878_v61 }
 0x2d1   : > { %2974 = vst [vmem:[#allocation3 + $0xb1] sm:$0xff] %v2887_v11  ;;  %v2886_v40 = vmax.f32 %v10113_v22, 0.0  ;;  %v10130_v48 = vadd.f32 %v7826_v5, %v9902_v44  ;;  %4318 = vmatprep.mubr.f32.mxu1 %v10124_v27  ;;  %4694 = vmatprep.subr.mxu1 %v9688_v32  ;;  %v10144_v44 = vld [vmem:[#allocation3 + $0x32] sm:$0xff] }
 0x2d2   : > { %v2785_v0 = vpop.f32.mrf.mxu1  ;;  %4695 = vmatpush1.msra.mxu1 %v3964_v37  ;;  %v10200_v37 = vld [vmem:[#allocation3 + $0x4a] sm:$0xff]  ;;  %v3983_v22 = vld [vmem:[%s12316_s5 + $0x3e8] sm:$0xff] }
 0x2d3   : > { %2973 = vst [vmem:[#allocation3 + $0xa9] sm:$0xff] %v2886_v40  ;;  %v2889_v61 = vmax.f32 %v10130_v48, 0.0  ;;  %v10141_v25 = vadd.f32 %v2785_v0, %v9889_v6  ;;  %4104 = vmatmul.mubr.f32.gmra.mxu0 %v10124_v27  ;;  %4696 = vmatprep.subr.mxu1 %v9688_v32  ;;  %v10206_v0 = vld [vmem:[#allocation3 + $0x68] sm:$0xff]  ;;  %v3978_v48 = vld [vmem:[%s12316_s5 + $0x3c0] sm:$0xff] }
 0x2d4   : > { %v7829_v18 = vpop.f32.mrf.mxu1  ;;  %4319 = vmatmul.mubr.f32.gmra.mxu1 %v10144_v44  ;;  %4108 = vmatprep.mubr.f32.mxu0 %v2879_v26 }
 0x2d5   : > { %2976 = vst [vmem:[#allocation3 + $0xc9] sm:$0xff] %v2889_v61  ;;  %v2888_v6 = vmax.f32 %v10141_v25, 0.0  ;;  %v10159_v59 = vadd.f32 %v7829_v18, %v9917_v9  ;;  %4323 = vmatprep.mubr.f32.mxu1 %v10150_v63  ;;  %4697 = vmatpush1.msra.mxu1 %v3963_v39  ;;  %v3961_v9 = vld [vmem:[%s12316_s5 + $0x338] sm:$0xff]  ;;  %v3959_v39 = vld [vmem:[%s12316_s5 + $0x328] sm:$0xff] }
 0x2d6   : > { %v2795_v41 = vpop.f32.mrf.mxu1  ;;  %4698 = vmatprep.subr.mxu1 %v9688_v32  ;;  %v10178_v32 = vld [vmem:[#allocation3 + $0x60] sm:$0xff]  ;;  %v10290_v57 = vld [vmem:[#allocation3 + $0x90] sm:$0xff] }
 0x2d7   : > { %2975 = vst [vmem:[#allocation3 + $0xc1] sm:$0xff] %v2888_v6  ;;  %v2891_v12 = vmax.f32 %v10159_v59, 0.0  ;;  %v10167_v26 = vadd.f32 %v2795_v41, %v9910_v33  ;;  %4109 = vmatmul.mubr.f32.gmra.mxu0 %v10150_v63  ;;  %4699 = vmatpush1.msra.mxu1 %v3962_v55  ;;  %v10226_v41 = vld [vmem:[#allocation3 + $0x52] sm:$0xff] }
 0x2d8   : > { %v7832_v35 = vpop.f32.mrf.mxu1  ;;  %4324 = vmatmul.mubr.f32.gmra.mxu1 %v10170_v34  ;;  %4113 = vmatprep.mubr.f32.mxu0 %v2880_v13  ;;  %v3975_v59 = vld [vmem:[%s12316_s5 + $0x3a8] sm:$0xff] }
 0x2d9   : > { %2978 = vst [vmem:[#allocation3 + $0xe1] sm:$0xff] %v2891_v12  ;;  %v2890_v33 = vmax.f32 %v10167_v26, 0.0  ;;  %v10184_v14 = vadd.f32 %v7832_v35, %v9931_v30  ;;  %4328 = vmatprep.mubr.f32.mxu1 %v10178_v32  ;;  %4700 = vmatprep.subr.mxu1 %v10187_v49  ;;  %v10234_v35 = vld [vmem:[#allocation3 + $0x78] sm:$0xff] }
 0x2da   : > { %v2805_v53 = vpop.f32.mrf.mxu1  ;;  %4701 = vmatpush1.msra.mxu1 %v3961_v9 }
 0x2db   : > { %2977 = vst [vmem:[#allocation3 + $0xd9] sm:$0xff] %v2890_v33  ;;  %v2893_v13 = vmax.f32 %v10184_v14, 0.0  ;;  %v10197_v30 = vadd.f32 %v2805_v53, %v9924_v43  ;;  %4114 = vmatmul.mubr.f32.gmra.mxu0 %v10178_v32  ;;  %4702 = vmatprep.subr.mxu1 %v10187_v49  ;;  %v3972_v14 = vld [vmem:[%s12316_s5 + $0x390] sm:$0xff] }
 0x2dc   : > { %v7835_v5 = vpop.f32.mrf.mxu1  ;;  %4329 = vmatmul.mubr.f32.gmra.mxu1 %v10200_v37  ;;  %4118 = vmatprep.mubr.f32.mxu0 %v2881_v36 }
 0x2dd   : > { %2980 = vst [vmem:[#allocation3 + $0xf9] sm:$0xff] %v2893_v13  ;;  %v2892_v43 = vmax.f32 %v10197_v30, 0.0  ;;  %v10215_v18 = vadd.f32 %v7835_v5, %v9945_v17  ;;  %4333 = vmatprep.mubr.f32.mxu1 %v10206_v0  ;;  %4703 = vmatpush1.msra.mxu1 %v3960_v28  ;;  %v3958_v17 = vld [vmem:[%s12316_s5 + $0x320] sm:$0xff] }
 0x2de   : > { %v2815_v55 = vpop.f32.mrf.mxu1  ;;  %4704 = vmatprep.subr.mxu1 %v10187_v49 }
 0x2df   : > { %2979 = vst [vmem:[#allocation3 + $0xf1] sm:$0xff] %v2892_v43  ;;  %v2895_v60 = vmax.f32 %v10215_v18, 0.0  ;;  %v10223_v36 = vadd.f32 %v2815_v55, %v9938_v29  ;;  %4119 = vmatmul.mubr.f32.gmra.mxu0 %v10206_v0  ;;  %4705 = vmatpush1.msra.mxu1 %v3959_v39  ;;  %v10260_v55 = vld [vmem:[#allocation3 + $0x80] sm:$0xff] }
 0x2e0   : > { %v7838_v9 = vpop.f32.mrf.mxu1  ;;  %4334 = vmatmul.mubr.f32.gmra.mxu1 %v10226_v41  ;;  %4123 = vmatprep.mubr.f32.mxu0 %v2882_v42 }
 0x2e1   : > { %2982 = vst [vmem:[#allocation3 + $0x111] sm:$0xff] %v2895_v60  ;;  %v2894_v29 = vmax.f32 %v10223_v36, 0.0  ;;  %v10240_v53 = vadd.f32 %v7838_v9, %v9959_v47  ;;  %4338 = vmatprep.mubr.f32.mxu1 %v10234_v35  ;;  %4706 = vmatprep.subr.mxu1 %v10187_v49  ;;  %v10254_v47 = vld [vmem:[#allocation3 + $0x62] sm:$0xff] }
 0x2e2   : > { %v2825_v28 = vpop.f32.mrf.mxu1  ;;  %4707 = vmatpush1.msra.mxu1 %v3958_v17  ;;  %v3956_v17 = vld [vmem:[%s12316_s5 + $0x310] sm:$0xff] }
 0x2e3   : > { %2981 = vst [vmem:[#allocation3 + $0x109] sm:$0xff] %v2894_v29  ;;  %v12356_v42 = vmax.f32 %v10240_v53, 0.0  ;;  %v10251_v5 = vadd.f32 %v2825_v28, %v9952_v52  ;;  %4124 = vmatmul.mubr.f32.gmra.mxu0 %v10234_v35  ;;  %4708 = vmatprep.subr.mxu1 %v10187_v49  ;;  %v10432_v26 = vld [vmem:[#allocation3 + $0xe0] sm:$0xff] }
 0x2e4   : > { %v7841_v39 = vpop.f32.mrf.mxu1  ;;  %4339 = vmatmul.mubr.f32.gmra.mxu1 %v10254_v47  ;;  %4128 = vmatprep.mubr.f32.mxu0 %v2883_v1 }
 0x2e5   : > { %2984 = vst [vmem:[#allocation3 + $0x129] sm:$0xff] %v12356_v42  ;;  %v2896_v52 = vmax.f32 %v10251_v5, 0.0  ;;  %v10269_v9 = vadd.f32 %v7841_v39, %v9975_v45  ;;  %4343 = vmatprep.mubr.f32.mxu1 %v10260_v55  ;;  %4709 = vmatpush1.msra.mxu1 %v3957_v4  ;;  %v10282_v45 = vld [vmem:[#allocation3 + $0x6a] sm:$0xff]  ;;  %v3955_v4 = vld [vmem:[%s12316_s5 + $0x308] sm:$0xff] }
 0x2e6   : > { %v2835_v28 = vpop.f32.mrf.mxu1  ;;  %4710 = vmatprep.subr.mxu1 %v10187_v49  ;;  %v10462_v30 = vld [vmem:[#allocation3 + $0xf8] sm:$0xff] }
 0x2e7   : > { %2983 = vst [vmem:[#allocation3 + $0x121] sm:$0xff] %v2896_v52  ;;  %v12357_v1 = vmax.f32 %v10269_v9, 0.0  ;;  %v10279_v42 = vadd.f32 %v2835_v28, %v9966_v51  ;;  %4129 = vmatmul.mubr.f32.gmra.mxu0 %v10260_v55  ;;  %4711 = vmatpush1.msra.mxu1 %v3956_v17 }
 0x2e8   : > { %v7844_v39 = vpop.f32.mrf.mxu1  ;;  %4344 = vmatmul.mubr.f32.gmra.mxu1 %v10282_v45  ;;  %4133 = vmatprep.mubr.f32.mxu0 %v2884_v58  ;;  %v2636_v58 = vadd.f32 %v10005_v24, %v9991_v10  ;;  %v10317_v10 = vld [vmem:[#allocation3 + $0x98] sm:$0xff]  ;;  %v3985_v24 = vld [vmem:[%s12316_s5 + $0x3f8] sm:$0xff] }
 0x2e9   : > { %2986 = vst [vmem:[#allocation3 + $0x141] sm:$0xff] %v12357_v1  ;;  %v2898_v51 = vmax.f32 %v10279_v42, 0.0  ;;  %v10295_v20 = vadd.f32 %v7844_v39, %v2626_v50  ;;  %4348 = vmatprep.mubr.f32.mxu1 %v10290_v57  ;;  %4712 = vmatprep.subr.mxu1 %v10187_v49  ;;  %v10311_v39 = vld [vmem:[#allocation3 + $0x7a] sm:$0xff]  ;;  %v10519_v5 = vld [vmem:[#allocation3 + $0x112] sm:$0xff] }
 0x2ea   : > { %v2845_v17 = vpop.f32.mrf.mxu1  ;;  %4713 = vmatpush1.msra.mxu1 %v3955_v4  ;;  %v10492_v36 = vld [vmem:[#allocation3 + $0x110] sm:$0xff] }
 0x2eb   : > { %2985 = vst [vmem:[#allocation3 + $0x139] sm:$0xff] %v2898_v51  ;;  %v2901_v28 = vmax.f32 %v10295_v20, 0.0  ;;  %v10308_v50 = vadd.f32 %v2845_v17, %v9982_v7  ;;  %4134 = vmatmul.mubr.f32.gmra.mxu0 %v10290_v57  ;;  %4714 = vmatprep.subr.mxu1 %v10187_v49  ;;  %v2421_v7 = vadd.f32 %v10003_v15, %v9764_v54 }
 0x2ec   : > { %v7847_v4 = vpop.f32.mrf.mxu1  ;;  %4349 = vmatmul.mubr.f32.gmra.mxu1 %v10311_v39  ;;  %4138 = vmatprep.mubr.f32.mxu0 %v2885_v16  ;;  %v10537_v42 = vld [vmem:[#allocation3 + $0x12a] sm:$0xff] }
 0x2ed   : > { %2988 = vst [vmem:[#allocation3 + $0x159] sm:$0xff] %v2901_v28  ;;  %v2900_v17 = vmax.f32 %v10308_v50, 0.0  ;;  %v10327_v1 = vadd.f32 %v7847_v4, %v2636_v58  ;;  %4353 = vmatprep.mubr.f32.mxu1 %v10317_v10  ;;  %4715 = vmatpush1.msra.mxu1 %v3954_v2  ;;  %v2646_v16 = vadd.f32 %v10019_v46, %v2421_v7  ;;  %v10339_v58 = vld [vmem:[#allocation3 + $0x82] sm:$0xff] }
 0x2ee   : > { %v2855_v8 = vpop.f32.mrf.mxu1  ;;  %4716 = vmatprep.subr.mxu1 %v10187_v49  ;;  %v3984_v2 = vld [vmem:[%s12316_s5 + $0x3f0] sm:$0xff]  ;;  %v10347_v46 = vld [vmem:[#allocation3 + $0xa8] sm:$0xff] }
 0x2ef   : > { %2987 = vst [vmem:[#allocation3 + $0x151] sm:$0xff] %v2900_v17  ;;  %v2903_v54 = vmax.f32 %v10327_v1, 0.0  ;;  %v10336_v15 = vadd.f32 %v2855_v8, %v10000_v19  ;;  %4139 = vmatmul.mubr.f32.gmra.mxu0 %v10317_v10  ;;  %4717 = vmatpush2.msra.mxu1 %v3985_v24  ;;  %v2641_v19 = vadd.f32 %v10011_v3, %v9998_v56  ;;  %v10505_v18 = vld [vmem:[#allocation3 + $0x120] sm:$0xff] }
 0x2f0   : > { %v7850_v4 = vpop.f32.mrf.mxu1  ;;  %4354 = vmatmul.mubr.f32.gmra.mxu1 %v10339_v58  ;;  %4143 = vmatprep.mubr.f32.mxu0 %v2886_v40  ;;  %v10362_v40 = vld [vmem:[#allocation3 + $0x92] sm:$0xff]  ;;  %v10555_v50 = vld [vmem:[#allocation3 + $0x142] sm:$0xff] }
 0x2f1   : > { %2990 = vst [vmem:[#allocation3 + $0x171] sm:$0xff] %v2903_v54  ;;  %v2902_v24 = vmax.f32 %v10336_v15, 0.0  ;;  %v2871_v7 = vadd.f32 %v7850_v4, %v2646_v16  ;;  %4358 = vmatprep.mubr.f32.mxu1 %v10347_v46  ;;  %4718 = vmatprep.subr.mxu1 %v10187_v49  ;;  %v10368_v16 = vld [vmem:[#allocation3 + $0xb0] sm:$0xff]  ;;  %v4000_v1 = vld [vmem:[%s12316_s5 + $0x470] sm:$0xff] }
 0x2f2   : > { %v2865_v8 = vpop.f32.mrf.mxu1  ;;  %4719 = vmatpush2.msra.mxu1 %v3984_v2  ;;  %v3982_v2 = vld [vmem:[%s12316_s5 + $0x3e0] sm:$0xff] }
 0x2f3   : > { %2989 = vst [vmem:[#allocation3 + $0x169] sm:$0xff] %v2902_v24  ;;  %v2905_v56 = vmax.f32 %v2871_v7, 0.0  ;;  %v2866_v3 = vadd.f32 %v2865_v8, %v2641_v19  ;;  %4144 = vmatmul.mubr.f32.gmra.mxu0 %v10347_v46  ;;  %4720 = vmatprep.subr.mxu1 %v10187_v49  ;;  %v10376_v19 = vld [vmem:[#allocation3 + $0x9a] sm:$0xff]  ;;  %v10388_v7 = vpop.f32.mrf.mxu0 }
 0x2f4   : > { %4359 = vmatmul.mubr.f32.gmra.mxu1 %v10362_v40  ;;  %4148 = vmatprep.mubr.f32.mxu0 %v2887_v11  ;;  %v10384_v11 = vld [vmem:[#allocation3 + $0xc0] sm:$0xff] }
 0x2f5   : > { %2992 = vst [vmem:[#allocation3 + $0x189] sm:$0xff] %v2905_v56  ;;  %v2904_v4 = vmax.f32 %v2866_v3, 0.0  ;;  %4363 = vmatprep.mubr.f32.mxu1 %v10368_v16  ;;  %4721 = vmatpush2.msra.mxu1 %v3983_v22  ;;  %v3980_v8 = vld [vmem:[%s12316_s5 + $0x3d0] sm:$0xff]  ;;  %v10394_v22 = vld [vmem:[#allocation3 + $0xaa] sm:$0xff]  ;;  %v4077_v25 = vpop.f32.mrf.mxu0  ;;  %v3979_v56 = vld [vmem:[%s12316_s5 + $0x3c8] sm:$0xff] }
 0x2f6   : > { %4722 = vmatprep.subr.mxu1 %v10187_v49  ;;  %v10440_v25 = vld [vmem:[#allocation3 + $0xca] sm:$0xff]  ;;  %v10564_v20 = vld [vmem:[#allocation3 + $0x152] sm:$0xff]  ;;  %v10573_v15 = vld [vmem:[#allocation3 + $0x15a] sm:$0xff] }
 0x2f7   : > { %2991 = vst [vmem:[#allocation3 + $0x181] sm:$0xff] %v2904_v4  ;;  %4149 = vmatmul.mubr.f32.gmra.mxu0 %v10368_v16  ;;  %4723 = vmatpush2.msra.mxu1 %v3982_v2  ;;  %v10406_v3 = vpop.f32.mrf.mxu0  ;;  %v10410_v2 = vld [vmem:[#allocation3 + $0xb2] sm:$0xff] }
 0x2f8   : > { %4364 = vmatmul.mubr.f32.gmra.mxu1 %v10376_v19  ;;  %4153 = vmatprep.mubr.f32.mxu0 %v2888_v6  ;;  %v10400_v6 = vld [vmem:[#allocation3 + $0xc8] sm:$0xff]  ;;  %v10418_v4 = vld [vmem:[#allocation3 + $0xd8] sm:$0xff] }
 0x2f9   : > { %4368 = vmatprep.mubr.f32.mxu1 %v10384_v11  ;;  %4724 = vmatprep.subr.mxu1 %v10187_v49 }
 0x2fa   : > { %4725 = vmatpush2.msra.mxu1 %v3981_v62  ;;  %v3977_v62 = vld [vmem:[%s12316_s5 + $0x3b8] sm:$0xff] }
 0x2fb   : > { %4154 = vmatmul.mubr.f32.gmra.mxu0 %v10384_v11  ;;  %4726 = vmatprep.subr.mxu1 %v10187_v49 }
 0x2fc   : > { %4369 = vmatmul.mubr.f32.gmra.mxu1 %v10394_v22  ;;  %4158 = vmatprep.mubr.f32.mxu0 %v2889_v61  ;;  %v4082_v61 = vpop.f32.mrf.mxu0 }
 0x2fd   : > { %4373 = vmatprep.mubr.f32.mxu1 %v10400_v6  ;;  %4727 = vmatpush2.msra.mxu1 %v3980_v8  ;;  %v10426_v8 = vld [vmem:[#allocation3 + $0xc2] sm:$0xff] }
 0x2fe   : > { %4728 = vmatprep.subr.mxu1 %v10187_v49  ;;  %v10470_v61 = vld [vmem:[#allocation3 + $0xe2] sm:$0xff] }
 0x2ff   : > { %4159 = vmatmul.mubr.f32.gmra.mxu0 %v10400_v6  ;;  %4729 = vmatpush2.msra.mxu1 %v3979_v56  ;;  %v3974_v56 = vld [vmem:[%s12316_s5 + $0x3a0] sm:$0xff] }
 0x300   : > { %4374 = vmatmul.mubr.f32.gmra.mxu1 %v10410_v2  ;;  %4163 = vmatprep.mubr.f32.mxu0 %v2890_v33  ;;  %v3976_v33 = vld [vmem:[%s12316_s5 + $0x3b0] sm:$0xff] }
 0x301   : > { %4378 = vmatprep.mubr.f32.mxu1 %v10418_v4  ;;  %4730 = vmatprep.subr.mxu1 %v10187_v49 }
 0x302   : > { %4731 = vmatpush2.msra.mxu1 %v3978_v48  ;;  %v10456_v48 = vld [vmem:[#allocation3 + $0xda] sm:$0xff] }
 0x303   : > { %4164 = vmatmul.mubr.f32.gmra.mxu0 %v10418_v4  ;;  %4732 = vmatprep.subr.mxu1 %v10187_v49 }
 0x304   : > { %4379 = vmatmul.mubr.f32.gmra.mxu1 %v10426_v8  ;;  %4168 = vmatprep.mubr.f32.mxu0 %v2891_v12  ;;  %v10448_v12 = vld [vmem:[#allocation3 + $0xf0] sm:$0xff] }
 0x305   : > { %4383 = vmatprep.mubr.f32.mxu1 %v10432_v26  ;;  %4733 = vmatpush2.msra.mxu1 %v3977_v62  ;;  %v3971_v62 = vld [vmem:[%s12316_s5 + $0x388] sm:$0xff] }
 0x306   : > { %4734 = vmatprep.subr.mxu1 %v10187_v49 }
 0x307   : > { %4169 = vmatmul.mubr.f32.gmra.mxu0 %v10432_v26  ;;  %4735 = vmatpush2.msra.mxu1 %v3976_v33  ;;  %v10486_v33 = vld [vmem:[#allocation3 + $0xf2] sm:$0xff] }
 0x308   : > { %4384 = vmatmul.mubr.f32.gmra.mxu1 %v10440_v25  ;;  %4173 = vmatprep.mubr.f32.mxu0 %v2892_v43  ;;  %v3973_v43 = vld [vmem:[%s12316_s5 + $0x398] sm:$0xff] }
 0x309   : > { %4388 = vmatprep.mubr.f32.mxu1 %v10448_v12  ;;  %4736 = vmatprep.subr.mxu1 %v10187_v49 }
 0x30a   : > { %4737 = vmatpush2.msra.mxu1 %v3975_v59  ;;  %v10500_v59 = vld [vmem:[#allocation3 + $0xfa] sm:$0xff] }
 0x30b   : > { %4174 = vmatmul.mubr.f32.gmra.mxu0 %v10448_v12  ;;  %4738 = vmatprep.subr.mxu1 %v10187_v49 }
 0x30c   : > { %4389 = vmatmul.mubr.f32.gmra.mxu1 %v10456_v48  ;;  %4178 = vmatprep.mubr.f32.mxu0 %v2893_v13  ;;  %v10478_v13 = vld [vmem:[#allocation3 + $0x108] sm:$0xff] }
 0x30d   : > { %4393 = vmatprep.mubr.f32.mxu1 %v10462_v30  ;;  %4739 = vmatpush2.msra.mxu1 %v3974_v56  ;;  %v12453_v56 = vmax.f32 %v10240_v53, 0.0  ;;  %v10528_v53 = vld [vmem:[#allocation3 + $0x122] sm:$0xff] }
 0x30e   : > { %4740 = vmatprep.subr.mxu1 %v10187_v49 }
 0x30f   : > { %4179 = vmatmul.mubr.f32.gmra.mxu0 %v10462_v30  ;;  %4741 = vmatpush2.msra.mxu1 %v3973_v43  ;;  %v10515_v43 = vld [vmem:[#allocation3 + $0x128] sm:$0xff] }
 0x310   : > { %4394 = vmatmul.mubr.f32.gmra.mxu1 %v10470_v61  ;;  %4183 = vmatprep.mubr.f32.mxu0 %v2894_v29  ;;  %v3970_v29 = vld [vmem:[%s12316_s5 + $0x380] sm:$0xff] }
 0x311   : > { %4398 = vmatprep.mubr.f32.mxu1 %v10478_v13  ;;  %4742 = vmatprep.subr.mxu1 %v10187_v49 }
 0x312   : > { %4743 = vmatpush2.msra.mxu1 %v3972_v14  ;;  %v12454_v14 = vmax.f32 %v10269_v9, 0.0  ;;  %v10546_v9 = vld [vmem:[#allocation3 + $0x13a] sm:$0xff] }
 0x313   : > { %4184 = vmatmul.mubr.f32.gmra.mxu0 %v10478_v13  ;;  %4744 = vmatprep.subr.mxu1 %v10187_v49 }
 0x314   : > { %4399 = vmatmul.mubr.f32.gmra.mxu1 %v10486_v33  ;;  %4188 = vmatprep.mubr.f32.mxu0 %v2895_v60  ;;  %v10510_v60 = vld [vmem:[#allocation3 + $0x10a] sm:$0xff] }
 0x315   : > { %4403 = vmatprep.mubr.f32.mxu1 %v10492_v36  ;;  %4745 = vmatpush2.msra.mxu1 %v3971_v62  ;;  %v10533_v62 = vld [vmem:[#allocation3 + $0x140] sm:$0xff] }
 0x316   : > { %4746 = vmatprep.subr.mxu1 %v10187_v49 }
 0x317   : > { %4189 = vmatmul.mubr.f32.gmra.mxu0 %v10492_v36  ;;  %4747 = vmatpush2.msra.mxu1 %v3970_v29  ;;  %v10551_v29 = vld [vmem:[#allocation3 + $0x158] sm:$0xff] }
 0x318   : > { %4404 = vmatmul.mubr.f32.gmra.mxu1 %v10500_v59  ;;  %4193 = vmatprep.mubr.f32.mxu0 %v2896_v52  ;;  %v10524_v52 = vld [vmem:[#allocation3 + $0x138] sm:$0xff] }
 0x319   : > { %4408 = vmatprep.mubr.f32.mxu1 %v10505_v18  ;;  %6269 = vmatprep.subr.mxu1 %v10187_v49 }
 0x31b   : > { %4194 = vmatmul.mubr.f32.gmra.mxu0 %v10505_v18 }
 0x31c   : > { %4409 = vmatmul.mubr.f32.gmra.mxu1 %v10510_v60  ;;  %4198 = vmatprep.mubr.f32.mxu0 %v12453_v56  ;;  %v3249_v56 = vld [vmem:[#allocation3 + $0x19] sm:$0xff] }
 0x31d   : > { %4413 = vmatprep.mubr.f32.mxu1 %v10515_v43 }
 0x31f   : > { %4199 = vmatmul.mubr.f32.gmra.mxu0 %v10515_v43 }
 0x320   : > { %4414 = vmatmul.mubr.f32.gmra.mxu1 %v10519_v5  ;;  %4203 = vmatprep.mubr.f32.mxu0 %v2898_v51  ;;  %v10542_v51 = vld [vmem:[#allocation3 + $0x150] sm:$0xff] }
 0x321   : > { %4418 = vmatprep.mubr.f32.mxu1 %v10524_v52 }
 0x323   : > { %4204 = vmatmul.mubr.f32.gmra.mxu0 %v10524_v52 }
 0x324   : > { %4419 = vmatmul.mubr.f32.gmra.mxu1 %v10528_v53  ;;  %4208 = vmatprep.mubr.f32.mxu0 %v12454_v14  ;;  %v10580_v14 = vld [vmem:[#allocation3 + $0x16a] sm:$0xff] }
 0x325   : > { %4423 = vmatprep.mubr.f32.mxu1 %v10533_v62 }
 0x327   : > { %4209 = vmatmul.mubr.f32.gmra.mxu0 %v10533_v62 }
 0x328   : > { %4424 = vmatmul.mubr.f32.gmra.mxu1 %v10537_v42  ;;  %4213 = vmatprep.mubr.f32.mxu0 %v2900_v17  ;;  %v10560_v17 = vld [vmem:[#allocation3 + $0x168] sm:$0xff] }
 0x329   : > { %4428 = vmatprep.mubr.f32.mxu1 %v10542_v51 }
 0x32b   : > { %4214 = vmatmul.mubr.f32.gmra.mxu0 %v10542_v51 }
 0x32c   : > { %4429 = vmatmul.mubr.f32.gmra.mxu1 %v10546_v9  ;;  %4218 = vmatprep.mubr.f32.mxu0 %v2901_v28  ;;  %v10569_v28 = vld [vmem:[#allocation3 + $0x170] sm:$0xff] }
 0x32d   : > { %4433 = vmatprep.mubr.f32.mxu1 %v10551_v29 }
 0x32f   : > { %4219 = vmatmul.mubr.f32.gmra.mxu0 %v10551_v29 }
 0x330   : > { %4434 = vmatmul.mubr.f32.gmra.mxu1 %v10555_v50  ;;  %4223 = vmatprep.mubr.f32.mxu0 %v2902_v24  ;;  %v10576_v24 = vld [vmem:[#allocation3 + $0x180] sm:$0xff] }
 0x331   : > { %4438 = vmatprep.mubr.f32.mxu1 %v10560_v17  ;;  %12455 = vst [vmem:[#allocation8_spill] sm:$0xff] %v10576_v24 }
 0x333   : > { %4224 = vmatmul.mubr.f32.gmra.mxu0 %v10560_v17 }
 0x334   : > { %4439 = vmatmul.mubr.f32.gmra.mxu1 %v10564_v20  ;;  %4228 = vmatprep.mubr.f32.mxu0 %v2903_v54  ;;  %v10587_v54 = vld [vmem:[#allocation3 + $0x188] sm:$0xff] }
 0x335   : > { %4443 = vmatprep.mubr.f32.mxu1 %v10569_v28  ;;  %12456 = vst [vmem:[#allocation17_spill] sm:$0xff] %v10587_v54 }
 0x337   : > { %4229 = vmatmul.mubr.f32.gmra.mxu0 %v10569_v28 }
 0x338   : > { %4444 = vmatmul.mubr.f32.gmra.mxu1 %v10573_v15  ;;  %4523 = vmatprep.mubr.f32.mxu0 %v10092_v31  ;;  %v3250_v31 = vld [vmem:[#allocation3 + $0x21] sm:$0xff] }
 0x339   : > { %4448 = vmatprep.mubr.f32.mxu1 %v10576_v24  ;;  %v10591_v24 = vld [vmem:[#allocation3 + $0x172] sm:$0xff] }
 0x33b   : > { %4524 = vmatmul.mubr.f32.vlgmr.msra.gmra.mxu0 %v3249_v56  ;;  %v3999_v56 = vld [vmem:[%s12316_s5 + $0x468] sm:$0xff] }
 0x33c   : > { %4449 = vmatmul.mubr.f32.gmra.mxu1 %v10580_v14  ;;  %7852 = vmatpush3.msra.mxu0 %v10030_v38  ;;  %v3442_v38 = vld [vmem:[#allocation3 + $0x31] sm:$0xff] }
 0x33d   : > { %4453 = vmatprep.mubr.f32.mxu1 %v10587_v54  ;;  %4528 = vmatprep.mubr.f32.mxu0 %v10116_v21  ;;  %v3378_v54 = vld [vmem:[#allocation3 + $0x30] sm:$0xff] }
 0x33e   : > { %7853 = vmatprep.subr.mxu0 %v4000_v1  ;;  %v3998_v21 = vld [vmem:[%s12316_s5 + $0x460] sm:$0xff] }
 0x33f   : > { %4529 = vmatmul.mubr.f32.gmra.mxu0 %v3250_v31  ;;  %v3443_v31 = vld [vmem:[#allocation3 + $0x39] sm:$0xff] }
 0x340   : > { %4454 = vmatmul.mubr.f32.gmra.mxu1 %v10591_v24  ;;  %4533 = vmatprep.mubr.f32.mxu0 %v10144_v44  ;;  %v3997_v44 = vld [vmem:[%s12316_s5 + $0x458] sm:$0xff] }
 0x341   : > { %4748 = vmatprep.mubr.f32.mxu1 %v3442_v38  ;;  %7854 = vmatpush3.msra.mxu0 %v4000_v1  ;;  %v3444_v1 = vld [vmem:[#allocation3 + $0x49] sm:$0xff] }
 0x342   : > { %7855 = vmatprep.subr.mxu0 %v3999_v56 }
 0x343   : > { %4534 = vmatmul.mubr.f32.gmra.mxu0 %v3442_v38 }
 0x344   : > { %4749 = vmatmul.mubr.f32.vlgmr.msra.gmra.mxu1 %v3378_v54  ;;  %4538 = vmatprep.mubr.f32.mxu0 %v10170_v34  ;;  %v3996_v34 = vld [vmem:[%s12316_s5 + $0x450] sm:$0xff]  ;;  %v3445_v54 = vld [vmem:[#allocation3 + $0x51] sm:$0xff] }
 0x345   : > { %4753 = vmatprep.mubr.f32.mxu1 %v3443_v31  ;;  %7856 = vmatpush3.msra.mxu0 %v3999_v56 }
 0x346   : > { %7857 = vmatprep.subr.mxu0 %v3998_v21 }
 0x347   : > { %4539 = vmatmul.mubr.f32.gmra.mxu0 %v3443_v31 }
 0x348   : > { %4754 = vmatmul.mubr.f32.gmra.mxu1 %v10096_v23  ;;  %4543 = vmatprep.mubr.f32.mxu0 %v10200_v37  ;;  %v3995_v23 = vld [vmem:[%s12316_s5 + $0x448] sm:$0xff]  ;;  %v3446_v37 = vld [vmem:[#allocation3 + $0x61] sm:$0xff] }
 0x349   : > { %4758 = vmatprep.mubr.f32.mxu1 %v3444_v1  ;;  %7858 = vmatpush3.msra.mxu0 %v3998_v21 }
 0x34a   : > { %7859 = vmatprep.subr.mxu0 %v3997_v44 }
 0x34b   : > { %4544 = vmatmul.mubr.f32.gmra.mxu0 %v3444_v1  ;;  %v6132_v1 = vld [vmem:[%s12318_s7 + $0x70] sm:$0xff] }
 0x34c   : > { %4759 = vmatmul.mubr.f32.gmra.mxu1 %v10124_v27  ;;  %4548 = vmatprep.mubr.f32.mxu0 %v10226_v41  ;;  %v3994_v27 = vld [vmem:[%s12316_s5 + $0x440] sm:$0xff] }
 0x34d   : > { %4763 = vmatprep.mubr.f32.mxu1 %v3445_v54  ;;  %7860 = vmatpush3.msra.mxu0 %v3997_v44  ;;  %v3447_v41 = vld [vmem:[#allocation3 + $0x69] sm:$0xff] }
 0x34e   : > { %7861 = vmatprep.subr.mxu0 %v3996_v34 }
 0x34f   : > { %4549 = vmatmul.mubr.f32.gmra.mxu0 %v3445_v54 }
 0x350   : > { %4764 = vmatmul.mubr.f32.gmra.mxu1 %v10150_v63  ;;  %4553 = vmatprep.mubr.f32.mxu0 %v10254_v47  ;;  %v3993_v63 = vld [vmem:[%s12316_s5 + $0x438] sm:$0xff]  ;;  %v3448_v47 = vld [vmem:[#allocation3 + $0x79] sm:$0xff] }
 0x351   : > { %4768 = vmatprep.mubr.f32.mxu1 %v3446_v37  ;;  %7862 = vmatpush3.msra.mxu0 %v3996_v34 }
 0x352   : > { %7863 = vmatprep.subr.mxu0 %v3995_v23 }
 0x353   : > { %4554 = vmatmul.mubr.f32.gmra.mxu0 %v3446_v37 }
 0x354   : > { %4769 = vmatmul.mubr.f32.gmra.mxu1 %v10178_v32  ;;  %4558 = vmatprep.mubr.f32.mxu0 %v10282_v45  ;;  %v3992_v32 = vld [vmem:[%s12316_s5 + $0x430] sm:$0xff] }
 0x355   : > { %4773 = vmatprep.mubr.f32.mxu1 %v3447_v41  ;;  %7864 = vmatpush3.msra.mxu0 %v3995_v23  ;;  %v3449_v45 = vld [vmem:[#allocation3 + $0x81] sm:$0xff] }
 0x356   : > { %7865 = vmatprep.subr.mxu0 %v3994_v27 }
 0x357   : > { %4559 = vmatmul.mubr.f32.gmra.mxu0 %v3447_v41 }
 0x358   : > { %4774 = vmatmul.mubr.f32.gmra.mxu1 %v10206_v0  ;;  %4563 = vmatprep.mubr.f32.mxu0 %v10311_v39  ;;  %v3991_v0 = vld [vmem:[%s12316_s5 + $0x428] sm:$0xff] }
 0x359   : > { %4778 = vmatprep.mubr.f32.mxu1 %v3448_v47  ;;  %7866 = vmatpush3.msra.mxu0 %v3994_v27  ;;  %v3450_v39 = vld [vmem:[#allocation3 + $0x91] sm:$0xff] }
 0x35a   : > { %7867 = vmatprep.subr.mxu0 %v3993_v63  ;;  %v6131_v27 = vld [vmem:[%s12318_s7 + $0x68] sm:$0xff] }
 0x35b   : > { %4564 = vmatmul.mubr.f32.gmra.mxu0 %v3448_v47 }
 0x35c   : > { %4779 = vmatmul.mubr.f32.gmra.mxu1 %v10234_v35  ;;  %4568 = vmatprep.mubr.f32.mxu0 %v10339_v58  ;;  %v3990_v35 = vld [vmem:[%s12316_s5 + $0x420] sm:$0xff]  ;;  %v3451_v58 = vld [vmem:[#allocation3 + $0x99] sm:$0xff] }
 0x35d   : > { %4783 = vmatprep.mubr.f32.mxu1 %v3449_v45  ;;  %7868 = vmatpush3.msra.mxu0 %v3993_v63 }
 0x35e   : > { %7869 = vmatprep.subr.mxu0 %v3992_v32 }
 0x35f   : > { %4569 = vmatmul.mubr.f32.gmra.mxu0 %v3449_v45 }
 0x360   : > { %4784 = vmatmul.mubr.f32.gmra.mxu1 %v10260_v55  ;;  %4573 = vmatprep.mubr.f32.mxu0 %v10362_v40  ;;  %v3989_v55 = vld [vmem:[%s12316_s5 + $0x418] sm:$0xff] }
 0x361   : > { %4788 = vmatprep.mubr.f32.mxu1 %v3450_v39  ;;  %7870 = vmatpush3.msra.mxu0 %v3992_v32  ;;  %v3452_v40 = vld [vmem:[#allocation3 + $0xa9] sm:$0xff] }
 0x362   : > { %7871 = vmatprep.subr.mxu0 %v3991_v0 }
 0x363   : > { %4574 = vmatmul.mubr.f32.gmra.mxu0 %v3450_v39 }
 0x364   : > { %4789 = vmatmul.mubr.f32.gmra.mxu1 %v10290_v57  ;;  %4578 = vmatprep.mubr.f32.mxu0 %v10376_v19  ;;  %v3988_v57 = vld [vmem:[%s12316_s5 + $0x410] sm:$0xff]  ;;  %v3453_v19 = vld [vmem:[#allocation3 + $0xb1] sm:$0xff] }
 0x365   : > { %4793 = vmatprep.mubr.f32.mxu1 %v3451_v58  ;;  %7872 = vmatpush3.msra.mxu0 %v3991_v0  ;;  %v6130_v0 = vld [vmem:[%s12318_s7 + $0x60] sm:$0xff] }
 0x366   : > { %7873 = vmatprep.subr.mxu0 %v3990_v35 }
 0x367   : > { %4579 = vmatmul.mubr.f32.gmra.mxu0 %v3451_v58 }
 0x368   : > { %4794 = vmatmul.mubr.f32.gmra.mxu1 %v10317_v10  ;;  %4583 = vmatprep.mubr.f32.mxu0 %v10394_v22  ;;  %v3987_v10 = vld [vmem:[%s12316_s5 + $0x408] sm:$0xff]  ;;  %v3454_v22 = vld [vmem:[#allocation3 + $0xc1] sm:$0xff] }
 0x369   : > { %4798 = vmatprep.mubr.f32.mxu1 %v3452_v40  ;;  %7874 = vmatpush3.msra.mxu0 %v3990_v35 }
 0x36a   : > { %7875 = vmatprep.subr.mxu0 %v3989_v55 }
 0x36b   : > { %4584 = vmatmul.mubr.f32.gmra.mxu0 %v3452_v40 }
 0x36c   : > { %4799 = vmatmul.mubr.f32.gmra.mxu1 %v10347_v46  ;;  %4588 = vmatprep.mubr.f32.mxu0 %v10410_v2  ;;  %v3986_v46 = vld [vmem:[%s12316_s5 + $0x400] sm:$0xff] }
 0x36d   : > { %4803 = vmatprep.mubr.f32.mxu1 %v3453_v19  ;;  %7876 = vmatpush3.msra.mxu0 %v3989_v55  ;;  %v3455_v2 = vld [vmem:[#allocation3 + $0xc9] sm:$0xff] }
 0x36e   : > { %7877 = vmatprep.subr.mxu0 %v3988_v57 }
 0x36f   : > { %4589 = vmatmul.mubr.f32.gmra.mxu0 %v3453_v19 }
 0x370   : > { %4804 = vmatmul.mubr.f32.gmra.mxu1 %v10368_v16  ;;  %4593 = vmatprep.mubr.f32.mxu0 %v10426_v8  ;;  %v3456_v16 = vld [vmem:[#allocation3 + $0xd9] sm:$0xff]  ;;  %v10670_v8 = vld [vmem:[%s12317_s6] ss:$0 sm:$0xff] }
 0x371   : > { %4808 = vmatprep.mubr.f32.mxu1 %v3454_v22  ;;  %7878 = vmatpush3.msra.mxu0 %v3988_v57  ;;  %v6129_v57 = vld [vmem:[%s12318_s7 + $0x58] sm:$0xff] }
 0x372   : > { %7879 = vmatprep.subr.mxu0 %v3987_v10 }
 0x373   : > { %4594 = vmatmul.mubr.f32.gmra.mxu0 %v3454_v22 }
 0x374   : > { %4809 = vmatmul.mubr.f32.gmra.mxu1 %v10384_v11  ;;  %4598 = vmatprep.mubr.f32.mxu0 %v10440_v25  ;;  %v3457_v11 = vld [vmem:[#allocation3 + $0xe1] sm:$0xff]  ;;  %v4076_v25 = vadd.f32 %v10670_v8, %v10388_v7  ;;  %v4081_v7 = vadd.f32 %v10670_v8, %v10406_v3 }
 0x375   : > { %4813 = vmatprep.mubr.f32.mxu1 %v3455_v2  ;;  %7880 = vmatpush3.msra.mxu0 %v3987_v10 }
 0x376   : > { %7881 = vmatprep.subr.mxu0 %v3986_v46 }
 0x377   : > { %4599 = vmatmul.mubr.f32.gmra.mxu0 %v3455_v2 }
 0x378   : > { %4814 = vmatmul.mubr.f32.gmra.mxu1 %v10400_v6  ;;  %4603 = vmatprep.mubr.f32.mxu0 %v10456_v48  ;;  %v3458_v6 = vld [vmem:[#allocation3 + $0xf1] sm:$0xff] }
 0x379   : > { %4818 = vmatprep.mubr.f32.mxu1 %v3456_v16  ;;  %7882 = vmatpush3.msra.mxu0 %v3986_v46 }
 0x37a   : > { %6494 = vmatprep.subr.mxu0 %v10187_v49 }
 0x37b   : > { %4604 = vmatmul.mubr.f32.gmra.mxu0 %v3456_v16  ;;  %v6128_v16 = vld [vmem:[%s12318_s7 + $0x50] sm:$0xff] }
 0x37c   : > { %4819 = vmatmul.mubr.f32.gmra.mxu1 %v10418_v4  ;;  %4608 = vmatprep.mubr.f32.mxu0 %v10470_v61  ;;  %v3459_v61 = vld [vmem:[#allocation3 + $0xf9] sm:$0xff] }
 0x37d   : > { %4823 = vmatprep.mubr.f32.mxu1 %v3457_v11 }
 0x37f   : > { %4609 = vmatmul.mubr.f32.gmra.mxu0 %v3457_v11 }
 0x380   : > { %4824 = vmatmul.mubr.f32.gmra.mxu1 %v10432_v26  ;;  %4613 = vmatprep.mubr.f32.mxu0 %v10486_v33  ;;  %v6133_v26 = vld [vmem:[%s12318_s7 + $0x78] sm:$0xff] }
 0x381   : > { %4828 = vmatprep.mubr.f32.mxu1 %v3458_v6  ;;  %6270 = vmatpush1.msra.mxu1 %v6133_v26 }
 0x382   : > { %6271 = vmatprep.subr.mxu1 %v10187_v49 }
 0x383   : > { %v4085_v4 = vpop.f32.mrf.mxu0  ;;  %4614 = vmatmul.mubr.f32.gmra.mxu0 %v3458_v6  ;;  %6272 = vmatpush1.msra.mxu1 %v6132_v1 }
 0x384   : > { %v4300_v48 = vpop.f32.mrf.mxu1  ;;  %4829 = vmatmul.mubr.f32.gmra.mxu1 %v10448_v12  ;;  %4618 = vmatprep.mubr.f32.mxu0 %v10500_v59  ;;  %v3460_v59 = vld [vmem:[#allocation3 + $0x109] sm:$0xff]  ;;  %v4086_v3 = vadd.f32 %v10670_v8, %v4085_v4 }
 0x385   : > { %v10678_v56 = vadd.f32 %v4300_v48, %v4076_v25  ;;  %4833 = vmatprep.mubr.f32.mxu1 %v3459_v61  ;;  %v4087_v38 = vpop.f32.mrf.mxu0  ;;  %6273 = vmatprep.subr.mxu1 %v10187_v49 }
 0x386   : > { %v4302_v33 = vpop.f32.mrf.mxu1  ;;  %6274 = vmatpush1.msra.mxu1 %v6131_v27 }
 0x387   : > { %v4090_v21 = vpop.f32.mrf.mxu0  ;;  %4619 = vmatmul.mubr.f32.gmra.mxu0 %v3459_v61  ;;  %6275 = vmatprep.subr.mxu1 %v10187_v49  ;;  %v6127_v61 = vld [vmem:[%s12318_s7 + $0x48] sm:$0xff] }
 0x388   : > { %v4305_v12 = vpop.f32.mrf.mxu1  ;;  %4834 = vmatmul.mubr.f32.gmra.mxu1 %v10462_v30  ;;  %4623 = vmatprep.mubr.f32.mxu0 %v10510_v60  ;;  %v3461_v60 = vld [vmem:[#allocation3 + $0x111] sm:$0xff]  ;;  %v4091_v63 = vadd.f32 %v10670_v8, %v4090_v21 }
 0x389   : > { %v10688_v31 = vadd.f32 %v4305_v12, %v4081_v7  ;;  %4838 = vmatprep.mubr.f32.mxu1 %v3460_v59  ;;  %v4092_v44 = vpop.f32.mrf.mxu0  ;;  %6276 = vmatpush1.msra.mxu1 %v6130_v0  ;;  %v6126_v12 = vld [vmem:[%s12318_s7 + $0x40] sm:$0xff] }
 0x38a   : > { %v4307_v34 = vpop.f32.mrf.mxu1  ;;  %6277 = vmatprep.subr.mxu1 %v10187_v49 }
 0x38b   : > { %v4095_v54 = vpop.f32.mrf.mxu0  ;;  %4624 = vmatmul.mubr.f32.gmra.mxu0 %v3460_v59  ;;  %6278 = vmatpush1.msra.mxu1 %v6129_v57 }
 0x38c   : > { %v4310_v30 = vpop.f32.mrf.mxu1  ;;  %4839 = vmatmul.mubr.f32.gmra.mxu1 %v10478_v13  ;;  %4628 = vmatprep.mubr.f32.mxu0 %v10519_v5  ;;  %v3462_v5 = vld [vmem:[#allocation3 + $0x121] sm:$0xff]  ;;  %v4096_v35 = vadd.f32 %v10670_v8, %v4095_v54 }
 0x38d   : > { %v10697_v23 = vadd.f32 %v4310_v30, %v4086_v3  ;;  %4843 = vmatprep.mubr.f32.mxu1 %v3461_v60  ;;  %v4097_v37 = vpop.f32.mrf.mxu0  ;;  %6279 = vmatprep.subr.mxu1 %v10187_v49  ;;  %v6125_v54 = vld [vmem:[%s12318_s7 + $0x38] sm:$0xff] }
 0x38e   : > { %v4312_v41 = vpop.f32.mrf.mxu1  ;;  %6280 = vmatpush1.msra.mxu1 %v6128_v16  ;;  %v3471_v16 = vld [vmem:[#allocation3 + $0x189] sm:$0xff] }
 0x38f   : > { %v4100_v47 = vpop.f32.mrf.mxu0  ;;  %4629 = vmatmul.mubr.f32.gmra.mxu0 %v3461_v60  ;;  %6281 = vmatprep.subr.mxu1 %v10187_v49  ;;  %v10739_v49 = vld [vmem:[#allocation2] sm:$0xff] }
 0x390   : > { %v4315_v13 = vpop.f32.mrf.mxu1  ;;  %4844 = vmatmul.mubr.f32.gmra.mxu1 %v10492_v36  ;;  %4633 = vmatprep.mubr.f32.mxu0 %v10528_v53  ;;  %v3463_v53 = vld [vmem:[#allocation3 + $0x129] sm:$0xff]  ;;  %v4101_v10 = vadd.f32 %v10670_v8, %v4100_v47 }
 0x391   : > { %v10706_v32 = vadd.f32 %v4315_v13, %v4091_v63  ;;  %4848 = vmatprep.mubr.f32.mxu1 %v3462_v5  ;;  %v4102_v45 = vpop.f32.mrf.mxu0  ;;  %6282 = vmatpush1.msra.mxu1 %v6127_v61  ;;  %v6124_v63 = vld [vmem:[%s12318_s7 + $0x30] sm:$0xff] }
 0x392   : > { %v4317_v39 = vpop.f32.mrf.mxu1  ;;  %6283 = vmatprep.subr.mxu1 %v10739_v49 }
 0x393   : > { %v4105_v58 = vpop.f32.mrf.mxu0  ;;  %4634 = vmatmul.mubr.f32.gmra.mxu0 %v3462_v5  ;;  %6284 = vmatpush1.msra.mxu1 %v6126_v12  ;;  %v6123_v39 = vld [vmem:[%s12318_s7 + $0x28] sm:$0xff] }
 0x394   : > { %v4320_v36 = vpop.f32.mrf.mxu1  ;;  %4849 = vmatmul.mubr.f32.gmra.mxu1 %v10505_v18  ;;  %4638 = vmatprep.mubr.f32.mxu0 %v10537_v42  ;;  %v3464_v42 = vld [vmem:[#allocation3 + $0x139] sm:$0xff]  ;;  %v4106_v6 = vadd.f32 %v10670_v8, %v4105_v58 }
 0x395   : > { %v10715_v55 = vadd.f32 %v4320_v36, %v4096_v35  ;;  %4853 = vmatprep.mubr.f32.mxu1 %v3463_v53  ;;  %v4107_v40 = vpop.f32.mrf.mxu0  ;;  %6285 = vmatprep.subr.mxu1 %v10739_v49 }
 0x396   : > { %v4322_v19 = vpop.f32.mrf.mxu1  ;;  %6286 = vmatpush1.msra.mxu1 %v6125_v54 }
 0x397   : > { %v4110_v22 = vpop.f32.mrf.mxu0  ;;  %4639 = vmatmul.mubr.f32.gmra.mxu0 %v3463_v53  ;;  %6287 = vmatprep.subr.mxu1 %v10739_v49  ;;  %v10777_v53 = vld [vmem:[#allocation3 + $0x182] sm:$0xff]  ;;  %v6122_v19 = vld [vmem:[%s12318_s7 + $0x20] sm:$0xff] }
 0x398   : > { %v4325_v18 = vpop.f32.mrf.mxu1  ;;  %4854 = vmatmul.mubr.f32.gmra.mxu1 %v10515_v43  ;;  %4643 = vmatprep.mubr.f32.mxu0 %v10546_v9  ;;  %v3465_v9 = vld [vmem:[#allocation3 + $0x141] sm:$0xff]  ;;  %v4111_v26 = vadd.f32 %v10670_v8, %v4110_v22 }
 0x399   : > { %v10724_v46 = vadd.f32 %v4325_v18, %v4101_v10  ;;  %4858 = vmatprep.mubr.f32.mxu1 %v3464_v42  ;;  %v4112_v2 = vpop.f32.mrf.mxu0  ;;  %6288 = vmatpush1.msra.mxu1 %v6124_v63  ;;  %v3510_v63 = vld [vmem:[#allocation3 + $0x62] sm:$0xff] }
 0x39a   : > { %v4327_v11 = vpop.f32.mrf.mxu1  ;;  %6289 = vmatprep.subr.mxu1 %v10739_v49  ;;  %v12457_v2 = vld [vmem:[#allocation8_spill] sm:$0xff] }
 0x39b   : > { %v4115_v25 = vpop.f32.mrf.mxu0  ;;  %4644 = vmatmul.mubr.f32.gmra.mxu0 %v3464_v42  ;;  %6290 = vmatpush1.msra.mxu1 %v6123_v39  ;;  %v10788_v42 = vld [vmem:[#allocation3 + $0x18a] sm:$0xff] }
 0x39c   : > { %v4330_v43 = vpop.f32.mrf.mxu1  ;;  %4859 = vmatmul.mubr.f32.gmra.mxu1 %v10524_v52  ;;  %4648 = vmatprep.mubr.f32.mxu0 %v10555_v50  ;;  %v3466_v50 = vld [vmem:[#allocation3 + $0x151] sm:$0xff]  ;;  %v4116_v44 = vadd.f32 %v10670_v8, %v4115_v25  ;;  %v6121_v25 = vld [vmem:[%s12318_s7 + $0x18] sm:$0xff] }
 0x39d   : > { %v10733_v4 = vadd.f32 %v4330_v43, %v4106_v6  ;;  %4863 = vmatprep.mubr.f32.mxu1 %v3465_v9  ;;  %v4117_v48 = vpop.f32.mrf.mxu0  ;;  %6291 = vmatprep.subr.mxu1 %v10739_v49 }
 0x39e   : > { %v4332_v38 = vpop.f32.mrf.mxu1  ;;  %6292 = vmatpush1.msra.mxu1 %v6122_v19 }
 0x39f   : > { %v4120_v33 = vpop.f32.mrf.mxu0  ;;  %4649 = vmatmul.mubr.f32.gmra.mxu0 %v3465_v9  ;;  %6293 = vmatprep.subr.mxu1 %v10739_v49  ;;  %v3472_v9 = vld [vmem:[#allocation3 + $0x199] sm:$0xff] }
 0x3a0   : > { %v4335_v52 = vpop.f32.mrf.mxu1  ;;  %4864 = vmatmul.mubr.f32.gmra.mxu1 %v10533_v62  ;;  %4653 = vmatprep.mubr.f32.mxu0 %v10564_v20  ;;  %v3467_v20 = vld [vmem:[#allocation3 + $0x159] sm:$0xff]  ;;  %v4121_v60 = vadd.f32 %v10670_v8, %v4120_v33  ;;  %v12458_v33 = vld [vmem:[#allocation17_spill] sm:$0xff] }
 0x3a1   : > { %v10744_v7 = vadd.f32 %v4335_v52, %v4111_v26  ;;  %4868 = vmatprep.mubr.f32.mxu1 %v3466_v50  ;;  %v4122_v21 = vpop.f32.mrf.mxu0  ;;  %6294 = vmatpush1.msra.mxu1 %v6121_v25  ;;  %v3506_v38 = vld [vmem:[#allocation3 + $0x32] sm:$0xff]  ;;  %v6148_v25 = vld [vmem:[%s12318_s7 + $0xf0] sm:$0xff] }
 0x3a2   : > { %v4337_v59 = vpop.f32.mrf.mxu1  ;;  %6295 = vmatprep.subr.mxu1 %v10739_v49  ;;  %v6120_v21 = vld [vmem:[%s12318_s7 + $0x10] sm:$0xff] }
 0x3a3   : > { %v4125_v1 = vpop.f32.mrf.mxu0  ;;  %4654 = vmatmul.mubr.f32.gmra.mxu0 %v3466_v50  ;;  %v3507_v59 = vld [vmem:[#allocation3 + $0x3a] sm:$0xff]  ;;  %6296 = vmatpush1.msra.mxu1 %v6120_v21 }
 0x3a4   : > { %v4340_v62 = vpop.f32.mrf.mxu1  ;;  %4869 = vmatmul.mubr.f32.gmra.mxu1 %v10542_v51  ;;  %4658 = vmatprep.mubr.f32.mxu0 %v10573_v15  ;;  %v3468_v15 = vld [vmem:[#allocation3 + $0x169] sm:$0xff]  ;;  %v4126_v13 = vadd.f32 %v10670_v8, %v4125_v1 }
 0x3a5   : > { %v10753_v34 = vadd.f32 %v4340_v62, %v4116_v44  ;;  %4873 = vmatprep.mubr.f32.mxu1 %v3467_v20  ;;  %v4127_v3 = vpop.f32.mrf.mxu0  ;;  %v3473_v44 = vld [vmem:[#allocation3 + $0x1a1] sm:$0xff]  ;;  %6297 = vmatprep.subr.mxu1 %v10739_v49 }
 0x3a6   : > { %v4342_v30 = vpop.f32.mrf.mxu1 }
 0x3a7   : > { %v4130_v37 = vpop.f32.mrf.mxu0  ;;  %4659 = vmatmul.mubr.f32.gmra.mxu0 %v3467_v20  ;;  %v3508_v20 = vld [vmem:[#allocation3 + $0x4a] sm:$0xff] }
 0x3a8   : > { %v4345_v51 = vpop.f32.mrf.mxu1  ;;  %4874 = vmatmul.mubr.f32.gmra.mxu1 %v10551_v29  ;;  %4663 = vmatprep.mubr.f32.mxu0 %v10580_v14  ;;  %v3469_v14 = vld [vmem:[#allocation3 + $0x171] sm:$0xff]  ;;  %v4131_v58 = vadd.f32 %v10670_v8, %v4130_v37 }
 0x3a9   : > { %v10762_v27 = vadd.f32 %v4345_v51, %v4121_v60  ;;  %4878 = vmatprep.mubr.f32.mxu1 %v3468_v15  ;;  %v4132_v41 = vpop.f32.mrf.mxu0  ;;  %v6119_v60 = vld [vmem:[%s12318_s7 + $0x8] sm:$0xff] }
 0x3aa   : > { %v4347_v47 = vpop.f32.mrf.mxu1  ;;  %v3509_v51 = vld [vmem:[#allocation3 + $0x52] sm:$0xff]  ;;  %6298 = vmatpush1.msra.mxu1 %v6119_v60 }
 0x3ab   : > { %v4135_v5 = vpop.f32.mrf.mxu0  ;;  %4664 = vmatmul.mubr.f32.gmra.mxu0 %v3468_v15  ;;  %6299 = vmatprep.subr.mxu1 %v10739_v49  ;;  %v6163_v60 = vld [vmem:[%s12318_s7 + $0x168] sm:$0xff] }
 0x3ac   : > { %v4350_v29 = vpop.f32.mrf.mxu1  ;;  %4879 = vmatmul.mubr.f32.gmra.mxu1 %v10560_v17  ;;  %4668 = vmatprep.mubr.f32.mxu0 %v10591_v24  ;;  %v3470_v24 = vld [vmem:[#allocation3 + $0x181] sm:$0xff]  ;;  %v4136_v22 = vadd.f32 %v10670_v8, %v4135_v5 }
 0x3ad   : > { %v10771_v45 = vadd.f32 %v4350_v29, %v4126_v13  ;;  %4883 = vmatprep.mubr.f32.mxu1 %v3469_v14  ;;  %v4137_v0 = vpop.f32.mrf.mxu0  ;;  %v6118_v29 = vld [vmem:[%s12318_s7] sm:$0xff] }
 0x3ae   : > { %v4352_v35 = vpop.f32.mrf.mxu1  ;;  %v3511_v0 = vld [vmem:[#allocation3 + $0x6a] sm:$0xff]  ;;  %6300 = vmatpush1.msra.mxu1 %v6118_v29 }
 0x3af   : > { %v4140_v36 = vpop.f32.mrf.mxu0  ;;  %4669 = vmatmul.mubr.f32.gmra.mxu0 %v3469_v14  ;;  %6301 = vmatprep.subr.mxu1 %v10739_v49 }
 0x3b0   : > { %v4355_v17 = vpop.f32.mrf.mxu1  ;;  %4884 = vmatmul.mubr.f32.gmra.mxu1 %v10569_v28  ;;  %4673 = vmatprep.mubr.f32.mxu0 %v10777_v53  ;;  %v4141_v48 = vadd.f32 %v10670_v8, %v4140_v36 }
 0x3b1   : > { %v10782_v40 = vadd.f32 %v4355_v17, %v4131_v58  ;;  %4888 = vmatprep.mubr.f32.mxu1 %v3470_v24  ;;  %v4142_v57 = vpop.f32.mrf.mxu0  ;;  %v3512_v58 = vld [vmem:[#allocation3 + $0x7a] sm:$0xff] }
 0x3b2   : > { %v4357_v10 = vpop.f32.mrf.mxu1  ;;  %v6149_v57 = vld [vmem:[%s12318_s7 + $0xf8] sm:$0xff] }
 0x3b3   : > { %v4145_v18 = vpop.f32.mrf.mxu0  ;;  %4674 = vmatmul.mubr.f32.gmra.mxu0 %v3470_v24  ;;  %v3513_v10 = vld [vmem:[#allocation3 + $0x82] sm:$0xff]  ;;  %6302 = vmatpush2.msra.mxu1 %v6149_v57 }
 0x3b4   : > { %v4360_v28 = vpop.f32.mrf.mxu1  ;;  %4889 = vmatmul.mubr.f32.gmra.mxu1 %v12457_v2  ;;  %4678 = vmatprep.mubr.f32.mxu0 %v10788_v42  ;;  %v4146_v1 = vadd.f32 %v10670_v8, %v4145_v18  ;;  %v3521_v57 = vld [vmem:[#allocation3 + $0xe2] sm:$0xff] }
 0x3b5   : > { %v10793_v11 = vadd.f32 %v4360_v28, %v4136_v22  ;;  %4893 = vmatprep.mubr.f32.mxu1 %v3471_v16  ;;  %v4147_v6 = vpop.f32.mrf.mxu0  ;;  %v3514_v28 = vld [vmem:[#allocation3 + $0x92] sm:$0xff]  ;;  %6303 = vmatprep.subr.mxu1 %v10739_v49 }
 0x3b6   : > { %v4362_v43 = vpop.f32.mrf.mxu1  ;;  %6304 = vmatpush2.msra.mxu1 %v6148_v25  ;;  %v6144_v25 = vld [vmem:[%s12318_s7 + $0xd0] sm:$0xff] }
 0x3b7   : > { %v4150_v61 = vpop.f32.mrf.mxu0  ;;  %4679 = vmatmul.mubr.f32.gmra.mxu0 %v3471_v16  ;;  %6305 = vmatprep.subr.mxu1 %v10739_v49 }
 0x3b8   : > { %v4365_v26 = vpop.f32.mrf.mxu1  ;;  %4894 = vmatmul.mubr.f32.gmra.mxu1 %v12458_v33  ;;  %7883 = vmatprep.mubr.f32.mxu0 %v3506_v38  ;;  %v4151_v15 = vadd.f32 %v10670_v8, %v4150_v61  ;;  %v3516_v38 = vld [vmem:[#allocation3 + $0xaa] sm:$0xff] }
 0x3b9   : > { %v10801_v52 = vadd.f32 %v4365_v26, %v4141_v48  ;;  %v4152_v50 = vpop.f32.mrf.mxu0  ;;  %4898 = vmatprep.mubr.f32.mxu1 %v3472_v9  ;;  %v3515_v9 = vld [vmem:[#allocation3 + $0x9a] sm:$0xff]  ;;  %v6165_v33 = vld [vmem:[%s12318_s7 + $0x178] sm:$0xff] }
 0x3ba   : > { %v4367_v12 = vpop.f32.mrf.mxu1 }
 0x3bb   : > { %v4155_v62 = vpop.f32.mrf.mxu0  ;;  %7884 = vmatmul.mubr.f32.vlgmr.msra.gmra.mxu0 %v3507_v59  ;;  %v6147_v12 = vld [vmem:[%s12318_s7 + $0xe8] sm:$0xff] }
 0x3bc   : > { %v4370_v3 = vpop.f32.mrf.mxu1  ;;  %4899 = vmatmul.mubr.f32.gmra.mxu1 %v10739_v49  ;;  %7886 = vmatprep.mubr.f32.mxu0 %v3508_v20  ;;  %v4156_v39 = vadd.f32 %v10670_v8, %v4155_v62 }
 0x3bd   : > { %v10809_v54 = vadd.f32 %v4370_v3, %v4146_v1  ;;  %v4157_v30 = vpop.f32.mrf.mxu0  ;;  %4903 = vmatprep.mubr.f32.mxu1 %v3473_v44  ;;  %6495 = vmatpush1.msra.mxu0 %v6165_v33  ;;  %v3517_v44 = vld [vmem:[#allocation3 + $0xb2] sm:$0xff]  ;;  %v6164_v1 = vld [vmem:[%s12318_s7 + $0x170] sm:$0xff] }
 0x3be   : > { %v4372_v37 = vpop.f32.mrf.mxu1  ;;  %6306 = vmatpush2.msra.mxu1 %v6147_v12  ;;  %6496 = vmatprep.subr.mxu0 %v10739_v49  ;;  %v3518_v3 = vld [vmem:[#allocation3 + $0xc2] sm:$0xff]  ;;  %v6158_v33 = vld [vmem:[%s12318_s7 + $0x140] sm:$0xff] }
 0x3bf   : > { %v4160_v41 = vpop.f32.mrf.mxu0  ;;  %7887 = vmatmul.mubr.f32.gmra.mxu0 %v3509_v51  ;;  %6307 = vmatprep.subr.mxu1 %v10739_v49 }
 0x3c0   : > { %v4375_v47 = vpop.f32.mrf.mxu1  ;;  %4904 = vmatmul.mubr.f32.gmra.mxu1 %v10739_v49  ;;  %7889 = vmatprep.mubr.f32.mxu0 %v3510_v63  ;;  %v4161_v22 = vadd.f32 %v10670_v8, %v4160_v41  ;;  %v3519_v63 = vld [vmem:[#allocation3 + $0xca] sm:$0xff] }
 0x3c1   : > { %v10817_v13 = vadd.f32 %v4375_v47, %v4151_v15  ;;  %v4162_v5 = vpop.f32.mrf.mxu0  ;;  %6497 = vmatpush1.msra.mxu0 %v6164_v1  ;;  %v6146_v15 = vld [vmem:[%s12318_s7 + $0xe0] sm:$0xff]  ;;  %v6157_v1 = vld [vmem:[%s12318_s7 + $0x138] sm:$0xff] }
 0x3c2   : > { %v4377_v14 = vpop.f32.mrf.mxu1  ;;  %6498 = vmatprep.subr.mxu0 %v10739_v49  ;;  %6308 = vmatpush2.msra.mxu1 %v6146_v15  ;;  %v6162_v47 = vld [vmem:[%s12318_s7 + $0x160] sm:$0xff] }
 0x3c3   : > { %v4165_v35 = vpop.f32.mrf.mxu0  ;;  %7890 = vmatmul.mubr.f32.gmra.mxu0 %v3511_v0  ;;  %v3520_v14 = vld [vmem:[#allocation3 + $0xda] sm:$0xff]  ;;  %6309 = vmatprep.subr.mxu1 %v10739_v49 }
 0x3c4   : > { %v4380_v36 = vpop.f32.mrf.mxu1  ;;  %7892 = vmatprep.mubr.f32.mxu0 %v3512_v58  ;;  %v4166_v48 = vadd.f32 %v10670_v8, %v4165_v35  ;;  %6499 = vmatpush1.msra.mxu0 %v6163_v60  ;;  %v6145_v58 = vld [vmem:[%s12318_s7 + $0xd8] sm:$0xff] }
 0x3c5   : > { %v10824_v17 = vadd.f32 %v4380_v36, %v4156_v39  ;;  %v4167_v24 = vpop.f32.mrf.mxu0  ;;  %6500 = vmatprep.subr.mxu0 %v10739_v49  ;;  %v6161_v36 = vld [vmem:[%s12318_s7 + $0x158] sm:$0xff]  ;;  %6310 = vmatpush2.msra.mxu1 %v6145_v58  ;;  %v3528_v58 = vld [vmem:[#allocation3 + $0x13a] sm:$0xff] }
 0x3c6   : > { %v4382_v19 = vpop.f32.mrf.mxu1  ;;  %6501 = vmatpush1.msra.mxu0 %v6162_v47  ;;  %6311 = vmatprep.subr.mxu1 %v10739_v49  ;;  %v3526_v60 = vld [vmem:[#allocation3 + $0x122] sm:$0xff]  ;;  %v6142_v47 = vld [vmem:[%s12318_s7 + $0xc0] sm:$0xff] }
 0x3c7   : > { %v4170_v18 = vpop.f32.mrf.mxu0  ;;  %7893 = vmatmul.mubr.f32.gmra.mxu0 %v3513_v10  ;;  %6502 = vmatprep.subr.mxu0 %v10739_v49 }
 0x3c8   : > { %v4385_v2 = vpop.f32.mrf.mxu1  ;;  %7895 = vmatprep.mubr.f32.mxu0 %v3514_v28  ;;  %v4171_v62 = vadd.f32 %v10670_v8, %v4170_v18  ;;  %v6160_v18 = vld [vmem:[%s12318_s7 + $0x150] sm:$0xff]  ;;  %6503 = vmatpush1.msra.mxu0 %v6161_v36  ;;  %v6154_v36 = vld [vmem:[%s12318_s7 + $0x120] sm:$0xff] }
 0x3c9   : > { %v10831_v16 = vadd.f32 %v4385_v2, %v4161_v22  ;;  %v4172_v6 = vpop.f32.mrf.mxu0  ;;  %v3522_v22 = vld [vmem:[#allocation3 + $0xf2] sm:$0xff]  ;;  %6504 = vmatprep.subr.mxu0 %v10739_v49  ;;  %6312 = vmatpush2.msra.mxu1 %v6144_v25 }
 0x3ca   : > { %v4387_v43 = vpop.f32.mrf.mxu1  ;;  %6505 = vmatpush1.msra.mxu0 %v6160_v18  ;;  %6313 = vmatprep.subr.mxu1 %v10739_v49 }
 0x3cb   : > { %v4175_v61 = vpop.f32.mrf.mxu0  ;;  %7896 = vmatmul.mubr.f32.gmra.mxu0 %v3515_v9  ;;  %v6159_v43 = vld [vmem:[%s12318_s7 + $0x148] sm:$0xff]  ;;  %6506 = vmatprep.subr.mxu0 %v10739_v49 }
 0x3cc   : > { %v4390_v26 = vpop.f32.mrf.mxu1  ;;  %7898 = vmatprep.mubr.f32.mxu0 %v3516_v38  ;;  %v4176_v5 = vadd.f32 %v10670_v8, %v4175_v61  ;;  %6507 = vmatpush1.msra.mxu0 %v6159_v43  ;;  %v3530_v43 = vld [vmem:[#allocation3 + $0x152] sm:$0xff] }
 0x3cd   : > { %v10841_v50 = vadd.f32 %v4390_v26, %v4166_v48  ;;  %v4177_v21 = vpop.f32.mrf.mxu0  ;;  %v3523_v48 = vld [vmem:[#allocation3 + $0xfa] sm:$0xff]  ;;  %v3524_v26 = vld [vmem:[#allocation3 + $0x10a] sm:$0xff]  ;;  %6508 = vmatprep.subr.mxu0 %v10739_v49 }
 0x3ce   : > { %v4392_v59 = vpop.f32.mrf.mxu1  ;;  %6509 = vmatpush1.msra.mxu0 %v6158_v33  ;;  %v6151_v33 = vld [vmem:[%s12318_s7 + $0x108] sm:$0xff] }
 0x3cf   : > { %v4180_v20 = vpop.f32.mrf.mxu0  ;;  %7899 = vmatmul.mubr.f32.gmra.mxu0 %v3517_v44  ;;  %v6143_v44 = vld [vmem:[%s12318_s7 + $0xc8] sm:$0xff]  ;;  %6510 = vmatprep.subr.mxu0 %v10739_v49 }
 0x3d0   : > { %v4395_v30 = vpop.f32.mrf.mxu1  ;;  %7901 = vmatprep.mubr.f32.mxu0 %v3518_v3  ;;  %v4181_v19 = vadd.f32 %v10670_v8, %v4180_v20  ;;  %v3525_v20 = vld [vmem:[#allocation3 + $0x112] sm:$0xff]  ;;  %6314 = vmatpush2.msra.mxu1 %v6143_v44 }
 0x3d1   : > { %v10855_v37 = vadd.f32 %v4395_v30, %v4171_v62  ;;  %v4182_v51 = vpop.f32.mrf.mxu0  ;;  %6511 = vmatpush1.msra.mxu0 %v6157_v1  ;;  %6315 = vmatprep.subr.mxu1 %v10739_v49 }
 0x3d2   : > { %v4397_v41 = vpop.f32.mrf.mxu1  ;;  %v6156_v51 = vld [vmem:[%s12318_s7 + $0x130] sm:$0xff]  ;;  %6512 = vmatprep.subr.mxu0 %v10739_v49  ;;  %6316 = vmatpush2.msra.mxu1 %v6142_v47  ;;  %v3533_v47 = vld [vmem:[#allocation3 + $0x172] sm:$0xff] }
 0x3d3   : > { %v4185_v29 = vpop.f32.mrf.mxu0  ;;  %7902 = vmatmul.mubr.f32.gmra.mxu0 %v3519_v63  ;;  %6317 = vmatprep.subr.mxu1 %v10739_v49 }
 0x3d4   : > { %v4400_v0 = vpop.f32.mrf.mxu1  ;;  %7904 = vmatprep.mubr.f32.mxu0 %v3520_v14  ;;  %v4186_v61 = vadd.f32 %v10670_v8, %v4185_v29  ;;  %v3527_v14 = vld [vmem:[#allocation3 + $0x12a] sm:$0xff]  ;;  %6513 = vmatpush1.msra.mxu0 %v6156_v51  ;;  %v6139_v51 = vld [vmem:[%s12318_s7 + $0xa8] sm:$0xff] }
 0x3d5   : > { %v10867_v39 = vadd.f32 %v4400_v0, %v4176_v5  ;;  %v4187_v35 = vpop.f32.mrf.mxu0  ;;  %v6155_v5 = vld [vmem:[%s12318_s7 + $0x128] sm:$0xff]  ;;  %6514 = vmatprep.subr.mxu0 %v10739_v49 }
 0x3d6   : > { %v4402_v24 = vpop.f32.mrf.mxu1  ;;  %6515 = vmatpush1.msra.mxu0 %v6155_v5 }
 0x3d7   : > { %v4190_v10 = vpop.f32.mrf.mxu0  ;;  %7905 = vmatmul.mubr.f32.gmra.mxu0 %v3521_v57  ;;  %6516 = vmatprep.subr.mxu0 %v10739_v49 }
 0x3d8   : > { %v4405_v28 = vpop.f32.mrf.mxu1  ;;  %7907 = vmatprep.mubr.f32.mxu0 %v3522_v22  ;;  %v4191_v3 = vadd.f32 %v10670_v8, %v4190_v10  ;;  %v6141_v10 = vld [vmem:[%s12318_s7 + $0xb8] sm:$0xff]  ;;  %6517 = vmatpush1.msra.mxu0 %v6154_v36  ;;  %v3536_v36 = vld [vmem:[#allocation3 + $0x19a] sm:$0xff] }
 0x3d9   : > { %v10881_v2 = vadd.f32 %v4405_v28, %v4181_v19  ;;  %v4192_v6 = vpop.f32.mrf.mxu0  ;;  %v6153_v22 = vld [vmem:[%s12318_s7 + $0x118] sm:$0xff]  ;;  %6318 = vmatpush2.msra.mxu1 %v6141_v10  ;;  %6518 = vmatprep.subr.mxu0 %v10739_v49 }
 0x3da   : > { %v4407_v9 = vpop.f32.mrf.mxu1  ;;  %v3529_v28 = vld [vmem:[#allocation3 + $0x142] sm:$0xff]  ;;  %6519 = vmatpush1.msra.mxu0 %v6153_v22  ;;  %6319 = vmatprep.subr.mxu1 %v10739_v49 }
 0x3db   : > { %v4195_v38 = vpop.f32.mrf.mxu0  ;;  %7908 = vmatmul.mubr.f32.gmra.mxu0 %v3523_v48  ;;  %v6152_v9 = vld [vmem:[%s12318_s7 + $0x110] sm:$0xff]  ;;  %6520 = vmatprep.subr.mxu0 %v10739_v49 }
 0x3dc   : > { %v4410_v21 = vpop.f32.mrf.mxu1  ;;  %7910 = vmatprep.mubr.f32.mxu0 %v3524_v26  ;;  %v4196_v0 = vadd.f32 %v10670_v8, %v4195_v38  ;;  %v6140_v26 = vld [vmem:[%s12318_s7 + $0xb0] sm:$0xff]  ;;  %6521 = vmatpush1.msra.mxu0 %v6152_v9  ;;  %v6177_v9 = vld [vmem:[%s12318_s7 + $0x1d8] sm:$0xff] }
 0x3dd   : > { %v10895_v12 = vadd.f32 %v4410_v21, %v4186_v61  ;;  %v4197_v59 = vpop.f32.mrf.mxu0  ;;  %6320 = vmatpush2.msra.mxu1 %v6140_v26  ;;  %6522 = vmatprep.subr.mxu0 %v10739_v49 }
 0x3de   : > { %v4412_v62 = vpop.f32.mrf.mxu1  ;;  %v3531_v59 = vld [vmem:[#allocation3 + $0x15a] sm:$0xff]  ;;  %6523 = vmatpush1.msra.mxu0 %v6151_v33  ;;  %6321 = vmatprep.subr.mxu1 %v10739_v49 }
 0x3df   : > { %v4200_v30 = vpop.f32.mrf.mxu0  ;;  %7911 = vmatmul.mubr.f32.gmra.mxu0 %v3525_v20  ;;  %v3532_v62 = vld [vmem:[#allocation3 + $0x16a] sm:$0xff]  ;;  %6524 = vmatprep.subr.mxu0 %v10739_v49  ;;  %v6176_v33 = vld [vmem:[%s12318_s7 + $0x1d0] sm:$0xff] }
 0x3e0   : > { %v4415_v15 = vpop.f32.mrf.mxu1  ;;  %7913 = vmatprep.mubr.f32.mxu0 %v3526_v60  ;;  %v4201_v6 = vadd.f32 %v10670_v8, %v4200_v30  ;;  %v6150_v20 = vld [vmem:[%s12318_s7 + $0x100] sm:$0xff]  ;;  %6322 = vmatpush2.msra.mxu1 %v6139_v51 }
 0x3e1   : > { %v10910_v41 = vadd.f32 %v4415_v15, %v4191_v3  ;;  %v4202_v63 = vpop.f32.mrf.mxu0  ;;  %v6181_v15 = vld [vmem:[%s12318_s7 + $0x1f8] sm:$0xff]  ;;  %6525 = vmatpush1.msra.mxu0 %v6150_v20  ;;  %6323 = vmatprep.subr.mxu1 %v10739_v49  ;;  %v6174_v51 = vld [vmem:[%s12318_s7 + $0x1c0] sm:$0xff] }
 0x3e2   : > { %v4417_v29 = vpop.f32.mrf.mxu1  ;;  %6526 = vmatprep.subr.mxu0 %v10739_v49 }
 0x3e3   : > { %v4205_v35 = vpop.f32.mrf.mxu0  ;;  %7914 = vmatmul.mubr.f32.gmra.mxu0 %v3527_v14  ;;  %v6180_v14 = vld [vmem:[%s12318_s7 + $0x1f0] sm:$0xff] }
 0x3e4   : > { %v4420_v24 = vpop.f32.mrf.mxu1  ;;  %7916 = vmatprep.mubr.f32.mxu0 %v3528_v58  ;;  %v4206_v44 = vadd.f32 %v10670_v8, %v4205_v35  ;;  %6527 = vmatpush2.msra.mxu0 %v6181_v15 }
 0x3e5   : > { %v10925_v57 = vadd.f32 %v4420_v24, %v4196_v0  ;;  %v4207_v19 = vpop.f32.mrf.mxu0  ;;  %6528 = vmatprep.subr.mxu0 %v10739_v49  ;;  %v6138_v24 = vld [vmem:[%s12318_s7 + $0xa0] sm:$0xff] }
 0x3e6   : > { %v4422_v18 = vpop.f32.mrf.mxu1  ;;  %v6179_v19 = vld [vmem:[%s12318_s7 + $0x1e8] sm:$0xff]  ;;  %6529 = vmatpush2.msra.mxu0 %v6180_v14  ;;  %6324 = vmatpush2.msra.mxu1 %v6138_v24 }
 0x3e7   : > { %v4210_v25 = vpop.f32.mrf.mxu0  ;;  %7917 = vmatmul.mubr.f32.gmra.mxu0 %v3529_v28  ;;  %6530 = vmatprep.subr.mxu0 %v10739_v49  ;;  %v6178_v18 = vld [vmem:[%s12318_s7 + $0x1e0] sm:$0xff] }
 0x3e8   : > { %v4425_v48 = vpop.f32.mrf.mxu1  ;;  %7919 = vmatprep.mubr.f32.mxu0 %v3530_v43  ;;  %v4211_v5 = vadd.f32 %v10670_v8, %v4210_v25  ;;  %6531 = vmatpush2.msra.mxu0 %v6179_v19 }
 0x3e9   : > { %v10940_v61 = vadd.f32 %v4425_v48, %v4201_v6  ;;  %v4212_v38 = vpop.f32.mrf.mxu0  ;;  %v3537_v6 = vld [vmem:[#allocation3 + $0x1a2] sm:$0xff]  ;;  %6532 = vmatprep.subr.mxu0 %v10739_v49  ;;  %6325 = vmatprep.subr.mxu1 %v10739_v49 }
 0x3ea   : > { %v4427_v21 = vpop.f32.mrf.mxu1  ;;  %6533 = vmatpush2.msra.mxu0 %v6178_v18  ;;  %v6171_v18 = vld [vmem:[%s12318_s7 + $0x1a8] sm:$0xff] }
 0x3eb   : > { %v4215_v1 = vpop.f32.mrf.mxu0  ;;  %7920 = vmatmul.mubr.f32.gmra.mxu0 %v3531_v59  ;;  %6534 = vmatprep.subr.mxu0 %v10739_v49 }
 0x3ec   : > { %v4430_v3 = vpop.f32.mrf.mxu1  ;;  %7922 = vmatprep.mubr.f32.mxu0 %v3532_v62  ;;  %6535 = vmatpush2.msra.mxu0 %v6177_v9  ;;  %v6175_v62 = vld [vmem:[%s12318_s7 + $0x1c8] sm:$0xff] }
 0x3ed   : > { %v10955_v30 = vadd.f32 %v4430_v3, %v4206_v44  ;;  %v4217_v60 = vpop.f32.mrf.mxu0  ;;  %6536 = vmatprep.subr.mxu0 %v10739_v49  ;;  %v5318_v9 = vld [vmem:[#allocation4 + $0x9] sm:$0xff] }
 0x3ee   : > { %v4432_v63 = vpop.f32.mrf.mxu1  ;;  %6537 = vmatpush2.msra.mxu0 %v6176_v33 }
 0x3ef   : > { %v4220_v29 = vpop.f32.mrf.mxu0  ;;  %7923 = vmatmul.mubr.f32.gmra.mxu0 %v3533_v47  ;;  %6538 = vmatprep.subr.mxu0 %v10739_v49 }
 0x3f0   : > { %v4435_v0 = vpop.f32.mrf.mxu1  ;;  %7925 = vmatprep.mubr.f32.mxu0 %v10777_v53  ;;  %v4216_v53 = vadd.f32 %v10670_v8, %v4215_v1  ;;  %v4221_v38 = vadd.f32 %v10670_v8, %v4220_v29  ;;  %v6136_v1 = vld [vmem:[%s12318_s7 + $0x90] sm:$0xff]  ;;  %6539 = vmatpush2.msra.mxu0 %v6175_v62  ;;  %v6173_v29 = vld [vmem:[%s12318_s7 + $0x1b8] sm:$0xff] }
 0x3f1   : > { %v10971_v35 = vadd.f32 %v4435_v0, %v4211_v5  ;;  %v4222_v58 = vpop.f32.mrf.mxu0  ;;  %6540 = vmatprep.subr.mxu0 %v10739_v49  ;;  %v6135_v0 = vld [vmem:[%s12318_s7 + $0x88] sm:$0xff]  ;;  %v6197_v62 = vld [vmem:[%s12318_s7 + $0x278] sm:$0xff] }
 0x3f2   : > { %v4437_v10 = vpop.f32.mrf.mxu1  ;;  %6541 = vmatpush2.msra.mxu0 %v6174_v51 }
 0x3f3   : > { %v4225_v22 = vpop.f32.mrf.mxu0  ;;  %7926 = vmatmul.mubr.f32.gmra.mxu0 %v10788_v42  ;;  %v6137_v42 = vld [vmem:[%s12318_s7 + $0x98] sm:$0xff]  ;;  %6542 = vmatprep.subr.mxu0 %v10739_v49  ;;  %v6134_v10 = vld [vmem:[%s12318_s7 + $0x80] sm:$0xff] }
 0x3f4   : > { %v4440_v28 = vpop.f32.mrf.mxu1  ;;  %7928 = vmatprep.mubr.f32.mxu0 %v3536_v36  ;;  %6326 = vmatpush2.msra.mxu1 %v6137_v42  ;;  %v4226_v3 = vadd.f32 %v10670_v8, %v4225_v22 }
 0x3f5   : > { %v10987_v25 = vadd.f32 %v4440_v28, %v4216_v53  ;;  %v4227_v43 = vpop.f32.mrf.mxu0  ;;  %6327 = vmatprep.subr.mxu1 %v10739_v49  ;;  %6543 = vmatpush2.msra.mxu0 %v6173_v29  ;;  %v5317_v53 = vld [vmem:[#allocation4 + $0x1] sm:$0xff]  ;;  %v6196_v29 = vld [vmem:[%s12318_s7 + $0x270] sm:$0xff] }
 0x3f6   : > { %v4442_v48 = vpop.f32.mrf.mxu1  ;;  %6328 = vmatpush2.msra.mxu1 %v6136_v1  ;;  %6544 = vmatprep.subr.mxu0 %v10739_v49 }
 0x3f7   : > { %v4230_v26 = vpop.f32.mrf.mxu0  ;;  %7929 = vmatmul.mubr.f32.gmra.mxu0 %v3537_v6  ;;  %6329 = vmatprep.subr.mxu1 %v10739_v49  ;;  %v6170_v6 = vld [vmem:[%s12318_s7 + $0x1a0] sm:$0xff] }
 0x3f8   : > { %v4445_v21 = vpop.f32.mrf.mxu1  ;;  %v4231_v58 = vadd.f32 %v10670_v8, %v4230_v26  ;;  %6330 = vmatpush2.msra.mxu1 %v6135_v0  ;;  %6333 = vmatprep.mubr.f32.mxu1 %v5317_v53  ;;  %v6169_v26 = vld [vmem:[%s12318_s7 + $0x198] sm:$0xff] }
 0x3f9   : > { %v11003_v59 = vadd.f32 %v4445_v21, %v4221_v38  ;;  %v4232_v44 = vpop.f32.mrf.mxu0  ;;  %6331 = vmatprep.subr.mxu1 %v10739_v49 }
 0x3fa   : > { %v4447_v20 = vpop.f32.mrf.mxu1  ;;  %6332 = vmatpush2.msra.mxu1 %v6134_v10 }
 0x3fb   : > { %v4525_v60 = vpop.f32.mrf.mxu0  ;;  %6334 = vmatmul.mubr.f32.vlgmr.msra.gmra.mxu1 %v10739_v49  ;;  %6719 = vmatprep.subr.mxu1 %v10739_v49 }
 0x3fc   : > { %v4450_v15 = vpop.f32.mrf.mxu1  ;;  %v4526_v63 = vadd.f32 %v4525_v60, %v10678_v56  ;;  %v6172_v56 = vld [vmem:[%s12318_s7 + $0x1b0] sm:$0xff]  ;;  %6338 = vmatprep.mubr.f32.mxu1 %v5318_v9  ;;  %6720 = vmatpush1.msra.mxu1 %v6197_v62  ;;  %v6167_v60 = vld [vmem:[%s12318_s7 + $0x188] sm:$0xff] }
 0x3fd   : > { %v11019_v47 = vadd.f32 %v4450_v15, %v4226_v3  ;;  %v4527_v5 = vpop.f32.mrf.mxu0  ;;  %6545 = vmatpush2.msra.mxu0 %v6172_v56  ;;  %6721 = vmatprep.subr.mxu1 %v10739_v49  ;;  %v6166_v15 = vld [vmem:[%s12318_s7 + $0x180] sm:$0xff] }
 0x3fe   : > { %v4452_v14 = vpop.f32.mrf.mxu1  ;;  %6546 = vmatprep.subr.mxu0 %v10739_v49  ;;  %6722 = vmatpush1.msra.mxu1 %v6196_v29 }
 0x3ff   : > { %v4530_v36 = vpop.f32.mrf.mxu0  ;;  %6547 = vmatpush2.msra.mxu0 %v6171_v18  ;;  %6339 = vmatmul.mubr.f32.gmra.mxu1 %v10739_v49 }
 0x400   : > { %v4455_v24 = vpop.f32.mrf.mxu1  ;;  %v4531_v19 = vadd.f32 %v4530_v36, %v10688_v31  ;;  %6548 = vmatprep.subr.mxu0 %v10739_v49  ;;  %6723 = vmatprep.subr.mxu1 %v10739_v49 }
 0x401   : > { %v11038_v8 = vadd.f32 %v4455_v24, %v4231_v58  ;;  %v4532_v22 = vpop.f32.mrf.mxu0  ;;  %6549 = vmatpush2.msra.mxu0 %v6170_v6  ;;  %v6195_v24 = vld [vmem:[%s12318_s7 + $0x268] sm:$0xff] }
 0x402   : > { %v4457_v28 = vpop.f32.mrf.mxu1  ;;  %6550 = vmatprep.subr.mxu0 %v10739_v49  ;;  %6724 = vmatpush1.msra.mxu1 %v6195_v24 }
 0x403   : > { %v4535_v31 = vpop.f32.mrf.mxu0  ;;  %6551 = vmatpush2.msra.mxu0 %v6169_v26  ;;  %6725 = vmatprep.subr.mxu1 %v10739_v49 }
 0x404   : > { %v4536_v43 = vadd.f32 %v4535_v31, %v10697_v23  ;;  %v4750_v42 = vpop.f32.mrf.mxu1  ;;  %v6168_v23 = vld [vmem:[%s12318_s7 + $0x190] sm:$0xff]  ;;  %6552 = vmatprep.subr.mxu0 %v10739_v49 }
 0x405   : > { %v11051_v48 = vadd.f32 %v4750_v42, %v4526_v63  ;;  %v4537_v38 = vpop.f32.mrf.mxu0  ;;  %6553 = vmatpush2.msra.mxu0 %v6168_v23 }
 0x406   : > { %v4752_v33 = vpop.f32.mrf.mxu1  ;;  %6554 = vmatprep.subr.mxu0 %v10739_v49 }
 0x407   : > { %v4540_v21 = vpop.f32.mrf.mxu0  ;;  %6555 = vmatpush2.msra.mxu0 %v6167_v60 }
 0x408   : > { %v4541_v44 = vadd.f32 %v4540_v21, %v10706_v32  ;;  %v4755_v1 = vpop.f32.mrf.mxu1  ;;  %6556 = vmatprep.subr.mxu0 %v10739_v49 }
 0x409   : > { %v11066_v20 = vadd.f32 %v4755_v1, %v4531_v19  ;;  %v4542_v3 = vpop.f32.mrf.mxu0  ;;  %6557 = vmatpush2.msra.mxu0 %v6166_v15 }
 0x40a   : > { %v4757_v51 = vpop.f32.mrf.mxu1  ;;  %6944 = vmatprep.subr.mxu0 %v10739_v49 }
 0x40b   : > { %v4545_v32 = vpop.f32.mrf.mxu0 }
 0x40c   : > { %v4546_v63 = vadd.f32 %v4545_v32, %v10715_v55  ;;  %v4760_v5 = vpop.f32.mrf.mxu1 }
 0x40d   : > { %v11081_v14 = vadd.f32 %v4760_v5, %v4536_v43  ;;  %v4547_v0 = vpop.f32.mrf.mxu0 }
 0x40e   : > { %v4762_v58 = vpop.f32.mrf.mxu1 }
 0x40f   : > { %v4550_v36 = vpop.f32.mrf.mxu0 }
 0x410   : > { %v4551_v55 = vadd.f32 %v4550_v36, %v10724_v46  ;;  %v4765_v56 = vpop.f32.mrf.mxu1  ;;  %v6194_v46 = vld [vmem:[%s12318_s7 + $0x260] sm:$0xff] }
 0x411   : > { %v11090_v19 = vadd.f32 %v4765_v56, %v4541_v44  ;;  %v4552_v10 = vpop.f32.mrf.mxu0  ;;  %6726 = vmatpush1.msra.mxu1 %v6194_v46 }
 0x412   : > { %v4767_v53 = vpop.f32.mrf.mxu1  ;;  %6727 = vmatprep.subr.mxu1 %v10739_v49 }
 0x413   : > { %v4555_v22 = vpop.f32.mrf.mxu0 }
 0x414   : > { %v4556_v18 = vadd.f32 %v4555_v22, %v10733_v4  ;;  %v4770_v28 = vpop.f32.mrf.mxu1  ;;  %v6193_v4 = vld [vmem:[%s12318_s7 + $0x258] sm:$0xff] }
 0x415   : > { %v11097_v31 = vadd.f32 %v4770_v28, %v4546_v63  ;;  %v4557_v6 = vpop.f32.mrf.mxu0  ;;  %6728 = vmatpush1.msra.mxu1 %v6193_v4 }
 0x416   : > { %v4772_v43 = vpop.f32.mrf.mxu1  ;;  %6729 = vmatprep.subr.mxu1 %v10739_v49  ;;  %v11134_v6 = vld [vmem:[#allocation2] sm:$0xff] }
 0x417   : > { %v4560_v42 = vpop.f32.mrf.mxu0 }
 0x418   : > { %v4561_v9 = vadd.f32 %v4560_v42, %v10744_v7  ;;  %v4775_v38 = vpop.f32.mrf.mxu1  ;;  %v6192_v7 = vld [vmem:[%s12318_s7 + $0x250] sm:$0xff] }
 0x419   : > { %v11104_v26 = vadd.f32 %v4775_v38, %v4551_v55  ;;  %v4562_v33 = vpop.f32.mrf.mxu0  ;;  %6730 = vmatpush1.msra.mxu1 %v6192_v7 }
 0x41a   : > { %v4777_v21 = vpop.f32.mrf.mxu1  ;;  %6731 = vmatprep.subr.mxu1 %v10739_v49 }
 0x41b   : > { %v4565_v23 = vpop.f32.mrf.mxu0 }
 0x41c   : > { %v4566_v44 = vadd.f32 %v4565_v23, %v10753_v34  ;;  %v4780_v1 = vpop.f32.mrf.mxu1  ;;  %v6191_v34 = vld [vmem:[%s12318_s7 + $0x248] sm:$0xff] }
 0x41d   : > { %v11111_v62 = vadd.f32 %v4780_v1, %v4556_v18  ;;  %v4567_v3 = vpop.f32.mrf.mxu0  ;;  %6732 = vmatpush1.msra.mxu1 %v6191_v34 }
 0x41e   : > { %v4782_v60 = vpop.f32.mrf.mxu1  ;;  %6733 = vmatprep.subr.mxu1 %v10739_v49 }
 0x41f   : > { %v4570_v51 = vpop.f32.mrf.mxu0 }
 0x420   : > { %v4571_v32 = vadd.f32 %v4570_v51, %v10762_v27  ;;  %v4785_v15 = vpop.f32.mrf.mxu1  ;;  %v6190_v27 = vld [vmem:[%s12318_s7 + $0x240] sm:$0xff] }
 0x421   : > { %v11118_v63 = vadd.f32 %v4785_v15, %v4561_v9  ;;  %v4572_v5 = vpop.f32.mrf.mxu0  ;;  %6734 = vmatpush1.msra.mxu1 %v6190_v27 }
 0x422   : > { %v4787_v29 = vpop.f32.mrf.mxu1  ;;  %6735 = vmatprep.subr.mxu1 %v10739_v49 }
 0x423   : > { %v4575_v0 = vpop.f32.mrf.mxu0 }
 0x424   : > { %v4576_v58 = vadd.f32 %v4575_v0, %v10771_v45  ;;  %v4790_v36 = vpop.f32.mrf.mxu1  ;;  %v6189_v45 = vld [vmem:[%s12318_s7 + $0x238] sm:$0xff] }
 0x425   : > { %v11125_v55 = vadd.f32 %v4790_v36, %v4566_v44  ;;  %v4577_v56 = vpop.f32.mrf.mxu0  ;;  %6736 = vmatpush1.msra.mxu1 %v6189_v45 }
 0x426   : > { %v4792_v24 = vpop.f32.mrf.mxu1  ;;  %6737 = vmatprep.subr.mxu1 %v11134_v6 }
 0x427   : > { %v4580_v10 = vpop.f32.mrf.mxu0 }
 0x428   : > { %v4581_v53 = vadd.f32 %v4580_v10, %v10782_v40  ;;  %v4795_v22 = vpop.f32.mrf.mxu1  ;;  %v6188_v40 = vld [vmem:[%s12318_s7 + $0x230] sm:$0xff] }
 0x429   : > { %v11132_v18 = vadd.f32 %v4795_v22, %v4571_v32  ;;  %v4582_v28 = vpop.f32.mrf.mxu0  ;;  %6738 = vmatpush1.msra.mxu1 %v6188_v40 }
 0x42a   : > { %v4797_v46 = vpop.f32.mrf.mxu1  ;;  %6739 = vmatprep.subr.mxu1 %v11134_v6  ;;  %v6183_v28 = vld [vmem:[%s12318_s7 + $0x208] sm:$0xff] }
 0x42b   : > { %v4585_v43 = vpop.f32.mrf.mxu0 }
 0x42c   : > { %v4586_v49 = vadd.f32 %v4585_v43, %v10793_v11  ;;  %v4800_v42 = vpop.f32.mrf.mxu1  ;;  %v6187_v11 = vld [vmem:[%s12318_s7 + $0x228] sm:$0xff] }
 0x42d   : > { %v11141_v9 = vadd.f32 %v4800_v42, %v4576_v58  ;;  %v4587_v38 = vpop.f32.mrf.mxu0  ;;  %6740 = vmatpush1.msra.mxu1 %v6187_v11 }
 0x42e   : > { %v4802_v4 = vpop.f32.mrf.mxu1  ;;  %6741 = vmatprep.subr.mxu1 %v11134_v6 }
 0x42f   : > { %v4590_v33 = vpop.f32.mrf.mxu0 }
 0x430   : > { %v4591_v21 = vadd.f32 %v4590_v33, %v10801_v52  ;;  %v4805_v23 = vpop.f32.mrf.mxu1  ;;  %v6186_v52 = vld [vmem:[%s12318_s7 + $0x220] sm:$0xff]  ;;  %v6213_v33 = vld [vmem:[%s12318_s7 + $0x2f8] sm:$0xff] }
 0x431   : > { %v11148_v44 = vadd.f32 %v4805_v23, %v4581_v53  ;;  %v4592_v1 = vpop.f32.mrf.mxu0  ;;  %6742 = vmatpush1.msra.mxu1 %v6186_v52 }
 0x432   : > { %v4807_v7 = vpop.f32.mrf.mxu1  ;;  %6743 = vmatprep.subr.mxu1 %v11134_v6 }
 0x433   : > { %v4595_v3 = vpop.f32.mrf.mxu0 }
 0x434   : > { %v4596_v60 = vadd.f32 %v4595_v3, %v10809_v54  ;;  %v4810_v51 = vpop.f32.mrf.mxu1  ;;  %v6185_v54 = vld [vmem:[%s12318_s7 + $0x218] sm:$0xff]  ;;  %v6212_v3 = vld [vmem:[%s12318_s7 + $0x2f0] sm:$0xff] }
 0x435   : > { %v11155_v32 = vadd.f32 %v4810_v51, %v4586_v49  ;;  %v4597_v15 = vpop.f32.mrf.mxu0  ;;  %6744 = vmatpush1.msra.mxu1 %v6185_v54 }
 0x436   : > { %v4812_v34 = vpop.f32.mrf.mxu1  ;;  %6745 = vmatprep.subr.mxu1 %v11134_v6 }
 0x437   : > { %v4600_v5 = vpop.f32.mrf.mxu0 }
 0x438   : > { %v4601_v29 = vadd.f32 %v4600_v5, %v10817_v13  ;;  %v4815_v0 = vpop.f32.mrf.mxu1  ;;  %v6184_v13 = vld [vmem:[%s12318_s7 + $0x210] sm:$0xff]  ;;  %v6211_v5 = vld [vmem:[%s12318_s7 + $0x2e8] sm:$0xff] }
 0x439   : > { %v11162_v58 = vadd.f32 %v4815_v0, %v4591_v21  ;;  %v4602_v36 = vpop.f32.mrf.mxu0  ;;  %6746 = vmatpush1.msra.mxu1 %v6184_v13 }
 0x43a   : > { %v4817_v27 = vpop.f32.mrf.mxu1  ;;  %6747 = vmatprep.subr.mxu1 %v11134_v6 }
 0x43b   : > { %v4605_v56 = vpop.f32.mrf.mxu0  ;;  %6748 = vmatpush1.msra.mxu1 %v6183_v28  ;;  %v6209_v28 = vld [vmem:[%s12318_s7 + $0x2d8] sm:$0xff] }
 0x43c   : > { %v4606_v24 = vadd.f32 %v4605_v56, %v10824_v17  ;;  %v4820_v10 = vpop.f32.mrf.mxu1  ;;  %v6182_v17 = vld [vmem:[%s12318_s7 + $0x200] sm:$0xff]  ;;  %6749 = vmatprep.subr.mxu1 %v11134_v6 }
 0x43d   : > { %v11169_v53 = vadd.f32 %v4820_v10, %v4596_v60  ;;  %v4607_v22 = vpop.f32.mrf.mxu0  ;;  %6750 = vmatpush1.msra.mxu1 %v6182_v17  ;;  %v6210_v56 = vld [vmem:[%s12318_s7 + $0x2e0] sm:$0xff] }
 0x43e   : > { %v4822_v45 = vpop.f32.mrf.mxu1  ;;  %6751 = vmatprep.subr.mxu1 %v11134_v6 }
 0x43f   : > { %v4610_v46 = vpop.f32.mrf.mxu0  ;;  %6752 = vmatpush2.msra.mxu1 %v6213_v33 }
 0x440   : > { %v4611_v43 = vadd.f32 %v4610_v46, %v10831_v16  ;;  %v4825_v49 = vpop.f32.mrf.mxu1  ;;  %6753 = vmatprep.subr.mxu1 %v11134_v6 }
 0x441   : > { %v11180_v42 = vadd.f32 %v4825_v49, %v4601_v29  ;;  %v4612_v40 = vpop.f32.mrf.mxu0  ;;  %6754 = vmatpush2.msra.mxu1 %v6212_v3 }
 0x442   : > { %v4827_v38 = vpop.f32.mrf.mxu1  ;;  %6755 = vmatprep.subr.mxu1 %v11134_v6 }
 0x443   : > { %v4615_v4 = vpop.f32.mrf.mxu0  ;;  %6756 = vmatpush2.msra.mxu1 %v6211_v5  ;;  %v6208_v38 = vld [vmem:[%s12318_s7 + $0x2d0] sm:$0xff] }
 0x444   : > { %v4616_v21 = vadd.f32 %v4615_v4, %v10841_v50  ;;  %v4830_v23 = vpop.f32.mrf.mxu1  ;;  %6757 = vmatprep.subr.mxu1 %v11134_v6 }
 0x445   : > { %v11187_v16 = vadd.f32 %v4830_v23, %v4606_v24  ;;  %v4617_v11 = vpop.f32.mrf.mxu0  ;;  %6758 = vmatpush2.msra.mxu1 %v6210_v56 }
 0x446   : > { %v4832_v1 = vpop.f32.mrf.mxu1  ;;  %6759 = vmatprep.subr.mxu1 %v11134_v6 }
 0x447   : > { %v4620_v7 = vpop.f32.mrf.mxu0  ;;  %6760 = vmatpush2.msra.mxu1 %v6209_v28  ;;  %v6207_v1 = vld [vmem:[%s12318_s7 + $0x2c8] sm:$0xff] }
 0x448   : > { %v4621_v60 = vadd.f32 %v4620_v7, %v10855_v37  ;;  %v4835_v51 = vpop.f32.mrf.mxu1  ;;  %6761 = vmatprep.subr.mxu1 %v11134_v6 }
 0x449   : > { %v11194_v52 = vadd.f32 %v4835_v51, %v4611_v43  ;;  %v4622_v50 = vpop.f32.mrf.mxu0  ;;  %6762 = vmatpush2.msra.mxu1 %v6208_v38 }
 0x44a   : > { %v4837_v15 = vpop.f32.mrf.mxu1  ;;  %6763 = vmatprep.subr.mxu1 %v11134_v6 }
 0x44b   : > { %v4625_v34 = vpop.f32.mrf.mxu0  ;;  %6764 = vmatpush2.msra.mxu1 %v6207_v1  ;;  %v6206_v15 = vld [vmem:[%s12318_s7 + $0x2c0] sm:$0xff] }
 0x44c   : > { %v4626_v29 = vadd.f32 %v4625_v34, %v10867_v39  ;;  %v4840_v0 = vpop.f32.mrf.mxu1  ;;  %6765 = vmatprep.subr.mxu1 %v11134_v6 }
 0x44d   : > { %v11201_v54 = vadd.f32 %v4840_v0, %v4616_v21  ;;  %v4627_v37 = vpop.f32.mrf.mxu0  ;;  %6766 = vmatpush2.msra.mxu1 %v6206_v15 }
 0x44e   : > { %v4842_v36 = vpop.f32.mrf.mxu1  ;;  %6767 = vmatprep.subr.mxu1 %v11134_v6 }
 0x44f   : > { %v4630_v27 = vpop.f32.mrf.mxu0  ;;  %v6205_v36 = vld [vmem:[%s12318_s7 + $0x2b8] sm:$0xff] }
 0x450   : > { %v4631_v24 = vadd.f32 %v4630_v27, %v10881_v2  ;;  %v4845_v10 = vpop.f32.mrf.mxu1  ;;  %6768 = vmatpush2.msra.mxu1 %v6205_v36  ;;  %v6199_v36 = vld [vmem:[%s12318_s7 + $0x288] sm:$0xff] }
 0x451   : > { %v11208_v13 = vadd.f32 %v4845_v10, %v4621_v60  ;;  %v4632_v39 = vpop.f32.mrf.mxu0  ;;  %6769 = vmatprep.subr.mxu1 %v11134_v6 }
 0x452   : > { %v4847_v22 = vpop.f32.mrf.mxu1 }
 0x453   : > { %v4635_v45 = vpop.f32.mrf.mxu0  ;;  %v6204_v22 = vld [vmem:[%s12318_s7 + $0x2b0] sm:$0xff] }
 0x454   : > { %v4636_v46 = vadd.f32 %v4635_v45, %v10895_v12  ;;  %v4850_v17 = vpop.f32.mrf.mxu1  ;;  %6770 = vmatpush2.msra.mxu1 %v6204_v22 }
 0x455   : > { %v11215_v43 = vadd.f32 %v4850_v17, %v4626_v29  ;;  %v4637_v2 = vpop.f32.mrf.mxu0  ;;  %6771 = vmatprep.subr.mxu1 %v11134_v6 }
 0x456   : > { %v4852_v49 = vpop.f32.mrf.mxu1 }
 0x457   : > { %v4640_v40 = vpop.f32.mrf.mxu0  ;;  %v6203_v49 = vld [vmem:[%s12318_s7 + $0x2a8] sm:$0xff] }
 0x458   : > { %v4641_v4 = vadd.f32 %v4640_v40, %v10910_v41  ;;  %v4855_v33 = vpop.f32.mrf.mxu1  ;;  %6772 = vmatpush2.msra.mxu1 %v6203_v49  ;;  %v11308_v49 = vld [vmem:[%s12318_s7 + $0x478] sm:$0xff] }
 0x459   : > { %v11222_v21 = vadd.f32 %v4855_v33, %v4631_v24  ;;  %v4642_v12 = vpop.f32.mrf.mxu0  ;;  %6773 = vmatprep.subr.mxu1 %v11134_v6 }
 0x45a   : > { %v4857_v23 = vpop.f32.mrf.mxu1 }
 0x45b   : > { %v4645_v11 = vpop.f32.mrf.mxu0  ;;  %v6202_v23 = vld [vmem:[%s12318_s7 + $0x2a0] sm:$0xff] }
 0x45c   : > { %v4646_v7 = vadd.f32 %v4645_v11, %v10925_v57  ;;  %v4860_v3 = vpop.f32.mrf.mxu1  ;;  %6774 = vmatpush2.msra.mxu1 %v6202_v23 }
 0x45d   : > { %v11229_v60 = vadd.f32 %v4860_v3, %v4636_v46  ;;  %v4647_v41 = vpop.f32.mrf.mxu0  ;;  %6775 = vmatprep.subr.mxu1 %v11134_v6 }
 0x45e   : > { %v4862_v51 = vpop.f32.mrf.mxu1  ;;  %v6201_v41 = vld [vmem:[%s12318_s7 + $0x298] sm:$0xff] }
 0x45f   : > { %v4650_v50 = vpop.f32.mrf.mxu0  ;;  %6776 = vmatpush2.msra.mxu1 %v6201_v41 }
 0x460   : > { %v4651_v34 = vadd.f32 %v4650_v50, %v10940_v61  ;;  %v4865_v5 = vpop.f32.mrf.mxu1  ;;  %6777 = vmatprep.subr.mxu1 %v11134_v6 }
 0x461   : > { %v11236_v29 = vadd.f32 %v4865_v5, %v4641_v4  ;;  %v4652_v57 = vpop.f32.mrf.mxu0  ;;  %v6200_v5 = vld [vmem:[%s12318_s7 + $0x290] sm:$0xff] }
 0x462   : > { %v4867_v0 = vpop.f32.mrf.mxu1  ;;  %6778 = vmatpush2.msra.mxu1 %v6200_v5 }
 0x463   : > { %v4655_v37 = vpop.f32.mrf.mxu0  ;;  %6779 = vmatprep.subr.mxu1 %v11134_v6 }
 0x464   : > { %v4656_v27 = vadd.f32 %v4655_v37, %v10955_v30  ;;  %v4870_v56 = vpop.f32.mrf.mxu1  ;;  %6780 = vmatpush2.msra.mxu1 %v6199_v36 }
 0x465   : > { %v11243_v24 = vadd.f32 %v4870_v56, %v4646_v7  ;;  %v4657_v61 = vpop.f32.mrf.mxu0  ;;  %6781 = vmatprep.subr.mxu1 %v11134_v6 }
 0x466   : > { %v4872_v10 = vpop.f32.mrf.mxu1 }
 0x467   : > { %v4660_v39 = vpop.f32.mrf.mxu0 }
 0x468   : > { %v11250_v45 = vadd.f32 %v4660_v39, %v10971_v35  ;;  %v4875_v28 = vpop.f32.mrf.mxu1 }
 0x469   : > { %v11252_v46 = vadd.f32 %v4875_v28, %v4651_v34  ;;  %v4662_v30 = vpop.f32.mrf.mxu0 }
 0x46a   : > { %v4877_v17 = vpop.f32.mrf.mxu1  ;;  %v6198_v30 = vld [vmem:[%s12318_s7 + $0x280] sm:$0xff] }
 0x46b   : > { %v4665_v2 = vpop.f32.mrf.mxu0  ;;  %6782 = vmatpush2.msra.mxu1 %v6198_v30  ;;  %v6228_v30 = vld [vmem:[%s12318_s7 + $0x370] sm:$0xff] }
 0x46c   : > { %v11259_v40 = vadd.f32 %v4665_v2, %v10987_v25  ;;  %v4880_v38 = vpop.f32.mrf.mxu1  ;;  %8011 = vmatprep.subr.mxu1 %v11308_v49 }
 0x46d   : > { %v11261_v35 = vadd.f32 %v4880_v38, %v4656_v27  ;;  %v4667_v4 = vpop.f32.mrf.mxu0 }
 0x46e   : > { %v4882_v33 = vpop.f32.mrf.mxu1 }
 0x46f   : > { %v4670_v12 = vpop.f32.mrf.mxu0 }
 0x470   : > { %v11268_v11 = vadd.f32 %v4670_v12, %v11003_v59  ;;  %v11270_v1 = vpop.f32.mrf.mxu1 }
 0x471   : > { %v4672_v25 = vpop.f32.mrf.mxu0 }
 0x472   : > { %v4887_v7 = vpop.f32.mrf.mxu1 }
 0x473   : > { %v4675_v3 = vpop.f32.mrf.mxu0 }
 0x474   : > { %v11277_v51 = vadd.f32 %v4675_v3, %v11019_v47  ;;  %v11279_v50 = vpop.f32.mrf.mxu1 }
 0x475   : > { %v4677_v59 = vpop.f32.mrf.mxu0 }
 0x476   : > { %v4892_v15 = vpop.f32.mrf.mxu1 }
 0x477   : > { %v11282_v34 = vpop.f32.mrf.mxu0 }
 0x478   : > { %v11287_v57 = vpop.f32.mrf.mxu1 }
 0x479   : > { %v4682_v0 = vpop.f32.mrf.mxu0 }
 0x47a   : > { %v4897_v47 = vpop.f32.mrf.mxu1 }
 0x47b   : > { %v7885_v37 = vpop.f32.mrf.mxu0 }
 0x47c   : > { %v11293_v27 = vpop.f32.mrf.mxu1  ;;  %v4981_v56 = vadd.f32 %v7885_v37, %v11066_v20 }
 0x47d   : > { %v4975_v61 = vpop.f32.mrf.mxu0 }
 0x47e   : > { %v5135_v10 = vmax.f32 %v4981_v56, 0.0  ;;  %v4902_v39 = vpop.f32.mrf.mxu1  ;;  %v4976_v22 = vadd.f32 %v4975_v61, %v11051_v48 }
 0x47f   : > { %v7888_v28 = vpop.f32.mrf.mxu0  ;;  %v5382_v39 = vld [vmem:[#allocation4 + $0xa] sm:$0xff] }
 0x480   : > { %5222 = vst.msk [vmem:[#allocation4 + $0x21] sm:$0xff] %vm700_vm0, %v5135_v10  ;;  %v5134_v17 = vmax.f32 %v4976_v22, 0.0  ;;  %v11302_v2 = vpop.f32.mrf.mxu1  ;;  %v4991_v20 = vadd.f32 %v7888_v28, %v11090_v19 }
 0x481   : > { %v4985_v38 = vpop.f32.mrf.mxu0 }
 0x482   : > { %5221 = vst.msk [vmem:[#allocation4 + $0x19] sm:$0xff] %vm700_vm0, %v5134_v17  ;;  %v5137_v48 = vmax.f32 %v4991_v20, 0.0  ;;  %v4986_v4 = vadd.f32 %v4985_v38, %v11081_v14  ;;  %v4907_v33 = vpop.f32.mrf.mxu1  ;;  %v5381_v14 = vld [vmem:[#allocation4 + $0x2] sm:$0xff] }
 0x483   : > { %v7891_v12 = vpop.f32.mrf.mxu0 }
 0x484   : > { %5224 = vst.msk [vmem:[#allocation4 + $0x39] sm:$0xff] %vm700_vm0, %v5137_v48  ;;  %v5136_v23 = vmax.f32 %v4986_v4, 0.0  ;;  %v5001_v19 = vadd.f32 %v7891_v12, %v11104_v26 }
 0x485   : > { %v4995_v25 = vpop.f32.mrf.mxu0 }
 0x486   : > { %5223 = vst.msk [vmem:[#allocation4 + $0x31] sm:$0xff] %vm700_vm0, %v5136_v23  ;;  %v5139_v7 = vmax.f32 %v5001_v19, 0.0  ;;  %v4996_v3 = vadd.f32 %v4995_v25, %v11097_v31  ;;  %v6229_v31 = vld [vmem:[%s12318_s7 + $0x378] sm:$0xff]  ;;  %v6227_v23 = vld [vmem:[%s12318_s7 + $0x368] sm:$0xff] }
 0x487   : > { %v7894_v41 = vpop.f32.mrf.mxu0  ;;  %v5320_v56 = vld [vmem:[#allocation4 + $0x21] sm:$0xff] }
 0x488   : > { %5226 = vst.msk [vmem:[#allocation4 + $0x51] sm:$0xff] %vm700_vm0, %v5139_v7  ;;  %v5138_v59 = vmax.f32 %v4996_v3, 0.0  ;;  %v5011_v15 = vadd.f32 %v7894_v41, %v11118_v63 }
 0x489   : > { %v5005_v5 = vpop.f32.mrf.mxu0  ;;  %v5319_v0 = vld [vmem:[#allocation4 + $0x19] sm:$0xff] }
 0x48a   : > { %v5445_v47 = vld [vmem:[#allocation4 + $0x18] sm:$0xff]  ;;  %5225 = vst.msk [vmem:[#allocation4 + $0x49] sm:$0xff] %vm700_vm0, %v5138_v59  ;;  %v5141_v37 = vmax.f32 %v5011_v15, 0.0  ;;  %v5006_v26 = vadd.f32 %v5005_v5, %v11111_v62  ;;  %6343 = vmatprep.mubr.f32.mxu1 %v5319_v0  ;;  %v5446_v63 = vld [vmem:[#allocation4 + $0x20] sm:$0xff] }
 0x48b   : > { %6558 = vmatprep.mubr.f32.mxu0 %v5445_v47  ;;  %v7897_v36 = vpop.f32.mrf.mxu0  ;;  %6344 = vmatmul.mubr.f32.gmra.mxu1 %v5445_v47  ;;  %v11339_v12 = vld [vmem:[#allocation4 + $0x1a] sm:$0xff]  ;;  %v11356_v15 = vld [vmem:[#allocation4 + $0x22] sm:$0xff] }
 0x48c   : > { %6559 = vmatmul.mubr.f32.vlgmr.msra.gmra.mxu0 %v5381_v14  ;;  %5228 = vst.msk [vmem:[#allocation4 + $0x69] sm:$0xff] %vm700_vm0, %v5141_v37  ;;  %v5140_v61 = vmax.f32 %v5006_v26, 0.0  ;;  %v5021_v10 = vadd.f32 %v7897_v36, %v11132_v18  ;;  %6348 = vmatprep.mubr.f32.mxu1 %v5320_v56  ;;  %v6226_v14 = vld [vmem:[%s12318_s7 + $0x360] sm:$0xff]  ;;  %v6225_v56 = vld [vmem:[%s12318_s7 + $0x358] sm:$0xff] }
 0x48d   : > { %6563 = vmatprep.mubr.f32.mxu0 %v5446_v63  ;;  %v5015_v62 = vpop.f32.mrf.mxu0  ;;  %6945 = vmatpush1.msra.mxu0 %v6229_v31  ;;  %v11332_v18 = vld [vmem:[#allocation4 + $0x31] sm:$0xff] }
 0x48e   : > { %5227 = vst.msk [vmem:[#allocation4 + $0x61] sm:$0xff] %vm700_vm0, %v5140_v61  ;;  %v5143_v22 = vmax.f32 %v5021_v10, 0.0  ;;  %v5016_v28 = vadd.f32 %v5015_v62, %v11125_v55  ;;  %6946 = vmatprep.subr.mxu0 %v11134_v6  ;;  %v5447_v20 = vld [vmem:[#allocation4 + $0x30] sm:$0xff]  ;;  %v11348_v25 = vld [vmem:[#allocation4 + $0x38] sm:$0xff] }
 0x48f   : > { %v7900_v17 = vpop.f32.mrf.mxu0  ;;  %6349 = vmatmul.mubr.f32.gmra.mxu1 %v5446_v63  ;;  %6947 = vmatpush1.msra.mxu0 %v6228_v30  ;;  %v11374_v36 = vld [vmem:[#allocation4 + $0x32] sm:$0xff] }
 0x490   : > { %6564 = vmatmul.mubr.f32.gmra.mxu0 %v5382_v39  ;;  %5230 = vst.msk [vmem:[#allocation4 + $0x81] sm:$0xff] %vm700_vm0, %v5143_v22  ;;  %v5142_v38 = vmax.f32 %v5016_v28, 0.0  ;;  %v5031_v48 = vadd.f32 %v7900_v17, %v11148_v44  ;;  %6353 = vmatprep.mubr.f32.mxu1 %v11332_v18  ;;  %v11346_v44 = vld [vmem:[#allocation4 + $0x39] sm:$0xff]  ;;  %v11382_v63 = vld [vmem:[#allocation4 + $0x51] sm:$0xff] }
 0x491   : > { %6568 = vmatprep.mubr.f32.mxu0 %v5447_v20  ;;  %v5025_v55 = vpop.f32.mrf.mxu0  ;;  %6948 = vmatprep.subr.mxu0 %v11134_v6  ;;  %v11364_v5 = vld [vmem:[#allocation4 + $0x49] sm:$0xff]  ;;  %v11392_v28 = vld [vmem:[#allocation4 + $0x3a] sm:$0xff] }
 0x492   : > { %5229 = vst.msk [vmem:[#allocation4 + $0x79] sm:$0xff] %vm700_vm0, %v5142_v38  ;;  %v5145_v4 = vmax.f32 %v5031_v48, 0.0  ;;  %v5026_v33 = vadd.f32 %v5025_v55, %v11141_v9  ;;  %6949 = vmatpush1.msra.mxu0 %v6227_v23  ;;  %v11366_v0 = vld [vmem:[#allocation4 + $0x48] sm:$0xff]  ;;  %v11384_v61 = vld [vmem:[#allocation4 + $0x50] sm:$0xff] }
 0x493   : > { %v7903_v19 = vpop.f32.mrf.mxu0  ;;  %6354 = vmatmul.mubr.f32.gmra.mxu1 %v5447_v20  ;;  %6950 = vmatprep.subr.mxu0 %v11134_v6  ;;  %v6224_v30 = vld [vmem:[%s12318_s7 + $0x350] sm:$0xff]  ;;  %v6223_v23 = vld [vmem:[%s12318_s7 + $0x348] sm:$0xff] }
 0x494   : > { %6569 = vmatmul.mubr.f32.gmra.mxu0 %v11339_v12  ;;  %5232 = vst.msk [vmem:[#allocation4 + $0x99] sm:$0xff] %vm700_vm0, %v5145_v4  ;;  %v5144_v7 = vmax.f32 %v5026_v33, 0.0  ;;  %v5041_v9 = vadd.f32 %v7903_v19, %v11162_v58  ;;  %6358 = vmatprep.mubr.f32.mxu1 %v11346_v44  ;;  %v11410_v33 = vld [vmem:[#allocation4 + $0x4a] sm:$0xff] }
 0x495   : > { %6573 = vmatprep.mubr.f32.mxu0 %v11348_v25  ;;  %v5035_v3 = vpop.f32.mrf.mxu0  ;;  %6951 = vmatpush1.msra.mxu0 %v6226_v14  ;;  %v11400_v17 = vld [vmem:[#allocation4 + $0x61] sm:$0xff]  ;;  %v11418_v19 = vld [vmem:[#allocation4 + $0x69] sm:$0xff]  ;;  %v11428_v14 = vld [vmem:[#allocation4 + $0x52] sm:$0xff] }
 0x496   : > { %5231 = vst.msk [vmem:[#allocation4 + $0x91] sm:$0xff] %vm700_vm0, %v5144_v7  ;;  %v5147_v41 = vmax.f32 %v5041_v9, 0.0  ;;  %v5036_v59 = vadd.f32 %v5035_v3, %v11155_v32  ;;  %6952 = vmatprep.subr.mxu0 %v11134_v6  ;;  %v11402_v20 = vld [vmem:[#allocation4 + $0x60] sm:$0xff]  ;;  %v11420_v7 = vld [vmem:[#allocation4 + $0x68] sm:$0xff] }
 0x497   : > { %v7906_v58 = vpop.f32.mrf.mxu0  ;;  %6359 = vmatmul.mubr.f32.gmra.mxu1 %v11348_v25  ;;  %6953 = vmatpush1.msra.mxu0 %v6225_v56 }
 0x498   : > { %6574 = vmatmul.mubr.f32.gmra.mxu0 %v11356_v15  ;;  %5234 = vst.msk [vmem:[#allocation4 + $0xb1] sm:$0xff] %vm700_vm0, %v5147_v41  ;;  %v5146_v32 = vmax.f32 %v5036_v59, 0.0  ;;  %v5051_v47 = vadd.f32 %v7906_v58, %v11180_v42  ;;  %6363 = vmatprep.mubr.f32.mxu1 %v11364_v5  ;;  %v6222_v58 = vld [vmem:[%s12318_s7 + $0x340] sm:$0xff] }
 0x499   : > { %6578 = vmatprep.mubr.f32.mxu0 %v11366_v0  ;;  %v5045_v37 = vpop.f32.mrf.mxu0  ;;  %6954 = vmatprep.subr.mxu0 %v11134_v6 }
 0x49a   : > { %5233 = vst.msk [vmem:[#allocation4 + $0xa9] sm:$0xff] %vm700_vm0, %v5146_v32  ;;  %v5149_v26 = vmax.f32 %v5051_v47, 0.0  ;;  %v5046_v31 = vadd.f32 %v5045_v37, %v11169_v53  ;;  %6955 = vmatpush1.msra.mxu0 %v6224_v30  ;;  %v11436_v32 = vld [vmem:[#allocation4 + $0x79] sm:$0xff]  ;;  %v4886_v30 = vadd.f32 %v11270_v1, %v11250_v45 }
 0x49b   : > { %v7909_v42 = vpop.f32.mrf.mxu0  ;;  %6364 = vmatmul.mubr.f32.gmra.mxu1 %v11366_v0  ;;  %6956 = vmatprep.subr.mxu0 %v11134_v6  ;;  %v11438_v47 = vld [vmem:[#allocation4 + $0x78] sm:$0xff] }
 0x49c   : > { %6579 = vmatmul.mubr.f32.gmra.mxu0 %v11374_v36  ;;  %5236 = vst.msk [vmem:[#allocation4 + $0xc9] sm:$0xff] %vm700_vm0, %v5149_v26  ;;  %v5148_v53 = vmax.f32 %v5046_v31, 0.0  ;;  %v5061_v10 = vadd.f32 %v7909_v42, %v11194_v52  ;;  %6368 = vmatprep.mubr.f32.mxu1 %v11382_v63  ;;  %v11446_v42 = vld [vmem:[#allocation4 + $0x62] sm:$0xff] }
 0x49d   : > { %6583 = vmatprep.mubr.f32.mxu0 %v11384_v61  ;;  %v5055_v39 = vpop.f32.mrf.mxu0  ;;  %6957 = vmatpush1.msra.mxu0 %v6223_v23  ;;  %v11476_v45 = vld [vmem:[#allocation4 + $0x90] sm:$0xff]  ;;  %v4896_v23 = vadd.f32 %v11287_v57, %v11268_v11  ;;  %v11495_v11 = vld [vmem:[#allocation4 + $0x98] sm:$0xff]  ;;  %v4681_v57 = vadd.f32 %v11282_v34, %v11038_v8  ;;  %v6218_v8 = vld [vmem:[%s12318_s7 + $0x320] sm:$0xff] }
 0x49e   : > { %5235 = vst.msk [vmem:[#allocation4 + $0xc1] sm:$0xff] %vm700_vm0, %v5148_v53  ;;  %v5151_v62 = vmax.f32 %v5061_v10, 0.0  ;;  %v5056_v22 = vadd.f32 %v5055_v39, %v11187_v16  ;;  %6958 = vmatprep.subr.mxu0 %v11134_v6  ;;  %v6221_v53 = vld [vmem:[%s12318_s7 + $0x338] sm:$0xff]  ;;  %v11454_v10 = vld [vmem:[#allocation4 + $0x81] sm:$0xff] }
 0x49f   : > { %v7912_v52 = vpop.f32.mrf.mxu0  ;;  %6369 = vmatmul.mubr.f32.gmra.mxu1 %v11384_v61  ;;  %6959 = vmatpush1.msra.mxu0 %v6222_v58  ;;  %v11456_v39 = vld [vmem:[#allocation4 + $0x80] sm:$0xff] }
 0x4a0   : > { %6584 = vmatmul.mubr.f32.gmra.mxu0 %v11392_v28  ;;  %5238 = vst.msk [vmem:[#allocation4 + $0xe1] sm:$0xff] %vm700_vm0, %v5151_v62  ;;  %v5150_v16 = vmax.f32 %v5056_v22, 0.0  ;;  %v5071_v38 = vadd.f32 %v7912_v52, %v11208_v13  ;;  %6373 = vmatprep.mubr.f32.mxu1 %v11400_v17 }
 0x4a1   : > { %6588 = vmatprep.mubr.f32.mxu0 %v11402_v20  ;;  %v5065_v48 = vpop.f32.mrf.mxu0  ;;  %6960 = vmatprep.subr.mxu0 %v11134_v6  ;;  %v11514_v34 = vld [vmem:[#allocation4 + $0xa9] sm:$0xff] }
 0x4a2   : > { %5237 = vst.msk [vmem:[#allocation4 + $0xd9] sm:$0xff] %vm700_vm0, %v5150_v16  ;;  %v5153_v55 = vmax.f32 %v5071_v38, 0.0  ;;  %v5066_v4 = vadd.f32 %v5065_v48, %v11201_v54  ;;  %6961 = vmatpush1.msra.mxu0 %v6221_v53  ;;  %v11466_v38 = vld [vmem:[#allocation4 + $0x6a] sm:$0xff] }
 0x4a3   : > { %v7915_v13 = vpop.f32.mrf.mxu0  ;;  %6374 = vmatmul.mubr.f32.gmra.mxu1 %v11402_v20  ;;  %6962 = vmatprep.subr.mxu0 %v11134_v6 }
 0x4a4   : > { %6589 = vmatmul.mubr.f32.gmra.mxu0 %v11410_v33  ;;  %5240 = vst.msk [vmem:[#allocation4 + $0xf9] sm:$0xff] %vm700_vm0, %v5153_v55  ;;  %v5152_v54 = vmax.f32 %v5066_v4, 0.0  ;;  %v5081_v9 = vadd.f32 %v7915_v13, %v11222_v21  ;;  %6378 = vmatprep.mubr.f32.mxu1 %v11418_v19  ;;  %v11474_v55 = vld [vmem:[#allocation4 + $0x91] sm:$0xff] }
 0x4a5   : > { %6593 = vmatprep.mubr.f32.mxu0 %v11420_v7  ;;  %v5075_v3 = vpop.f32.mrf.mxu0 }
 0x4a6   : > { %5239 = vst.msk [vmem:[#allocation4 + $0xf1] sm:$0xff] %vm700_vm0, %v5152_v54  ;;  %v5155_v41 = vmax.f32 %v5081_v9, 0.0  ;;  %v5076_v59 = vadd.f32 %v5075_v3, %v11215_v43  ;;  %v11485_v9 = vld [vmem:[#allocation4 + $0x7a] sm:$0xff]  ;;  %v6219_v3 = vld [vmem:[%s12318_s7 + $0x328] sm:$0xff] }
 0x4a7   : > { %v7918_v21 = vpop.f32.mrf.mxu0  ;;  %6379 = vmatmul.mubr.f32.gmra.mxu1 %v11420_v7 }
 0x4a8   : > { %6594 = vmatmul.mubr.f32.gmra.mxu0 %v11428_v14  ;;  %5242 = vst.msk [vmem:[#allocation4 + $0x111] sm:$0xff] %vm700_vm0, %v5155_v41  ;;  %v5154_v43 = vmax.f32 %v5076_v59, 0.0  ;;  %v5091_v37 = vadd.f32 %v7918_v21, %v11236_v29  ;;  %6383 = vmatprep.mubr.f32.mxu1 %v11436_v32  ;;  %v11493_v59 = vld [vmem:[#allocation4 + $0x99] sm:$0xff] }
 0x4a9   : > { %6598 = vmatprep.mubr.f32.mxu0 %v11438_v47  ;;  %v5085_v26 = vpop.f32.mrf.mxu0 }
 0x4aa   : > { %5241 = vst.msk [vmem:[#allocation4 + $0x109] sm:$0xff] %vm700_vm0, %v5154_v43  ;;  %v5157_v31 = vmax.f32 %v5091_v37, 0.0  ;;  %v5086_v56 = vadd.f32 %v5085_v26, %v11229_v60  ;;  %v4906_v37 = vadd.f32 %v11302_v2, %v4681_v57  ;;  %v11516_v2 = vld [vmem:[#allocation4 + $0xa8] sm:$0xff]  ;;  %v6214_v57 = vld [vmem:[%s12318_s7 + $0x300] sm:$0xff] }
 0x4ab   : > { %v7921_v29 = vpop.f32.mrf.mxu0  ;;  %6384 = vmatmul.mubr.f32.gmra.mxu1 %v11438_v47 }
 0x4ac   : > { %6599 = vmatmul.mubr.f32.gmra.mxu0 %v11446_v42  ;;  %5244 = vst.msk [vmem:[#allocation4 + $0x129] sm:$0xff] %vm700_vm0, %v5157_v31  ;;  %v5156_v60 = vmax.f32 %v5086_v56, 0.0  ;;  %v5101_v62 = vadd.f32 %v7921_v29, %v11252_v46  ;;  %6388 = vmatprep.mubr.f32.mxu1 %v11454_v10  ;;  %v6220_v46 = vld [vmem:[%s12318_s7 + $0x330] sm:$0xff]  ;;  %v4901_v56 = vadd.f32 %v11293_v27, %v11277_v51  ;;  %v6217_v51 = vld [vmem:[%s12318_s7 + $0x318] sm:$0xff] }
 0x4ad   : > { %6603 = vmatprep.mubr.f32.mxu0 %v11456_v39  ;;  %v5095_v22 = vpop.f32.mrf.mxu0  ;;  %6963 = vmatpush1.msra.mxu0 %v6220_v46  ;;  %v11532_v27 = vld [vmem:[#allocation4 + $0xb1] sm:$0xff]  ;;  %v11540_v46 = vld [vmem:[#allocation4 + $0x9a] sm:$0xff] }
 0x4ae   : > { %5243 = vst.msk [vmem:[#allocation4 + $0x121] sm:$0xff] %vm700_vm0, %v5156_v60  ;;  %v5159_v52 = vmax.f32 %v5101_v62, 0.0  ;;  %v5096_v16 = vadd.f32 %v5095_v22, %v11243_v24  ;;  %6964 = vmatprep.subr.mxu0 %v11134_v6 }
 0x4af   : > { %v7924_v48 = vpop.f32.mrf.mxu0  ;;  %6389 = vmatmul.mubr.f32.gmra.mxu1 %v11456_v39  ;;  %6965 = vmatpush1.msra.mxu0 %v6219_v3 }
 0x4b0   : > { %6604 = vmatmul.mubr.f32.gmra.mxu0 %v11466_v38  ;;  %5246 = vst.msk [vmem:[#allocation4 + $0x141] sm:$0xff] %vm700_vm0, %v5159_v52  ;;  %v5158_v24 = vmax.f32 %v5096_v16, 0.0  ;;  %v5111_v1 = vadd.f32 %v7924_v48, %v4886_v30  ;;  %6393 = vmatprep.mubr.f32.mxu1 %v11474_v55  ;;  %v11524_v30 = vld [vmem:[#allocation4 + $0x92] sm:$0xff] }
 0x4b1   : > { %6608 = vmatprep.mubr.f32.mxu0 %v11476_v45  ;;  %v5105_v4 = vpop.f32.mrf.mxu0  ;;  %6966 = vmatprep.subr.mxu0 %v11134_v6  ;;  %v11534_v52 = vld [vmem:[#allocation4 + $0xb0] sm:$0xff] }
 0x4b2   : > { %5245 = vst.msk [vmem:[#allocation4 + $0x139] sm:$0xff] %vm700_vm0, %v5158_v24  ;;  %v5161_v13 = vmax.f32 %v5111_v1, 0.0  ;;  %v5106_v54 = vadd.f32 %v5105_v4, %v11261_v35  ;;  %v4891_v35 = vadd.f32 %v11279_v50, %v11259_v40  ;;  %v11506_v40 = vld [vmem:[#allocation4 + $0x82] sm:$0xff]  ;;  %6967 = vmatpush1.msra.mxu0 %v6218_v8  ;;  %v6216_v48 = vld [vmem:[%s12318_s7 + $0x310] sm:$0xff] }
 0x4b3   : > { %v7927_v41 = vpop.f32.mrf.mxu0  ;;  %6394 = vmatmul.mubr.f32.gmra.mxu1 %v11476_v45  ;;  %6968 = vmatprep.subr.mxu0 %v11134_v6  ;;  %v11548_v24 = vld [vmem:[#allocation4 + $0xc1] sm:$0xff]  ;;  %v11554_v4 = vld [vmem:[#allocation4 + $0xaa] sm:$0xff] }
 0x4b4   : > { %6609 = vmatmul.mubr.f32.gmra.mxu0 %v11485_v9  ;;  %5248 = vst.msk [vmem:[#allocation4 + $0x159] sm:$0xff] %vm700_vm0, %v5161_v13  ;;  %v5160_v58 = vmax.f32 %v5106_v54, 0.0  ;;  %v5121_v21 = vadd.f32 %v7927_v41, %v4896_v23  ;;  %6398 = vmatprep.mubr.f32.mxu1 %v11493_v59  ;;  %v11550_v1 = vld [vmem:[#allocation4 + $0xc0] sm:$0xff]  ;;  %v6215_v23 = vld [vmem:[%s12318_s7 + $0x308] sm:$0xff] }
 0x4b5   : > { %6613 = vmatprep.mubr.f32.mxu0 %v11495_v11  ;;  %v5115_v43 = vpop.f32.mrf.mxu0  ;;  %6969 = vmatpush1.msra.mxu0 %v6217_v51  ;;  %v11562_v13 = vld [vmem:[#allocation4 + $0xc9] sm:$0xff]  ;;  %v11594_v8 = vld [vmem:[#allocation4 + $0xe1] sm:$0xff]  ;;  %v11624_v51 = vld [vmem:[#allocation4 + $0xf9] sm:$0xff] }
 0x4b6   : > { %5247 = vst.msk [vmem:[#allocation4 + $0x151] sm:$0xff] %vm700_vm0, %v5160_v58  ;;  %v5163_v26 = vmax.f32 %v5121_v21, 0.0  ;;  %v5116_v31 = vadd.f32 %v5115_v43, %v4891_v35  ;;  %6970 = vmatprep.subr.mxu0 %v11134_v6  ;;  %v11564_v54 = vld [vmem:[#allocation4 + $0xc8] sm:$0xff]  ;;  %v11570_v35 = vld [vmem:[#allocation4 + $0xb2] sm:$0xff] }
 0x4b7   : > { %v7930_v50 = vpop.f32.mrf.mxu0  ;;  %6399 = vmatmul.mubr.f32.gmra.mxu1 %v11495_v11  ;;  %6971 = vmatpush1.msra.mxu0 %v6216_v48  ;;  %v11578_v58 = vld [vmem:[#allocation4 + $0xd9] sm:$0xff]  ;;  %v11630_v48 = vld [vmem:[#allocation4 + $0xe2] sm:$0xff] }
 0x4b8   : > { %6614 = vmatmul.mubr.f32.gmra.mxu0 %v11506_v40  ;;  %5250 = vst.msk [vmem:[#allocation4 + $0x171] sm:$0xff] %vm700_vm0, %v5163_v26  ;;  %v5162_v53 = vmax.f32 %v5116_v31, 0.0  ;;  %v5131_v29 = vadd.f32 %v7930_v50, %v4906_v37  ;;  %6403 = vmatprep.mubr.f32.mxu1 %v11514_v34  ;;  %v11580_v21 = vld [vmem:[#allocation4 + $0xd8] sm:$0xff]  ;;  %v11586_v26 = vld [vmem:[#allocation4 + $0xc2] sm:$0xff] }
 0x4b9   : > { %6618 = vmatprep.mubr.f32.mxu0 %v11516_v2  ;;  %v5125_v60 = vpop.f32.mrf.mxu0  ;;  %6972 = vmatprep.subr.mxu0 %v11134_v6  ;;  %v6245_v31 = vld [vmem:[%s12318_s7 + $0x3f8] sm:$0xff]  ;;  %v11596_v50 = vld [vmem:[#allocation4 + $0xe0] sm:$0xff] }
 0x4ba   : > { %5249 = vst.msk [vmem:[#allocation4 + $0x169] sm:$0xff] %vm700_vm0, %v5162_v53  ;;  %v5165_v62 = vmax.f32 %v5131_v29, 0.0  ;;  %v5126_v22 = vadd.f32 %v5125_v60, %v4901_v56  ;;  %6973 = vmatpush1.msra.mxu0 %v6215_v23  ;;  %v11600_v56 = vld [vmem:[#allocation4 + $0xca] sm:$0xff]  ;;  %v6242_v23 = vld [vmem:[%s12318_s7 + $0x3e0] sm:$0xff] }
 0x4bb   : > { %6404 = vmatmul.mubr.f32.gmra.mxu1 %v11516_v2  ;;  %v11566_v3 = vpop.f32.mrf.mxu1  ;;  %6974 = vmatprep.subr.mxu0 %v11134_v6  ;;  %v6244_v53 = vld [vmem:[%s12318_s7 + $0x3f0] sm:$0xff] }
 0x4bc   : > { %6619 = vmatmul.mubr.f32.gmra.mxu0 %v11524_v30  ;;  %5252 = vst.msk [vmem:[#allocation4 + $0x189] sm:$0xff] %vm700_vm0, %v5165_v62  ;;  %v5164_v16 = vmax.f32 %v5126_v22, 0.0  ;;  %6408 = vmatprep.mubr.f32.mxu1 %v11532_v27  ;;  %v11608_v29 = vld [vmem:[#allocation4 + $0xf1] sm:$0xff]  ;;  %v11614_v62 = vld [vmem:[#allocation4 + $0xda] sm:$0xff]  ;;  %v6243_v22 = vld [vmem:[%s12318_s7 + $0x3e8] sm:$0xff] }
 0x4bd   : > { %6623 = vmatprep.mubr.f32.mxu0 %v11534_v52  ;;  %v6337_v41 = vpop.f32.mrf.mxu1  ;;  %6975 = vmatpush1.msra.mxu0 %v6214_v57  ;;  %v11610_v60 = vld [vmem:[#allocation4 + $0xf0] sm:$0xff]  ;;  %v11640_v57 = vld [vmem:[#allocation4 + $0x108] sm:$0xff] }
 0x4be   : > { %5251 = vst.msk [vmem:[#allocation4 + $0x181] sm:$0xff] %vm700_vm0, %v5164_v16  ;;  %6976 = vmatprep.subr.mxu0 %v11134_v6  ;;  %v11626_v16 = vld [vmem:[#allocation4 + $0xf8] sm:$0xff]  ;;  %v11638_v41 = vld [vmem:[#allocation4 + $0x109] sm:$0xff]  ;;  %12462 = vst [vmem:[#allocation11_spill] sm:$0xff] %v11640_v57 }
 0x4bf   : > { %6409 = vmatmul.mubr.f32.gmra.mxu1 %v11534_v52  ;;  %v11582_v43 = vpop.f32.mrf.mxu1  ;;  %6977 = vmatpush2.msra.mxu0 %v6245_v31  ;;  %12460 = vst [vmem:[#allocation10_spill] sm:$0xff] %v11626_v16  ;;  %12461 = vst [vmem:[#allocation18_spill] sm:$0xff] %v11638_v41  ;;  %v6241_v31 = vld [vmem:[%s12318_s7 + $0x3d8] sm:$0xff] }
 0x4c0   : > { %6624 = vmatmul.mubr.f32.gmra.mxu0 %v11540_v46  ;;  %6413 = vmatprep.mubr.f32.mxu1 %v11548_v24  ;;  %12459 = vst [vmem:[#allocation9_spill] sm:$0xff] %v11582_v43  ;;  %v11682_v43 = vld [vmem:[#allocation4 + $0x128] sm:$0xff] }
 0x4c1   : > { %6628 = vmatprep.mubr.f32.mxu0 %v11550_v1  ;;  %v6342_v37 = vpop.f32.mrf.mxu1  ;;  %6978 = vmatprep.subr.mxu0 %v11134_v6  ;;  %v11616_v6 = vld [vmem:[#allocation2] sm:$0xff]  ;;  %12469 = vst [vmem:[#allocation16_spill] sm:$0xff] %v11682_v43 }
 0x4c2   : > { %6979 = vmatpush2.msra.mxu0 %v6244_v53  ;;  %v11644_v37 = vld [vmem:[#allocation4 + $0xf2] sm:$0xff] }
 0x4c3   : > { %6414 = vmatmul.mubr.f32.gmra.mxu1 %v11550_v1  ;;  %6980 = vmatprep.subr.mxu0 %v11616_v6  ;;  %v11652_v53 = vld [vmem:[#allocation4 + $0x111] sm:$0xff] }
 0x4c4   : > { %6629 = vmatmul.mubr.f32.gmra.mxu0 %v11554_v4  ;;  %6418 = vmatprep.mubr.f32.mxu1 %v11562_v13  ;;  %12463 = vst [vmem:[#allocation12_spill] sm:$0xff] %v11652_v53 }
 0x4c5   : > { %6633 = vmatprep.mubr.f32.mxu0 %v11564_v54  ;;  %6981 = vmatpush2.msra.mxu0 %v6243_v22  ;;  %v11654_v22 = vld [vmem:[#allocation4 + $0x110] sm:$0xff] }
 0x4c6   : > { %6982 = vmatprep.subr.mxu0 %v11616_v6  ;;  %12464 = vst [vmem:[#allocation23_spill] sm:$0xff] %v11654_v22 }
 0x4c7   : > { %6419 = vmatmul.mubr.f32.gmra.mxu1 %v11564_v54  ;;  %6983 = vmatpush2.msra.mxu0 %v6242_v23  ;;  %v11658_v23 = vld [vmem:[#allocation4 + $0xfa] sm:$0xff] }
 0x4c8   : > { %6634 = vmatmul.mubr.f32.gmra.mxu0 %v11570_v35  ;;  %6423 = vmatprep.mubr.f32.mxu1 %v11578_v58 }
 0x4c9   : > { %6638 = vmatprep.mubr.f32.mxu0 %v11580_v21  ;;  %6984 = vmatprep.subr.mxu0 %v11616_v6 }
 0x4ca   : > { %6985 = vmatpush2.msra.mxu0 %v6241_v31  ;;  %v11672_v31 = vld [vmem:[#allocation4 + $0x10a] sm:$0xff] }
 0x4cb   : > { %6424 = vmatmul.mubr.f32.gmra.mxu1 %v11580_v21  ;;  %6986 = vmatprep.subr.mxu0 %v11616_v6  ;;  %12467 = vst [vmem:[#allocation24_spill] sm:$0xff] %v11672_v31 }
 0x4cc   : > { %6639 = vmatmul.mubr.f32.gmra.mxu0 %v11586_v26  ;;  %6428 = vmatprep.mubr.f32.mxu1 %v11594_v8 }
 0x4cd   : > { %6643 = vmatprep.mubr.f32.mxu0 %v11596_v50 }
 0x4cf   : > { %6429 = vmatmul.mubr.f32.gmra.mxu1 %v11596_v50 }
 0x4d0   : > { %6644 = vmatmul.mubr.f32.gmra.mxu0 %v11600_v56  ;;  %6433 = vmatprep.mubr.f32.mxu1 %v11608_v29 }
 0x4d1   : > { %6648 = vmatprep.mubr.f32.mxu0 %v11610_v60 }
 0x4d3   : > { %6434 = vmatmul.mubr.f32.gmra.mxu1 %v11610_v60 }
 0x4d4   : > { %6649 = vmatmul.mubr.f32.gmra.mxu0 %v11614_v62  ;;  %6438 = vmatprep.mubr.f32.mxu1 %v11624_v51 }
 0x4d5   : > { %6653 = vmatprep.mubr.f32.mxu0 %v11626_v16 }
 0x4d7   : > { %6439 = vmatmul.mubr.f32.gmra.mxu1 %v11626_v16  ;;  %v11668_v16 = vld [vmem:[#allocation4 + $0x120] sm:$0xff] }
 0x4d8   : > { %6654 = vmatmul.mubr.f32.gmra.mxu0 %v11630_v48  ;;  %6443 = vmatprep.mubr.f32.mxu1 %v11638_v41  ;;  %v6240_v41 = vld [vmem:[%s12318_s7 + $0x3d0] sm:$0xff]  ;;  %12466 = vst [vmem:[#allocation14_spill] sm:$0xff] %v11668_v16 }
 0x4d9   : > { %6658 = vmatprep.mubr.f32.mxu0 %v11640_v57  ;;  %6987 = vmatpush2.msra.mxu0 %v6240_v41  ;;  %v11686_v41 = vld [vmem:[#allocation4 + $0x112] sm:$0xff] }
 0x4da   : > { %6988 = vmatprep.subr.mxu0 %v11616_v6  ;;  %12470 = vst [vmem:[#allocation29_spill] sm:$0xff] %v11686_v41 }
 0x4db   : > { %6444 = vmatmul.mubr.f32.gmra.mxu1 %v11640_v57  ;;  %v11666_v57 = vld [vmem:[#allocation4 + $0x121] sm:$0xff] }
 0x4dc   : > { %6659 = vmatmul.mubr.f32.gmra.mxu0 %v11644_v37  ;;  %6448 = vmatprep.mubr.f32.mxu1 %v11652_v53  ;;  %12465 = vst [vmem:[#allocation13_spill] sm:$0xff] %v11666_v57  ;;  %v6239_v53 = vld [vmem:[%s12318_s7 + $0x3c8] sm:$0xff] }
 0x4dd   : > { %6663 = vmatprep.mubr.f32.mxu0 %v11654_v22  ;;  %6989 = vmatpush2.msra.mxu0 %v6239_v53  ;;  %v11700_v53 = vld [vmem:[#allocation4 + $0x122] sm:$0xff] }
 0x4de   : > { %6990 = vmatprep.subr.mxu0 %v11616_v6  ;;  %12473 = vst [vmem:[#allocation30_spill] sm:$0xff] %v11700_v53 }
 0x4df   : > { %6449 = vmatmul.mubr.f32.gmra.mxu1 %v11654_v22  ;;  %v11680_v22 = vld [vmem:[#allocation4 + $0x129] sm:$0xff] }
 0x4e0   : > { %6664 = vmatmul.mubr.f32.gmra.mxu0 %v11658_v23  ;;  %6453 = vmatprep.mubr.f32.mxu1 %v11666_v57  ;;  %12468 = vst [vmem:[#allocation15_spill] sm:$0xff] %v11680_v22  ;;  %v6238_v57 = vld [vmem:[%s12318_s7 + $0x3c0] sm:$0xff] }
 0x4e1   : > { %6668 = vmatprep.mubr.f32.mxu0 %v11668_v16  ;;  %6991 = vmatpush2.msra.mxu0 %v6238_v57  ;;  %v11714_v57 = vld [vmem:[#allocation4 + $0x12a] sm:$0xff] }
 0x4e2   : > { %6992 = vmatprep.subr.mxu0 %v11616_v6  ;;  %12476 = vst [vmem:[#allocation25_spill] sm:$0xff] %v11714_v57 }
 0x4e3   : > { %6454 = vmatmul.mubr.f32.gmra.mxu1 %v11668_v16  ;;  %v11694_v16 = vld [vmem:[#allocation4 + $0x139] sm:$0xff] }
 0x4e4   : > { %6669 = vmatmul.mubr.f32.gmra.mxu0 %v11672_v31  ;;  %6458 = vmatprep.mubr.f32.mxu1 %v11680_v22  ;;  %12471 = vst [vmem:[#allocation19_spill] sm:$0xff] %v11694_v16  ;;  %v11696_v31 = vld [vmem:[#allocation4 + $0x138] sm:$0xff] }
 0x4e5   : > { %6673 = vmatprep.mubr.f32.mxu0 %v11682_v43  ;;  %12472 = vst [vmem:[#allocation20_spill] sm:$0xff] %v11696_v31  ;;  %v6237_v22 = vld [vmem:[%s12318_s7 + $0x3b8] sm:$0xff] }
 0x4e6   : > { %6993 = vmatpush2.msra.mxu0 %v6237_v22  ;;  %v11728_v22 = vld [vmem:[#allocation4 + $0x13a] sm:$0xff] }
 0x4e7   : > { %6459 = vmatmul.mubr.f32.gmra.mxu1 %v11682_v43  ;;  %v11708_v43 = vld [vmem:[#allocation4 + $0x141] sm:$0xff]  ;;  %6994 = vmatprep.subr.mxu0 %v11616_v6  ;;  %12479 = vst [vmem:[#allocation28_spill] sm:$0xff] %v11728_v22 }
 0x4e8   : > { %6674 = vmatmul.mubr.f32.gmra.mxu0 %v11686_v41  ;;  %6463 = vmatprep.mubr.f32.mxu1 %v11694_v16  ;;  %12474 = vst [vmem:[#allocation21_spill] sm:$0xff] %v11708_v43  ;;  %v11710_v41 = vld [vmem:[#allocation4 + $0x140] sm:$0xff]  ;;  %v6236_v16 = vld [vmem:[%s12318_s7 + $0x3b0] sm:$0xff] }
 0x4e9   : > { %6678 = vmatprep.mubr.f32.mxu0 %v11696_v31  ;;  %12475 = vst [vmem:[#allocation22_spill] sm:$0xff] %v11710_v41  ;;  %6995 = vmatpush2.msra.mxu0 %v6236_v16  ;;  %v11742_v16 = vld [vmem:[#allocation4 + $0x142] sm:$0xff] }
 0x4ea   : > { %6996 = vmatprep.subr.mxu0 %v11616_v6  ;;  %12482 = vst [vmem:[#allocation33_spill] sm:$0xff] %v11742_v16 }
 0x4eb   : > { %6464 = vmatmul.mubr.f32.gmra.mxu1 %v11696_v31  ;;  %v11722_v31 = vld [vmem:[#allocation4 + $0x151] sm:$0xff] }
 0x4ec   : > { %6679 = vmatmul.mubr.f32.gmra.mxu0 %v11700_v53  ;;  %6468 = vmatprep.mubr.f32.mxu1 %v11708_v43  ;;  %12477 = vst [vmem:[#allocation26_spill] sm:$0xff] %v11722_v31  ;;  %v11724_v53 = vld [vmem:[#allocation4 + $0x150] sm:$0xff]  ;;  %v6235_v43 = vld [vmem:[%s12318_s7 + $0x3a8] sm:$0xff] }
 0x4ed   : > { %6683 = vmatprep.mubr.f32.mxu0 %v11710_v41  ;;  %12478 = vst [vmem:[#allocation27_spill] sm:$0xff] %v11724_v53  ;;  %6997 = vmatpush2.msra.mxu0 %v6235_v43  ;;  %v11756_v43 = vld [vmem:[#allocation4 + $0x152] sm:$0xff] }
 0x4ee   : > { %6998 = vmatprep.subr.mxu0 %v11616_v6  ;;  %12485 = vst [vmem:[#allocation34_spill] sm:$0xff] %v11756_v43 }
 0x4ef   : > { %6469 = vmatmul.mubr.f32.gmra.mxu1 %v11710_v41  ;;  %v11736_v41 = vld [vmem:[#allocation4 + $0x159] sm:$0xff] }
 0x4f0   : > { %6684 = vmatmul.mubr.f32.gmra.mxu0 %v11714_v57  ;;  %6473 = vmatprep.mubr.f32.mxu1 %v11722_v31  ;;  %12480 = vst [vmem:[#allocation31_spill] sm:$0xff] %v11736_v41  ;;  %v11738_v57 = vld [vmem:[#allocation4 + $0x158] sm:$0xff]  ;;  %v6234_v31 = vld [vmem:[%s12318_s7 + $0x3a0] sm:$0xff] }
 0x4f1   : > { %6688 = vmatprep.mubr.f32.mxu0 %v11724_v53  ;;  %12481 = vst [vmem:[#allocation32_spill] sm:$0xff] %v11738_v57  ;;  %6999 = vmatpush2.msra.mxu0 %v6234_v31  ;;  %v11770_v31 = vld [vmem:[#allocation4 + $0x15a] sm:$0xff] }
 0x4f2   : > { %7000 = vmatprep.subr.mxu0 %v11616_v6 }
 0x4f3   : > { %6474 = vmatmul.mubr.f32.gmra.mxu1 %v11724_v53  ;;  %v11750_v53 = vld [vmem:[#allocation4 + $0x169] sm:$0xff] }
 0x4f4   : > { %6689 = vmatmul.mubr.f32.gmra.mxu0 %v11728_v22  ;;  %6478 = vmatprep.mubr.f32.mxu1 %v11736_v41  ;;  %12483 = vst [vmem:[#allocation8_spill] sm:$0xff] %v11750_v53  ;;  %v11752_v22 = vld [vmem:[#allocation4 + $0x168] sm:$0xff]  ;;  %v6233_v41 = vld [vmem:[%s12318_s7 + $0x398] sm:$0xff] }
 0x4f5   : > { %6693 = vmatprep.mubr.f32.mxu0 %v11738_v57  ;;  %12484 = vst [vmem:[#allocation17_spill] sm:$0xff] %v11752_v22  ;;  %7001 = vmatpush2.msra.mxu0 %v6233_v41  ;;  %v11782_v41 = vld [vmem:[#allocation4 + $0x16a] sm:$0xff] }
 0x4f6   : > { %7002 = vmatprep.subr.mxu0 %v11616_v6 }
 0x4f7   : > { %6479 = vmatmul.mubr.f32.gmra.mxu1 %v11738_v57  ;;  %v11764_v57 = vld [vmem:[#allocation4 + $0x171] sm:$0xff] }
 0x4f8   : > { %6694 = vmatmul.mubr.f32.gmra.mxu0 %v11742_v16  ;;  %6483 = vmatprep.mubr.f32.mxu1 %v11750_v53  ;;  %12486 = vst [vmem:[#allocation35_spill] sm:$0xff] %v11764_v57  ;;  %v11766_v16 = vld [vmem:[#allocation4 + $0x170] sm:$0xff] }
 0x4f9   : > { %6698 = vmatprep.mubr.f32.mxu0 %v11752_v22  ;;  %12487 = vst [vmem:[#allocation36_spill] sm:$0xff] %v11766_v16  ;;  %v6232_v53 = vld [vmem:[%s12318_s7 + $0x390] sm:$0xff] }
 0x4fa   : > { %7003 = vmatpush2.msra.mxu0 %v6232_v53  ;;  %v5510_v53 = vld [vmem:[#allocation4 + $0x21] sm:$0xff] }
 0x4fb   : > { %6484 = vmatmul.mubr.f32.gmra.mxu1 %v11752_v22  ;;  %v11778_v22 = vld [vmem:[#allocation4 + $0x180] sm:$0xff]  ;;  %7004 = vmatprep.subr.mxu0 %v11616_v6 }
 0x4fc   : > { %6699 = vmatmul.mubr.f32.gmra.mxu0 %v11756_v43  ;;  %6488 = vmatprep.mubr.f32.mxu1 %v11764_v57  ;;  %12488 = vst [vmem:[#allocation37_spill] sm:$0xff] %v11778_v22  ;;  %v5509_v57 = vld [vmem:[#allocation4 + $0x19] sm:$0xff]  ;;  %v6231_v43 = vld [vmem:[%s12318_s7 + $0x388] sm:$0xff] }
 0x4fd   : > { %6703 = vmatprep.mubr.f32.mxu0 %v11766_v16  ;;  %7005 = vmatpush2.msra.mxu0 %v6231_v43  ;;  %v5638_v43 = vld [vmem:[#allocation4 + $0x30] sm:$0xff] }
 0x4fe   : > { %7006 = vmatprep.subr.mxu0 %v11616_v6 }
 0x4ff   : > { %6489 = vmatmul.mubr.f32.gmra.mxu1 %v11766_v16  ;;  %v11789_v16 = vld [vmem:[#allocation4 + $0x188] sm:$0xff] }
 0x500   : > { %6704 = vmatmul.mubr.f32.gmra.mxu0 %v11770_v31  ;;  %6783 = vmatprep.mubr.f32.mxu1 %v11339_v12  ;;  %12489 = vst [vmem:[#allocation38_spill] sm:$0xff] %v11789_v16  ;;  %v11797_v12 = vld [vmem:[#allocation4 + $0x172] sm:$0xff] }
 0x501   : > { %6708 = vmatprep.mubr.f32.mxu0 %v11778_v22  ;;  %v6260_v22 = vld [vmem:[%s12318_s7 + $0x470] sm:$0xff] }
 0x503   : > { %6784 = vmatmul.mubr.f32.vlgmr.msra.gmra.mxu1 %v5509_v57  ;;  %v6230_v57 = vld [vmem:[%s12318_s7 + $0x380] sm:$0xff] }
 0x504   : > { %6709 = vmatmul.mubr.f32.gmra.mxu0 %v11782_v41  ;;  %8027 = vmatpush3.msra.mxu1 %v11308_v49 }
 0x505   : > { %6713 = vmatprep.mubr.f32.mxu0 %v11789_v16  ;;  %6788 = vmatprep.mubr.f32.mxu1 %v11356_v15  ;;  %v6259_v16 = vld [vmem:[%s12318_s7 + $0x468] sm:$0xff]  ;;  %v5511_v15 = vld [vmem:[#allocation4 + $0x31] sm:$0xff] }
 0x506   : > { %8012 = vmatprep.subr.mxu1 %v6260_v22  ;;  %7007 = vmatpush2.msra.mxu0 %v6230_v57 }
 0x507   : > { %6789 = vmatmul.mubr.f32.gmra.mxu1 %v5510_v53  ;;  %7931 = vmatprep.subr.mxu0 %v11308_v49  ;;  %v6258_v53 = vld [vmem:[%s12318_s7 + $0x460] sm:$0xff] }
 0x508   : > { %6714 = vmatmul.mubr.f32.gmra.mxu0 %v11797_v12  ;;  %6793 = vmatprep.mubr.f32.mxu1 %v11374_v36  ;;  %v6251_v36 = vld [vmem:[%s12318_s7 + $0x428] sm:$0xff] }
 0x509   : > { %7008 = vmatprep.mubr.f32.mxu0 %v11332_v18  ;;  %8028 = vmatpush3.msra.mxu1 %v6260_v22  ;;  %v6257_v18 = vld [vmem:[%s12318_s7 + $0x458] sm:$0xff] }
 0x50a   : > { %8013 = vmatprep.subr.mxu1 %v6259_v16 }
 0x50b   : > { %6794 = vmatmul.mubr.f32.gmra.mxu1 %v5511_v15 }
 0x50c   : > { %7009 = vmatmul.mubr.f32.vlgmr.msra.gmra.mxu0 %v5638_v43  ;;  %6798 = vmatprep.mubr.f32.mxu1 %v11392_v28  ;;  %v6248_v28 = vld [vmem:[%s12318_s7 + $0x410] sm:$0xff] }
 0x50d   : > { %7013 = vmatprep.mubr.f32.mxu0 %v11346_v44  ;;  %8029 = vmatpush3.msra.mxu1 %v6259_v16 }
 0x50e   : > { %7932 = vmatpush3.msra.mxu0 %v11308_v49  ;;  %8014 = vmatprep.subr.mxu1 %v6258_v53  ;;  %v6256_v49 = vld [vmem:[%s12318_s7 + $0x450] sm:$0xff] }
 0x50f   : > { %7933 = vmatprep.subr.mxu0 %v6260_v22  ;;  %6799 = vmatmul.mubr.f32.gmra.mxu1 %v11346_v44  ;;  %v6255_v44 = vld [vmem:[%s12318_s7 + $0x448] sm:$0xff] }
 0x510   : > { %7014 = vmatmul.mubr.f32.gmra.mxu0 %v11348_v25  ;;  %6803 = vmatprep.mubr.f32.mxu1 %v11410_v33  ;;  %v6254_v25 = vld [vmem:[%s12318_s7 + $0x440] sm:$0xff] }
 0x511   : > { %7018 = vmatprep.mubr.f32.mxu0 %v11364_v5  ;;  %8030 = vmatpush3.msra.mxu1 %v6258_v53  ;;  %v11911_v33 = vld [vmem:[%s12319_s8] ss:$0 sm:$0xff] }
 0x512   : > { %7934 = vmatpush3.msra.mxu0 %v6260_v22  ;;  %8015 = vmatprep.subr.mxu1 %v6257_v18 }
 0x513   : > { %7935 = vmatprep.subr.mxu0 %v6259_v16  ;;  %6804 = vmatmul.mubr.f32.gmra.mxu1 %v11364_v5  ;;  %v6253_v5 = vld [vmem:[%s12318_s7 + $0x438] sm:$0xff] }
 0x514   : > { %7019 = vmatmul.mubr.f32.gmra.mxu0 %v11366_v0  ;;  %6808 = vmatprep.mubr.f32.mxu1 %v11428_v14  ;;  %v6252_v0 = vld [vmem:[%s12318_s7 + $0x430] sm:$0xff] }
 0x515   : > { %7023 = vmatprep.mubr.f32.mxu0 %v11382_v63  ;;  %8031 = vmatpush3.msra.mxu1 %v6257_v18 }
 0x516   : > { %7936 = vmatpush3.msra.mxu0 %v6259_v16  ;;  %8016 = vmatprep.subr.mxu1 %v6256_v49 }
 0x517   : > { %7937 = vmatprep.subr.mxu0 %v6258_v53  ;;  %6809 = vmatmul.mubr.f32.gmra.mxu1 %v11382_v63  ;;  %v6250_v63 = vld [vmem:[%s12318_s7 + $0x420] sm:$0xff] }
 0x518   : > { %7024 = vmatmul.mubr.f32.gmra.mxu0 %v11384_v61  ;;  %6813 = vmatprep.mubr.f32.mxu1 %v11446_v42  ;;  %v6249_v61 = vld [vmem:[%s12318_s7 + $0x418] sm:$0xff] }
 0x519   : > { %7028 = vmatprep.mubr.f32.mxu0 %v11400_v17  ;;  %8032 = vmatpush3.msra.mxu1 %v6256_v49 }
 0x51a   : > { %7938 = vmatpush3.msra.mxu0 %v6258_v53  ;;  %8017 = vmatprep.subr.mxu1 %v6255_v44  ;;  %v12503_v53 = vld [vmem:[#allocation16_spill] sm:$0xff] }
 0x51b   : > { %7939 = vmatprep.subr.mxu0 %v6257_v18  ;;  %6814 = vmatmul.mubr.f32.gmra.mxu1 %v11400_v17  ;;  %v6247_v17 = vld [vmem:[%s12318_s7 + $0x408] sm:$0xff] }
 0x51c   : > { %7029 = vmatmul.mubr.f32.gmra.mxu0 %v11402_v20  ;;  %6818 = vmatprep.mubr.f32.mxu1 %v11466_v38  ;;  %v6246_v20 = vld [vmem:[%s12318_s7 + $0x400] sm:$0xff] }
 0x51d   : > { %7033 = vmatprep.mubr.f32.mxu0 %v11418_v19  ;;  %8033 = vmatpush3.msra.mxu1 %v6255_v44 }
 0x51e   : > { %7940 = vmatpush3.msra.mxu0 %v6257_v18  ;;  %8018 = vmatprep.subr.mxu1 %v6254_v25 }
 0x51f   : > { %7941 = vmatprep.subr.mxu0 %v6256_v49  ;;  %6819 = vmatmul.mubr.f32.gmra.mxu1 %v11418_v19  ;;  %v6336_v19 = vadd.f32 %v11911_v33, %v11566_v3 }
 0x520   : > { %7034 = vmatmul.mubr.f32.gmra.mxu0 %v11420_v7  ;;  %6823 = vmatprep.mubr.f32.mxu1 %v11485_v9 }
 0x521   : > { %7038 = vmatprep.mubr.f32.mxu0 %v11436_v32  ;;  %8034 = vmatpush3.msra.mxu1 %v6254_v25 }
 0x522   : > { %7942 = vmatpush3.msra.mxu0 %v6256_v49  ;;  %8019 = vmatprep.subr.mxu1 %v6253_v5  ;;  %v12504_v49 = vld [vmem:[#allocation28_spill] sm:$0xff] }
 0x523   : > { %7943 = vmatprep.subr.mxu0 %v6255_v44  ;;  %6824 = vmatmul.mubr.f32.gmra.mxu1 %v11436_v32 }
 0x524   : > { %7039 = vmatmul.mubr.f32.gmra.mxu0 %v11438_v47  ;;  %6828 = vmatprep.mubr.f32.mxu1 %v11506_v40 }
 0x525   : > { %7043 = vmatprep.mubr.f32.mxu0 %v11454_v10  ;;  %8035 = vmatpush3.msra.mxu1 %v6253_v5 }
 0x526   : > { %7944 = vmatpush3.msra.mxu0 %v6255_v44  ;;  %8020 = vmatprep.subr.mxu1 %v6252_v0  ;;  %v12505_v44 = vld [vmem:[#allocation19_spill] sm:$0xff] }
 0x527   : > { %7945 = vmatprep.subr.mxu0 %v6254_v25  ;;  %6829 = vmatmul.mubr.f32.gmra.mxu1 %v11454_v10  ;;  %v12490_v10 = vld [vmem:[#allocation9_spill] sm:$0xff] }
 0x528   : > { %7044 = vmatmul.mubr.f32.gmra.mxu0 %v11456_v39  ;;  %6833 = vmatprep.mubr.f32.mxu1 %v11524_v30  ;;  %v6341_v39 = vadd.f32 %v11911_v33, %v12490_v10  ;;  %v12509_v10 = vld [vmem:[#allocation22_spill] sm:$0xff] }
 0x529   : > { %7048 = vmatprep.mubr.f32.mxu0 %v11474_v55  ;;  %8036 = vmatpush3.msra.mxu1 %v6252_v0 }
 0x52a   : > { %7946 = vmatpush3.msra.mxu0 %v6254_v25  ;;  %8021 = vmatprep.subr.mxu1 %v6251_v36 }
 0x52b   : > { %7947 = vmatprep.subr.mxu0 %v6253_v5  ;;  %6834 = vmatmul.mubr.f32.gmra.mxu1 %v11474_v55 }
 0x52c   : > { %7049 = vmatmul.mubr.f32.gmra.mxu0 %v11476_v45  ;;  %6838 = vmatprep.mubr.f32.mxu1 %v11540_v46  ;;  %v12491_v45 = vld [vmem:[#allocation10_spill] sm:$0xff] }
 0x52d   : > { %7053 = vmatprep.mubr.f32.mxu0 %v11493_v59  ;;  %8037 = vmatpush3.msra.mxu1 %v6251_v36 }
 0x52e   : > { %7948 = vmatpush3.msra.mxu0 %v6253_v5  ;;  %8022 = vmatprep.subr.mxu1 %v6250_v63 }
 0x52f   : > { %7949 = vmatprep.subr.mxu0 %v6252_v0  ;;  %6839 = vmatmul.mubr.f32.gmra.mxu1 %v11493_v59  ;;  %v12492_v59 = vld [vmem:[#allocation24_spill] sm:$0xff] }
 0x530   : > { %7054 = vmatmul.mubr.f32.gmra.mxu0 %v11495_v11  ;;  %6843 = vmatprep.mubr.f32.mxu1 %v11554_v4  ;;  %v12493_v11 = vld [vmem:[#allocation18_spill] sm:$0xff] }
 0x531   : > { %7058 = vmatprep.mubr.f32.mxu0 %v11514_v34  ;;  %8038 = vmatpush3.msra.mxu1 %v6250_v63 }
 0x532   : > { %7950 = vmatpush3.msra.mxu0 %v6252_v0  ;;  %8023 = vmatprep.subr.mxu1 %v6249_v61 }
 0x533   : > { %7951 = vmatprep.subr.mxu0 %v6251_v36  ;;  %6844 = vmatmul.mubr.f32.gmra.mxu1 %v11514_v34 }
 0x534   : > { %7059 = vmatmul.mubr.f32.gmra.mxu0 %v11516_v2  ;;  %6848 = vmatprep.mubr.f32.mxu1 %v11570_v35 }
 0x535   : > { %7063 = vmatprep.mubr.f32.mxu0 %v11532_v27  ;;  %8039 = vmatpush3.msra.mxu1 %v6249_v61 }
 0x536   : > { %7952 = vmatpush3.msra.mxu0 %v6251_v36  ;;  %8024 = vmatprep.subr.mxu1 %v6248_v28 }
 0x537   : > { %7953 = vmatprep.subr.mxu0 %v6250_v63  ;;  %6849 = vmatmul.mubr.f32.gmra.mxu1 %v11532_v27 }
 0x538   : > { %7064 = vmatmul.mubr.f32.gmra.mxu0 %v11534_v52  ;;  %6853 = vmatprep.mubr.f32.mxu1 %v11586_v26  ;;  %v12494_v52 = vld [vmem:[#allocation11_spill] sm:$0xff]  ;;  %v12498_v26 = vld [vmem:[#allocation30_spill] sm:$0xff] }
 0x539   : > { %7068 = vmatprep.mubr.f32.mxu0 %v11548_v24  ;;  %8040 = vmatpush3.msra.mxu1 %v6248_v28 }
 0x53a   : > { %7954 = vmatpush3.msra.mxu0 %v6250_v63  ;;  %8025 = vmatprep.subr.mxu1 %v6247_v17 }
 0x53b   : > { %7955 = vmatprep.subr.mxu0 %v6249_v61  ;;  %6854 = vmatmul.mubr.f32.gmra.mxu1 %v11548_v24  ;;  %v12495_v24 = vld [vmem:[#allocation29_spill] sm:$0xff] }
 0x53c   : > { %7069 = vmatmul.mubr.f32.gmra.mxu0 %v11550_v1  ;;  %6858 = vmatprep.mubr.f32.mxu1 %v11600_v56  ;;  %v12496_v1 = vld [vmem:[#allocation12_spill] sm:$0xff] }
 0x53d   : > { %7073 = vmatprep.mubr.f32.mxu0 %v11562_v13  ;;  %8041 = vmatpush3.msra.mxu1 %v6247_v17 }
 0x53e   : > { %7956 = vmatpush3.msra.mxu0 %v6249_v61  ;;  %8026 = vmatprep.subr.mxu1 %v6246_v20  ;;  %v12506_v61 = vld [vmem:[#allocation20_spill] sm:$0xff] }
 0x53f   : > { %7957 = vmatprep.subr.mxu0 %v6248_v28  ;;  %6859 = vmatmul.mubr.f32.gmra.mxu1 %v11562_v13 }
 0x540   : > { %7074 = vmatmul.mubr.f32.gmra.mxu0 %v11564_v54  ;;  %6863 = vmatprep.mubr.f32.mxu1 %v11614_v62 }
 0x541   : > { %7078 = vmatprep.mubr.f32.mxu0 %v11578_v58  ;;  %8042 = vmatpush3.msra.mxu1 %v6246_v20 }
 0x542   : > { %7958 = vmatpush3.msra.mxu0 %v6248_v28 }
 0x543   : > { %7959 = vmatprep.subr.mxu0 %v6247_v17  ;;  %6864 = vmatmul.mubr.f32.gmra.mxu1 %v11578_v58  ;;  %v12497_v58 = vld [vmem:[#allocation23_spill] sm:$0xff] }
 0x544   : > { %7079 = vmatmul.mubr.f32.gmra.mxu0 %v11580_v21  ;;  %6868 = vmatprep.mubr.f32.mxu1 %v11630_v48 }
 0x545   : > { %7083 = vmatprep.mubr.f32.mxu0 %v11594_v8  ;;  %7960 = vmatpush3.msra.mxu0 %v6247_v17  ;;  %v12507_v17 = vld [vmem:[#allocation33_spill] sm:$0xff] }
 0x546   : > { %7961 = vmatprep.subr.mxu0 %v6246_v20 }
 0x547   : > { %6869 = vmatmul.mubr.f32.gmra.mxu1 %v11594_v8  ;;  %7962 = vmatpush3.msra.mxu0 %v6246_v20  ;;  %v12499_v8 = vld [vmem:[#allocation13_spill] sm:$0xff] }
 0x548   : > { %7084 = vmatmul.mubr.f32.gmra.mxu0 %v11596_v50  ;;  %6873 = vmatprep.mubr.f32.mxu1 %v11644_v37  ;;  %v12501_v37 = vld [vmem:[#allocation25_spill] sm:$0xff] }
 0x549   : > { %7088 = vmatprep.mubr.f32.mxu0 %v11608_v29  ;;  %v12508_v20 = vld [vmem:[#allocation21_spill] sm:$0xff] }
 0x54b   : > { %v6345_v7 = vpop.f32.mrf.mxu1  ;;  %6874 = vmatmul.mubr.f32.gmra.mxu1 %v11608_v29 }
 0x54c   : > { %v6560_v14 = vpop.f32.mrf.mxu0  ;;  %7089 = vmatmul.mubr.f32.gmra.mxu0 %v11610_v60  ;;  %6878 = vmatprep.mubr.f32.mxu1 %v11658_v23  ;;  %v6346_v2 = vadd.f32 %v11911_v33, %v6345_v7  ;;  %v12502_v23 = vld [vmem:[#allocation15_spill] sm:$0xff] }
 0x54d   : > { %v11921_v32 = vadd.f32 %v6560_v14, %v6336_v19  ;;  %7093 = vmatprep.mubr.f32.mxu0 %v11624_v51  ;;  %v6347_v47 = vpop.f32.mrf.mxu1 }
 0x54e   : > { %v6562_v42 = vpop.f32.mrf.mxu0 }
 0x54f   : > { %v6350_v38 = vpop.f32.mrf.mxu1  ;;  %6879 = vmatmul.mubr.f32.gmra.mxu1 %v11624_v51  ;;  %v12500_v51 = vld [vmem:[#allocation14_spill] sm:$0xff] }
 0x550   : > { %v6565_v55 = vpop.f32.mrf.mxu0  ;;  %7094 = vmatmul.mubr.f32.gmra.mxu0 %v12491_v45  ;;  %6883 = vmatprep.mubr.f32.mxu1 %v12492_v59  ;;  %v6351_v54 = vadd.f32 %v11911_v33, %v6350_v38  ;;  %v12510_v38 = vld [vmem:[#allocation34_spill] sm:$0xff] }
 0x551   : > { %v11929_v9 = vadd.f32 %v6565_v55, %v6341_v39  ;;  %7098 = vmatprep.mubr.f32.mxu0 %v12493_v11  ;;  %v6352_v40 = vpop.f32.mrf.mxu1  ;;  %v12511_v55 = vld [vmem:[#allocation26_spill] sm:$0xff] }
 0x552   : > { %v6567_v34 = vpop.f32.mrf.mxu0 }
 0x553   : > { %v6355_v30 = vpop.f32.mrf.mxu1  ;;  %6884 = vmatmul.mubr.f32.gmra.mxu1 %v12493_v11 }
 0x554   : > { %v6570_v27 = vpop.f32.mrf.mxu0  ;;  %7099 = vmatmul.mubr.f32.gmra.mxu0 %v12494_v52  ;;  %6888 = vmatprep.mubr.f32.mxu1 %v12495_v24  ;;  %v6356_v29 = vadd.f32 %v11911_v33, %v6355_v30 }
 0x555   : > { %v11936_v46 = vadd.f32 %v6570_v27, %v6346_v2  ;;  %7103 = vmatprep.mubr.f32.mxu0 %v12496_v1  ;;  %v6357_v4 = vpop.f32.mrf.mxu1  ;;  %v12512_v2 = vld [vmem:[#allocation27_spill] sm:$0xff] }
 0x556   : > { %v6572_v13 = vpop.f32.mrf.mxu0  ;;  %v12513_v27 = vld [vmem:[#allocation31_spill] sm:$0xff] }
 0x557   : > { %v6360_v3 = vpop.f32.mrf.mxu1  ;;  %6889 = vmatmul.mubr.f32.gmra.mxu1 %v12496_v1 }
 0x558   : > { %v6575_v35 = vpop.f32.mrf.mxu0  ;;  %7104 = vmatmul.mubr.f32.gmra.mxu0 %v12497_v58  ;;  %6893 = vmatprep.mubr.f32.mxu1 %v12498_v26  ;;  %v6361_v57 = vadd.f32 %v11911_v33, %v6360_v3 }
 0x559   : > { %v11943_v21 = vadd.f32 %v6575_v35, %v6351_v54  ;;  %7108 = vmatprep.mubr.f32.mxu0 %v12499_v8  ;;  %v6362_v50 = vpop.f32.mrf.mxu1  ;;  %v12514_v54 = vld [vmem:[#allocation32_spill] sm:$0xff] }
 0x55a   : > { %v6577_v56 = vpop.f32.mrf.mxu0  ;;  %v12515_v35 = vld [vmem:[#allocation8_spill] sm:$0xff] }
 0x55b   : > { %v6365_v60 = vpop.f32.mrf.mxu1  ;;  %6894 = vmatmul.mubr.f32.gmra.mxu1 %v12499_v8  ;;  %v12516_v56 = vld [vmem:[#allocation17_spill] sm:$0xff] }
 0x55c   : > { %v6580_v62 = vpop.f32.mrf.mxu0  ;;  %7109 = vmatmul.mubr.f32.gmra.mxu0 %v12500_v51  ;;  %6898 = vmatprep.mubr.f32.mxu1 %v12501_v37  ;;  %v6366_v0 = vadd.f32 %v11911_v33, %v6365_v60  ;;  %v12517_v60 = vld [vmem:[#allocation35_spill] sm:$0xff] }
 0x55d   : > { %v11950_v48 = vadd.f32 %v6580_v62, %v6356_v29  ;;  %7113 = vmatprep.mubr.f32.mxu0 %v12502_v23  ;;  %v6367_v22 = vpop.f32.mrf.mxu1 }
 0x55e   : > { %v6582_v16 = vpop.f32.mrf.mxu0  ;;  %v12518_v22 = vld [vmem:[#allocation36_spill] sm:$0xff] }
 0x55f   : > { %v6370_v15 = vpop.f32.mrf.mxu1  ;;  %6899 = vmatmul.mubr.f32.gmra.mxu1 %v12502_v23  ;;  %v11999_v16 = vld [vmem:[#allocation4 + $0x182] sm:$0xff] }
 0x560   : > { %v6585_v43 = vpop.f32.mrf.mxu0  ;;  %7114 = vmatmul.mubr.f32.gmra.mxu0 %v12503_v53  ;;  %6903 = vmatprep.mubr.f32.mxu1 %v12504_v49  ;;  %v6371_v14 = vadd.f32 %v11911_v33, %v6370_v15 }
 0x561   : > { %v11957_v18 = vadd.f32 %v6585_v43, %v6361_v57  ;;  %7118 = vmatprep.mubr.f32.mxu0 %v12505_v44  ;;  %v6372_v25 = vpop.f32.mrf.mxu1  ;;  %v5730_v57 = vld [vmem:[#allocation4 + $0x181] sm:$0xff] }
 0x562   : > { %v6587_v5 = vpop.f32.mrf.mxu0  ;;  %v12519_v25 = vld [vmem:[#allocation37_spill] sm:$0xff] }
 0x563   : > { %v6375_v36 = vpop.f32.mrf.mxu1  ;;  %6904 = vmatmul.mubr.f32.gmra.mxu1 %v12505_v44  ;;  %v12006_v5 = vld [vmem:[#allocation4 + $0x18a] sm:$0xff] }
 0x564   : > { %v6590_v63 = vpop.f32.mrf.mxu0  ;;  %7119 = vmatmul.mubr.f32.gmra.mxu0 %v12506_v61  ;;  %6908 = vmatprep.mubr.f32.mxu1 %v12507_v17  ;;  %v6376_v11 = vadd.f32 %v11911_v33, %v6375_v36  ;;  %v5732_v17 = vld [vmem:[#allocation4 + $0x199] sm:$0xff] }
 0x565   : > { %v11964_v28 = vadd.f32 %v6590_v63, %v6366_v0  ;;  %7123 = vmatprep.mubr.f32.mxu0 %v12508_v20  ;;  %v6377_v19 = vpop.f32.mrf.mxu1  ;;  %v5731_v0 = vld [vmem:[#allocation4 + $0x189] sm:$0xff] }
 0x566   : > { %v6592_v7 = vpop.f32.mrf.mxu0 }
 0x567   : > { %v6380_v47 = vpop.f32.mrf.mxu1  ;;  %6909 = vmatmul.mubr.f32.gmra.mxu1 %v12508_v20 }
 0x568   : > { %v6595_v42 = vpop.f32.mrf.mxu0  ;;  %7124 = vmatmul.mubr.f32.gmra.mxu0 %v12509_v10  ;;  %6913 = vmatprep.mubr.f32.mxu1 %v12510_v38  ;;  %v6381_v1 = vadd.f32 %v11911_v33, %v6380_v47  ;;  %v5774_v47 = vld [vmem:[#allocation4 + $0x92] sm:$0xff] }
 0x569   : > { %v11971_v39 = vadd.f32 %v6595_v42, %v6371_v14  ;;  %7128 = vmatprep.mubr.f32.mxu0 %v12511_v55  ;;  %v6382_v45 = vpop.f32.mrf.mxu1  ;;  %v12520_v14 = vld [vmem:[#allocation38_spill] sm:$0xff] }
 0x56a   : > { %v6597_v59 = vpop.f32.mrf.mxu0 }
 0x56b   : > { %v6385_v40 = vpop.f32.mrf.mxu1  ;;  %6914 = vmatmul.mubr.f32.gmra.mxu1 %v12511_v55  ;;  %v5733_v55 = vld [vmem:[#allocation4 + $0x1a1] sm:$0xff] }
 0x56c   : > { %v6600_v34 = vpop.f32.mrf.mxu0  ;;  %7129 = vmatmul.mubr.f32.gmra.mxu0 %v12512_v2  ;;  %6918 = vmatprep.mubr.f32.mxu1 %v11770_v31  ;;  %v6386_v26 = vadd.f32 %v11911_v33, %v6385_v40  ;;  %v5775_v59 = vld [vmem:[#allocation4 + $0x9a] sm:$0xff] }
 0x56d   : > { %v11978_v30 = vadd.f32 %v6600_v34, %v6376_v11  ;;  %7133 = vmatprep.mubr.f32.mxu0 %v12513_v27  ;;  %v6387_v52 = vpop.f32.mrf.mxu1  ;;  %v5776_v34 = vld [vmem:[#allocation4 + $0xaa] sm:$0xff] }
 0x56e   : > { %v6602_v24 = vpop.f32.mrf.mxu0 }
 0x56f   : > { %v6390_v4 = vpop.f32.mrf.mxu1  ;;  %6919 = vmatmul.mubr.f32.gmra.mxu1 %v12513_v27 }
 0x570   : > { %v6605_v13 = vpop.f32.mrf.mxu0  ;;  %7134 = vmatmul.mubr.f32.gmra.mxu0 %v12514_v54  ;;  %6923 = vmatprep.mubr.f32.mxu1 %v11782_v41  ;;  %v6391_v51 = vadd.f32 %v11911_v33, %v6390_v4  ;;  %v5766_v54 = vld [vmem:[#allocation4 + $0x32] sm:$0xff] }
 0x571   : > { %v11985_v3 = vadd.f32 %v6605_v13, %v6381_v1  ;;  %7138 = vmatprep.mubr.f32.mxu0 %v12515_v35  ;;  %v6392_v58 = vpop.f32.mrf.mxu1  ;;  %v5777_v1 = vld [vmem:[#allocation4 + $0xb2] sm:$0xff] }
 0x572   : > { %v6607_v31 = vpop.f32.mrf.mxu0 }
 0x573   : > { %v6395_v8 = vpop.f32.mrf.mxu1  ;;  %6924 = vmatmul.mubr.f32.gmra.mxu1 %v12515_v35  ;;  %v5778_v35 = vld [vmem:[#allocation4 + $0xc2] sm:$0xff] }
 0x574   : > { %v6610_v50 = vpop.f32.mrf.mxu0  ;;  %7139 = vmatmul.mubr.f32.gmra.mxu0 %v12516_v56  ;;  %6928 = vmatprep.mubr.f32.mxu1 %v11797_v12  ;;  %v6396_v53 = vadd.f32 %v11911_v33, %v6395_v8  ;;  %v5779_v56 = vld [vmem:[#allocation4 + $0xca] sm:$0xff] }
 0x575   : > { %v11992_v29 = vadd.f32 %v6610_v50, %v6386_v26  ;;  %7143 = vmatprep.mubr.f32.mxu0 %v12517_v60  ;;  %v6397_v62 = vpop.f32.mrf.mxu1  ;;  %v5767_v50 = vld [vmem:[#allocation4 + $0x3a] sm:$0xff] }
 0x576   : > { %v6612_v41 = vpop.f32.mrf.mxu0 }
 0x577   : > { %v6400_v37 = vpop.f32.mrf.mxu1  ;;  %6929 = vmatmul.mubr.f32.gmra.mxu1 %v12517_v60  ;;  %v5768_v41 = vld [vmem:[#allocation4 + $0x4a] sm:$0xff] }
 0x578   : > { %v6615_v23 = vpop.f32.mrf.mxu0  ;;  %7144 = vmatmul.mubr.f32.gmra.mxu0 %v12518_v22  ;;  %6933 = vmatprep.mubr.f32.mxu1 %v11999_v16  ;;  %v6401_v20 = vadd.f32 %v11911_v33, %v6400_v37 }
 0x579   : > { %v12001_v15 = vadd.f32 %v6615_v23, %v6391_v51  ;;  %7148 = vmatprep.mubr.f32.mxu0 %v5730_v57  ;;  %v6402_v12 = vpop.f32.mrf.mxu1  ;;  %v5780_v51 = vld [vmem:[#allocation4 + $0xda] sm:$0xff] }
 0x57a   : > { %v6617_v43 = vpop.f32.mrf.mxu0  ;;  %v5781_v12 = vld [vmem:[#allocation4 + $0xe2] sm:$0xff] }
 0x57b   : > { %v6405_v49 = vpop.f32.mrf.mxu1  ;;  %6934 = vmatmul.mubr.f32.gmra.mxu1 %v5730_v57  ;;  %v5769_v57 = vld [vmem:[#allocation4 + $0x52] sm:$0xff] }
 0x57c   : > { %v6620_v44 = vpop.f32.mrf.mxu0  ;;  %7149 = vmatmul.mubr.f32.gmra.mxu0 %v12519_v25  ;;  %6938 = vmatprep.mubr.f32.mxu1 %v12006_v5  ;;  %v6406_v45 = vadd.f32 %v11911_v33, %v6405_v49  ;;  %v5770_v49 = vld [vmem:[#allocation4 + $0x62] sm:$0xff] }
 0x57d   : > { %v12008_v36 = vadd.f32 %v6620_v44, %v6396_v53  ;;  %7153 = vmatprep.mubr.f32.mxu0 %v5731_v0  ;;  %v6407_v63 = vpop.f32.mrf.mxu1  ;;  %v5782_v44 = vld [vmem:[#allocation4 + $0xf2] sm:$0xff] }
 0x57e   : > { %v6622_v61 = vpop.f32.mrf.mxu0 }
 0x57f   : > { %v6410_v19 = vpop.f32.mrf.mxu1  ;;  %6939 = vmatmul.mubr.f32.gmra.mxu1 %v5731_v0 }
 0x580   : > { %v6625_v7 = vpop.f32.mrf.mxu0  ;;  %7154 = vmatmul.mubr.f32.gmra.mxu0 %v12520_v14  ;;  %7975 = vmatprep.mubr.f32.mxu1 %v5774_v47  ;;  %v6411_v24 = vadd.f32 %v11911_v33, %v6410_v19  ;;  %v5772_v14 = vld [vmem:[#allocation4 + $0x7a] sm:$0xff]  ;;  %v5784_v47 = vld [vmem:[#allocation4 + $0x10a] sm:$0xff] }
 0x581   : > { %v12013_v42 = vadd.f32 %v6625_v7, %v6401_v20  ;;  %7158 = vmatprep.mubr.f32.mxu0 %v5732_v17  ;;  %v6412_v10 = vpop.f32.mrf.mxu1  ;;  %v5771_v17 = vld [vmem:[#allocation4 + $0x6a] sm:$0xff]  ;;  %v5783_v20 = vld [vmem:[#allocation4 + $0xfa] sm:$0xff] }
 0x582   : > { %v6627_v38 = vpop.f32.mrf.mxu0 }
 0x583   : > { %v6415_v11 = vpop.f32.mrf.mxu1  ;;  %7976 = vmatmul.mubr.f32.vlgmr.msra.gmra.mxu1 %v5775_v59  ;;  %v5773_v59 = vld [vmem:[#allocation4 + $0x82] sm:$0xff] }
 0x584   : > { %v6630_v40 = vpop.f32.mrf.mxu0  ;;  %7159 = vmatmul.mubr.f32.gmra.mxu0 %v11616_v6  ;;  %7978 = vmatprep.mubr.f32.mxu1 %v5776_v34  ;;  %v6416_v8 = vadd.f32 %v11911_v33, %v6415_v11  ;;  %v5785_v11 = vld [vmem:[#allocation4 + $0x112] sm:$0xff] }
 0x585   : > { %v12017_v2 = vadd.f32 %v6630_v40, %v6406_v45  ;;  %7163 = vmatprep.mubr.f32.mxu0 %v5733_v55  ;;  %v6417_v27 = vpop.f32.mrf.mxu1 }
 0x586   : > { %v6632_v52 = vpop.f32.mrf.mxu0  ;;  %v5786_v27 = vld [vmem:[#allocation4 + $0x122] sm:$0xff] }
 0x587   : > { %v6420_v4 = vpop.f32.mrf.mxu1  ;;  %7979 = vmatmul.mubr.f32.gmra.mxu1 %v5777_v1 }
 0x588   : > { %v6635_v13 = vpop.f32.mrf.mxu0  ;;  %7164 = vmatmul.mubr.f32.gmra.mxu0 %v11616_v6  ;;  %7981 = vmatprep.mubr.f32.mxu1 %v5778_v35  ;;  %v6421_v22 = vadd.f32 %v11911_v33, %v6420_v4 }
 0x589   : > { %v12021_v58 = vadd.f32 %v6635_v13, %v6411_v24  ;;  %7963 = vmatprep.mubr.f32.mxu0 %v5766_v54  ;;  %v6422_v31 = vpop.f32.mrf.mxu1  ;;  %v5787_v13 = vld [vmem:[#allocation4 + $0x12a] sm:$0xff] }
 0x58a   : > { %v6637_v26 = vpop.f32.mrf.mxu0  ;;  %v5788_v31 = vld [vmem:[#allocation4 + $0x13a] sm:$0xff] }
 0x58b   : > { %v6425_v60 = vpop.f32.mrf.mxu1  ;;  %7982 = vmatmul.mubr.f32.gmra.mxu1 %v5779_v56 }
 0x58c   : > { %v6640_v62 = vpop.f32.mrf.mxu0  ;;  %7964 = vmatmul.mubr.f32.vlgmr.msra.gmra.mxu0 %v5767_v50  ;;  %7984 = vmatprep.mubr.f32.mxu1 %v5780_v51  ;;  %v6426_v61 = vadd.f32 %v11911_v33, %v6425_v60  ;;  %v5789_v60 = vld [vmem:[#allocation4 + $0x142] sm:$0xff]  ;;  %v5790_v51 = vld [vmem:[#allocation4 + $0x152] sm:$0xff] }
 0x58d   : > { %v12024_v6 = vadd.f32 %v6640_v62, %v6416_v8  ;;  %7966 = vmatprep.mubr.f32.mxu0 %v5768_v41  ;;  %v6427_v37 = vpop.f32.mrf.mxu1 }
 0x58e   : > { %v6642_v23 = vpop.f32.mrf.mxu0 }
 0x58f   : > { %v6430_v43 = vpop.f32.mrf.mxu1  ;;  %7985 = vmatmul.mubr.f32.gmra.mxu1 %v5781_v12  ;;  %v5791_v12 = vld [vmem:[#allocation4 + $0x15a] sm:$0xff] }
 0x590   : > { %v6645_v53 = vpop.f32.mrf.mxu0  ;;  %7967 = vmatmul.mubr.f32.gmra.mxu0 %v5769_v57  ;;  %7987 = vmatprep.mubr.f32.mxu1 %v5782_v44  ;;  %v6431_v45 = vadd.f32 %v11911_v33, %v6430_v43 }
 0x591   : > { %v12027_v25 = vadd.f32 %v6645_v53, %v6421_v22  ;;  %7969 = vmatprep.mubr.f32.mxu0 %v5770_v49  ;;  %v6432_v0 = vpop.f32.mrf.mxu1  ;;  %v5792_v49 = vld [vmem:[#allocation4 + $0x16a] sm:$0xff] }
 0x592   : > { %v6647_v63 = vpop.f32.mrf.mxu0 }
 0x593   : > { %v6435_v19 = vpop.f32.mrf.mxu1  ;;  %7988 = vmatmul.mubr.f32.gmra.mxu1 %v5783_v20 }
 0x594   : > { %v6650_v7 = vpop.f32.mrf.mxu0  ;;  %7970 = vmatmul.mubr.f32.gmra.mxu0 %v5771_v17  ;;  %7990 = vmatprep.mubr.f32.mxu1 %v5784_v47  ;;  %v6436_v4 = vadd.f32 %v11911_v33, %v6435_v19  ;;  %v5793_v17 = vld [vmem:[#allocation4 + $0x172] sm:$0xff] }
 0x595   : > { %v12030_v10 = vadd.f32 %v6650_v7, %v6426_v61  ;;  %7972 = vmatprep.mubr.f32.mxu0 %v5772_v14  ;;  %v6437_v38 = vpop.f32.mrf.mxu1 }
 0x596   : > { %v6652_v55 = vpop.f32.mrf.mxu0  ;;  %v5796_v38 = vld [vmem:[#allocation4 + $0x19a] sm:$0xff] }
 0x597   : > { %v6440_v40 = vpop.f32.mrf.mxu1  ;;  %7991 = vmatmul.mubr.f32.gmra.mxu1 %v5785_v11 }
 0x598   : > { %v6655_v34 = vpop.f32.mrf.mxu0  ;;  %7973 = vmatmul.mubr.f32.gmra.mxu0 %v5773_v59  ;;  %7993 = vmatprep.mubr.f32.mxu1 %v5786_v27  ;;  %v6441_v56 = vadd.f32 %v11911_v33, %v6440_v40  ;;  %v5797_v40 = vld [vmem:[#allocation4 + $0x1a2] sm:$0xff] }
 0x599   : > { %v12033_v52 = vadd.f32 %v6655_v34, %v6431_v45  ;;  %v6442_v24 = vpop.f32.mrf.mxu1 }
 0x59a   : > { %v6657_v1 = vpop.f32.mrf.mxu0 }
 0x59b   : > { %v6445_v54 = vpop.f32.mrf.mxu1  ;;  %7994 = vmatmul.mubr.f32.gmra.mxu1 %v5787_v13 }
 0x59c   : > { %v6660_v35 = vpop.f32.mrf.mxu0  ;;  %7996 = vmatprep.mubr.f32.mxu1 %v5788_v31  ;;  %v6446_v57 = vadd.f32 %v11911_v33, %v6445_v54 }
 0x59d   : > { %v12036_v26 = vadd.f32 %v6660_v35, %v6436_v4  ;;  %v6447_v8 = vpop.f32.mrf.mxu1 }
 0x59e   : > { %v6662_v50 = vpop.f32.mrf.mxu0 }
 0x59f   : > { %v6450_v62 = vpop.f32.mrf.mxu1  ;;  %7997 = vmatmul.mubr.f32.gmra.mxu1 %v5789_v60 }
 0x5a0   : > { %v6665_v41 = vpop.f32.mrf.mxu0  ;;  %7999 = vmatprep.mubr.f32.mxu1 %v5790_v51  ;;  %v6451_v61 = vadd.f32 %v11911_v33, %v6450_v62 }
 0x5a1   : > { %v12039_v37 = vadd.f32 %v6665_v41, %v6441_v56  ;;  %v6452_v23 = vpop.f32.mrf.mxu1 }
 0x5a2   : > { %v6667_v22 = vpop.f32.mrf.mxu0 }
 0x5a3   : > { %v6455_v43 = vpop.f32.mrf.mxu1  ;;  %8000 = vmatmul.mubr.f32.gmra.mxu1 %v5791_v12 }
 0x5a4   : > { %v6670_v53 = vpop.f32.mrf.mxu0  ;;  %8002 = vmatprep.mubr.f32.mxu1 %v5792_v49  ;;  %v6456_v55 = vadd.f32 %v11911_v33, %v6455_v43 }
 0x5a5   : > { %v12042_v44 = vadd.f32 %v6670_v53, %v6446_v57  ;;  %v6457_v0 = vpop.f32.mrf.mxu1 }
 0x5a6   : > { %v6672_v63 = vpop.f32.mrf.mxu0 }
 0x5a7   : > { %v6460_v20 = vpop.f32.mrf.mxu1  ;;  %8003 = vmatmul.mubr.f32.gmra.mxu1 %v5793_v17 }
 0x5a8   : > { %v6675_v19 = vpop.f32.mrf.mxu0  ;;  %8005 = vmatprep.mubr.f32.mxu1 %v11999_v16  ;;  %v6461_v24 = vadd.f32 %v11911_v33, %v6460_v20 }
 0x5a9   : > { %v12045_v7 = vadd.f32 %v6675_v19, %v6451_v61  ;;  %v6462_v14 = vpop.f32.mrf.mxu1 }
 0x5aa   : > { %v6677_v47 = vpop.f32.mrf.mxu0 }
 0x5ab   : > { %v6465_v45 = vpop.f32.mrf.mxu1  ;;  %8006 = vmatmul.mubr.f32.gmra.mxu1 %v12006_v5 }
 0x5ac   : > { %v6680_v59 = vpop.f32.mrf.mxu0  ;;  %8008 = vmatprep.mubr.f32.mxu1 %v5796_v38  ;;  %v6466_v35 = vadd.f32 %v11911_v33, %v6465_v45 }
 0x5ad   : > { %v12050_v11 = vadd.f32 %v6680_v59, %v6456_v55  ;;  %v6467_v34 = vpop.f32.mrf.mxu1 }
 0x5ae   : > { %v6682_v27 = vpop.f32.mrf.mxu0 }
 0x5af   : > { %v6470_v1 = vpop.f32.mrf.mxu1  ;;  %8009 = vmatmul.mubr.f32.gmra.mxu1 %v5797_v40 }
 0x5b0   : > { %v6685_v4 = vpop.f32.mrf.mxu0  ;;  %v6471_v60 = vadd.f32 %v11911_v33, %v6470_v1 }
 0x5b1   : > { %v12053_v16 = vadd.f32 %v6685_v4, %v6461_v24  ;;  %v6472_v13 = vpop.f32.mrf.mxu1 }
 0x5b2   : > { %v6687_v54 = vpop.f32.mrf.mxu0 }
 0x5b3   : > { %v6475_v31 = vpop.f32.mrf.mxu1 }
 0x5b4   : > { %v6690_v8 = vpop.f32.mrf.mxu0  ;;  %v6476_v57 = vadd.f32 %v11911_v33, %v6475_v31 }
 0x5b5   : > { %v12056_v5 = vadd.f32 %v6690_v8, %v6466_v35  ;;  %v6477_v50 = vpop.f32.mrf.mxu1 }
 0x5b6   : > { %v6692_v56 = vpop.f32.mrf.mxu0 }
 0x5b7   : > { %v6480_v62 = vpop.f32.mrf.mxu1 }
 0x5b8   : > { %v6695_v41 = vpop.f32.mrf.mxu0  ;;  %v6481_v63 = vadd.f32 %v11911_v33, %v6480_v62 }
 0x5b9   : > { %v12059_v51 = vadd.f32 %v6695_v41, %v6471_v60  ;;  %v6482_v23 = vpop.f32.mrf.mxu1 }
 0x5ba   : > { %v6697_v22 = vpop.f32.mrf.mxu0 }
 0x5bb   : > { %v6485_v12 = vpop.f32.mrf.mxu1 }
 0x5bc   : > { %v6700_v43 = vpop.f32.mrf.mxu0  ;;  %v6486_v47 = vadd.f32 %v11911_v33, %v6485_v12 }
 0x5bd   : > { %v12062_v53 = vadd.f32 %v6700_v43, %v6476_v57  ;;  %v6487_v49 = vpop.f32.mrf.mxu1 }
 0x5be   : > { %v6702_v0 = vpop.f32.mrf.mxu0 }
 0x5bf   : > { %v6490_v61 = vpop.f32.mrf.mxu1 }
 0x5c0   : > { %v6705_v17 = vpop.f32.mrf.mxu0  ;;  %v6491_v27 = vadd.f32 %v11911_v33, %v6490_v61 }
 0x5c1   : > { %v12065_v20 = vadd.f32 %v6705_v17, %v6481_v63  ;;  %v6492_v19 = vpop.f32.mrf.mxu1 }
 0x5c2   : > { %v6707_v14 = vpop.f32.mrf.mxu0 }
 0x5c3   : > { %v6785_v55 = vpop.f32.mrf.mxu1 }
 0x5c4   : > { %v6710_v38 = vpop.f32.mrf.mxu0  ;;  %v6786_v59 = vadd.f32 %v6785_v55, %v11921_v32 }
 0x5c5   : > { %v12068_v45 = vadd.f32 %v6710_v38, %v6486_v47  ;;  %v6787_v34 = vpop.f32.mrf.mxu1 }
 0x5c6   : > { %v6712_v40 = vpop.f32.mrf.mxu0 }
 0x5c7   : > { %v6790_v1 = vpop.f32.mrf.mxu1 }
 0x5c8   : > { %v6715_v24 = vpop.f32.mrf.mxu0  ;;  %v6791_v13 = vadd.f32 %v6790_v1, %v11929_v9 }
 0x5c9   : > { %v12072_v4 = vadd.f32 %v6715_v24, %v6491_v27  ;;  %v6792_v35 = vpop.f32.mrf.mxu1 }
 0x5ca   : > { %v6717_v54 = vpop.f32.mrf.mxu0 }
 0x5cb   : > { %v6795_v31 = vpop.f32.mrf.mxu1 }
 0x5cc   : > { %v7010_v8 = vpop.f32.mrf.mxu0  ;;  %v6796_v50 = vadd.f32 %v6795_v31, %v11936_v46 }
 0x5cd   : > { %v12076_v56 = vadd.f32 %v7010_v8, %v6786_v59  ;;  %v6797_v60 = vpop.f32.mrf.mxu1 }
 0x5ce   : > { %v7012_v32 = vpop.f32.mrf.mxu0 }
 0x5cf   : > { %v6800_v62 = vpop.f32.mrf.mxu1 }
 0x5d0   : > { %v7015_v41 = vpop.f32.mrf.mxu0  ;;  %v6801_v33 = vadd.f32 %v6800_v62, %v11943_v21 }
 0x5d1   : > { %v12079_v23 = vadd.f32 %v7015_v41, %v6791_v13  ;;  %v6802_v22 = vpop.f32.mrf.mxu1 }
 0x5d2   : > { %v7017_v57 = vpop.f32.mrf.mxu0 }
 0x5d3   : > { %v6805_v12 = vpop.f32.mrf.mxu1 }
 0x5d4   : > { %v7020_v9 = vpop.f32.mrf.mxu0  ;;  %v6806_v43 = vadd.f32 %v6805_v12, %v11950_v48 }
 0x5d5   : > { %v12082_v49 = vadd.f32 %v7020_v9, %v6796_v50  ;;  %v6807_v0 = vpop.f32.mrf.mxu1 }
 0x5d6   : > { %v7022_v46 = vpop.f32.mrf.mxu0 }
 0x5d7   : > { %v6810_v63 = vpop.f32.mrf.mxu1 }
 0x5d8   : > { %v7025_v61 = vpop.f32.mrf.mxu0  ;;  %v6811_v17 = vadd.f32 %v6810_v63, %v11957_v18 }
 0x5d9   : > { %v12085_v19 = vadd.f32 %v7025_v61, %v6801_v33  ;;  %v6812_v14 = vpop.f32.mrf.mxu1 }
 0x5da   : > { %v7027_v21 = vpop.f32.mrf.mxu0 }
 0x5db   : > { %v6815_v47 = vpop.f32.mrf.mxu1 }
 0x5dc   : > { %v7030_v38 = vpop.f32.mrf.mxu0  ;;  %v6816_v55 = vadd.f32 %v6815_v47, %v11964_v28 }
 0x5dd   : > { %v12088_v59 = vadd.f32 %v7030_v38, %v6806_v43  ;;  %v6817_v40 = vpop.f32.mrf.mxu1 }
 0x5de   : > { %v7032_v48 = vpop.f32.mrf.mxu0 }
 0x5df   : > { %v6820_v34 = vpop.f32.mrf.mxu1 }
 0x5e0   : > { %v7035_v27 = vpop.f32.mrf.mxu0  ;;  %v6821_v24 = vadd.f32 %v6820_v34, %v11971_v39 }
 0x5e1   : > { %v12091_v1 = vadd.f32 %v7035_v27, %v6811_v17  ;;  %v6822_v13 = vpop.f32.mrf.mxu1 }
 0x5e2   : > { %v7037_v18 = vpop.f32.mrf.mxu0 }
 0x5e3   : > { %v6825_v54 = vpop.f32.mrf.mxu1 }
 0x5e4   : > { %v7040_v35 = vpop.f32.mrf.mxu0  ;;  %v6826_v31 = vadd.f32 %v6825_v54, %v11978_v30 }
 0x5e5   : > { %v12094_v8 = vadd.f32 %v7040_v35, %v6816_v55  ;;  %v6827_v50 = vpop.f32.mrf.mxu1 }
 0x5e6   : > { %v7042_v28 = vpop.f32.mrf.mxu0 }
 0x5e7   : > { %v6830_v60 = vpop.f32.mrf.mxu1 }
 0x5e8   : > { %v7045_v32 = vpop.f32.mrf.mxu0  ;;  %v6831_v62 = vadd.f32 %v6830_v60, %v11985_v3 }
 0x5e9   : > { %v12097_v41 = vadd.f32 %v7045_v32, %v6821_v24  ;;  %v6832_v33 = vpop.f32.mrf.mxu1 }
 0x5ea   : > { %v7047_v39 = vpop.f32.mrf.mxu0 }
 0x5eb   : > { %v6835_v22 = vpop.f32.mrf.mxu1 }
 0x5ec   : > { %v7050_v57 = vpop.f32.mrf.mxu0  ;;  %v6836_v12 = vadd.f32 %v6835_v22, %v11992_v29 }
 0x5ed   : > { %v12100_v9 = vadd.f32 %v7050_v57, %v6826_v31  ;;  %v6837_v43 = vpop.f32.mrf.mxu1 }
 0x5ee   : > { %v7052_v30 = vpop.f32.mrf.mxu0 }
 0x5ef   : > { %v6840_v0 = vpop.f32.mrf.mxu1 }
 0x5f0   : > { %v7055_v46 = vpop.f32.mrf.mxu0  ;;  %v6841_v63 = vadd.f32 %v6840_v0, %v12001_v15 }
 0x5f1   : > { %v12103_v61 = vadd.f32 %v7055_v46, %v6831_v62  ;;  %v6842_v17 = vpop.f32.mrf.mxu1 }
 0x5f2   : > { %v7057_v3 = vpop.f32.mrf.mxu0 }
 0x5f3   : > { %v6845_v14 = vpop.f32.mrf.mxu1 }
 0x5f4   : > { %v7060_v21 = vpop.f32.mrf.mxu0  ;;  %v6846_v47 = vadd.f32 %v6845_v14, %v12008_v36 }
 0x5f5   : > { %v12106_v38 = vadd.f32 %v7060_v21, %v6836_v12  ;;  %v6847_v55 = vpop.f32.mrf.mxu1 }
 0x5f6   : > { %v7062_v29 = vpop.f32.mrf.mxu0 }
 0x5f7   : > { %v6850_v40 = vpop.f32.mrf.mxu1 }
 0x5f8   : > { %v7065_v48 = vpop.f32.mrf.mxu0  ;;  %v6851_v34 = vadd.f32 %v6850_v40, %v12013_v42 }
 0x5f9   : > { %v12109_v27 = vadd.f32 %v7065_v48, %v6841_v63  ;;  %v6852_v24 = vpop.f32.mrf.mxu1 }
 0x5fa   : > { %v7067_v15 = vpop.f32.mrf.mxu0 }
 0x5fb   : > { %v6855_v13 = vpop.f32.mrf.mxu1 }
 0x5fc   : > { %v7070_v18 = vpop.f32.mrf.mxu0  ;;  %v6856_v54 = vadd.f32 %v6855_v13, %v12017_v2 }
 0x5fd   : > { %v12112_v35 = vadd.f32 %v7070_v18, %v6846_v47  ;;  %v6857_v31 = vpop.f32.mrf.mxu1 }
 0x5fe   : > { %v7072_v36 = vpop.f32.mrf.mxu0 }
 0x5ff   : > { %v6860_v50 = vpop.f32.mrf.mxu1 }
 0x600   : > { %v7075_v28 = vpop.f32.mrf.mxu0  ;;  %v6861_v60 = vadd.f32 %v6860_v50, %v12021_v58 }
 0x601   : > { %v12115_v32 = vadd.f32 %v7075_v28, %v6851_v34  ;;  %v6862_v62 = vpop.f32.mrf.mxu1 }
 0x602   : > { %v7077_v42 = vpop.f32.mrf.mxu0 }
 0x603   : > { %v6865_v33 = vpop.f32.mrf.mxu1 }
 0x604   : > { %v7080_v39 = vpop.f32.mrf.mxu0  ;;  %v6866_v22 = vadd.f32 %v6865_v33, %v12024_v6 }
 0x605   : > { %v12118_v57 = vadd.f32 %v7080_v39, %v6856_v54  ;;  %v6867_v12 = vpop.f32.mrf.mxu1 }
 0x606   : > { %v7082_v2 = vpop.f32.mrf.mxu0 }
 0x607   : > { %v6870_v43 = vpop.f32.mrf.mxu1 }
 0x608   : > { %v7085_v30 = vpop.f32.mrf.mxu0  ;;  %v6871_v0 = vadd.f32 %v6870_v43, %v12027_v25 }
 0x609   : > { %v12121_v46 = vadd.f32 %v7085_v30, %v6861_v60  ;;  %v6872_v63 = vpop.f32.mrf.mxu1 }
 0x60a   : > { %v7087_v58 = vpop.f32.mrf.mxu0 }
 0x60b   : > { %v6875_v17 = vpop.f32.mrf.mxu1 }
 0x60c   : > { %v7090_v3 = vpop.f32.mrf.mxu0  ;;  %v6876_v14 = vadd.f32 %v6875_v17, %v12030_v10 }
 0x60d   : > { %v12124_v21 = vadd.f32 %v7090_v3, %v6866_v22  ;;  %v6877_v47 = vpop.f32.mrf.mxu1 }
 0x60e   : > { %v7092_v6 = vpop.f32.mrf.mxu0 }
 0x60f   : > { %v6880_v55 = vpop.f32.mrf.mxu1 }
 0x610   : > { %v7095_v29 = vpop.f32.mrf.mxu0  ;;  %v12127_v40 = vadd.f32 %v6880_v55, %v12033_v52 }
 0x611   : > { %v12129_v48 = vadd.f32 %v7095_v29, %v6871_v0  ;;  %v6882_v25 = vpop.f32.mrf.mxu1 }
 0x612   : > { %v7097_v34 = vpop.f32.mrf.mxu0 }
 0x613   : > { %v6885_v24 = vpop.f32.mrf.mxu1 }
 0x614   : > { %v7100_v15 = vpop.f32.mrf.mxu0  ;;  %v6886_v13 = vadd.f32 %v6885_v24, %v12036_v26 }
 0x615   : > { %v12132_v18 = vadd.f32 %v7100_v15, %v6876_v14  ;;  %v6887_v10 = vpop.f32.mrf.mxu1 }
 0x616   : > { %v7102_v54 = vpop.f32.mrf.mxu0 }
 0x617   : > { %v6890_v31 = vpop.f32.mrf.mxu1 }
 0x618   : > { %v12134_v36 = vpop.f32.mrf.mxu0  ;;  %v12137_v50 = vadd.f32 %v6890_v31, %v12039_v37 }
 0x619   : > { %v6892_v52 = vpop.f32.mrf.mxu1 }
 0x61a   : > { %v7107_v28 = vpop.f32.mrf.mxu0 }
 0x61b   : > { %v6895_v60 = vpop.f32.mrf.mxu1 }
 0x61c   : > { %v7110_v62 = vpop.f32.mrf.mxu0  ;;  %v12140_v42 = vadd.f32 %v6895_v60, %v12042_v44 }
 0x61d   : > { %v12142_v33 = vadd.f32 %v7110_v62, %v6886_v13  ;;  %v6897_v26 = vpop.f32.mrf.mxu1 }
 0x61e   : > { %v7112_v39 = vpop.f32.mrf.mxu0 }
 0x61f   : > { %v12144_v22 = vpop.f32.mrf.mxu1 }
 0x620   : > { %v12146_v12 = vpop.f32.mrf.mxu0 }
 0x621   : > { %v6902_v2 = vpop.f32.mrf.mxu1 }
 0x622   : > { %v7117_v43 = vpop.f32.mrf.mxu0 }
 0x623   : > { %v12148_v30 = vpop.f32.mrf.mxu1 }
 0x624   : > { %v12150_v37 = vpop.f32.mrf.mxu0 }
 0x625   : > { %v6907_v0 = vpop.f32.mrf.mxu1 }
 0x626   : > { %v7122_v63 = vpop.f32.mrf.mxu0 }
 0x627   : > { %v12152_v58 = vpop.f32.mrf.mxu1 }
 0x628   : > { %v12154_v44 = vpop.f32.mrf.mxu0 }
 0x629   : > { %v6912_v17 = vpop.f32.mrf.mxu1 }
 0x62a   : > { %v7127_v3 = vpop.f32.mrf.mxu0 }
 0x62b   : > { %v12156_v14 = vpop.f32.mrf.mxu1 }
 0x62c   : > { %v12158_v47 = vpop.f32.mrf.mxu0 }
 0x62d   : > { %v6917_v6 = vpop.f32.mrf.mxu1 }
 0x62e   : > { %v7132_v55 = vpop.f32.mrf.mxu0 }
 0x62f   : > { %v12160_v29 = vpop.f32.mrf.mxu1 }
 0x630   : > { %v12162_v25 = vpop.f32.mrf.mxu0 }
 0x631   : > { %v6922_v34 = vpop.f32.mrf.mxu1 }
 0x632   : > { %v7137_v24 = vpop.f32.mrf.mxu0 }
 0x633   : > { %v12164_v15 = vpop.f32.mrf.mxu1 }
 0x634   : > { %v12166_v13 = vpop.f32.mrf.mxu0 }
 0x635   : > { %v6927_v10 = vpop.f32.mrf.mxu1 }
 0x636   : > { %v7142_v54 = vpop.f32.mrf.mxu0 }
 0x637   : > { %v12168_v31 = vpop.f32.mrf.mxu1 }
 0x638   : > { %v12170_v52 = vpop.f32.mrf.mxu0 }
 0x639   : > { %v6932_v28 = vpop.f32.mrf.mxu1 }
 0x63a   : > { %v7147_v60 = vpop.f32.mrf.mxu0 }
 0x63b   : > { %v12172_v62 = vpop.f32.mrf.mxu1 }
 0x63c   : > { %v12174_v26 = vpop.f32.mrf.mxu0 }
 0x63d   : > { %v6937_v39 = vpop.f32.mrf.mxu1 }
 0x63e   : > { %v7152_v2 = vpop.f32.mrf.mxu0 }
 0x63f   : > { %v12176_v43 = vpop.f32.mrf.mxu1 }
 0x640   : > { %v12178_v0 = vpop.f32.mrf.mxu0 }
 0x641   : > { %v6942_v63 = vpop.f32.mrf.mxu1 }
 0x642   : > { %v7157_v17 = vpop.f32.mrf.mxu0 }
 0x643   : > { %v7977_v6 = vpop.f32.mrf.mxu1 }
 0x644   : > { %v12187_v3 = vpop.f32.mrf.mxu0  ;;  %v7281_v55 = vadd.f32 %v7977_v6, %v12103_v61 }
 0x645   : > { %v7275_v24 = vpop.f32.mrf.mxu1 }
 0x646   : > { %v7162_v34 = vpop.f32.mrf.mxu0  ;;  %7404 = vst.msk [vmem:[%s12185_s29 + $0x48] sm:$0xff] %vm7394_vm1, %v7281_v55  ;;  %v7276_v10 = vadd.f32 %v7275_v24, %v12100_v9 }
 0x647   : > { %v7980_v28 = vpop.f32.mrf.mxu1 }
 0x648   : > { %v12193_v54 = vpop.f32.mrf.mxu0  ;;  %7403 = vst.msk [vmem:[%s12185_s29 + $0x40] sm:$0xff] %vm7394_vm1, %v7276_v10  ;;  %v7291_v60 = vadd.f32 %v7980_v28, %v12109_v27 }
 0x649   : > { %v7285_v2 = vpop.f32.mrf.mxu1 }
 0x64a   : > { %v7167_v39 = vpop.f32.mrf.mxu0  ;;  %7406 = vst.msk [vmem:[%s12185_s29 + $0x58] sm:$0xff] %vm7394_vm1, %v7291_v60  ;;  %v7286_v61 = vadd.f32 %v7285_v2, %v12106_v38 }
 0x64b   : > { %v7983_v17 = vpop.f32.mrf.mxu1 }
 0x64c   : > { %v7965_v63 = vpop.f32.mrf.mxu0  ;;  %7405 = vst.msk [vmem:[%s12185_s29 + $0x50] sm:$0xff] %vm7394_vm1, %v7286_v61  ;;  %v7301_v6 = vadd.f32 %v7983_v17, %v12115_v32 }
 0x64d   : > { %v7241_v9 = vadd.f32 %v7965_v63, %v12079_v23  ;;  %v7295_v27 = vpop.f32.mrf.mxu1 }
 0x64e   : > { %v7235_v55 = vpop.f32.mrf.mxu0  ;;  %7408 = vst.msk [vmem:[%s12185_s29 + $0x68] sm:$0xff] %vm7394_vm1, %v7301_v6  ;;  %v7296_v38 = vadd.f32 %v7295_v27, %v12112_v35 }
 0x64f   : > { %7396 = vst.msk [vmem:[%s12185_s29 + $0x8] sm:$0xff] %vm7394_vm1, %v7241_v9  ;;  %v7236_v34 = vadd.f32 %v7235_v55, %v12076_v56  ;;  %v7986_v10 = vpop.f32.mrf.mxu1  ;;  %v7116_v55 = vadd.f32 %v12146_v12, %v12137_v50 }
 0x650   : > { %v7968_v24 = vpop.f32.mrf.mxu0  ;;  %7407 = vst.msk [vmem:[%s12185_s29 + $0x60] sm:$0xff] %vm7394_vm1, %v7296_v38  ;;  %v7311_v32 = vadd.f32 %v7986_v10, %v12121_v46 }
 0x651   : > { %7395 = vst.msk [vmem:[%s12185_s29] sm:$0xff] %vm7394_vm1, %v7236_v34  ;;  %v7251_v23 = vadd.f32 %v7968_v24, %v12085_v19  ;;  %v7305_v60 = vpop.f32.mrf.mxu1 }
 0x652   : > { %v7245_v28 = vpop.f32.mrf.mxu0  ;;  %7410 = vst.msk [vmem:[%s12185_s29 + $0x78] sm:$0xff] %vm7394_vm1, %v7311_v32  ;;  %v7306_v35 = vadd.f32 %v7305_v60, %v12118_v57 }
 0x653   : > { %7398 = vst.msk [vmem:[%s12185_s29 + $0x18] sm:$0xff] %vm7394_vm1, %v7251_v23  ;;  %v7246_v56 = vadd.f32 %v7245_v28, %v12082_v49  ;;  %v7989_v2 = vpop.f32.mrf.mxu1  ;;  %v7106_v49 = vadd.f32 %v12134_v36, %v12127_v40 }
 0x654   : > { %v7971_v39 = vpop.f32.mrf.mxu0  ;;  %7409 = vst.msk [vmem:[%s12185_s29 + $0x70] sm:$0xff] %vm7394_vm1, %v7306_v35  ;;  %v7321_v46 = vadd.f32 %v7989_v2, %v12129_v48 }
 0x655   : > { %7397 = vst.msk [vmem:[%s12185_s29 + $0x10] sm:$0xff] %vm7394_vm1, %v7246_v56  ;;  %v7261_v19 = vadd.f32 %v7971_v39, %v12091_v1  ;;  %v7315_v63 = vpop.f32.mrf.mxu1 }
 0x656   : > { %v7255_v61 = vpop.f32.mrf.mxu0  ;;  %7412 = vst.msk [vmem:[%s12185_s29 + $0x88] sm:$0xff] %vm7394_vm1, %v7321_v46  ;;  %v7316_v17 = vadd.f32 %v7315_v63, %v12124_v21 }
 0x657   : > { %7400 = vst.msk [vmem:[%s12185_s29 + $0x28] sm:$0xff] %vm7394_vm1, %v7261_v19  ;;  %v7256_v57 = vadd.f32 %v7255_v61, %v12088_v59  ;;  %v7992_v1 = vpop.f32.mrf.mxu1 }
 0x658   : > { %v7974_v9 = vpop.f32.mrf.mxu0  ;;  %7411 = vst.msk [vmem:[%s12185_s29 + $0x80] sm:$0xff] %vm7394_vm1, %v7316_v17  ;;  %v7331_v40 = vadd.f32 %v7992_v1, %v7106_v49 }
 0x659   : > { %7399 = vst.msk [vmem:[%s12185_s29 + $0x20] sm:$0xff] %vm7394_vm1, %v7256_v57  ;;  %v7271_v48 = vadd.f32 %v7974_v9, %v12097_v41  ;;  %v7325_v6 = vpop.f32.mrf.mxu1  ;;  %v6901_v41 = vadd.f32 %v12144_v22, %v12045_v7  ;;  %v6911_v7 = vadd.f32 %v12152_v58, %v12053_v16  ;;  %v6921_v16 = vadd.f32 %v12160_v29, %v12059_v51 }
 0x65a   : > { %v7265_v36 = vpop.f32.mrf.mxu0  ;;  %7414 = vst.msk [vmem:[%s12185_s29 + $0x98] sm:$0xff] %vm7394_vm1, %v7331_v40  ;;  %v7326_v21 = vadd.f32 %v7325_v6, %v12132_v18  ;;  %v7121_v18 = vadd.f32 %v12150_v37, %v12140_v42  ;;  %v6931_v51 = vadd.f32 %v12168_v31, %v12065_v20  ;;  %v6941_v20 = vadd.f32 %v12176_v43, %v12072_v4 }
 0x65b   : > { %7402 = vst.msk [vmem:[%s12185_s29 + $0x38] sm:$0xff] %vm7394_vm1, %v7271_v48  ;;  %v7266_v59 = vadd.f32 %v7265_v36, %v12094_v8  ;;  %v7995_v27 = vpop.f32.mrf.mxu1  ;;  %v7126_v12 = vadd.f32 %v12154_v44, %v6901_v41  ;;  %v6906_v44 = vadd.f32 %v12148_v30, %v12050_v11  ;;  %v7136_v10 = vadd.f32 %v12162_v25, %v6911_v7 }
 0x65c   : > { %7413 = vst.msk [vmem:[%s12185_s29 + $0x90] sm:$0xff] %vm7394_vm1, %v7326_v21  ;;  %v7341_v34 = vadd.f32 %v7995_v27, %v7116_v55  ;;  %v6916_v11 = vadd.f32 %v12156_v14, %v12056_v5  ;;  %v7146_v30 = vadd.f32 %v12170_v52, %v6921_v16  ;;  %v6926_v5 = vadd.f32 %v12164_v15, %v12062_v53 }
 0x65d   : > { %7401 = vst.msk [vmem:[%s12185_s29 + $0x30] sm:$0xff] %vm7394_vm1, %v7266_v59  ;;  %v7335_v50 = vpop.f32.mrf.mxu1  ;;  %v7131_v42 = vadd.f32 %v12158_v47, %v6906_v44  ;;  %v7156_v14 = vadd.f32 %v12178_v0, %v6931_v51  ;;  %v6936_v53 = vadd.f32 %v12172_v62, %v12068_v45  ;;  %v7166_v15 = vadd.f32 %v12193_v54, %v6941_v20 }
 0x65e   : > { %7416 = vst.msk [vmem:[%s12185_s29 + $0xa8] sm:$0xff] %vm7394_vm1, %v7341_v34  ;;  %v7336_v8 = vadd.f32 %v7335_v50, %v12142_v33  ;;  %v7141_v47 = vadd.f32 %v12166_v13, %v6916_v11  ;;  %v7151_v13 = vadd.f32 %v12174_v26, %v6926_v5 }
 0x65f   : > { %v7998_v38 = vpop.f32.mrf.mxu1  ;;  %v7161_v39 = vadd.f32 %v12187_v3, %v6936_v53 }
 0x660   : > { %7415 = vst.msk [vmem:[%s12185_s29 + $0xa0] sm:$0xff] %vm7394_vm1, %v7336_v8  ;;  %v7351_v22 = vadd.f32 %v7998_v38, %v7126_v12 }
 0x661   : > { %v7345_v24 = vpop.f32.mrf.mxu1 }
 0x662   : > { %7418 = vst.msk [vmem:[%s12185_s29 + $0xb8] sm:$0xff] %vm7394_vm1, %v7351_v22  ;;  %v7346_v33 = vadd.f32 %v7345_v24, %v7121_v18 }
 0x663   : > { %v8001_v23 = vpop.f32.mrf.mxu1 }
 0x664   : > { %7417 = vst.msk [vmem:[%s12185_s29 + $0xb0] sm:$0xff] %vm7394_vm1, %v7346_v33  ;;  %v7361_v37 = vadd.f32 %v8001_v23, %v7136_v10 }
 0x665   : > { %v7355_v58 = vpop.f32.mrf.mxu1 }
 0x666   : > { %7420 = vst.msk [vmem:[%s12185_s29 + $0xc8] sm:$0xff] %vm7394_vm1, %v7361_v37  ;;  %v7356_v25 = vadd.f32 %v7355_v58, %v7131_v42 }
 0x667   : > { %v8004_v32 = vpop.f32.mrf.mxu1 }
 0x668   : > { %7419 = vst.msk [vmem:[%s12185_s29 + $0xc0] sm:$0xff] %vm7394_vm1, %v7356_v25  ;;  %v7371_v29 = vadd.f32 %v8004_v32, %v7146_v30 }
 0x669   : > { %v7365_v28 = vpop.f32.mrf.mxu1 }
 0x66a   : > { %7422 = vst.msk [vmem:[%s12185_s29 + $0xd8] sm:$0xff] %vm7394_vm1, %v7371_v29  ;;  %v7366_v52 = vadd.f32 %v7365_v28, %v7141_v47 }
 0x66b   : > { %v8007_v60 = vpop.f32.mrf.mxu1 }
 0x66c   : > { %7421 = vst.msk [vmem:[%s12185_s29 + $0xd0] sm:$0xff] %vm7394_vm1, %v7366_v52  ;;  %v7381_v31 = vadd.f32 %v8007_v60, %v7156_v14 }
 0x66d   : > { %v7375_v56 = vpop.f32.mrf.mxu1 }
 0x66e   : > { %7424 = vst.msk [vmem:[%s12185_s29 + $0xe8] sm:$0xff] %vm7394_vm1, %v7381_v31  ;;  %v7376_v0 = vadd.f32 %v7375_v56, %v7151_v13 }
 0x66f   : > { %v8010_v35 = vpop.f32.mrf.mxu1 }
 0x670   : > { %7423 = vst.msk [vmem:[%s12185_s29 + $0xe0] sm:$0xff] %vm7394_vm1, %v7376_v0  ;;  %v7391_v26 = vadd.f32 %v8010_v35, %v7166_v15 }
 0x671   : > { %v7385_v2 = vpop.f32.mrf.mxu1 }
 0x672   : > { %7426 = vst.msk [vmem:[%s12185_s29 + $0xf8] sm:$0xff] %vm7394_vm1, %v7391_v26  ;;  %v7386_v4 = vadd.f32 %v7385_v2, %v7161_v39 }
 0x674   : > { %7425 = vst.msk [vmem:[%s12185_s29 + $0xf0] sm:$0xff] %vm7394_vm1, %v7386_v4 }
 0x675 PF: > { %s19_s30 = sadd.s32 1, %s8065_s30  }
 0x676   : > { %p16_p4 = scmp.ge.s32.totalorder %s19_s30, 4  }
 0x678   :  { %18 = sbr.rel (!%p16_p4) target bundleno = 1 (0x1), region = 92 }

</bundles_post_ra>
